<compile_context>
chip_gen: v5e
topology: v5e:2x2
jax: 0.10.0
libtpu: 0.0.40
codegen_flags: <defaults>
</compile_context>

<pallas_src>
import functools

import jax
import jax.numpy as jnp
from jax.experimental import pallas as pl
from jax.experimental.pallas import tpu as pltpu

# ----- synthetic "Qwen2.5-VL" config (scaled way down, MXU/vreg friendly) ----
HIDDEN = 256
NUM_HEADS = 2
HEAD_DIM = HIDDEN // NUM_HEADS        # 128 -> lane-aligned head slices
MLP_HIDDEN = 512
NUM_LAYERS = 2
SEQ_LEN = 32
BATCH = 2
VOCAB = 512
MAX_LENGTH = 32                       # analogue of max_length=640
OFFSET = 8                            # analogue of the `217` prefix-token skip
RMS_EPS = 1e-6


# =============================== fused kernel ================================
def qwen_stack_kernel(x0_ref, cos_ref, sin_ref, bias_ref, lnf_ref,
                      ln1_ref, wqkv_ref, bqkv_ref, wo_ref,
                      ln2_ref, wgu_ref, wd_ref,
                      emb_ref,                                   # output
                      acc_ref, attn_ref, qkv_ref, q_ref, k_ref, v_ref,  # scratch
                      *, batch, n_valid, offset):
    l = pl.program_id(0)
    num_layers = pl.num_programs(0)
    bs, hidden = x0_ref.shape                     # (B*S, H)
    head_dim = cos_ref.shape[1]
    num_heads = hidden // head_dim
    seq = bs // batch
    half = head_dim // 2
    mlp_hidden = wd_ref.shape[0]

    @pl.when(l == 0)
    def _init():
        acc_ref[...] = x0_ref[...].astype(jnp.float32)
        # Output block stays VMEM-resident across the whole layer grid; zero the
        # padded tail once here (overlaps layer-0 compute) so _finalize can do a
        # partial, valid-rows-only store.  Pallas does not zero output blocks.
        emb_ref[...] = jnp.zeros(emb_ref.shape, emb_ref.dtype)

    x = acc_ref[...]                              # (B*S, H) f32 residual
    cos = cos_ref[...]                            # (B*S, HD) f32, pre-tiled over batch
    sin = sin_ref[...]                            # (B*S, HD) f32, sign-folded

    def rmsnorm(v, w_ref, out_bf16=True):
        var = jnp.mean(v * v, axis=-1, keepdims=True)
        nv = v * jax.lax.rsqrt(var + RMS_EPS) * w_ref[...].astype(jnp.float32)
        return nv.astype(jnp.bfloat16) if out_bf16 else nv

    # ------------------------- self-attention block -------------------------
    h = rmsnorm(x, ln1_ref)                       # bf16 into the MXU
    qkv = jnp.dot(h, wqkv_ref[...], preferred_element_type=jnp.float32) \
        + bqkv_ref[...].astype(jnp.float32)       # (B*S, 3H) f32, one wide matmul
    qkv_ref[...] = qkv.astype(jnp.bfloat16)       # stage bf16 -> f32 live range dies here

    # Re-stage q/k/v head-major (head, batch, seq) rows with RoPE folded in, so the
    # score matmul below is one lane-dense (NH*B*S, NH*B*S) tile.
    for hh in range(num_heads):
        rows = slice(hh * bs, (hh + 1) * bs)
        q_h = qkv_ref[:, hh * head_dim:(hh + 1) * head_dim].astype(jnp.float32)
        k_h = qkv_ref[:, hidden + hh * head_dim:
                         hidden + (hh + 1) * head_dim].astype(jnp.float32)
        # rotate_half == roll-by-half times sign-folded sin (XLU slot); whole batch at once.
        q_ref[rows, :] = (q_h * cos + pltpu.roll(q_h, shift=half, axis=1) * sin
                          ).astype(jnp.bfloat16)
        k_ref[rows, :] = (k_h * cos + pltpu.roll(k_h, shift=half, axis=1) * sin
                          ).astype(jnp.bfloat16)
        v_ref[rows, :] = qkv_ref[:, 2 * hidden + hh * head_dim:
                                    2 * hidden + (hh + 1) * head_dim]

    scale = 1.0 / (head_dim ** 0.5)
    # Single lane-dense score tile over ALL heads & batches; bias_ref holds the
    # precomputed block-diagonal causal mask as an additive 0 / -1e30 term.
    s = jax.lax.dot_general(q_ref[...], k_ref[...], (((1,), (1,)), ((), ())),
                            preferred_element_type=jnp.float32) * scale + bias_ref[...]
    s = s - jnp.max(s, axis=-1, keepdims=True)
    p = jnp.exp(s)
    p = p * pl.reciprocal(jnp.sum(p, axis=-1, keepdims=True), approx=True)
    ctx = jnp.dot(p.astype(jnp.bfloat16), v_ref[...],
                  preferred_element_type=jnp.float32)      # (NH*B*S, HD) f32

    # Scatter head outputs back to (B*S, H): one lane-aligned column write per head.
    for hh in range(num_heads):
        attn_ref[:, hh * head_dim:(hh + 1) * head_dim] = \
            ctx[hh * bs:(hh + 1) * bs, :].astype(jnp.bfloat16)

    x = x + jnp.dot(attn_ref[...], wo_ref[...], preferred_element_type=jnp.float32)

    # ----------------------------- SwiGLU MLP --------------------------------
    h2 = rmsnorm(x, ln2_ref)
    gu = jnp.dot(h2, wgu_ref[...], preferred_element_type=jnp.float32)  # fused gate/up
    g = gu[:, :mlp_hidden]
    u = gu[:, mlp_hidden:]
    m = (g * jax.nn.sigmoid(g)) * u
    x = x + jnp.dot(m.astype(jnp.bfloat16), wd_ref[...],
                    preferred_element_type=jnp.float32)

    acc_ref[...] = x                              # carry residual to the next layer

    # ------------ final RMSNorm + prefix-drop (valid rows only) --------------
    @pl.when(l == num_layers - 1)
    def _finalize():
        hf = rmsnorm(x, lnf_ref, out_bf16=False)  # (B*S, H) f32
        if n_valid > 0:
            for b in range(batch):
                start = b * seq + offset          # sublane-aligned static slice
                emb_ref[b, :n_valid, :] = hf[start:start + n_valid, :].astype(emb_ref.dtype)


def _shared_spec(shape):
    nd = len(shape)
    return pl.BlockSpec(tuple(shape), lambda l, _nd=nd: (0,) * _nd)


def _layer_spec(shape):
    nd = len(shape)
    return pl.BlockSpec((None,) + tuple(shape[1:]),
                        lambda l, _nd=nd: (l,) + (0,) * (_nd - 1))


# ------------------------------ forward wrapper ------------------------------
def qwen25vl_embedder_forward(input_ids, params,
                              max_length=MAX_LENGTH, offset=OFFSET):
    B, S = input_ids.shape
    H = HIDDEN
    BS = B * S
    n_valid = max(0, min(max_length, S - offset))     # guard offset >= S

    # TODO(synk): token-id construction (tokenizer/processor) is glue; the
    #             data-dependent embedding gather stays in XLA.
    x0 = jnp.take(params["embed"], input_ids, axis=0).reshape(BS, H)  # bf16

    # Layer-invariant tensors precomputed ONCE (not per layer inside the kernel):
    cos_bs = jnp.tile(params["cos"], (B, 1))          # (B*S, HD) f32
    sin_bs = jnp.tile(params["sin_signed"], (B, 1))   # (B*S, HD) f32, sign-folded
    total = NUM_HEADS * BS                            # rows ordered (head, batch, seq)
    r = jnp.arange(total, dtype=jnp.int32)
    same_blk = (r[:, None] // S) == (r[None, :] // S)     # same (head, batch)
    causal = (r[:, None] % S) >= (r[None, :] % S)
    attn_bias = jnp.where(same_blk & causal, 0.0, -1e30).astype(jnp.float32)

    layer_names = ("ln1", "wqkv", "bqkv", "wo", "ln2", "wgu", "wd")
    in_arrays = ([x0, cos_bs, sin_bs, attn_bias, params["ln_f"]]
                 + [params[n] for n in layer_names])
    in_specs = ([_shared_spec(x0.shape),
                 _shared_spec(cos_bs.shape),
                 _shared_spec(sin_bs.shape),
                 _shared_spec(attn_bias.shape),
                 _shared_spec(params["ln_f"].shape)]
                + [_layer_spec(params[n].shape) for n in layer_names])

    kern = functools.partial(qwen_stack_kernel, batch=B, n_valid=n_valid,
                             offset=offset)

    embs = pl.pallas_call(
        kern,
        grid=(NUM_LAYERS,),
        in_specs=in_specs,
        out_specs=pl.BlockSpec((B, max_length, H), lambda l: (0, 0, 0)),
        out_shape=jax.ShapeDtypeStruct((B, max_length, H), jnp.bfloat16),
        scratch_shapes=[
            pltpu.VMEM((BS, H), jnp.float32),                      # residual carry
            pltpu.VMEM((BS, H), jnp.bfloat16),                     # attention context
            pltpu.VMEM((BS, 3 * H), jnp.bfloat16),                 # staged post-bias QKV
            pltpu.VMEM((NUM_HEADS * BS, HEAD_DIM), jnp.bfloat16),  # q (head-major, RoPE'd)
            pltpu.VMEM((NUM_HEADS * BS, HEAD_DIM), jnp.bfloat16),  # k (head-major, RoPE'd)
            pltpu.VMEM((NUM_HEADS * BS, HEAD_DIM), jnp.bfloat16),  # v (head-major)
        ],
        compiler_params=pltpu.CompilerParams(
            dimension_semantics=("arbitrary",),       # layers are sequential
            vmem_limit_bytes=64 * 1024 * 1024),
    )(*in_arrays)

    masks = jnp.broadcast_to(
        (jnp.arange(max_length, dtype=jnp.int32)[None, :] < n_valid).astype(jnp.int32),
        (B, max_length))
    return embs, masks


# -------------------------------- parameters ---------------------------------
def init_params(key):
    ks = jax.random.split(key, 12)

    def w(k, shape, scale=0.02):
        return (jax.random.normal(k, shape, jnp.float32) * scale).astype(jnp.bfloat16)

    L, H, M = NUM_LAYERS, HIDDEN, MLP_HIDDEN
    wq, wk, wv = w(ks[1], (L, H, H)), w(ks[3], (L, H, H)), w(ks[5], (L, H, H))
    bq, bk, bv = w(ks[2], (L, 1, H)), w(ks[4], (L, 1, H)), w(ks[6], (L, 1, H))
    wg, wu = w(ks[8], (L, H, M)), w(ks[9], (L, H, M))
    params = {
        "embed": w(ks[0], (VOCAB, H)),
        "ln_f": jnp.ones((1, H), jnp.bfloat16),
        "ln1": jnp.ones((L, 1, H), jnp.bfloat16),
        "ln2": jnp.ones((L, 1, H), jnp.bfloat16),
        # fused weights — concatenation done here, not in the kernel
        "wqkv": jnp.concatenate([wq, wk, wv], axis=-1),   # (L, H, 3H)
        "bqkv": jnp.concatenate([bq, bk, bv], axis=-1),   # (L, 1, 3H)
        "wo": w(ks[7], (L, H, H)),
        "wgu": jnp.concatenate([wg, wu], axis=-1),        # (L, H, 2M)
        "wd": w(ks[10], (L, M, H)),
    }
    inv_freq = 1.0 / (10000.0 ** (jnp.arange(0, HEAD_DIM, 2, dtype=jnp.float32)
                                  / HEAD_DIM))
    pos = jnp.arange(SEQ_LEN, dtype=jnp.float32)
    ang = pos[:, None] * inv_freq[None, :]                        # (S, HD/2)
    cos = jnp.concatenate([jnp.cos(ang), jnp.cos(ang)], axis=-1)  # (S, HD)
    sin = jnp.concatenate([jnp.sin(ang), jnp.sin(ang)], axis=-1)
    sign = jnp.concatenate([-jnp.ones((HEAD_DIM // 2,), jnp.float32),
                            jnp.ones((HEAD_DIM // 2,), jnp.float32)])
    params["cos"] = cos
    params["sin_signed"] = sin * sign[None, :]   # folded sign for roll-based RoPE
    return params


# ------------------------- plain-JAX reference (f32) -------------------------
def reference_forward(input_ids, params):
    B, S = input_ids.shape
    H, M = HIDDEN, MLP_HIDDEN
    x = jnp.take(params["embed"], input_ids, axis=0).astype(jnp.float32)
    cos4 = params["cos"][None, None, :, :]
    sin4 = params["sin_signed"][None, None, :, :]

    def rms(v, wgt):
        var = jnp.mean(v * v, axis=-1, keepdims=True)
        return v * jax.lax.rsqrt(var + RMS_EPS) * wgt.astype(jnp.float32)

    for l in range(NUM_LAYERS):
        h = rms(x, params["ln1"][l])
        qkv = h @ params["wqkv"][l].astype(jnp.float32) \
            + params["bqkv"][l].astype(jnp.float32)
        q, k, v = qkv[..., :H], qkv[..., H:2 * H], qkv[..., 2 * H:]

        def heads(t):
            return t.reshape(B, S, NUM_HEADS, HEAD_DIM).transpose(0, 2, 1, 3)

        qh, kh, vh = heads(q), heads(k), heads(v)
        qh = qh * cos4 + jnp.roll(qh, HEAD_DIM // 2, axis=-1) * sin4
        kh = kh * cos4 + jnp.roll(kh, HEAD_DIM // 2, axis=-1) * sin4
        scores = jnp.einsum("bhqd,bhkd->bhqk", qh, kh) / (HEAD_DIM ** 0.5)
        causal = jnp.tril(jnp.ones((S, S), bool))
        scores = jnp.where(causal, scores, -1e30)
        p = jax.nn.softmax(scores, axis=-1)
        ctx = jnp.einsum("bhqk,bhkd->bhqd", p, vh)
        attn = ctx.transpose(0, 2, 1, 3).reshape(B, S, HIDDEN)
        x = x + attn @ params["wo"][l].astype(jnp.float32)

        h2 = rms(x, params["ln2"][l])
        gu = h2 @ params["wgu"][l].astype(jnp.float32)
        g, u = gu[..., :M], gu[..., M:]
        x = x + ((g * jax.nn.sigmoid(g)) * u) @ params["wd"][l].astype(jnp.float32)

    hf = rms(x, params["ln_f"])
    n_valid = max(0, min(MAX_LENGTH, S - OFFSET))
    emb = jnp.zeros((B, MAX_LENGTH, HIDDEN), jnp.float32)
    emb = emb.at[:, :n_valid].set(hf[:, OFFSET:OFFSET + n_valid])
    mask = jnp.broadcast_to(
        (jnp.arange(MAX_LENGTH)[None, :] < n_valid).astype(jnp.int32),
        (B, MAX_LENGTH))
    return emb, mask


if __name__ == "__main__":
    key = jax.random.PRNGKey(0)
    params = init_params(key)
    input_ids = jax.random.randint(jax.random.fold_in(key, 123),
                                   (BATCH, SEQ_LEN), 1, VOCAB, dtype=jnp.int32)

    embs, masks = qwen25vl_embedder_forward(input_ids, params)
    jax.block_until_ready((embs, masks))

    n_valid = min(MAX_LENGTH, SEQ_LEN - OFFSET)
    assert embs.shape == (BATCH, MAX_LENGTH, HIDDEN) and embs.dtype == jnp.bfloat16
    assert masks.shape == (BATCH, MAX_LENGTH) and masks.dtype == jnp.int32
    assert int(masks.sum()) == BATCH * n_valid
    assert float(jnp.abs(embs[:, n_valid:].astype(jnp.float32)).sum()) == 0.0

    # Error budget: bf16 inputs at every MXU boundary + approx softmax reciprocal
    # give ~1e-2 relative error on O(1) RMS-normalized outputs.
    ref_emb, ref_mask = reference_forward(input_ids, params)
    err = float(jnp.max(jnp.abs(embs.astype(jnp.float32) - ref_emb)))
    assert err < 0.25, f"max abs err vs reference: {err}"
    assert bool(jnp.all(ref_mask == masks))

    print("KERNEL_OK")
</pallas_src>

<mosaic_0001>
module attributes {stable_mosaic.version = 11 : i64} {
  func.func @qwen_stack_kernel(%arg0: i32, %arg1: memref<64x256xbf16, #tpu.memory_space<vmem>>, %arg2: memref<64x128xf32, #tpu.memory_space<vmem>>, %arg3: memref<64x128xf32, #tpu.memory_space<vmem>>, %arg4: memref<128x128xf32, #tpu.memory_space<vmem>>, %arg5: memref<1x256xbf16, #tpu.memory_space<vmem>>, %arg6: memref<1x1x256xbf16, #tpu.memory_space<vmem>>, %arg7: memref<1x256x768xbf16, #tpu.memory_space<vmem>>, %arg8: memref<1x1x768xbf16, #tpu.memory_space<vmem>>, %arg9: memref<1x256x256xbf16, #tpu.memory_space<vmem>>, %arg10: memref<1x1x256xbf16, #tpu.memory_space<vmem>>, %arg11: memref<1x256x1024xbf16, #tpu.memory_space<vmem>>, %arg12: memref<1x512x256xbf16, #tpu.memory_space<vmem>>, %arg13: memref<2x32x256xbf16, #tpu.memory_space<vmem>>, %arg14: memref<64x256xf32, #tpu.memory_space<vmem>>, %arg15: memref<64x256xbf16, #tpu.memory_space<vmem>>, %arg16: memref<64x768xbf16, #tpu.memory_space<vmem>>, %arg17: memref<128x128xbf16, #tpu.memory_space<vmem>>, %arg18: memref<128x128xbf16, #tpu.memory_space<vmem>>, %arg19: memref<128x128xbf16, #tpu.memory_space<vmem>>) attributes {dimension_semantics = [#tpu.dimension_semantics<arbitrary>], iteration_bounds = array<i64: 2>, scalar_prefetch = 0 : i64, scratch_operands = 6 : i64, tpu.core_type = #tpu.core_type<tc>, window_params = [{pipeline_mode = #tpu.pipeline_mode<synchronous>, transform_indices = @transform_0, window_bounds = array<i64: 64, 256>}, {pipeline_mode = #tpu.pipeline_mode<synchronous>, transform_indices = @transform_1, window_bounds = array<i64: 64, 128>}, {pipeline_mode = #tpu.pipeline_mode<synchronous>, transform_indices = @transform_2, window_bounds = array<i64: 64, 128>}, {pipeline_mode = #tpu.pipeline_mode<synchronous>, transform_indices = @transform_3, window_bounds = array<i64: 128, 128>}, {pipeline_mode = #tpu.pipeline_mode<synchronous>, transform_indices = @transform_4, window_bounds = array<i64: 1, 256>}, {transform_indices = @transform_5, window_bounds = array<i64: 1, 1, 256>}, {transform_indices = @transform_6, window_bounds = array<i64: 1, 256, 768>}, {transform_indices = @transform_7, window_bounds = array<i64: 1, 1, 768>}, {transform_indices = @transform_8, window_bounds = array<i64: 1, 256, 256>}, {transform_indices = @transform_9, window_bounds = array<i64: 1, 1, 256>}, {transform_indices = @transform_10, window_bounds = array<i64: 1, 256, 1024>}, {transform_indices = @transform_11, window_bounds = array<i64: 1, 512, 256>}, {pipeline_mode = #tpu.pipeline_mode<synchronous>, transform_indices = @transform_12, window_bounds = array<i64: 2, 32, 256>}]} {
    %c0_i32 = arith.constant 0 : i32
    %0 = arith.cmpi eq, %arg0, %c0_i32 : i32
    %1 = arith.extui %0 : i1 to i32
    %c0_i32_0 = arith.constant 0 : i32
    %2 = arith.cmpi ne, %1, %c0_i32_0 : i32
    scf.if %2 {
      %c0_82 = arith.constant 0 : index
      %c0_83 = arith.constant 0 : index
      %136 = vector.load %arg1[%c0_82, %c0_83] : memref<64x256xbf16, #tpu.memory_space<vmem>>, vector<64x256xbf16>
      %137 = arith.extf %136 : vector<64x256xbf16> to vector<64x256xf32>
      %c0_84 = arith.constant 0 : index
      %c0_85 = arith.constant 0 : index
      %138 = vector.load %arg14[%c0_84, %c0_85] : memref<64x256xf32, #tpu.memory_space<vmem>>, vector<64x256xf32>
      tpu.vector_store %arg14[%c0_84, %c0_85], %137 {strides = array<i32>} : memref<64x256xf32, #tpu.memory_space<vmem>>, vector<64x256xf32>,
      %cst_86 = arith.constant 0.000000e+00 : bf16
      %139 = vector.broadcast %cst_86 : bf16 to vector<2x32x256xbf16>
      %c0_87 = arith.constant 0 : index
      %c0_88 = arith.constant 0 : index
      %c0_89 = arith.constant 0 : index
      %140 = vector.load %arg13[%c0_87, %c0_88, %c0_89] : memref<2x32x256xbf16, #tpu.memory_space<vmem>>, vector<2x32x256xbf16>
      tpu.vector_store %arg13[%c0_87, %c0_88, %c0_89], %139 {strides = array<i32>} : memref<2x32x256xbf16, #tpu.memory_space<vmem>>, vector<2x32x256xbf16>,
    } else {
    }
    %c0 = arith.constant 0 : index
    %c0_1 = arith.constant 0 : index
    %3 = vector.load %arg14[%c0, %c0_1] : memref<64x256xf32, #tpu.memory_space<vmem>>, vector<64x256xf32>
    %c0_2 = arith.constant 0 : index
    %c0_3 = arith.constant 0 : index
    %4 = vector.load %arg2[%c0_2, %c0_3] : memref<64x128xf32, #tpu.memory_space<vmem>>, vector<64x128xf32>
    %c0_4 = arith.constant 0 : index
    %c0_5 = arith.constant 0 : index
    %5 = vector.load %arg3[%c0_4, %c0_5] : memref<64x128xf32, #tpu.memory_space<vmem>>, vector<64x128xf32>
    %6 = arith.mulf %3, %3 : vector<64x256xf32>
    %cst = arith.constant dense<0.000000e+00> : vector<64xf32>
    %7 = vector.multi_reduction <add>, %6, %cst [1] : vector<64x256xf32> to vector<64xf32>
    %8 = vector.shape_cast %7 : vector<64xf32> to vector<64x1xf32>
    %cst_6 = arith.constant 2.560000e+02 : f32
    %9 = vector.broadcast %cst_6 : f32 to vector<64x1xf32>
    %10 = arith.divf %8, %9 : vector<64x1xf32>
    %cst_7 = arith.constant 9.99999997E-7 : f32
    %11 = vector.broadcast %cst_7 : f32 to vector<64x1xf32>
    %12 = arith.addf %10, %11 : vector<64x1xf32>
    %13 = math.rsqrt %12 : vector<64x1xf32>
    %14 = vector.broadcast %13 : vector<64x1xf32> to vector<64x256xf32>
    %15 = arith.mulf %3, %14 : vector<64x256xf32>
    %c0_8 = arith.constant 0 : index
    %c0_9 = arith.constant 0 : index
    %c0_10 = arith.constant 0 : index
    %16 = vector.load %arg6[%c0_8, %c0_9, %c0_10] : memref<1x1x256xbf16, #tpu.memory_space<vmem>>, vector<1x1x256xbf16>
    %17 = vector.shape_cast %16 : vector<1x1x256xbf16> to vector<1x256xbf16>
    %18 = arith.extf %17 : vector<1x256xbf16> to vector<1x256xf32>
    %19 = vector.broadcast %18 : vector<1x256xf32> to vector<64x256xf32>
    %20 = arith.mulf %15, %19 : vector<64x256xf32>
    %21 = arith.truncf %20 : vector<64x256xf32> to vector<64x256xbf16>
    %c0_11 = arith.constant 0 : index
    %c0_12 = arith.constant 0 : index
    %c0_13 = arith.constant 0 : index
    %22 = vector.load %arg7[%c0_11, %c0_12, %c0_13] : memref<1x256x768xbf16, #tpu.memory_space<vmem>>, vector<1x256x768xbf16>
    %23 = vector.shape_cast %22 : vector<1x256x768xbf16> to vector<256x768xbf16>
    %cst_14 = arith.constant dense<0.000000e+00> : vector<64x768xf32>
    %24 = tpu.matmul %21, %23, %cst_14 {dimension_numbers = #tpu.dot_dimension_numbers<[1], [0], [0], [1], [0, 0, 1, 1], [], []>} : vector<64x256xbf16>, vector<256x768xbf16>, vector<64x768xf32> -> vector<64x768xf32>
    %c0_15 = arith.constant 0 : index
    %c0_16 = arith.constant 0 : index
    %c0_17 = arith.constant 0 : index
    %25 = vector.load %arg8[%c0_15, %c0_16, %c0_17] : memref<1x1x768xbf16, #tpu.memory_space<vmem>>, vector<1x1x768xbf16>
    %26 = vector.shape_cast %25 : vector<1x1x768xbf16> to vector<1x768xbf16>
    %27 = arith.extf %26 : vector<1x768xbf16> to vector<1x768xf32>
    %28 = vector.broadcast %27 : vector<1x768xf32> to vector<64x768xf32>
    %29 = arith.addf %24, %28 : vector<64x768xf32>
    %30 = arith.truncf %29 : vector<64x768xf32> to vector<64x768xbf16>
    %c0_18 = arith.constant 0 : index
    %c0_19 = arith.constant 0 : index
    %31 = vector.load %arg16[%c0_18, %c0_19] : memref<64x768xbf16, #tpu.memory_space<vmem>>, vector<64x768xbf16>
    tpu.vector_store %arg16[%c0_18, %c0_19], %30 {strides = array<i32>} : memref<64x768xbf16, #tpu.memory_space<vmem>>, vector<64x768xbf16>,
    %c0_20 = arith.constant 0 : index
    %c0_21 = arith.constant 0 : index
    %32 = vector.load %arg16[%c0_20, %c0_21] : memref<64x768xbf16, #tpu.memory_space<vmem>>, vector<64x128xbf16>
    %33 = arith.extf %32 : vector<64x128xbf16> to vector<64x128xf32>
    %c0_22 = arith.constant 0 : index
    %c256 = arith.constant 256 : index
    %34 = vector.load %arg16[%c0_22, %c256] : memref<64x768xbf16, #tpu.memory_space<vmem>>, vector<64x128xbf16>
    %35 = arith.extf %34 : vector<64x128xbf16> to vector<64x128xf32>
    %36 = arith.mulf %33, %4 : vector<64x128xf32>
    %c64_i32 = arith.constant 64 : i32
    %37 = tpu.dynamic_rotate %33 by %c64_i32 dim 1 : vector<64x128xf32>, i32 -> vector<64x128xf32>
    %38 = arith.mulf %37, %5 : vector<64x128xf32>
    %39 = arith.addf %36, %38 : vector<64x128xf32>
    %40 = arith.truncf %39 : vector<64x128xf32> to vector<64x128xbf16>
    %c0_23 = arith.constant 0 : index
    %c0_24 = arith.constant 0 : index
    %41 = vector.load %arg17[%c0_23, %c0_24] : memref<128x128xbf16, #tpu.memory_space<vmem>>, vector<64x128xbf16>
    tpu.vector_store %arg17[%c0_23, %c0_24], %40 {strides = array<i32>} : memref<128x128xbf16, #tpu.memory_space<vmem>>, vector<64x128xbf16>,
    %42 = arith.mulf %35, %4 : vector<64x128xf32>
    %c64_i32_25 = arith.constant 64 : i32
    %43 = tpu.dynamic_rotate %35 by %c64_i32_25 dim 1 : vector<64x128xf32>, i32 -> vector<64x128xf32>
    %44 = arith.mulf %43, %5 : vector<64x128xf32>
    %45 = arith.addf %42, %44 : vector<64x128xf32>
    %46 = arith.truncf %45 : vector<64x128xf32> to vector<64x128xbf16>
    %c0_26 = arith.constant 0 : index
    %c0_27 = arith.constant 0 : index
    %47 = vector.load %arg18[%c0_26, %c0_27] : memref<128x128xbf16, #tpu.memory_space<vmem>>, vector<64x128xbf16>
    tpu.vector_store %arg18[%c0_26, %c0_27], %46 {strides = array<i32>} : memref<128x128xbf16, #tpu.memory_space<vmem>>, vector<64x128xbf16>,
    %c0_28 = arith.constant 0 : index
    %c512 = arith.constant 512 : index
    %48 = vector.load %arg16[%c0_28, %c512] : memref<64x768xbf16, #tpu.memory_space<vmem>>, vector<64x128xbf16>
    %c0_29 = arith.constant 0 : index
    %c0_30 = arith.constant 0 : index
    %49 = vector.load %arg19[%c0_29, %c0_30] : memref<128x128xbf16, #tpu.memory_space<vmem>>, vector<64x128xbf16>
    tpu.vector_store %arg19[%c0_29, %c0_30], %48 {strides = array<i32>} : memref<128x128xbf16, #tpu.memory_space<vmem>>, vector<64x128xbf16>,
    %c0_31 = arith.constant 0 : index
    %c128 = arith.constant 128 : index
    %50 = vector.load %arg16[%c0_31, %c128] : memref<64x768xbf16, #tpu.memory_space<vmem>>, vector<64x128xbf16>
    %51 = arith.extf %50 : vector<64x128xbf16> to vector<64x128xf32>
    %c0_32 = arith.constant 0 : index
    %c384 = arith.constant 384 : index
    %52 = vector.load %arg16[%c0_32, %c384] : memref<64x768xbf16, #tpu.memory_space<vmem>>, vector<64x128xbf16>
    %53 = arith.extf %52 : vector<64x128xbf16> to vector<64x128xf32>
    %54 = arith.mulf %51, %4 : vector<64x128xf32>
    %c64_i32_33 = arith.constant 64 : i32
    %55 = tpu.dynamic_rotate %51 by %c64_i32_33 dim 1 : vector<64x128xf32>, i32 -> vector<64x128xf32>
    %56 = arith.mulf %55, %5 : vector<64x128xf32>
    %57 = arith.addf %54, %56 : vector<64x128xf32>
    %58 = arith.truncf %57 : vector<64x128xf32> to vector<64x128xbf16>
    %c64 = arith.constant 64 : index
    %c0_34 = arith.constant 0 : index
    %59 = vector.load %arg17[%c64, %c0_34] : memref<128x128xbf16, #tpu.memory_space<vmem>>, vector<64x128xbf16>
    tpu.vector_store %arg17[%c64, %c0_34], %58 {strides = array<i32>} : memref<128x128xbf16, #tpu.memory_space<vmem>>, vector<64x128xbf16>,
    %60 = arith.mulf %53, %4 : vector<64x128xf32>
    %c64_i32_35 = arith.constant 64 : i32
    %61 = tpu.dynamic_rotate %53 by %c64_i32_35 dim 1 : vector<64x128xf32>, i32 -> vector<64x128xf32>
    %62 = arith.mulf %61, %5 : vector<64x128xf32>
    %63 = arith.addf %60, %62 : vector<64x128xf32>
    %64 = arith.truncf %63 : vector<64x128xf32> to vector<64x128xbf16>
    %c64_36 = arith.constant 64 : index
    %c0_37 = arith.constant 0 : index
    %65 = vector.load %arg18[%c64_36, %c0_37] : memref<128x128xbf16, #tpu.memory_space<vmem>>, vector<64x128xbf16>
    tpu.vector_store %arg18[%c64_36, %c0_37], %64 {strides = array<i32>} : memref<128x128xbf16, #tpu.memory_space<vmem>>, vector<64x128xbf16>,
    %c0_38 = arith.constant 0 : index
    %c640 = arith.constant 640 : index
    %66 = vector.load %arg16[%c0_38, %c640] : memref<64x768xbf16, #tpu.memory_space<vmem>>, vector<64x128xbf16>
    %c64_39 = arith.constant 64 : index
    %c0_40 = arith.constant 0 : index
    %67 = vector.load %arg19[%c64_39, %c0_40] : memref<128x128xbf16, #tpu.memory_space<vmem>>, vector<64x128xbf16>
    tpu.vector_store %arg19[%c64_39, %c0_40], %66 {strides = array<i32>} : memref<128x128xbf16, #tpu.memory_space<vmem>>, vector<64x128xbf16>,
    %c0_41 = arith.constant 0 : index
    %c0_42 = arith.constant 0 : index
    %68 = vector.load %arg17[%c0_41, %c0_42] : memref<128x128xbf16, #tpu.memory_space<vmem>>, vector<128x128xbf16>
    %c0_43 = arith.constant 0 : index
    %c0_44 = arith.constant 0 : index
    %69 = vector.load %arg18[%c0_43, %c0_44] : memref<128x128xbf16, #tpu.memory_space<vmem>>, vector<128x128xbf16>
    %cst_45 = arith.constant dense<0.000000e+00> : vector<128x128xf32>
    %70 = tpu.matmul %68, %69, %cst_45 {dimension_numbers = #tpu.dot_dimension_numbers<[1], [1], [0], [0], [0, 0, 1, 0], [], []>} : vector<128x128xbf16>, vector<128x128xbf16>, vector<128x128xf32> -> vector<128x128xf32>
    %cst_46 = arith.constant 0.0883883461 : f32
    %71 = vector.broadcast %cst_46 : f32 to vector<128x128xf32>
    %72 = arith.mulf %70, %71 : vector<128x128xf32>
    %c0_47 = arith.constant 0 : index
    %c0_48 = arith.constant 0 : index
    %73 = vector.load %arg4[%c0_47, %c0_48] : memref<128x128xf32, #tpu.memory_space<vmem>>, vector<128x128xf32>
    %74 = arith.addf %72, %73 : vector<128x128xf32>
    %cst_49 = arith.constant dense<0xFF800000> : vector<128xf32>
    %75 = vector.multi_reduction <maximumf>, %74, %cst_49 [1] : vector<128x128xf32> to vector<128xf32>
    %76 = vector.shape_cast %75 : vector<128xf32> to vector<128x1xf32>
    %77 = vector.broadcast %76 : vector<128x1xf32> to vector<128x128xf32>
    %78 = arith.subf %74, %77 : vector<128x128xf32>
    %79 = math.exp %78 : vector<128x128xf32>
    %cst_50 = arith.constant dense<0.000000e+00> : vector<128xf32>
    %80 = vector.multi_reduction <add>, %79, %cst_50 [1] : vector<128x128xf32> to vector<128xf32>
    %81 = vector.shape_cast %80 : vector<128xf32> to vector<128x1xf32>
    %82 = tpu.reciprocal %81 {approx = true} : vector<128x1xf32> -> vector<128x1xf32>
    %83 = vector.broadcast %82 : vector<128x1xf32> to vector<128x128xf32>
    %84 = arith.mulf %79, %83 : vector<128x128xf32>
    %85 = arith.truncf %84 : vector<128x128xf32> to vector<128x128xbf16>
    %c0_51 = arith.constant 0 : index
    %c0_52 = arith.constant 0 : index
    %86 = vector.load %arg19[%c0_51, %c0_52] : memref<128x128xbf16, #tpu.memory_space<vmem>>, vector<128x128xbf16>
    %cst_53 = arith.constant dense<0.000000e+00> : vector<128x128xf32>
    %87 = tpu.matmul %85, %86, %cst_53 {dimension_numbers = #tpu.dot_dimension_numbers<[1], [0], [0], [1], [0, 0, 1, 1], [], []>} : vector<128x128xbf16>, vector<128x128xbf16>, vector<128x128xf32> -> vector<128x128xf32>
    %88 = vector.extract_strided_slice %87 {offsets = [0, 0], sizes = [64, 128], strides = [1, 1]} : vector<128x128xf32> to vector<64x128xf32>
    %89 = arith.truncf %88 : vector<64x128xf32> to vector<64x128xbf16>
    %c0_54 = arith.constant 0 : index
    %c0_55 = arith.constant 0 : index
    %90 = vector.load %arg15[%c0_54, %c0_55] : memref<64x256xbf16, #tpu.memory_space<vmem>>, vector<64x128xbf16>
    tpu.vector_store %arg15[%c0_54, %c0_55], %89 {strides = array<i32>} : memref<64x256xbf16, #tpu.memory_space<vmem>>, vector<64x128xbf16>,
    %91 = vector.extract_strided_slice %87 {offsets = [64, 0], sizes = [64, 128], strides = [1, 1]} : vector<128x128xf32> to vector<64x128xf32>
    %92 = arith.truncf %91 : vector<64x128xf32> to vector<64x128xbf16>
    %c0_56 = arith.constant 0 : index
    %c128_57 = arith.constant 128 : index
    %93 = vector.load %arg15[%c0_56, %c128_57] : memref<64x256xbf16, #tpu.memory_space<vmem>>, vector<64x128xbf16>
    tpu.vector_store %arg15[%c0_56, %c128_57], %92 {strides = array<i32>} : memref<64x256xbf16, #tpu.memory_space<vmem>>, vector<64x128xbf16>,
    %c0_58 = arith.constant 0 : index
    %c0_59 = arith.constant 0 : index
    %94 = vector.load %arg15[%c0_58, %c0_59] : memref<64x256xbf16, #tpu.memory_space<vmem>>, vector<64x256xbf16>
    %c0_60 = arith.constant 0 : index
    %c0_61 = arith.constant 0 : index
    %c0_62 = arith.constant 0 : index
    %95 = vector.load %arg9[%c0_60, %c0_61, %c0_62] : memref<1x256x256xbf16, #tpu.memory_space<vmem>>, vector<1x256x256xbf16>
    %96 = vector.shape_cast %95 : vector<1x256x256xbf16> to vector<256x256xbf16>
    %cst_63 = arith.constant dense<0.000000e+00> : vector<64x256xf32>
    %97 = tpu.matmul %94, %96, %cst_63 {dimension_numbers = #tpu.dot_dimension_numbers<[1], [0], [0], [1], [0, 0, 1, 1], [], []>} : vector<64x256xbf16>, vector<256x256xbf16>, vector<64x256xf32> -> vector<64x256xf32>
    %98 = arith.addf %3, %97 : vector<64x256xf32>
    %99 = arith.mulf %98, %98 : vector<64x256xf32>
    %cst_64 = arith.constant dense<0.000000e+00> : vector<64xf32>
    %100 = vector.multi_reduction <add>, %99, %cst_64 [1] : vector<64x256xf32> to vector<64xf32>
    %101 = vector.shape_cast %100 : vector<64xf32> to vector<64x1xf32>
    %cst_65 = arith.constant 2.560000e+02 : f32
    %102 = vector.broadcast %cst_65 : f32 to vector<64x1xf32>
    %103 = arith.divf %101, %102 : vector<64x1xf32>
    %cst_66 = arith.constant 9.99999997E-7 : f32
    %104 = vector.broadcast %cst_66 : f32 to vector<64x1xf32>
    %105 = arith.addf %103, %104 : vector<64x1xf32>
    %106 = math.rsqrt %105 : vector<64x1xf32>
    %107 = vector.broadcast %106 : vector<64x1xf32> to vector<64x256xf32>
    %108 = arith.mulf %98, %107 : vector<64x256xf32>
    %c0_67 = arith.constant 0 : index
    %c0_68 = arith.constant 0 : index
    %c0_69 = arith.constant 0 : index
    %109 = vector.load %arg10[%c0_67, %c0_68, %c0_69] : memref<1x1x256xbf16, #tpu.memory_space<vmem>>, vector<1x1x256xbf16>
    %110 = vector.shape_cast %109 : vector<1x1x256xbf16> to vector<1x256xbf16>
    %111 = arith.extf %110 : vector<1x256xbf16> to vector<1x256xf32>
    %112 = vector.broadcast %111 : vector<1x256xf32> to vector<64x256xf32>
    %113 = arith.mulf %108, %112 : vector<64x256xf32>
    %114 = arith.truncf %113 : vector<64x256xf32> to vector<64x256xbf16>
    %c0_70 = arith.constant 0 : index
    %c0_71 = arith.constant 0 : index
    %c0_72 = arith.constant 0 : index
    %115 = vector.load %arg11[%c0_70, %c0_71, %c0_72] : memref<1x256x1024xbf16, #tpu.memory_space<vmem>>, vector<1x256x1024xbf16>
    %116 = vector.shape_cast %115 : vector<1x256x1024xbf16> to vector<256x1024xbf16>
    %cst_73 = arith.constant dense<0.000000e+00> : vector<64x1024xf32>
    %117 = tpu.matmul %114, %116, %cst_73 {dimension_numbers = #tpu.dot_dimension_numbers<[1], [0], [0], [1], [0, 0, 1, 1], [], []>} : vector<64x256xbf16>, vector<256x1024xbf16>, vector<64x1024xf32> -> vector<64x1024xf32>
    %118 = vector.extract_strided_slice %117 {offsets = [0, 0], sizes = [64, 512], strides = [1, 1]} : vector<64x1024xf32> to vector<64x512xf32>
    %119 = vector.extract_strided_slice %117 {offsets = [0, 512], sizes = [64, 512], strides = [1, 1]} : vector<64x1024xf32> to vector<64x512xf32>
    %120 = arith.negf %118 : vector<64x512xf32>
    %121 = math.exp %120 : vector<64x512xf32>
    %cst_74 = arith.constant 1.000000e+00 : f32
    %122 = vector.broadcast %cst_74 : f32 to vector<64x512xf32>
    %123 = arith.addf %122, %121 : vector<64x512xf32>
    %124 = arith.divf %122, %123 : vector<64x512xf32>
    %125 = arith.mulf %118, %124 : vector<64x512xf32>
    %126 = arith.mulf %125, %119 : vector<64x512xf32>
    %127 = arith.truncf %126 : vector<64x512xf32> to vector<64x512xbf16>
    %c0_75 = arith.constant 0 : index
    %c0_76 = arith.constant 0 : index
    %c0_77 = arith.constant 0 : index
    %128 = vector.load %arg12[%c0_75, %c0_76, %c0_77] : memref<1x512x256xbf16, #tpu.memory_space<vmem>>, vector<1x512x256xbf16>
    %129 = vector.shape_cast %128 : vector<1x512x256xbf16> to vector<512x256xbf16>
    %cst_78 = arith.constant dense<0.000000e+00> : vector<64x256xf32>
    %130 = tpu.matmul %127, %129, %cst_78 {dimension_numbers = #tpu.dot_dimension_numbers<[1], [0], [0], [1], [0, 0, 1, 1], [], []>} : vector<64x512xbf16>, vector<512x256xbf16>, vector<64x256xf32> -> vector<64x256xf32>
    %131 = arith.addf %98, %130 : vector<64x256xf32>
    %c0_79 = arith.constant 0 : index
    %c0_80 = arith.constant 0 : index
    %132 = vector.load %arg14[%c0_79, %c0_80] : memref<64x256xf32, #tpu.memory_space<vmem>>, vector<64x256xf32>
    tpu.vector_store %arg14[%c0_79, %c0_80], %131 {strides = array<i32>} : memref<64x256xf32, #tpu.memory_space<vmem>>, vector<64x256xf32>,
    %c1_i32 = arith.constant 1 : i32
    %133 = arith.cmpi eq, %arg0, %c1_i32 : i32
    %134 = arith.extui %133 : i1 to i32
    %c0_i32_81 = arith.constant 0 : i32
    %135 = arith.cmpi ne, %134, %c0_i32_81 : i32
    scf.if %135 {
      %136 = arith.mulf %131, %131 : vector<64x256xf32>
      %cst_82 = arith.constant dense<0.000000e+00> : vector<64xf32>
      %137 = vector.multi_reduction <add>, %136, %cst_82 [1] : vector<64x256xf32> to vector<64xf32>
      %138 = vector.shape_cast %137 : vector<64xf32> to vector<64x1xf32>
      %cst_83 = arith.constant 2.560000e+02 : f32
      %139 = vector.broadcast %cst_83 : f32 to vector<64x1xf32>
      %140 = arith.divf %138, %139 : vector<64x1xf32>
      %cst_84 = arith.constant 9.99999997E-7 : f32
      %141 = vector.broadcast %cst_84 : f32 to vector<64x1xf32>
      %142 = arith.addf %140, %141 : vector<64x1xf32>
      %143 = math.rsqrt %142 : vector<64x1xf32>
      %144 = vector.broadcast %143 : vector<64x1xf32> to vector<64x256xf32>
      %145 = arith.mulf %131, %144 : vector<64x256xf32>
      %c0_85 = arith.constant 0 : index
      %c0_86 = arith.constant 0 : index
      %146 = vector.load %arg5[%c0_85, %c0_86] : memref<1x256xbf16, #tpu.memory_space<vmem>>, vector<1x256xbf16>
      %147 = arith.extf %146 : vector<1x256xbf16> to vector<1x256xf32>
      %148 = vector.broadcast %147 : vector<1x256xf32> to vector<64x256xf32>
      %149 = arith.mulf %145, %148 : vector<64x256xf32>
      %150 = vector.extract_strided_slice %149 {offsets = [8, 0], sizes = [24, 256], strides = [1, 1]} : vector<64x256xf32> to vector<24x256xf32>
      %151 = arith.truncf %150 : vector<24x256xf32> to vector<24x256xbf16>
      %c0_87 = arith.constant 0 : index
      %c0_88 = arith.constant 0 : index
      %c0_89 = arith.constant 0 : index
      %152 = vector.load %arg13[%c0_87, %c0_88, %c0_89] : memref<2x32x256xbf16, #tpu.memory_space<vmem>>, vector<1x24x256xbf16>
      %153 = vector.shape_cast %152 : vector<1x24x256xbf16> to vector<24x256xbf16>
      %154 = vector.shape_cast %151 : vector<24x256xbf16> to vector<1x24x256xbf16>
      tpu.vector_store %arg13[%c0_87, %c0_88, %c0_89], %154 {strides = array<i32>} : memref<2x32x256xbf16, #tpu.memory_space<vmem>>, vector<1x24x256xbf16>,
      %155 = vector.extract_strided_slice %149 {offsets = [40, 0], sizes = [24, 256], strides = [1, 1]} : vector<64x256xf32> to vector<24x256xf32>
      %156 = arith.truncf %155 : vector<24x256xf32> to vector<24x256xbf16>
      %c1 = arith.constant 1 : index
      %c0_90 = arith.constant 0 : index
      %c0_91 = arith.constant 0 : index
      %157 = vector.load %arg13[%c1, %c0_90, %c0_91] : memref<2x32x256xbf16, #tpu.memory_space<vmem>>, vector<1x24x256xbf16>
      %158 = vector.shape_cast %157 : vector<1x24x256xbf16> to vector<24x256xbf16>
      %159 = vector.shape_cast %156 : vector<24x256xbf16> to vector<1x24x256xbf16>
      tpu.vector_store %arg13[%c1, %c0_90, %c0_91], %159 {strides = array<i32>} : memref<2x32x256xbf16, #tpu.memory_space<vmem>>, vector<1x24x256xbf16>,
    } else {
    }
    return
  }
  func.func @transform_0(%arg0: i32) -> (i32, i32) {
    %c0_i32 = arith.constant 0 : i32
    %c0_i32_0 = arith.constant 0 : i32
    %c0_i32_1 = arith.constant 0 : i32
    return %c0_i32, %c0_i32_0 : i32, i32
  }
  func.func @transform_1(%arg0: i32) -> (i32, i32) {
    %c0_i32 = arith.constant 0 : i32
    %c0_i32_0 = arith.constant 0 : i32
    %c0_i32_1 = arith.constant 0 : i32
    return %c0_i32, %c0_i32_0 : i32, i32
  }
  func.func @transform_2(%arg0: i32) -> (i32, i32) {
    %c0_i32 = arith.constant 0 : i32
    %c0_i32_0 = arith.constant 0 : i32
    %c0_i32_1 = arith.constant 0 : i32
    return %c0_i32, %c0_i32_0 : i32, i32
  }
  func.func @transform_3(%arg0: i32) -> (i32, i32) {
    %c0_i32 = arith.constant 0 : i32
    %c0_i32_0 = arith.constant 0 : i32
    %c0_i32_1 = arith.constant 0 : i32
    return %c0_i32, %c0_i32_0 : i32, i32
  }
  func.func @transform_4(%arg0: i32) -> (i32, i32) {
    %c0_i32 = arith.constant 0 : i32
    %c0_i32_0 = arith.constant 0 : i32
    %c0_i32_1 = arith.constant 0 : i32
    return %c0_i32, %c0_i32_0 : i32, i32
  }
  func.func @transform_5(%arg0: i32) -> (i32, i32, i32) {
    %c0_i32 = arith.constant 0 : i32
    %c0_i32_0 = arith.constant 0 : i32
    %c0_i32_1 = arith.constant 0 : i32
    return %arg0, %c0_i32, %c0_i32_0 : i32, i32, i32
  }
  func.func @transform_6(%arg0: i32) -> (i32, i32, i32) {
    %c0_i32 = arith.constant 0 : i32
    %c0_i32_0 = arith.constant 0 : i32
    %c0_i32_1 = arith.constant 0 : i32
    return %arg0, %c0_i32, %c0_i32_0 : i32, i32, i32
  }
  func.func @transform_7(%arg0: i32) -> (i32, i32, i32) {
    %c0_i32 = arith.constant 0 : i32
    %c0_i32_0 = arith.constant 0 : i32
    %c0_i32_1 = arith.constant 0 : i32
    return %arg0, %c0_i32, %c0_i32_0 : i32, i32, i32
  }
  func.func @transform_8(%arg0: i32) -> (i32, i32, i32) {
    %c0_i32 = arith.constant 0 : i32
    %c0_i32_0 = arith.constant 0 : i32
    %c0_i32_1 = arith.constant 0 : i32
    return %arg0, %c0_i32, %c0_i32_0 : i32, i32, i32
  }
  func.func @transform_9(%arg0: i32) -> (i32, i32, i32) {
    %c0_i32 = arith.constant 0 : i32
    %c0_i32_0 = arith.constant 0 : i32
    %c0_i32_1 = arith.constant 0 : i32
    return %arg0, %c0_i32, %c0_i32_0 : i32, i32, i32
  }
  func.func @transform_10(%arg0: i32) -> (i32, i32, i32) {
    %c0_i32 = arith.constant 0 : i32
    %c0_i32_0 = arith.constant 0 : i32
    %c0_i32_1 = arith.constant 0 : i32
    return %arg0, %c0_i32, %c0_i32_0 : i32, i32, i32
  }
  func.func @transform_11(%arg0: i32) -> (i32, i32, i32) {
    %c0_i32 = arith.constant 0 : i32
    %c0_i32_0 = arith.constant 0 : i32
    %c0_i32_1 = arith.constant 0 : i32
    return %arg0, %c0_i32, %c0_i32_0 : i32, i32, i32
  }
  func.func @transform_12(%arg0: i32) -> (i32, i32, i32) {
    %c0_i32 = arith.constant 0 : i32
    %c0_i32_0 = arith.constant 0 : i32
    %c0_i32_1 = arith.constant 0 : i32
    %c0_i32_2 = arith.constant 0 : i32
    return %c0_i32, %c0_i32_0, %c0_i32_1 : i32, i32, i32
  }
}

</mosaic_0001>

<bundles_post_ra>
// kernel: tpu_custom_call.1
= control target key start
LH: loop header
LB: loop body
LE: loop exit
PB: predicated region body
PF: predicated region fallthrough
CT: control target
= control target key end

     0   :  { %s12535_s0 = inlined_call_operand.hbm [shape: bf16[64,256], index: 0, kind: input, shape index: {}]   ;;  %s12536_s1 = inlined_call_operand.hbm [shape: f32[64,128], index: 1, kind: input, shape index: {}]   ;;  %s12537_s2 = inlined_call_operand.hbm [shape: f32[64,128], index: 2, kind: input, shape index: {}]   ;;  %s12538_s3 = inlined_call_operand.hbm [shape: f32[128,128], index: 3, kind: input, shape index: {}]   ;;  %s12539_s4 = inlined_call_operand.vmem [shape: bf16[1,256], index: 4, kind: input, shape index: {}]   ;;  %s12540_s5 = inlined_call_operand.vmem [shape: bf16[2,1,256], index: 5, kind: input, shape index: {}]   ;;  %s12541_s6 = inlined_call_operand.hbm [shape: bf16[2,256,768], index: 6, kind: input, shape index: {}]   ;;  %s12542_s7 = inlined_call_operand.vmem [shape: bf16[2,1,768], index: 7, kind: input, shape index: {}]   ;;  %s12543_s8 = inlined_call_operand.hbm [shape: bf16[2,256,256], index: 8, kind: input, shape index: {}]   ;;  %s12544_s9 = inlined_call_operand.vmem [shape: bf16[2,1,256], index: 9, kind: input, shape index: {}]   ;;  %s12545_s10 = inlined_call_operand.hbm [shape: bf16[2,256,1024], index: 10, kind: input, shape index: {}]   ;;  %s12546_s11 = inlined_call_operand.hbm [shape: bf16[2,512,256], index: 11, kind: input, shape index: {}]   ;;  %s12547_s12 = inlined_call_operand.hbm [shape: bf16[2,32,256], index: 12, kind: output, shape index: {}]  }
   0x1   :  { %12608 = sst [smem:[#allocation78_spill]] %s12535_s0 }
   0x2   :  { %12609 = sst [smem:[#allocation79_spill]] %s12536_s1 }
   0x3   :  { %12610 = sst [smem:[#allocation80_spill]] %s12539_s4 }
   0x4   :  { %12611 = sst [smem:[#allocation81_spill]] %s12541_s6 }
   0x5   :  { %12612 = sst [smem:[#allocation82_spill]] %s12542_s7 }
   0x6   :  { %12613 = sst [smem:[#allocation83_spill]] %s12543_s8 }
   0x7   :  { %12614 = sst [smem:[#allocation84_spill]] %s12544_s9 }
   0x8   :  { %12615 = sst [smem:[#allocation85_spill]] %s12547_s12 }
   0x9   :  { %17 = vsyncpa [#allocation9], 0 }
   0xa   :  { %18 = vsyncpa [#allocation12], 0 }
   0xb   :  { %19 = vsyncpa [#allocation15], 0 }
   0xc   :  { %20 = vsyncpa [#allocation10], 0  ;;  %s9014_s21 = smov 0   ;;  %s9016_s22 = smov 0  }
   0xd   :  { %s9018_s23 = smov 0   ;;  %s9020_s24 = smov 0  }
   0xe LB: > { %12616 = sst [smem:[#allocation26_spill]] %s8927_s23  ;;  %s9033_s25 = sadd.s32 4294967295, %s8931_s24   ;;  %s8931_s24 = sphi %s9020_s24, %s12888_s24   ;;  %s8927_s23 = sphi %s9018_s23, %s12890_s23   ;;  %s8923_s22 = sphi %s9016_s22, %s12892_s22   ;;  %s8919_s21 = sphi %s9014_s21, %s12891_s21  }
   0xf   : > { %s9036_s26 = sadd.s32 1, %s8931_s24   ;;  %s164_s28 = sadd.s32 1, %s8927_s23 }
  0x10   : > { %12617 = sst [smem:[#allocation27_spill]] %s9036_s26  ;;  %s161_s27 = ssub.s32 %s8931_s24, %s9036_s26 }
  0x11   : > { %p162_p0 = scmp.eq.s32.totalorder %s161_s27, 0  ;;  %p171_p1 = scmp.ne.s32.totalorder %s8927_s23, %s8923_s22 }
  0x12   : > { %p172_p2 = scmp.eq.s32.totalorder %s8931_s24, 0  ;;  %p177_p3 = scmp.ne.s32.totalorder %s8923_s22, %s8919_s21 }
  0x13   : > { %s9046_s29 = scalar_select %p162_p0, %s8927_s23, %s164_s28  }
  0x14   : > { %p9048_p4 = por %p172_p2, %p171_p1  ;;  %p178_p5 = scmp.eq.s32.totalorder %s9033_s25, 0 }
  0x15   : > { %12618 = sst [smem:[#allocation28_spill]] %s9046_s29  ;;  %p6241_p6 = scmp.ge.s32.totalorder %s8931_s24, 1 }
  0x16   : > { %p339_p7 = scmp.lt.s32.totalorder %s8931_s24, 3  ;;  %p9057_p8 = por %p178_p5, %p177_p3 }
  0x17   : > { %p6242_p9 = scmp.ne.s32.totalorder %s9033_s25, 0  ;;  %s12622_s0 = sld [smem:[#allocation78_spill]] }
  0x18   : > { %p9062_p10 = pnand %p6241_p6, %p339_p7  ;;  %s8933_s18 = smov [#allocation8]  }
  0x19   : > { %s352_s19 = sshll.u32 %s8933_s18, 4  ;;  %p8224_p13 = scmp.lt.s32.totalorder %s8931_s24, 2  ;;  %s353_s19 = int_to_ptr.vmem [resolvable:$true] %s352_s19 }
  0x1a   : > { %p8194_p11 = pneg %p9062_p10  ;;  %s418_s21 = sand.u32 1, %s8931_s24  }
  0x1b   : > { %s12550_s27 = smov 128   ;;  %s12552_s28 = smov 8  }
  0x1c   : > { %p9073_p12 = pnand %p8194_p11, %p178_p5  ;;  %s9085_s15 = sand.u32 1, %s8927_s23  }
  0x1d   : > { %s350_s17 = sshll.u32 %s12622_s0, 4  ;;  %s8162_s16 = smul.u32 768, %s9085_s15  ;;  %s351_s17 = int_to_ptr.hbm [resolvable:$true] %s350_s17 }
  0x1e   : > { %8197 = dma.hbm_to_vmem [thread:$0]  (!%p9073_p12), %s351_s17, 1024, %s353_s19, [#allocation9], %s12550_s27, %s12550_s27, %s12552_s28  }
  0x1f   : > { %p9090_p0 = pnand %p8224_p13, %p9048_p4  ;;  %s8163_s0 = smul.u32 768, %s8931_s24 }
  0x20   : > { %s12625_s6 = sld [smem:[#allocation81_spill]]  ;;  %s422_s4 = scalar_lea.vmem [#allocation16], %s8162_s16 }
  0x21   : > { %s430_s7 = sshll.u32 %s422_s4, 4  ;;  %s9098_s17 = scalar_lea.sflag [#allocation9], %s418_s21  ;;  %s431_s7 = int_to_ptr.vmem [resolvable:$true] %s430_s7 }
  0x22   : > { %p8647_p2 = pneg %p9090_p0 }
  0x26   : > { %s427_s12 = scalar_lea.hbm %s12625_s6, %s8163_s0  ;;  %s8650_s0 = scalar_lea.hbm %s12625_s6, 1536 }
  0x27   : > { %s428_s9 = sshll.u32 %s427_s12, 4  ;;  %s429_s9 = int_to_ptr.hbm [resolvable:$true] %s428_s9 }
  0x28   : > { %s8643_s19 = sshra.s32 %s429_s9, 4  ;;  %s8644_s19 = int_to_ptr.hbm [resolvable:$true] %s8643_s19 }
  0x29   : > { %s8645_s30 = scalar_lea.hbm %s8644_s19, 768  ;;  %p8651_p6 = scmp.lt.s32.totalorder %s8644_s19, %s12625_s6 }
  0x2a   : > { %p8646_p1 = scmp.ne.s32.totalorder %s8644_s19, %s8645_s30  ;;  %p8652_p7 = scmp.lt.s32.totalorder %s8650_s0, %s8645_s30 }
  0x2c   : > { %p8648_p3 = pnand %p8647_p2, %p8646_p1  ;;  %p8653_p11 = por %p8652_p7, %p8651_p6 }
  0x2e   : > { %p8649_p4 = pneg %p8648_p3 }
  0x30   : > { %p8654_p13 = pnand %p8653_p11, %p8649_p4 }
  0x32   : > { %8657 = shalt.err (!%p8654_p13)
}
  0x33   : > { %s8936_s29 = smov 384   ;;  %s8937_s21 = smov 24  }
  0x34   : > { %8210 = dma.hbm_to_vmem [thread:$0]  (!%p9090_p0), %s429_s9, 12288, %s431_s7, %s9098_s17, %s8936_s29, %s8936_s29, %s8937_s21  }
  0x35   : > { %s6248_s16 = sshll.u32 %s9085_s15, 8  ;;  %s7713_s27 = sshll.u32 %s8931_s24, 8 }
  0x36   : > { %s12626_s8 = sld [smem:[#allocation83_spill]]  ;;  %s451_s30 = scalar_lea.vmem [#allocation17], %s6248_s16 }
  0x37   : > { %s459_s0 = sshll.u32 %s451_s30, 4  ;;  %s460_s0 = int_to_ptr.vmem [resolvable:$true] %s459_s0 }
  0x3c   : > { %s456_s4 = scalar_lea.hbm %s12626_s8, %s7713_s27  ;;  %s8680_s29 = scalar_lea.hbm %s12626_s8, 512 }
  0x3d   : > { %s457_s19 = sshll.u32 %s456_s4, 4  ;;  %s458_s19 = int_to_ptr.hbm [resolvable:$true] %s457_s19 }
  0x3e   : > { %s8673_s12 = sshra.s32 %s458_s19, 4  ;;  %s8674_s12 = int_to_ptr.hbm [resolvable:$true] %s8673_s12 }
  0x3f   : > { %s8675_s6 = scalar_lea.hbm %s8674_s12, 256  ;;  %p8681_p6 = scmp.lt.s32.totalorder %s8674_s12, %s12626_s8 }
  0x40   : > { %p8676_p1 = scmp.ne.s32.totalorder %s8674_s12, %s8675_s6  ;;  %p8682_p7 = scmp.lt.s32.totalorder %s8680_s29, %s8675_s6 }
  0x42   : > { %p8678_p3 = pnand %p8676_p1, %p8647_p2  ;;  %p8683_p11 = por %p8682_p7, %p8681_p6 }
  0x44   : > { %p8679_p4 = pneg %p8678_p3 }
  0x46   : > { %p8684_p13 = pnand %p8683_p11, %p8679_p4 }
  0x48   : > { %8687 = shalt.err (!%p8684_p13)
}
  0x49   : > { %s12627_s16 = smov 8   ;;  %s12628_s27 = smov 128  }
  0x4a   : > { %8213 = dma.hbm_to_vmem [thread:$0]  (!%p9090_p0), %s458_s19, 4096, %s460_s0, %s9098_s17, %s12628_s27, %s12628_s27, %s12627_s16  }
  0x4b   : > { %s12629_s1 = sld [smem:[#allocation79_spill]]  ;;  %s8938_s12 = smov [#allocation11]  }
  0x4c   : > { %s366_s6 = sshll.u32 %s8938_s12, 4  ;;  %s6251_s7 = sshll.u32 %s9085_s15, 10  ;;  %s367_s6 = int_to_ptr.vmem [resolvable:$true] %s366_s6 }
  0x4d   : > { %s7714_s9 = sshll.u32 %s8931_s24, 10  ;;  %s480_s0 = scalar_lea.vmem [#allocation18], %s6251_s7 }
  0x4e   : > { %s485_s19 = scalar_lea.hbm %s12545_s10, %s7714_s9  ;;  %s488_s28 = sshll.u32 %s480_s0, 4  ;;  %s489_s28 = int_to_ptr.vmem [resolvable:$true] %s488_s28 }
  0x4f   : > { %s486_s26 = sshll.u32 %s485_s19, 4  ;;  %s8740_s7 = scalar_lea.hbm %s12545_s10, 2048  ;;  %s487_s26 = int_to_ptr.hbm [resolvable:$true] %s486_s26 }
  0x50   : > { %s8733_s8 = sshra.s32 %s487_s26, 4  ;;  %s8734_s8 = int_to_ptr.hbm [resolvable:$true] %s8733_s8 }
  0x51   : > { %s364_s30 = sshll.u32 %s12629_s1, 4  ;;  %s378_s1 = sshll.u32 %s12537_s2, 4  ;;  %s365_s30 = int_to_ptr.hbm [resolvable:$true] %s364_s30  ;;  %s379_s1 = int_to_ptr.hbm [resolvable:$true] %s378_s1 }
  0x52   : > { %8200 = dma.hbm_to_vmem [thread:$0]  (!%p9073_p12), %s365_s30, 1024, %s367_s6, [#allocation12], %s12628_s27, %s12628_s27, %s12627_s16  }
  0x53   : > { %s8735_s23 = scalar_lea.hbm %s8734_s8, 1024  ;;  %p8741_p6 = scmp.lt.s32.totalorder %s8734_s8, %s12545_s10 }
  0x54   : > { %p8736_p1 = scmp.ne.s32.totalorder %s8734_s8, %s8735_s23  ;;  %p8742_p7 = scmp.lt.s32.totalorder %s8740_s7, %s8735_s23 }
  0x56   : > { %p8738_p3 = pnand %p8736_p1, %p8647_p2  ;;  %p8743_p11 = por %p8742_p7, %p8741_p6 }
  0x58   : > { %p8739_p4 = pneg %p8738_p3 }
  0x5a   : > { %p8744_p13 = pnand %p8743_p11, %p8739_p4 }
  0x5c   : > { %8747 = shalt.err (!%p8744_p13)
}
  0x5d   : > { %s8939_s21 = smov 512   ;;  %s8940_s19 = smov 32  }
  0x5e   : > { %8216 = dma.hbm_to_vmem [thread:$0]  (!%p9090_p0), %s487_s26, 16384, %s489_s28, %s9098_s17, %s8939_s21, %s8939_s21, %s8940_s19  }
  0x5f   : > { %s8941_s0 = smov [#allocation13]   ;;  %s392_s8 = sshll.u32 %s12538_s3, 4  ;;  %s393_s8 = int_to_ptr.hbm [resolvable:$true] %s392_s8 }
  0x60   : > { %s380_s4 = sshll.u32 %s8941_s0, 4  ;;  %s6254_s23 = sshll.u32 %s9085_s15, 9  ;;  %s381_s4 = int_to_ptr.vmem [resolvable:$true] %s380_s4 }
  0x61   : > { %8203 = dma.hbm_to_vmem [thread:$0]  (!%p9073_p12), %s379_s1, 1024, %s381_s4, [#allocation12], %s12628_s27, %s12628_s27, %s12627_s16  }
  0x62   : > { %s8942_s6 = smov [#allocation14]   ;;  %s7715_s28 = sshll.u32 %s8931_s24, 9 }
  0x63   : > { %s394_s7 = sshll.u32 %s8942_s6, 4  ;;  %s507_s29 = scalar_lea.hbm %s12546_s11, %s7715_s28  ;;  %s395_s7 = int_to_ptr.vmem [resolvable:$true] %s394_s7 }
  0x64   : > { %8206 = dma.hbm_to_vmem [thread:$0]  (!%p9073_p12), %s393_s8, 2048, %s395_s7, [#allocation15], %s12628_s27, %s12628_s27, %s12627_s16  }
  0x65   : > { %s502_s21 = scalar_lea.vmem [#allocation19], %s6254_s23  ;;  %s508_s0 = sshll.u32 %s507_s29, 4  ;;  %s509_s0 = int_to_ptr.hbm [resolvable:$true] %s508_s0 }
  0x66   : > { %s510_s19 = sshll.u32 %s502_s21, 4  ;;  %s8823_s1 = sshra.s32 %s509_s0, 4  ;;  %s511_s19 = int_to_ptr.vmem [resolvable:$true] %s510_s19  ;;  %s8824_s1 = int_to_ptr.hbm [resolvable:$true] %s8823_s1 }
  0x67   : > { %s8825_s15 = scalar_lea.hbm %s8824_s1, 512  ;;  %s8830_s4 = scalar_lea.hbm %s12546_s11, 1024 }
  0x68   : > { %p8826_p1 = scmp.ne.s32.totalorder %s8824_s1, %s8825_s15  ;;  %p8831_p12 = scmp.lt.s32.totalorder %s8824_s1, %s12546_s11 }
  0x69   : > { %p8832_p6 = scmp.lt.s32.totalorder %s8830_s4, %s8825_s15 }
  0x6a   : > { %p8828_p3 = pnand %p8826_p1, %p8647_p2 }
  0x6b   : > { %p8833_p7 = por %p8832_p6, %p8831_p12 }
  0x6c   : > { %p8829_p4 = pneg %p8828_p3 }
  0x6e   : > { %p8834_p11 = pnand %p8833_p7, %p8829_p4 }
  0x70   : > { %8837 = shalt.err (!%p8834_p11)
}
  0x71   : > { %8219 = dma.hbm_to_vmem [thread:$0]  (!%p9090_p0), %s509_s0, 8192, %s511_s19, %s9098_s17, %s12628_s27, %s12628_s27, %s12627_s16  }
  0x72   : > { %522 = sbr.rel (%p9062_p10) target bundleno = 2567 (0xa07), region = 68 }
  0x77   : > { %8898 = dma.done.wait (%p178_p5), [#allocation9], 1024  }
  0x78   : > { %8900 = vsyncadd (%p178_p5), [#allocation9], 4294966272 }
  0x79   : > { %8902 = dma.done.wait (%p178_p5), [#allocation12], 2048  }
  0x7a   : > { %8904 = vsyncadd (%p178_p5), [#allocation12], 4294965248 }
  0x7b   : > { %8906 = dma.done.wait (%p178_p5), [#allocation15], 2048  }
  0x7c   : > { %8908 = vsyncadd (%p178_p5), [#allocation15], 4294965248  ;;  %s544_s14 = sand.u32 1, %s9033_s25   ;;  %s546_s18 = sand.u32 1, %s8923_s22  }
  0x7d   : > { %s8164_s17 = smul.u32 768, %s546_s18  ;;  %s545_s16 = scalar_lea.sflag [#allocation9], %s544_s14 }
  0x7f   : > { %s9211_s27 = scalar_lea.vmem [#allocation16], %s8164_s17 }
  0x80   : > { %8910 = dma.done.wait (%p9057_p8), %s545_s16, 40960  }
  0x81   : > { %8912 = vsyncadd (%p9057_p8), %s545_s16, 4294926336  ;;  %s6262_s8 = sshll.u32 %s546_s18, 8  ;;  %s6263_s23 = sshll.u32 %s546_s18, 10 }
  0x82   : > { %s6264_s6 = sshll.u32 %s546_s18, 9  ;;  %p642_p5 = scmp.lt.s32.totalorder %s9033_s25, 1 }
  0x83   : > { %s12630_s1 = sld [smem:[#allocation84_spill]]  ;;  %s9234_s12 = scalar_lea.vmem [#allocation17], %s6262_s8 }
  0x84   : > { %s643_s7 = scalar_select %p642_p5, %s9033_s25, 1 }
  0x85   : > { %s12631_s20 = sld [smem:[#allocation82_spill]]  ;;  %s9236_s30 = scalar_lea.vmem [#allocation18], %s6263_s23 }
  0x86   : > { %s6265_s28 = sshll.u32 %s643_s7, 1  ;;  %s8165_s26 = smul.u32 6, %s643_s7 }
  0x87   : > { %s9222_s21 = scalar_lea.vmem %s12540_s5, %s6265_s28  ;;  %s9238_s14 = scalar_lea.vmem [#allocation19], %s6264_s6 }
  0x88   : > { %658 = sbr.rel (%p6242_p9) target bundleno = 166 (0xa6), region = 104 }
  0x89   : > { %s9227_s15 = scalar_lea.vmem %s12630_s1, %s6265_s28 }
  0x8b   : > { %s9232_s4 = scalar_lea.vmem %s12631_s20, %s8165_s26 }
  0x8d   : > { %v659_v0 = vld [vmem:[#allocation8] sm:$0xff]  ;;  %v660_v1 = vld [vmem:[#allocation8 + $0x8] sm:$0xff]  ;;  %v661_v2 = vld [vmem:[#allocation8 + $0x10] sm:$0xff]  ;;  %v8943_v6 = vmov 0  }
  0x8e   : > { %v667_v3 = vunpack.c.l.bf16 %v659_v0  ;;  %v668_v4 = vunpack.c.h.bf16 %v659_v0  ;;  %v669_v5 = vunpack.c.l.bf16 %v660_v1  ;;  %699 = vst [vmem:[#allocation20] sm:$0xff] %v8943_v6  ;;  %v670_v7 = vunpack.c.h.bf16 %v660_v1  ;;  %v662_v8 = vld [vmem:[#allocation8 + $0x18] sm:$0xff]  ;;  %v663_v11 = vld [vmem:[#allocation8 + $0x20] sm:$0xff]  ;;  %v664_v14 = vld [vmem:[#allocation8 + $0x28] sm:$0xff] }
  0x8f   : > { %700 = vst [vmem:[#allocation20 + $0x8] sm:$0xff] %v8943_v6  ;;  %v671_v9 = vunpack.c.l.bf16 %v661_v2  ;;  %v672_v10 = vunpack.c.h.bf16 %v661_v2  ;;  %v673_v12 = vunpack.c.l.bf16 %v662_v8  ;;  %v674_v13 = vunpack.c.h.bf16 %v662_v8  ;;  %v665_v17 = vld [vmem:[#allocation8 + $0x30] sm:$0xff]  ;;  %v666_v20 = vld [vmem:[#allocation8 + $0x38] sm:$0xff] }
  0x90   : > { %683 = vst [vmem:[#allocation2 + $0x30] sm:$0xff] %v667_v3  ;;  %v675_v15 = vunpack.c.l.bf16 %v663_v11  ;;  %v676_v16 = vunpack.c.h.bf16 %v663_v11  ;;  %v677_v18 = vunpack.c.l.bf16 %v664_v14  ;;  %v678_v19 = vunpack.c.h.bf16 %v664_v14 }
  0x91   : > { %684 = vst [vmem:[#allocation2] sm:$0xff] %v668_v4  ;;  %v679_v21 = vunpack.c.l.bf16 %v665_v17  ;;  %v680_v22 = vunpack.c.h.bf16 %v665_v17  ;;  %v681_v23 = vunpack.c.l.bf16 %v666_v20  ;;  %v682_v24 = vunpack.c.h.bf16 %v666_v20 }
  0x92   : > { %685 = vst [vmem:[#allocation2 + $0x58] sm:$0xff] %v669_v5 }
  0x93   : > { %686 = vst [vmem:[#allocation2 + $0x18] sm:$0xff] %v670_v7 }
  0x94   : > { %687 = vst [vmem:[#allocation2 + $0x50] sm:$0xff] %v671_v9 }
  0x95   : > { %688 = vst [vmem:[#allocation2 + $0x68] sm:$0xff] %v672_v10 }
  0x96   : > { %689 = vst [vmem:[#allocation2 + $0x8] sm:$0xff] %v673_v12 }
  0x97   : > { %690 = vst [vmem:[#allocation2 + $0x48] sm:$0xff] %v674_v13 }
  0x98   : > { %691 = vst [vmem:[#allocation2 + $0x40] sm:$0xff] %v675_v15 }
  0x99   : > { %692 = vst [vmem:[#allocation2 + $0x20] sm:$0xff] %v676_v16 }
  0x9a   : > { %693 = vst [vmem:[#allocation2 + $0x10] sm:$0xff] %v677_v18 }
  0x9b   : > { %694 = vst [vmem:[#allocation2 + $0x38] sm:$0xff] %v678_v19 }
  0x9c   : > { %695 = vst [vmem:[#allocation2 + $0x60] sm:$0xff] %v679_v21 }
  0x9d   : > { %696 = vst [vmem:[#allocation2 + $0x70] sm:$0xff] %v680_v22 }
  0x9e   : > { %697 = vst [vmem:[#allocation2 + $0x78] sm:$0xff] %v681_v23 }
  0x9f   : > { %698 = vst [vmem:[#allocation2 + $0x28] sm:$0xff] %v682_v24 }
  0xa0   : > { %701 = vst [vmem:[#allocation20 + $0x10] sm:$0xff] %v8943_v6 }
  0xa1   : > { %702 = vst [vmem:[#allocation20 + $0x18] sm:$0xff] %v8943_v6 }
  0xa2   : > { %703 = vst [vmem:[#allocation20 + $0x20] sm:$0xff] %v8943_v6 }
  0xa3   : > { %704 = vst [vmem:[#allocation20 + $0x28] sm:$0xff] %v8943_v6 }
  0xa4   : > { %705 = vst [vmem:[#allocation20 + $0x30] sm:$0xff] %v8943_v6 }
  0xa5   : > { %706 = vst [vmem:[#allocation20 + $0x38] sm:$0xff] %v8943_v6 }
  0xa6 PF: > { %v9242_v25 = vld [vmem:[#allocation2 + $0x50] sm:$0xff]  ;;  %v9244_v26 = vld [vmem:[#allocation2 + $0x68] sm:$0xff]  ;;  %v9252_v30 = vld [vmem:[#allocation2] sm:$0xff]  ;;  %v8944_v8 = vmov 256.0   ;;  %s8945_s18 = smov 64   ;;  %p7708_p8 = scmp.ne.s32.totalorder %s9033_s25, 1 }
  0xa7   : > { %v9246_v27 = vld [vmem:[#allocation2 + $0x30] sm:$0xff]  ;;  %v743_v28 = vmul.f32 %v9242_v25, %v9242_v25  ;;  %v744_v29 = vmul.f32 %v9244_v26, %v9244_v26  ;;  %v740_v32 = vmul.f32 %v9252_v30, %v9252_v30  ;;  %v9258_v33 = vld [vmem:[#allocation2 + $0x8] sm:$0xff]  ;;  %v9262_v35 = vld [vmem:[#allocation2 + $0x40] sm:$0xff]  ;;  %8359 = vrcp.f32 %v8944_v8 }
  0xa8   : > { %v739_v31 = vmul.f32 %v9246_v27, %v9246_v27  ;;  %v9260_v34 = vld [vmem:[#allocation2 + $0x48] sm:$0xff]  ;;  %v9264_v37 = vld [vmem:[#allocation2 + $0x58] sm:$0xff]  ;;  %v9268_v39 = vld [vmem:[#allocation2 + $0x20] sm:$0xff]  ;;  %v747_v40 = vmul.f32 %v9262_v35, %v9262_v35  ;;  %v745_v43 = vmul.f32 %v9258_v33, %v9258_v33 }
  0xa9   : > { %v761_v36 = vadd.f32 %v744_v29, %v743_v28  ;;  %v9266_v38 = vld [vmem:[#allocation2 + $0x18] sm:$0xff]  ;;  %v748_v42 = vmul.f32 %v9268_v39, %v9268_v39  ;;  %v746_v44 = vmul.f32 %v9260_v34, %v9260_v34  ;;  %v9278_v45 = vld [vmem:[#allocation2 + $0x10] sm:$0xff]  ;;  %v741_v47 = vmul.f32 %v9264_v37, %v9264_v37  ;;  %v9292_v55 = vld [vmem:[#allocation2 + $0x28] sm:$0xff] }
  0xaa   : > { %v755_v41 = vadd.f32 %v740_v32, %v739_v31  ;;  %v9280_v46 = vld [vmem:[#allocation2 + $0x38] sm:$0xff]  ;;  %v742_v48 = vmul.f32 %v9266_v38, %v9266_v38  ;;  %v749_v50 = vmul.f32 %v9278_v45, %v9278_v45  ;;  %v9294_v56 = vld [vmem:[#allocation2 + $0x60] sm:$0xff]  ;;  %v9296_v57 = vld [vmem:[#allocation2 + $0x70] sm:$0xff]  ;;  %v754_v60 = vmul.f32 %v9292_v55, %v9292_v55 }
  0xab   : > { %762 = vadd.xlane.f32.xlu1 %v761_v36  ;;  %v767_v49 = vadd.f32 %v748_v42, %v747_v40  ;;  %v750_v51 = vmul.f32 %v9280_v46, %v9280_v46  ;;  %v764_v52 = vadd.f32 %v746_v44, %v745_v43  ;;  %v9290_v54 = vld [vmem:[#allocation2 + $0x78] sm:$0xff]  ;;  %v751_v61 = vmul.f32 %v9294_v56, %v9294_v56  ;;  %v6438_v1 = vld [vmem:[%s9211_s27 + $0x150] sm:$0xf]  ;;  %v7761_v2 = vld [vmem:[%s9211_s27 + $0x164] sm:$0xf0] }
  0xac   : > { %756 = vadd.xlane.f32.xlu0 %v755_v41  ;;  %v758_v53 = vadd.f32 %v742_v48, %v741_v47  ;;  %v753_v59 = vmul.f32 %v9290_v54, %v9290_v54  ;;  %v752_v62 = vmul.f32 %v9296_v57, %v9296_v57  ;;  %v6630_v3 = vld [vmem:[%s9211_s27 + $0x2d0] sm:$0xf]  ;;  %v6439_v4 = vor.u32 %v7761_v2, %v6438_v1  ;;  %v7809_v5 = vld [vmem:[%s9211_s27 + $0x2e4] sm:$0xf0]  ;;  %v7758_v6 = vld [vmem:[%s9211_s27 + $0x154] sm:$0xf] }
  0xad   : > { %768 = vadd.xlane.f32.xlu2 %v767_v49  ;;  %v770_v58 = vadd.f32 %v750_v51, %v749_v50  ;;  %v6440_v7 = vld [vmem:[%s9211_s27 + $0x168] sm:$0xf0]  ;;  %v6631_v9 = vor.u32 %v7809_v5, %v6630_v3  ;;  %v7806_v11 = vld [vmem:[%s9211_s27 + $0x2d4] sm:$0xf]  ;;  %v6414_v14 = vld [vmem:[%s9211_s27 + $0x120] sm:$0xf]  ;;  %v9322_v29 = vpop.eup %8359 }
  0xae   : > { %v776_v63 = vadd.f32 %v754_v60, %v753_v59  ;;  %v773_v0 = vadd.f32 %v752_v62, %v751_v61  ;;  %v6443_v10 = vor.u32 %v7758_v6, %v6440_v7  ;;  %v6632_v12 = vld [vmem:[%s9211_s27 + $0x2e8] sm:$0xf0]  ;;  %1530 = vmatpush.bf16.msra.mxu0 %v6439_v4  ;;  %v7755_v15 = vld [vmem:[%s9211_s27 + $0x134] sm:$0xf0]  ;;  %v6606_v16 = vld [vmem:[%s9211_s27 + $0x2a0] sm:$0xf]  ;;  %vm784_vm0 = vweird.f32 %v9322_v29 }
  0xaf   : > { %v6635_v13 = vor.u32 %v7806_v11, %v6632_v12  ;;  %1559 = vmatpush.bf16.msra.mxu1 %v6631_v9  ;;  %v6415_v17 = vor.u32 %v7755_v15, %v6414_v14  ;;  %v7803_v18 = vld [vmem:[%s9211_s27 + $0x2b4] sm:$0xf0]  ;;  %v7752_v19 = vld [vmem:[%s9211_s27 + $0x124] sm:$0xf]  ;;  %v6416_v20 = vld [vmem:[%s9211_s27 + $0x138] sm:$0xf0] }
  0xb0   : > { %1588 = vmatpush.bf16.msra.mxu2 %v6443_v10  ;;  %v6607_v21 = vor.u32 %v7803_v18, %v6606_v16  ;;  %v6419_v22 = vor.u32 %v7752_v19, %v6416_v20  ;;  %v7800_v23 = vld [vmem:[%s9211_s27 + $0x2a4] sm:$0xf]  ;;  %v6608_v24 = vld [vmem:[%s9211_s27 + $0x2b8] sm:$0xf0]  ;;  %v6390_v31 = vld [vmem:[%s9211_s27 + $0xf0] sm:$0xf] }
  0xb1   : > { %1617 = vmatpush.bf16.msra.mxu3 %v6635_v13  ;;  %v6611_v28 = vor.u32 %v7800_v23, %v6608_v24  ;;  %v7749_v32 = vld [vmem:[%s9211_s27 + $0x104] sm:$0xf0]  ;;  %v6582_v36 = vld [vmem:[%s9211_s27 + $0x270] sm:$0xf]  ;;  %v7746_v42 = vld [vmem:[%s9211_s27 + $0xf4] sm:$0xf] }
  0xb2   : > { %1531 = vmatpush.bf16.msra.mxu0 %v6415_v17  ;;  %v6391_v40 = vor.u32 %v7749_v32, %v6390_v31  ;;  %v7797_v41 = vld [vmem:[%s9211_s27 + $0x284] sm:$0xf0]  ;;  %v6392_v43 = vld [vmem:[%s9211_s27 + $0x108] sm:$0xf0]  ;;  %v7794_v48 = vld [vmem:[%s9211_s27 + $0x274] sm:$0xf] }
  0xb3   : > { %765 = vadd.xlane.f32.xlu1 %v764_v52  ;;  %1560 = vmatpush.bf16.msra.mxu1 %v6607_v21  ;;  %v6583_v44 = vor.u32 %v7797_v41, %v6582_v36  ;;  %v6395_v47 = vor.u32 %v7746_v42, %v6392_v43  ;;  %v6584_v49 = vld [vmem:[%s9211_s27 + $0x288] sm:$0xf0]  ;;  %v780_v50 = vmul.f32 256.0, %v9322_v29  ;;  %v6366_v52 = vld [vmem:[%s9211_s27 + $0xc0] sm:$0xf] }
  0xb4   : > { %759 = vadd.xlane.f32.xlu0 %v758_v53  ;;  %1589 = vmatpush.bf16.msra.mxu2 %v6419_v22  ;;  %v6587_v51 = vor.u32 %v7794_v48, %v6584_v49  ;;  %v7743_v53 = vld [vmem:[%s9211_s27 + $0xd4] sm:$0xf0]  ;;  %v7740_v61 = vld [vmem:[%s9211_s27 + $0xc4] sm:$0xf]  ;;  %v6368_v62 = vld [vmem:[%s9211_s27 + $0xd8] sm:$0xf0] }
  0xb5   : > { %771 = vadd.xlane.f32.xlu2 %v770_v58  ;;  %1618 = vmatpush.bf16.msra.mxu3 %v6611_v28  ;;  %v6558_v58 = vld [vmem:[%s9211_s27 + $0x240] sm:$0xf]  ;;  %v6367_v59 = vor.u32 %v7743_v53, %v6366_v52  ;;  %v7791_v60 = vld [vmem:[%s9211_s27 + $0x254] sm:$0xf0]  ;;  %v7788_v1 = vld [vmem:[%s9211_s27 + $0x244] sm:$0xf] }
  0xb6   : > { %1532 = vmatpush.bf16.msra.mxu0 %v6391_v40  ;;  %v6560_v2 = vld [vmem:[%s9211_s27 + $0x258] sm:$0xf0]  ;;  %v781_v3 = vsub.f32 1.0, %v780_v50  ;;  %v6342_v5 = vld [vmem:[%s9211_s27 + $0x90] sm:$0xf] }
  0xb7   : > { %1561 = vmatpush.bf16.msra.mxu1 %v6583_v44  ;;  %v6563_v4 = vor.u32 %v7788_v1, %v6560_v2  ;;  %v7737_v6 = vld [vmem:[%s9211_s27 + $0xa4] sm:$0xf0]  ;;  %v6534_v7 = vld [vmem:[%s9211_s27 + $0x210] sm:$0xf]  ;;  %v7734_v10 = vld [vmem:[%s9211_s27 + $0x94] sm:$0xf] }
  0xb8   : > { %1590 = vmatpush.bf16.msra.mxu2 %v6395_v47  ;;  %v6343_v8 = vor.u32 %v7737_v6, %v6342_v5  ;;  %v7785_v9 = vld [vmem:[%s9211_s27 + $0x224] sm:$0xf0]  ;;  %v6344_v11 = vld [vmem:[%s9211_s27 + $0xa8] sm:$0xf0]  ;;  %v7782_v14 = vld [vmem:[%s9211_s27 + $0x214] sm:$0xf]  ;;  %v782_v16 = vmul.f32 %v9322_v29, %v781_v3 }
  0xb9   : > { %1619 = vmatpush.bf16.msra.mxu3 %v6587_v51  ;;  %v6535_v12 = vor.u32 %v7785_v9, %v6534_v7  ;;  %v6347_v13 = vor.u32 %v7734_v10, %v6344_v11  ;;  %v6536_v15 = vld [vmem:[%s9211_s27 + $0x228] sm:$0xf0]  ;;  %v6318_v18 = vld [vmem:[%s9211_s27 + $0x60] sm:$0xf]  ;;  %v7731_v19 = vld [vmem:[%s9211_s27 + $0x74] sm:$0xf0] }
  0xba   : > { %1533 = vmatpush.bf16.msra.mxu0 %v6367_v59  ;;  %v6539_v17 = vor.u32 %v7782_v14, %v6536_v15  ;;  %v6510_v20 = vld [vmem:[%s9211_s27 + $0x1e0] sm:$0xf]  ;;  %v6319_v21 = vor.u32 %v7731_v19, %v6318_v18  ;;  %v7779_v22 = vld [vmem:[%s9211_s27 + $0x1f4] sm:$0xf0]  ;;  %v7728_v23 = vld [vmem:[%s9211_s27 + $0x64] sm:$0xf]  ;;  %v783_v40 = vadd.f32 %v9322_v29, %v782_v16 }
  0xbb   : > { %777 = vadd.xlane.f32.xlu1 %v776_v63  ;;  %v6559_v63 = vor.u32 %v7791_v60, %v6558_v58  ;;  %v6320_v24 = vld [vmem:[%s9211_s27 + $0x78] sm:$0xf0]  ;;  %v6511_v28 = vor.u32 %v7779_v22, %v6510_v20  ;;  %v7776_v32 = vld [vmem:[%s9211_s27 + $0x1e4] sm:$0xf]  ;;  %v6294_v42 = vld [vmem:[%s9211_s27 + $0x30] sm:$0xf] }
  0xbc   : > { %774 = vadd.xlane.f32.xlu0 %v773_v0  ;;  %v6371_v0 = vor.u32 %v7740_v61, %v6368_v62  ;;  %v6323_v31 = vor.u32 %v7728_v23, %v6320_v24  ;;  %v6512_v36 = vld [vmem:[%s9211_s27 + $0x1f8] sm:$0xf0]  ;;  %v7725_v43 = vld [vmem:[%s9211_s27 + $0x44] sm:$0xf0]  ;;  %v6486_v44 = vld [vmem:[%s9211_s27 + $0x1b0] sm:$0xf]  ;;  %v9369_v59 = vsel %vm784_vm0, %v9322_v29, %v783_v40 }
  0xbd   : > { %1562 = vmatpush.bf16.msra.mxu1 %v6559_v63  ;;  %1620 = vmatpush.bf16.msra.mxu3 %v6563_v4  ;;  %v6515_v41 = vor.u32 %v7776_v32, %v6512_v36  ;;  %v6295_v47 = vor.u32 %v7725_v43, %v6294_v42  ;;  %v7773_v48 = vld [vmem:[%s9211_s27 + $0x1c4] sm:$0xf0]  ;;  %v7722_v49 = vld [vmem:[%s9211_s27 + $0x34] sm:$0xf]  ;;  %v6296_v50 = vld [vmem:[%s9211_s27 + $0x48] sm:$0xf0] }
  0xbe   : > { %1591 = vmatpush.bf16.msra.mxu2 %v6371_v0  ;;  %1534 = vmatpush.bf16.msra.mxu0 %v6343_v8  ;;  %v6487_v51 = vor.u32 %v7773_v48, %v6486_v44  ;;  %v6299_v52 = vor.u32 %v7722_v49, %v6296_v50  ;;  %v7770_v53 = vld [vmem:[%s9211_s27 + $0x1b4] sm:$0xf]  ;;  %v6488_v58 = vld [vmem:[%s9211_s27 + $0x1c8] sm:$0xf0]  ;;  %12632 = vst [vmem:[#allocation29_spill] sm:$0xff] %v9369_v59 }
  0xbf   : > { %v6491_v60 = vor.u32 %v7770_v53, %v6488_v58  ;;  %v6270_v62 = vld [vmem:[%s9211_s27] sm:$0xf]  ;;  %v7719_v63 = vld [vmem:[%s9211_s27 + $0x14] sm:$0xf0]  ;;  %v7716_v4 = vld [vmem:[%s9211_s27 + $0x4] sm:$0xf] }
  0xc0   : > { %v6462_v0 = vld [vmem:[%s9211_s27 + $0x180] sm:$0xf]  ;;  %v6271_v2 = vor.u32 %v7719_v63, %v6270_v62  ;;  %v7767_v3 = vld [vmem:[%s9211_s27 + $0x194] sm:$0xf0]  ;;  %v6272_v5 = vld [vmem:[%s9211_s27 + $0x18] sm:$0xf0] }
  0xc1   : > { %1563 = vmatpush.bf16.msra.mxu1 %v6535_v12  ;;  %1621 = vmatpush.bf16.msra.mxu3 %v6539_v17  ;;  %v6463_v29 = vor.u32 %v7767_v3, %v6462_v0  ;;  %v6275_v7 = vor.u32 %v7716_v4, %v6272_v5  ;;  %v7764_v8 = vld [vmem:[%s9211_s27 + $0x184] sm:$0xf]  ;;  %v6464_v9 = vld [vmem:[%s9211_s27 + $0x198] sm:$0xf0]  ;;  %v6448_v17 = vld [vmem:[%s9211_s27 + $0x170] sm:$0xf0] }
  0xc2   : > { %1592 = vmatpush.bf16.msra.mxu2 %v6347_v13  ;;  %1535 = vmatpush.bf16.msra.mxu0 %v6319_v21  ;;  %v6467_v11 = vor.u32 %v7764_v8, %v6464_v9  ;;  %v7759_v16 = vld [vmem:[%s9211_s27 + $0x15c] sm:$0xf]  ;;  %v6640_v22 = vld [vmem:[%s9211_s27 + $0x2f0] sm:$0xf0]  ;;  %v898_v43 = vld [vmem:[%s9222_s21] sm:$0x3] }
  0xc3   : > { %v7807_v18 = vld [vmem:[%s9211_s27 + $0x2dc] sm:$0xf]  ;;  %v6451_v21 = vor.u32 %v7759_v16, %v6448_v17  ;;  %v6446_v49 = vld [vmem:[%s9211_s27 + $0x158] sm:$0xf]  ;;  %v7762_v50 = vld [vmem:[%s9211_s27 + $0x16c] sm:$0xf0] }
  0xc4   : > { %v6643_v24 = vor.u32 %v7807_v18, %v6640_v22  ;;  %v6447_v58 = vor.u32 %v7762_v50, %v6446_v49  ;;  %v6424_v22 = vld [vmem:[%s9211_s27 + $0x140] sm:$0xf0] }
  0xc5   : > { %1564 = vmatpush.bf16.msra.mxu1 %v6511_v28  ;;  %1622 = vmatpush.bf16.msra.mxu3 %v6515_v41 }
  0xc6   : > { %1593 = vmatpush.bf16.msra.mxu2 %v6323_v31  ;;  %1536 = vmatpush.bf16.msra.mxu0 %v6295_v47 }
  0xc9   : > { %1565 = vmatpush.bf16.msra.mxu1 %v6487_v51  ;;  %1623 = vmatpush.bf16.msra.mxu3 %v6491_v60 }
  0xca   : > { %1594 = vmatpush.bf16.msra.mxu2 %v6299_v52  ;;  %1537 = vmatpush.bf16.msra.mxu0 %v6271_v2 }
  0xcd   : > { %1566 = vmatpush.bf16.msra.mxu1 %v6463_v29  ;;  %1624 = vmatpush.bf16.msra.mxu3 %v6467_v11  ;;  %v6638_v11 = vld [vmem:[%s9211_s27 + $0x2d8] sm:$0xf] }
  0xce   : > { %1595 = vmatpush.bf16.msra.mxu2 %v6275_v7  ;;  %1646 = vmatpush.bf16.msrb.mxu0 %v6447_v58 }
  0xd1   : > { %1733 = vmatpush.bf16.msrb.mxu3 %v6643_v24 }
  0xd2   : > { %1704 = vmatpush.bf16.msrb.mxu2 %v6451_v21  ;;  %v7753_v21 = vld [vmem:[%s9211_s27 + $0x12c] sm:$0xf] }
  0xd3   : > { %v6427_v50 = vor.u32 %v7753_v21, %v6424_v22  ;;  %v6376_v22 = vld [vmem:[%s9211_s27 + $0xe0] sm:$0xf0] }
  0xd6   : > { %1705 = vmatpush.bf16.msrb.mxu2 %v6427_v50  ;;  %v6566_v50 = vld [vmem:[%s9211_s27 + $0x248] sm:$0xf] }
 0x11e   : > { %v763_v61 = vpop.xlane.xlu1 %762 }
 0x11f   : > { %v757_v1 = vpop.xlane.xlu0 %756  ;;  %v788_v10 = vmul.f32 %v9369_v59, %v763_v61  ;;  %v899_v61 = vunpack.c.l.bf16 %v898_v43 }
 0x120   : > { %v786_v6 = vmul.f32 %v9369_v59, %v757_v1  ;;  %v769_v13 = vpop.xlane.xlu2 %768 }
 0x121   : > { %v9381_v14 = vadd.f32 1e-06, %v788_v10  ;;  %v790_v40 = vmul.f32 %v9369_v59, %v769_v13  ;;  %v901_v4 = vperm.slane %v899_v61, 0  ;;  %v902_v7 = vperm.slane %v899_v61, 2  ;;  %v7810_v13 = vld [vmem:[%s9211_s27 + $0x2ec] sm:$0xf0] }
 0x122   : > { %v794_v12 = vadd.f32 1e-06, %v786_v6 }
 0x123   : > { %v9397_v48 = vadd.f32 1e-06, %v790_v40  ;;  %vm828_vm10 = vweird.f32 %v9381_v14 }
 0x124   : > { %8361 = vrsqrt.f32 %v794_v12  ;;  %vm808_vm2 = vweird.f32 %v794_v12 }
 0x125   : > { %8363 = vrsqrt.f32 %v9381_v14  ;;  %vm848_vm13 = vweird.f32 %v9397_v48 }
 0x126   : > { %v766_v15 = vpop.xlane.xlu1 %765 }
 0x127   : > { %v789_v19 = vmul.f32 %v9369_v59, %v766_v15  ;;  %v760_v20 = vpop.xlane.xlu0 %759  ;;  %v9418_v15 = vperm.slane %v901_v4, 0 }
 0x128   : > { %v787_v23 = vmul.f32 %v9369_v59, %v760_v20  ;;  %v772_v42 = vpop.xlane.xlu2 %771 }
 0x129   : > { %v9389_v28 = vadd.f32 1e-06, %v789_v19  ;;  %v791_v53 = vmul.f32 %v9369_v59, %v772_v42  ;;  %v7756_v42 = vld [vmem:[%s9211_s27 + $0x13c] sm:$0xf0] }
 0x12a   : > { %v8362_v31 = vpop.eup %8361  ;;  %v795_v32 = vadd.f32 1e-06, %v787_v23  ;;  %v9426_v23 = vperm.slane %v902_v7, 0 }
 0x12b   : > { %v803_v36 = vmul.f32 %v8362_v31, %v794_v12  ;;  %8365 = vrsqrt.f32 %v9389_v28  ;;  %v9395_v47 = vpop.eup %8363  ;;  %vm809_vm1 = vweird.f32 %v8362_v31  ;;  %v9409_v3 = vadd.f32 1e-06, %v791_v53 }
 0x12c   : > { %8367 = vrsqrt.f32 %v795_v32  ;;  %v823_v63 = vmul.f32 %v9395_v47, %v9381_v14  ;;  %vm810_vm3 = vmor %vm808_vm2, %vm809_vm1  ;;  %vm818_vm5 = vweird.f32 %v795_v32  ;;  %vm838_vm7 = vweird.f32 %v9389_v28 }
 0x12d   : > { %v804_v41 = vmul.f32 %v8362_v31, %v803_v36  ;;  %8369 = vrsqrt.f32 %v9397_v48  ;;  %v7801_v36 = vld [vmem:[%s9211_s27 + $0x2ac] sm:$0xf]  ;;  %vm829_vm11 = vweird.f32 %v9395_v47  ;;  %vm858_vm15 = vweird.f32 %v9409_v3 }
 0x12e   : > { %v824_v6 = vmul.f32 %v9395_v47, %v823_v63  ;;  %v778_v9 = vpop.xlane.xlu1 %777  ;;  %8371 = vrsqrt.f32 %v9409_v3  ;;  %vm9495_vm12 = vmor %vm828_vm10, %vm829_vm11 }
 0x12f   : > { %v805_v44 = vmul.f32 0.5, %v804_v41  ;;  %v793_v20 = vmul.f32 %v9369_v59, %v778_v9  ;;  %v6422_v41 = vld [vmem:[%s9211_s27 + $0x128] sm:$0xf]  ;;  %v775_v49 = vpop.xlane.xlu0 %774 }
 0x130   : > { %v9420_v17 = vmul.f32 0.5, %v824_v6  ;;  %v792_v4 = vmul.f32 %v9369_v59, %v775_v49  ;;  %v7795_v6 = vld [vmem:[%s9211_s27 + $0x27c] sm:$0xf] }
 0x131   : > { %v9401_v51 = vpop.eup %8365  ;;  %v806_v52 = vsub.f32 1.5, %v805_v44 }
 0x132   : > { %v8368_v60 = vpop.eup %8367  ;;  %v833_v62 = vmul.f32 %v9401_v51, %v9389_v28  ;;  %vm839_vm8 = vweird.f32 %v9401_v51  ;;  %v826_v53 = vsub.f32 1.5, %v9420_v17  ;;  %v7747_v28 = vld [vmem:[%s9211_s27 + $0xfc] sm:$0xf]  ;;  %v6590_v17 = vld [vmem:[%s9211_s27 + $0x278] sm:$0xf] }
 0x133   : > { %v813_v0 = vmul.f32 %v8368_v60, %v795_v32  ;;  %v807_v1 = vmul.f32 %v8362_v31, %v806_v52  ;;  %vm819_vm4 = vweird.f32 %v8368_v60  ;;  %v9416_v12 = vpop.eup %8369  ;;  %v6616_v32 = vld [vmem:[%s9211_s27 + $0x2c0] sm:$0xf0]  ;;  %vm9451_vm9 = vmor %vm838_vm7, %vm839_vm8 }
 0x134   : > { %v834_v5 = vmul.f32 %v9401_v51, %v833_v62  ;;  %vm820_vm6 = vmor %vm818_vm5, %vm819_vm4  ;;  %v843_v40 = vmul.f32 %v9416_v12, %v9397_v48  ;;  %v9440_v52 = vpop.eup %8371  ;;  %v6619_v61 = vor.u32 %v7801_v36, %v6616_v32  ;;  %v827_v36 = vmul.f32 %v9395_v47, %v826_v53  ;;  %v7792_v53 = vld [vmem:[%s9211_s27 + $0x25c] sm:$0xf0] }
 0x135   : > { %v814_v2 = vmul.f32 %v8368_v60, %v813_v0  ;;  %v811_v8 = vsel %vm810_vm3, %v8362_v31, %v807_v1  ;;  %v6639_v31 = vor.u32 %v7810_v13, %v6638_v11  ;;  %v6423_v0 = vor.u32 %v7756_v42, %v6422_v41  ;;  %v6614_v1 = vld [vmem:[%s9211_s27 + $0x2a8] sm:$0xf]  ;;  %v6398_v11 = vld [vmem:[%s9211_s27 + $0xf8] sm:$0xf]  ;;  %v7750_v13 = vld [vmem:[%s9211_s27 + $0x10c] sm:$0xf0] }
 0x136   : > { %v835_v16 = vmul.f32 0.5, %v834_v5  ;;  %v882_v18 = vmul.f32 %v811_v8, %v9246_v27  ;;  %v883_v24 = vmul.f32 %v811_v8, %v9252_v30  ;;  %1734 = vmatpush.bf16.msrb.mxu3 %v6619_v61  ;;  %v6400_v5 = vld [vmem:[%s9211_s27 + $0x110] sm:$0xf0]  ;;  %v853_v9 = vmul.f32 %v9440_v52, %v9409_v3  ;;  %v6374_v41 = vld [vmem:[%s9211_s27 + $0xc8] sm:$0xf] }
 0x137   : > { %v815_v29 = vmul.f32 0.5, %v814_v2  ;;  %1675 = vmatpush.bf16.msrb.mxu1 %v6639_v31  ;;  %v7804_v2 = vld [vmem:[%s9211_s27 + $0x2bc] sm:$0xf0]  ;;  %1647 = vmatpush.bf16.msrb.mxu0 %v6423_v0  ;;  %v6403_v21 = vor.u32 %v7747_v28, %v6400_v5  ;;  %v6568_v31 = vld [vmem:[%s9211_s27 + $0x260] sm:$0xf0]  ;;  %vm849_vm14 = vweird.f32 %v9416_v12  ;;  %vm859_vm0 = vweird.f32 %v9440_v52 }
 0x138   : > { %v836_v43 = vsub.f32 1.5, %v835_v16  ;;  %v907_v58 = vmul.f32 %v9418_v15, %v882_v18  ;;  %v6615_v16 = vor.u32 %v7804_v2, %v6614_v1  ;;  %v7798_v18 = vld [vmem:[%s9211_s27 + $0x28c] sm:$0xf0]  ;;  %v9487_v32 = vadd.f32 1e-06, %v792_v4  ;;  %vm850_vm1 = vmor %vm848_vm13, %vm849_vm14 }
 0x139   : > { %v816_v10 = vsub.f32 1.5, %v815_v29  ;;  %v7744_v42 = vld [vmem:[%s9211_s27 + $0xdc] sm:$0xf0]  ;;  %1706 = vmatpush.bf16.msrb.mxu2 %v6403_v21  ;;  %v6591_v49 = vor.u32 %v7798_v18, %v6590_v17  ;;  %v7735_v61 = vld [vmem:[%s9211_s27 + $0x9c] sm:$0xf]  ;;  %v831_v1 = vsel %vm9495_vm12, %v9395_v47, %v827_v36  ;;  %vm860_vm2 = vmor %vm858_vm15, %vm859_vm0 }
 0x13a   : > { %v837_v29 = vmul.f32 %v9401_v51, %v836_v43  ;;  %v7738_v0 = vld [vmem:[%s9211_s27 + $0xac] sm:$0xf0]  ;;  %v886_v17 = vmul.f32 %v831_v1, %v9242_v25  ;;  %v6520_v18 = vld [vmem:[%s9211_s27 + $0x200] sm:$0xf0]  ;;  %vm868_vm5 = vweird.f32 %v9487_v32 }
 0x13b   : > { %v817_v19 = vmul.f32 %v8368_v60, %v816_v10  ;;  %v6592_v10 = vld [vmem:[%s9211_s27 + $0x290] sm:$0xf0]  ;;  %1676 = vmatpush.bf16.msrb.mxu1 %v6615_v16  ;;  %v7786_v47 = vld [vmem:[%s9211_s27 + $0x22c] sm:$0xf0]  ;;  %v7777_v16 = vld [vmem:[%s9211_s27 + $0x1ec] sm:$0xf] }
 0x13c   : > { %v6523_v25 = vor.u32 %v7777_v16, %v6520_v18  ;;  %v6278_v16 = vld [vmem:[%s9211_s27 + $0x8] sm:$0xf] }
 0x13d   : > { %v821_v27 = vsel %vm820_vm6, %v8368_v60, %v817_v19  ;;  %v9444_v60 = vadd.f32 1e-06, %v793_v20  ;;  %v7741_v19 = vld [vmem:[%s9211_s27 + $0xcc] sm:$0xf]  ;;  %v844_v20 = vmul.f32 %v9416_v12, %v843_v40  ;;  %v6399_v40 = vor.u32 %v7750_v13, %v6398_v11  ;;  %v6328_v13 = vld [vmem:[%s9211_s27 + $0x80] sm:$0xf0] }
 0x13e   : > { %v884_v44 = vmul.f32 %v821_v27, %v9264_v37  ;;  %v885_v30 = vmul.f32 %v821_v27, %v9266_v38  ;;  %v908_v37 = vmul.f32 %v9426_v23, %v883_v24  ;;  %v7789_v24 = vld [vmem:[%s9211_s27 + $0x24c] sm:$0xf]  ;;  %v6595_v27 = vor.u32 %v7795_v6, %v6592_v10  ;;  %v6544_v38 = vld [vmem:[%s9211_s27 + $0x230] sm:$0xf0] }
 0x13f   : > { %1648 = vmatpush.bf16.msrb.mxu0 %v6399_v40  ;;  %v6379_v14 = vor.u32 %v7741_v19, %v6376_v22  ;;  %8373 = vrsqrt.f32 %v9444_v60  ;;  %v845_v4 = vmul.f32 0.5, %v844_v20  ;;  %1677 = vmatpush.bf16.msrb.mxu1 %v6591_v49  ;;  %v6567_v6 = vor.u32 %v7792_v53, %v6566_v50  ;;  %v7729_v11 = vld [vmem:[%s9211_s27 + $0x6c] sm:$0xf]  ;;  %v6326_v19 = vld [vmem:[%s9211_s27 + $0x68] sm:$0xf] }
 0x140   : > { %v909_v62 = vmul.f32 %v9418_v15, %v884_v44  ;;  %v910_v63 = vmul.f32 %v9426_v23, %v885_v30  ;;  %v841_v44 = vsel %vm9451_vm9, %v9401_v51, %v837_v29  ;;  %v854_v30 = vmul.f32 %v9440_v52, %v853_v9  ;;  %1735 = vmatpush.bf16.msrb.mxu3 %v6595_v27  ;;  %v6542_v9 = vld [vmem:[%s9211_s27 + $0x218] sm:$0xf]  ;;  %v7732_v20 = vld [vmem:[%s9211_s27 + $0x7c] sm:$0xf0]  ;;  %v6518_v53 = vld [vmem:[%s9211_s27 + $0x1e8] sm:$0xf] }
 0x141   : > { %v6375_v51 = vor.u32 %v7744_v42, %v6374_v41  ;;  %v888_v2 = vmul.f32 %v841_v44, %v9258_v33  ;;  %8375 = vrsqrt.f32 %v9487_v32  ;;  %v889_v28 = vmul.f32 %v841_v44, %v9260_v34  ;;  %1707 = vmatpush.bf16.msrb.mxu2 %v6379_v14  ;;  %v7780_v14 = vld [vmem:[%s9211_s27 + $0x1fc] sm:$0xf0] }
 0x142   : > { %v9464_v7 = vpack.c.bf16 %v909_v62, %v907_v58  ;;  %v9466_v8 = vpack.c.bf16 %v910_v63, %v908_v37  ;;  %v6571_v58 = vor.u32 %v7789_v24, %v6568_v31  ;;  %v6352_v37 = vld [vmem:[%s9211_s27 + $0xb0] sm:$0xf0]  ;;  %v7783_v62 = vld [vmem:[%s9211_s27 + $0x21c] sm:$0xf]  ;;  %v6350_v63 = vld [vmem:[%s9211_s27 + $0x98] sm:$0xf]  ;;  %v887_v34 = vmul.f32 %v831_v1, %v9244_v26 }
 0x143   : > { %v855_v5 = vmul.f32 0.5, %v854_v30  ;;  %v6355_v29 = vor.u32 %v7735_v61, %v6352_v37  ;;  %1649 = vmatpush.bf16.msrb.mxu0 %v6375_v51  ;;  %v6547_v33 = vor.u32 %v7783_v62, %v6544_v38  ;;  %v6351_v10 = vor.u32 %v7738_v0, %v6350_v63  ;;  %1678 = vmatpush.bf16.msrb.mxu1 %v6567_v6  ;;  %v6304_v51 = vld [vmem:[%s9211_s27 + $0x50] sm:$0xf0]  ;;  %v7771_v38 = vld [vmem:[%s9211_s27 + $0x1bc] sm:$0xf] }
 0x144   : > { %1538 = vmatmul.bf16.vlgmr.msra.gmra.mxu0 %v9464_v7  ;;  %1567 = vmatmul.bf16.vlgmr.msra.gmra.mxu1 %v9466_v8  ;;  %v913_v21 = vmul.f32 %v9418_v15, %v888_v2  ;;  %v846_v22 = vsub.f32 1.5, %v845_v4  ;;  %v914_v31 = vmul.f32 %v9426_v23, %v889_v28  ;;  %v6543_v36 = vor.u32 %v7786_v47, %v6542_v9  ;;  %v6496_v63 = vld [vmem:[%s9211_s27 + $0x1d0] sm:$0xf0]  ;;  %v6302_v28 = vld [vmem:[%s9211_s27 + $0x38] sm:$0xf] }
 0x145   : > { %1596 = vmatmul.bf16.vlgmr.msra.gmra.mxu2 %v9464_v7  ;;  %1625 = vmatmul.bf16.vlgmr.msra.gmra.mxu3 %v9466_v8  ;;  %v9529_v24 = vpop.eup %8373  ;;  %v6331_v27 = vor.u32 %v7729_v11, %v6328_v13  ;;  %v856_v41 = vsub.f32 1.5, %v855_v5  ;;  %v6327_v26 = vor.u32 %v7732_v20, %v6326_v19  ;;  %v911_v42 = vmul.f32 %v9418_v15, %v886_v17  ;;  %v7726_v5 = vld [vmem:[%s9211_s27 + $0x4c] sm:$0xf0]  ;;  %v7717_v9 = vld [vmem:[%s9211_s27 + $0xc] sm:$0xf] }
 0x146   : > { %1736 = vmatpush.bf16.msrb.mxu3 %v6571_v58  ;;  %1708 = vmatpush.bf16.msrb.mxu2 %v6355_v29  ;;  %v912_v43 = vmul.f32 %v9426_v23, %v887_v34  ;;  %v847_v44 = vmul.f32 %v9416_v12, %v846_v22  ;;  %v873_v50 = vmul.f32 %v9529_v24, %v9444_v60  ;;  %v7723_v58 = vld [vmem:[%s9211_s27 + $0x3c] sm:$0xf]  ;;  %v7774_v29 = vld [vmem:[%s9211_s27 + $0x1cc] sm:$0xf0]  ;;  %v6280_v47 = vld [vmem:[%s9211_s27 + $0x20] sm:$0xf0]  ;;  %vm878_vm3 = vweird.f32 %v9444_v60 }
 0x147   : > { %v9532_v40 = vpop.eup %8375  ;;  %1650 = vmatpush.bf16.msrb.mxu0 %v6351_v10  ;;  %v9541_v30 = vpack.c.bf16 %v913_v21, %v911_v42  ;;  %1679 = vmatpush.bf16.msrb.mxu1 %v6543_v36  ;;  %v857_v48 = vmul.f32 %v9440_v52, %v856_v41  ;;  %v6519_v62 = vor.u32 %v7780_v14, %v6518_v53  ;;  %v7765_v11 = vld [vmem:[%s9211_s27 + $0x18c] sm:$0xf]  ;;  %v6472_v13 = vld [vmem:[%s9211_s27 + $0x1a0] sm:$0xf0]  ;;  %v7720_v20 = vld [vmem:[%s9211_s27 + $0x1c] sm:$0xf0]  ;;  %vm879_vm4 = vweird.f32 %v9529_v24 }
 0x148   : > { %v9543_v49 = vpack.c.bf16 %v914_v31, %v912_v43  ;;  %v863_v3 = vmul.f32 %v9532_v40, %v9487_v32  ;;  %v851_v61 = vsel %vm850_vm1, %v9416_v12, %v847_v44  ;;  %v874_v37 = vmul.f32 %v9529_v24, %v873_v50  ;;  %v6494_v12 = vld [vmem:[%s9211_s27 + $0x1b8] sm:$0xf]  ;;  %v6470_v21 = vld [vmem:[%s9211_s27 + $0x188] sm:$0xf]  ;;  %v7768_v22 = vld [vmem:[%s9211_s27 + $0x19c] sm:$0xf0] }
 0x149   : > { %v861_v0 = vsel %vm860_vm2, %v9440_v52, %v857_v48  ;;  %v6307_v2 = vor.u32 %v7723_v58, %v6304_v51  ;;  %v6499_v4 = vor.u32 %v7771_v38, %v6496_v63  ;;  %v6303_v6 = vor.u32 %v7726_v5, %v6302_v28  ;;  %vm880_vm7 = vmor %vm878_vm3, %vm879_vm4  ;;  %v6456_v51 = vld [vmem:[%s9211_s27 + $0x178] sm:$0xf0]  ;;  %v7757_v28 = vld [vmem:[%s9211_s27 + $0x144] sm:$0xf0] }
 0x14a   : > { %1737 = vmatpush.bf16.msrb.mxu3 %v6547_v33  ;;  %1709 = vmatpush.bf16.msrb.mxu2 %v6331_v27  ;;  %v864_v1 = vmul.f32 %v9532_v40, %v863_v3  ;;  %v890_v52 = vmul.f32 %v851_v61, %v9262_v35  ;;  %v6495_v33 = vor.u32 %v7774_v29, %v6494_v12  ;;  %v875_v31 = vmul.f32 0.5, %v874_v37  ;;  %v6622_v5 = vld [vmem:[%s9211_s27 + $0x2b0] sm:$0xf]  ;;  %v7805_v12 = vld [vmem:[%s9211_s27 + $0x2c4] sm:$0xf0] }
 0x14b   : > { %1651 = vmatpush.bf16.msrb.mxu0 %v6327_v26  ;;  %1680 = vmatpush.bf16.msrb.mxu1 %v6519_v62  ;;  %v6283_v10 = vor.u32 %v7717_v9, %v6280_v47  ;;  %v891_v17 = vmul.f32 %v851_v61, %v9268_v39  ;;  %v892_v34 = vmul.f32 %v861_v0, %v9278_v45  ;;  %vm869_vm6 = vweird.f32 %v9532_v40  ;;  %v7760_v62 = vld [vmem:[%s9211_s27 + $0x164] sm:$0xf]  ;;  %v7754_v9 = vld [vmem:[%s9211_s27 + $0x134] sm:$0xf]  ;;  %v6432_v47 = vld [vmem:[%s9211_s27 + $0x148] sm:$0xf0] }
 0x14c   : > { %v893_v18 = vmul.f32 %v861_v0, %v9280_v46  ;;  %v6475_v19 = vor.u32 %v7765_v11, %v6472_v13  ;;  %v865_v35 = vmul.f32 0.5, %v864_v1  ;;  %v6279_v36 = vor.u32 %v7720_v20, %v6278_v16  ;;  %vm870_vm8 = vmor %vm868_vm5, %vm869_vm6  ;;  %v7808_v0 = vld [vmem:[%s9211_s27 + $0x2e4] sm:$0xf]  ;;  %v6648_v1 = vld [vmem:[%s9211_s27 + $0x2f8] sm:$0xf0] }
 0x14d   : > { %v6471_v27 = vor.u32 %v7768_v22, %v6470_v21  ;;  %v915_v41 = vmul.f32 %v9418_v15, %v890_v52  ;;  %v916_v39 = vmul.f32 %v9426_v23, %v891_v17  ;;  %v917_v45 = vmul.f32 %v9418_v15, %v892_v34  ;;  %v7802_v52 = vld [vmem:[%s9211_s27 + $0x2b4] sm:$0xf]  ;;  %v6406_v11 = vld [vmem:[%s9211_s27 + $0x100] sm:$0xf]  ;;  %v7751_v13 = vld [vmem:[%s9211_s27 + $0x114] sm:$0xf0] }
 0x14e   : > { %1738 = vmatpush.bf16.msrb.mxu3 %v6523_v25  ;;  %1710 = vmatpush.bf16.msrb.mxu2 %v6307_v2  ;;  %v918_v46 = vmul.f32 %v9426_v23, %v893_v18  ;;  %v876_v25 = vsub.f32 1.5, %v875_v31  ;;  %v866_v26 = vsub.f32 1.5, %v865_v35  ;;  %v6459_v63 = vor.u32 %v7760_v62, %v6456_v51  ;;  %v6430_v2 = vld [vmem:[%s9211_s27 + $0x130] sm:$0xf]  ;;  %v6598_v17 = vld [vmem:[%s9211_s27 + $0x280] sm:$0xf] }
 0x14f   : > { %1652 = vmatpush.bf16.msrb.mxu0 %v6303_v6  ;;  %1681 = vmatpush.bf16.msrb.mxu1 %v6495_v33  ;;  %v9588_v42 = vpack.c.bf16 %v917_v45, %v915_v41  ;;  %v6431_v6 = vor.u32 %v7757_v28, %v6430_v2  ;;  %v6623_v29 = vor.u32 %v7805_v12, %v6622_v5  ;;  %v7799_v34 = vld [vmem:[%s9211_s27 + $0x294] sm:$0xf0]  ;;  %v7748_v18 = vld [vmem:[%s9211_s27 + $0x104] sm:$0xf]  ;;  %v6408_v20 = vld [vmem:[%s9211_s27 + $0x118] sm:$0xf0] }
 0x150   : > { %v9590_v43 = vpack.c.bf16 %v918_v46, %v916_v39  ;;  %v877_v44 = vmul.f32 %v9529_v24, %v876_v25  ;;  %v867_v50 = vmul.f32 %v9532_v40, %v866_v26  ;;  %v6435_v33 = vor.u32 %v7754_v9, %v6432_v47  ;;  %v7796_v21 = vld [vmem:[%s9211_s27 + $0x284] sm:$0xf]  ;;  %v6600_v22 = vld [vmem:[%s9211_s27 + $0x298] sm:$0xf0]  ;;  %v6574_v41 = vld [vmem:[%s9211_s27 + $0x250] sm:$0xf] }
 0x151   : > { %v6599_v31 = vor.u32 %v7799_v34, %v6598_v17  ;;  %v6411_v35 = vor.u32 %v7748_v18, %v6408_v20  ;;  %v6603_v39 = vor.u32 %v7796_v21, %v6600_v22  ;;  %v7793_v45 = vld [vmem:[%s9211_s27 + $0x264] sm:$0xf0]  ;;  %v7742_v46 = vld [vmem:[%s9211_s27 + $0xd4] sm:$0xf]  ;;  %v6384_v25 = vld [vmem:[%s9211_s27 + $0xe8] sm:$0xf0] }
 0x152   : > { %1739 = vmatpush.bf16.msrb.mxu3 %v6499_v4  ;;  %1711 = vmatpush.bf16.msrb.mxu2 %v6283_v10  ;;  %v881_v60 = vsel %vm880_vm7, %v9529_v24, %v877_v44  ;;  %v871_v32 = vsel %vm870_vm8, %v9532_v40, %v867_v50  ;;  %v6651_v4 = vor.u32 %v7808_v0, %v6648_v1  ;;  %v6624_v10 = vld [vmem:[%s9211_s27 + $0x2c8] sm:$0xf0]  ;;  %v7733_v51 = vld [vmem:[%s9211_s27 + $0x84] sm:$0xf0]  ;;  %v7730_v2 = vld [vmem:[%s9211_s27 + $0x74] sm:$0xf] }
 0x153   : > { %1653 = vmatpush.bf16.msrb.mxu0 %v6279_v36  ;;  %1682 = vmatpush.bf16.msrb.mxu1 %v6471_v27  ;;  %v896_v48 = vmul.f32 %v881_v60, %v9290_v54  ;;  %v897_v3 = vmul.f32 %v881_v60, %v9292_v55  ;;  %v894_v53 = vmul.f32 %v871_v32, %v9294_v56  ;;  %v6454_v55 = vld [vmem:[%s9211_s27 + $0x160] sm:$0xf]  ;;  %v7763_v56 = vld [vmem:[%s9211_s27 + $0x174] sm:$0xf0]  ;;  %v6382_v36 = vld [vmem:[%s9211_s27 + $0xd0] sm:$0xf] }
 0x154   : > { %1543 = vmatmul.bf16.gmra.mxu0 %v9541_v30  ;;  %1572 = vmatmul.bf16.gmra.mxu1 %v9543_v49  ;;  %v895_v14 = vmul.f32 %v871_v32, %v9296_v57  ;;  %v6646_v57 = vld [vmem:[%s9211_s27 + $0x2e0] sm:$0xf]  ;;  %v6627_v16 = vor.u32 %v7802_v52, %v6624_v10  ;;  %v7745_v27 = vld [vmem:[%s9211_s27 + $0xe4] sm:$0xf0]  ;;  %v6575_v44 = vor.u32 %v7793_v45, %v6574_v41  ;;  %v7790_v60 = vld [vmem:[%s9211_s27 + $0x254] sm:$0xf] }
 0x155   : > { %1601 = vmatmul.bf16.gmra.mxu2 %v9541_v30  ;;  %1630 = vmatmul.bf16.gmra.mxu3 %v9543_v49  ;;  %v921_v58 = vmul.f32 %v9418_v15, %v896_v48  ;;  %v922_v61 = vmul.f32 %v9426_v23, %v897_v3  ;;  %v919_v24 = vmul.f32 %v9418_v15, %v894_v53  ;;  %v6576_v32 = vld [vmem:[%s9211_s27 + $0x268] sm:$0xf0]  ;;  %v6358_v3 = vld [vmem:[%s9211_s27 + $0xa0] sm:$0xf]  ;;  %v7739_v53 = vld [vmem:[%s9211_s27 + $0xb4] sm:$0xf0] }
 0x156   : > { %1740 = vmatpush.bf16.msrb.mxu3 %v6475_v19  ;;  %v920_v40 = vmul.f32 %v9426_v23, %v895_v14  ;;  %v6455_v15 = vor.u32 %v7763_v56, %v6454_v55  ;;  %v7811_v23 = vld [vmem:[%s9211_s27 + $0x2f4] sm:$0xf0]  ;;  %1820 = vmatpush.bf16.msra.mxu2 %v6459_v63  ;;  %v6407_v19 = vor.u32 %v7751_v13, %v6406_v11  ;;  %v6550_v14 = vld [vmem:[%s9211_s27 + $0x220] sm:$0xf]  ;;  %v7781_v63 = vld [vmem:[%s9211_s27 + $0x204] sm:$0xf0] }
 0x157   : > { %v9608_v37 = vpack.c.bf16 %v921_v58, %v919_v24  ;;  %v6647_v38 = vor.u32 %v7811_v23, %v6646_v57  ;;  %v6383_v26 = vor.u32 %v7745_v27, %v6382_v36  ;;  %v6387_v50 = vor.u32 %v7742_v46, %v6384_v25  ;;  %v7736_v24 = vld [vmem:[%s9211_s27 + $0xa4] sm:$0xf]  ;;  %v6334_v23 = vld [vmem:[%s9211_s27 + $0x70] sm:$0xf]  ;;  %v7778_v28 = vld [vmem:[%s9211_s27 + $0x1f4] sm:$0xf] }
 0x158   : > { %v9610_v54 = vpack.c.bf16 %v922_v61, %v920_v40  ;;  %1762 = vmatpush.bf16.msra.mxu0 %v6455_v15  ;;  %v6579_v48 = vor.u32 %v7790_v60, %v6576_v32  ;;  %v6359_v58 = vor.u32 %v7739_v53, %v6358_v3  ;;  %v7787_v61 = vld [vmem:[%s9211_s27 + $0x234] sm:$0xf0]  ;;  %v6360_v40 = vld [vmem:[%s9211_s27 + $0xb8] sm:$0xf0]  ;;  %v7784_v57 = vld [vmem:[%s9211_s27 + $0x224] sm:$0xf]  ;;  %v6335_v0 = vor.u32 %v7733_v51, %v6334_v23 }
 0x159   : > { %1791 = vmatpush.bf16.msra.mxu1 %v6647_v38  ;;  %v6551_v55 = vor.u32 %v7787_v61, %v6550_v14  ;;  %v6363_v56 = vor.u32 %v7736_v24, %v6360_v40  ;;  %v6552_v15 = vld [vmem:[%s9211_s27 + $0x238] sm:$0xf0]  ;;  %v6526_v38 = vld [vmem:[%s9211_s27 + $0x1f0] sm:$0xf]  ;;  %v6528_v12 = vld [vmem:[%s9211_s27 + $0x208] sm:$0xf0] }
 0x15a   : > { %1849 = vmatpush.bf16.msra.mxu3 %v6651_v4  ;;  %1821 = vmatpush.bf16.msra.mxu2 %v6435_v33  ;;  %v6555_v62 = vor.u32 %v7784_v57, %v6552_v15  ;;  %v6527_v1 = vor.u32 %v7781_v63, %v6526_v38  ;;  %v6336_v4 = vld [vmem:[%s9211_s27 + $0x88] sm:$0xf0]  ;;  %v6502_v9 = vld [vmem:[%s9211_s27 + $0x1c0] sm:$0xf]  ;;  %v7775_v47 = vld [vmem:[%s9211_s27 + $0x1d4] sm:$0xf0]  ;;  %v6531_v33 = vor.u32 %v7778_v28, %v6528_v12 }
 0x15b   : > { %v6339_v5 = vor.u32 %v7730_v2, %v6336_v4  ;;  %v7724_v52 = vld [vmem:[%s9211_s27 + $0x44] sm:$0xf]  ;;  %v6312_v11 = vld [vmem:[%s9211_s27 + $0x58] sm:$0xf0]  ;;  %v6503_v13 = vor.u32 %v7775_v47, %v6502_v9  ;;  %v7721_v20 = vld [vmem:[%s9211_s27 + $0x24] sm:$0xf0] }
 0x15c   : > { %1763 = vmatpush.bf16.msra.mxu0 %v6431_v6  ;;  %v6310_v6 = vld [vmem:[%s9211_s27 + $0x40] sm:$0xf]  ;;  %v7772_v17 = vld [vmem:[%s9211_s27 + $0x1c4] sm:$0xf]  ;;  %v6504_v34 = vld [vmem:[%s9211_s27 + $0x1d8] sm:$0xf0] }
 0x15d   : > { %1792 = vmatpush.bf16.msra.mxu1 %v6623_v29  ;;  %v7727_v29 = vld [vmem:[%s9211_s27 + $0x54] sm:$0xf0]  ;;  %v6507_v18 = vor.u32 %v7772_v17, %v6504_v34  ;;  %v6478_v21 = vld [vmem:[%s9211_s27 + $0x190] sm:$0xf]  ;;  %v6288_v27 = vld [vmem:[%s9211_s27 + $0x28] sm:$0xf0] }
 0x15e   : > { %1850 = vmatpush.bf16.msra.mxu3 %v6627_v16  ;;  %1822 = vmatpush.bf16.msra.mxu2 %v6411_v35  ;;  %v6311_v10 = vor.u32 %v7727_v29, %v6310_v6  ;;  %v6315_v16 = vor.u32 %v7724_v52, %v6312_v11  ;;  %v7718_v35 = vld [vmem:[%s9211_s27 + $0x14] sm:$0xf]  ;;  %v9697_v25 = vld [vmem:[%s9232_s4] sm:$0x3f] }
 0x15f   : > { %v7766_v41 = vld [vmem:[%s9211_s27 + $0x194] sm:$0xf]  ;;  %v6291_v45 = vor.u32 %v7718_v35, %v6288_v27 }
 0x160   : > { %1764 = vmatpush.bf16.msra.mxu0 %v6407_v19  ;;  %v6286_v19 = vld [vmem:[%s9211_s27 + $0x10] sm:$0xf] }
 0x161   : > { %1793 = vmatpush.bf16.msra.mxu1 %v6599_v31  ;;  %v6287_v22 = vor.u32 %v7721_v20, %v6286_v19  ;;  %v7769_v31 = vld [vmem:[%s9211_s27 + $0x1a4] sm:$0xf0] }
 0x162   : > { %1851 = vmatpush.bf16.msra.mxu3 %v6603_v39  ;;  %1823 = vmatpush.bf16.msra.mxu2 %v6387_v50  ;;  %v6479_v36 = vor.u32 %v7769_v31, %v6478_v21  ;;  %v6480_v39 = vld [vmem:[%s9211_s27 + $0x1a8] sm:$0xf0]  ;;  %s12886_s27 = sld [smem:[#allocation80_spill]] (!%p7708_p8) }
 0x163   : > { %v6483_v46 = vor.u32 %v7766_v41, %v6480_v39 }
 0x164   : > { %1548 = vmatmul.bf16.gmra.mxu0 %v9588_v42  ;;  %1577 = vmatmul.bf16.gmra.mxu1 %v9590_v43 }
 0x165   : > { %1606 = vmatmul.bf16.gmra.mxu2 %v9588_v42  ;;  %1635 = vmatmul.bf16.gmra.mxu3 %v9590_v43 }
 0x166   : > { %1765 = vmatpush.bf16.msra.mxu0 %v6383_v26  ;;  %1794 = vmatpush.bf16.msra.mxu1 %v6575_v44  ;;  %v9700_v26 = vunpack.c.l.bf16 %v9697_v25 }
 0x167   : > { %1852 = vmatpush.bf16.msra.mxu3 %v6579_v48  ;;  %1824 = vmatpush.bf16.msra.mxu2 %v6363_v56 }
 0x168   : > { %v1032_v44 = vperm.slane %v9700_v26, 0  ;;  %v1033_v32 = vperm.slane %v9700_v26, 2 }
 0x16a   : > { %1766 = vmatpush.bf16.msra.mxu0 %v6359_v58  ;;  %1795 = vmatpush.bf16.msra.mxu1 %v6551_v55  ;;  %v9704_v48 = vperm.slane %v1032_v44, 0  ;;  %v9710_v3 = vperm.slane %v1033_v32, 0 }
 0x16b   : > { %1853 = vmatpush.bf16.msra.mxu3 %v6555_v62  ;;  %1825 = vmatpush.bf16.msra.mxu2 %v6339_v5 }
 0x16e   : > { %1767 = vmatpush.bf16.msra.mxu0 %v6335_v0  ;;  %1796 = vmatpush.bf16.msra.mxu1 %v6527_v1 }
 0x16f   : > { %1854 = vmatpush.bf16.msra.mxu3 %v6531_v33  ;;  %1826 = vmatpush.bf16.msra.mxu2 %v6315_v16 }
 0x172   : > { %1768 = vmatpush.bf16.msra.mxu0 %v6311_v10  ;;  %1797 = vmatpush.bf16.msra.mxu1 %v6503_v13 }
 0x173   : > { %1855 = vmatpush.bf16.msra.mxu3 %v6507_v18  ;;  %1827 = vmatpush.bf16.msra.mxu2 %v6291_v45 }
 0x174   : > { %1553 = vmatmul.bf16.gmra.mxu0 %v9608_v37  ;;  %1582 = vmatmul.bf16.gmra.mxu1 %v9610_v54 }
 0x175   : > { %1611 = vmatmul.bf16.gmra.mxu2 %v9608_v37  ;;  %1640 = vmatmul.bf16.gmra.mxu3 %v9610_v54 }
 0x176   : > { %1769 = vmatpush.bf16.msra.mxu0 %v6287_v22  ;;  %1798 = vmatpush.bf16.msra.mxu1 %v6479_v36 }
 0x177   : > { %1856 = vmatpush.bf16.msra.mxu3 %v6483_v46 }
 0x184   : > { %1654 = vmatmul.bf16.vlgmr.msrb.gmra.mxu0 %v9464_v7  ;;  %1683 = vmatmul.bf16.vlgmr.msrb.gmra.mxu1 %v9466_v8 }
 0x185   : > { %1712 = vmatmul.bf16.vlgmr.msrb.gmra.mxu2 %v9464_v7  ;;  %1741 = vmatmul.bf16.vlgmr.msrb.gmra.mxu3 %v9466_v8 }
 0x194   : > { %1659 = vmatmul.bf16.gmra.mxu0 %v9541_v30  ;;  %1688 = vmatmul.bf16.gmra.mxu1 %v9543_v49 }
 0x195   : > { %1717 = vmatmul.bf16.gmra.mxu2 %v9541_v30  ;;  %1746 = vmatmul.bf16.gmra.mxu3 %v9543_v49 }
 0x1a4   : > { %1664 = vmatmul.bf16.gmra.mxu0 %v9588_v42  ;;  %1693 = vmatmul.bf16.gmra.mxu1 %v9590_v43 }
 0x1a5   : > { %1722 = vmatmul.bf16.gmra.mxu2 %v9588_v42  ;;  %1751 = vmatmul.bf16.gmra.mxu3 %v9590_v43 }
 0x1b4   : > { %1669 = vmatmul.bf16.gmra.mxu0 %v9608_v37  ;;  %1698 = vmatmul.bf16.gmra.mxu1 %v9610_v54 }
 0x1b5   : > { %1727 = vmatmul.bf16.gmra.mxu2 %v9608_v37  ;;  %1756 = vmatmul.bf16.gmra.mxu3 %v9610_v54 }
 0x1c1   : > { %v1539_v50 = vpop.f32.mrf.mxu0  ;;  %v1568_v60 = vpop.f32.mrf.mxu1 }
 0x1c2   : > { %v1540_v53 = vadd.f32 %v1539_v50, %v9704_v48 }
 0x1c4   : > { %1770 = vmatmul.bf16.vlgmr.msra.gmra.mxu0 %v9464_v7  ;;  %1799 = vmatmul.bf16.vlgmr.msra.gmra.mxu1 %v9466_v8  ;;  %v1569_v55 = vadd.f32 %v1568_v60, %v1540_v53 }
 0x1c5   : > { %1828 = vmatmul.bf16.vlgmr.msra.gmra.mxu2 %v9464_v7  ;;  %1857 = vmatmul.bf16.vlgmr.msra.gmra.mxu3 %v9466_v8 }
 0x1c8   : > { %v1597_v14 = vpop.f32.mrf.mxu2  ;;  %v1626_v58 = vpop.f32.mrf.mxu3 }
 0x1c9   : > { %v1598_v61 = vadd.f32 %v1597_v14, %v9710_v3  ;;  %v1541_v24 = vpop.f32.mrf.mxu0  ;;  %v1570_v40 = vpop.f32.mrf.mxu1 }
 0x1ca   : > { %v1542_v15 = vadd.f32 %v1541_v24, %v9704_v48 }
 0x1cb   : > { %v1627_v56 = vadd.f32 %v1626_v58, %v1598_v61 }
 0x1cc   : > { %v1571_v38 = vadd.f32 %v1570_v40, %v1542_v15 }
 0x1cd   : > { %v1878_v57 = vpack.c.bf16 %v1627_v56, %v1569_v55  ;;  %v1034_v56 = vperm.slane %v9700_v26, 4 }
 0x1cf   : > { %1902 = vst [vmem:[#allocation4] sm:$0xff] %v1878_v57 }
 0x1d0   : > { %v1599_v23 = vpop.f32.mrf.mxu2  ;;  %v1628_v7 = vpop.f32.mrf.mxu3 }
 0x1d1   : > { %v1600_v8 = vadd.f32 %v1599_v23, %v9710_v3  ;;  %v1544_v62 = vpop.f32.mrf.mxu0  ;;  %v1573_v51 = vpop.f32.mrf.mxu1 }
 0x1d2   : > { %v1545_v1 = vadd.f32 %v1544_v62, %v9704_v48 }
 0x1d3   : > { %v1629_v63 = vadd.f32 %v1628_v7, %v1600_v8  ;;  %v1035_v7 = vperm.slane %v9700_v26, 6 }
 0x1d4   : > { %1775 = vmatmul.bf16.gmra.mxu0 %v9541_v30  ;;  %1804 = vmatmul.bf16.gmra.mxu1 %v9543_v49  ;;  %v1574_v6 = vadd.f32 %v1573_v51, %v1545_v1  ;;  %v9742_v51 = vperm.slane %v1034_v56, 0 }
 0x1d5   : > { %v1881_v0 = vpack.c.bf16 %v1629_v63, %v1571_v38  ;;  %1833 = vmatmul.bf16.gmra.mxu2 %v9541_v30  ;;  %1862 = vmatmul.bf16.gmra.mxu3 %v9543_v49  ;;  %v9744_v63 = vperm.slane %v1035_v7, 0 }
 0x1d7   : > { %1905 = vst [vmem:[#allocation4 + $0x18] sm:$0xff] %v1881_v0 }
 0x1d8   : > { %v1602_v2 = vpop.f32.mrf.mxu2  ;;  %v1631_v4 = vpop.f32.mrf.mxu3 }
 0x1d9   : > { %v1603_v28 = vadd.f32 %v1602_v2, %v9710_v3  ;;  %v1546_v5 = vpop.f32.mrf.mxu0  ;;  %v1575_v12 = vpop.f32.mrf.mxu1 }
 0x1da   : > { %v1547_v47 = vadd.f32 %v1546_v5, %v9704_v48 }
 0x1db   : > { %v1632_v29 = vadd.f32 %v1631_v4, %v1603_v28 }
 0x1dc   : > { %v1576_v11 = vadd.f32 %v1575_v12, %v1547_v47 }
 0x1dd   : > { %v1884_v9 = vpack.c.bf16 %v1632_v29, %v1574_v6 }
 0x1df   : > { %1908 = vst [vmem:[#allocation4 + $0x30] sm:$0xff] %v1884_v9 }
 0x1e0   : > { %v1604_v52 = vpop.f32.mrf.mxu2  ;;  %v1633_v33 = vpop.f32.mrf.mxu3 }
 0x1e1   : > { %v1605_v30 = vadd.f32 %v1604_v52, %v9710_v3  ;;  %v1549_v49 = vpop.f32.mrf.mxu0  ;;  %v1578_v10 = vpop.f32.mrf.mxu1 }
 0x1e2   : > { %v1550_v17 = vadd.f32 %v1549_v49, %v9704_v48 }
 0x1e3   : > { %v1634_v13 = vadd.f32 %v1633_v33, %v1605_v30 }
 0x1e4   : > { %1780 = vmatmul.bf16.gmra.mxu0 %v9588_v42  ;;  %1809 = vmatmul.bf16.gmra.mxu1 %v9590_v43  ;;  %v1579_v22 = vadd.f32 %v1578_v10, %v1550_v17 }
 0x1e5   : > { %v1887_v16 = vpack.c.bf16 %v1634_v13, %v1576_v11  ;;  %1838 = vmatmul.bf16.gmra.mxu2 %v9588_v42  ;;  %1867 = vmatmul.bf16.gmra.mxu3 %v9590_v43 }
 0x1e7   : > { %1911 = vst [vmem:[#allocation4 + $0x48] sm:$0xff] %v1887_v16 }
 0x1e8   : > { %v1607_v34 = vpop.f32.mrf.mxu2  ;;  %v1636_v18 = vpop.f32.mrf.mxu3 }
 0x1e9   : > { %v1608_v19 = vadd.f32 %v1607_v34, %v9710_v3  ;;  %v1551_v20 = vpop.f32.mrf.mxu0  ;;  %v1580_v21 = vpop.f32.mrf.mxu1 }
 0x1ea   : > { %v1552_v36 = vadd.f32 %v1551_v20, %v9704_v48 }
 0x1eb   : > { %v1637_v31 = vadd.f32 %v1636_v18, %v1608_v19 }
 0x1ec   : > { %v1581_v45 = vadd.f32 %v1580_v21, %v1552_v36 }
 0x1ed   : > { %v1890_v35 = vpack.c.bf16 %v1637_v31, %v1579_v22 }
 0x1ef   : > { %1914 = vst [vmem:[#allocation4 + $0x60] sm:$0xff] %v1890_v35 }
 0x1f0   : > { %v1609_v27 = vpop.f32.mrf.mxu2  ;;  %v1638_v41 = vpop.f32.mrf.mxu3 }
 0x1f1   : > { %v1610_v42 = vadd.f32 %v1609_v27, %v9710_v3  ;;  %v1554_v43 = vpop.f32.mrf.mxu0  ;;  %v1583_v39 = vpop.f32.mrf.mxu1 }
 0x1f2   : > { %v1555_v50 = vadd.f32 %v1554_v43, %v9704_v48 }
 0x1f3   : > { %v1639_v46 = vadd.f32 %v1638_v41, %v1610_v42 }
 0x1f4   : > { %1785 = vmatmul.bf16.gmra.mxu0 %v9608_v37  ;;  %1814 = vmatmul.bf16.gmra.mxu1 %v9610_v54  ;;  %v1584_v61 = vadd.f32 %v1583_v39, %v1555_v50 }
 0x1f5   : > { %v1893_v44 = vpack.c.bf16 %v1639_v46, %v1581_v45  ;;  %1843 = vmatmul.bf16.gmra.mxu2 %v9608_v37  ;;  %1872 = vmatmul.bf16.gmra.mxu3 %v9610_v54 }
 0x1f7   : > { %1917 = vst [vmem:[#allocation4 + $0x78] sm:$0xff] %v1893_v44 }
 0x1f8   : > { %v1612_v60 = vpop.f32.mrf.mxu2  ;;  %v1641_v32 = vpop.f32.mrf.mxu3 }
 0x1f9   : > { %v1613_v53 = vadd.f32 %v1612_v60, %v9710_v3  ;;  %v1556_v14 = vpop.f32.mrf.mxu0  ;;  %v1585_v58 = vpop.f32.mrf.mxu1 }
 0x1fa   : > { %v1557_v55 = vadd.f32 %v1556_v14, %v9704_v48 }
 0x1fb   : > { %v1642_v24 = vadd.f32 %v1641_v32, %v1613_v53 }
 0x1fc   : > { %v1586_v8 = vadd.f32 %v1585_v58, %v1557_v55 }
 0x1fd   : > { %v1896_v40 = vpack.c.bf16 %v1642_v24, %v1584_v61 }
 0x1ff   : > { %1920 = vst [vmem:[#allocation4 + $0x90] sm:$0xff] %v1896_v40 }
 0x200   : > { %v1614_v37 = vpop.f32.mrf.mxu2  ;;  %v1643_v57 = vpop.f32.mrf.mxu3 }
 0x201   : > { %v1615_v54 = vadd.f32 %v1614_v37, %v9710_v3  ;;  %v1655_v15 = vpop.f32.mrf.mxu0  ;;  %v1684_v23 = vpop.f32.mrf.mxu1 }
 0x202   : > { %v1656_v48 = vadd.f32 %v1655_v15, %v9742_v51 }
 0x203   : > { %v1644_v62 = vadd.f32 %v1643_v57, %v1615_v54 }
 0x204   : > { %v1685_v28 = vadd.f32 %v1684_v23, %v1656_v48 }
 0x205   : > { %v1899_v38 = vpack.c.bf16 %v1644_v62, %v1586_v8 }
 0x207   : > { %1923 = vst [vmem:[#allocation4 + $0xa8] sm:$0xff] %v1899_v38 }
 0x208   : > { %v1713_v0 = vpop.f32.mrf.mxu2  ;;  %v1742_v1 = vpop.f32.mrf.mxu3 }
 0x209   : > { %v1714_v2 = vadd.f32 %v1713_v0, %v9744_v63  ;;  %v1657_v4 = vpop.f32.mrf.mxu0  ;;  %v1686_v3 = vpop.f32.mrf.mxu1 }
 0x20a   : > { %v1658_v26 = vadd.f32 %v1657_v4, %v9742_v51 }
 0x20b   : > { %v1743_v5 = vadd.f32 %v1742_v1, %v1714_v2 }
 0x20c   : > { %v1687_v33 = vadd.f32 %v1686_v3, %v1658_v26 }
 0x20d   : > { %v1879_v12 = vpack.c.bf16 %v1743_v5, %v1685_v28 }
 0x20f   : > { %1903 = vst [vmem:[#allocation4 + $0x8] sm:$0xff] %v1879_v12  ;;  %v9777_v12 = vld [vmem:[#allocation4 + $0x48] sm:$0xff]  }
 0x210   : > { %v1715_v6 = vpop.f32.mrf.mxu2  ;;  %v1744_v29 = vpop.f32.mrf.mxu3 }
 0x211   : > { %v1716_v9 = vadd.f32 %v1715_v6, %v9744_v63  ;;  %v1660_v47 = vpop.f32.mrf.mxu0  ;;  %v1689_v52 = vpop.f32.mrf.mxu1 }
 0x212   : > { %v1661_v10 = vadd.f32 %v1660_v47, %v9742_v51 }
 0x213   : > { %v1745_v30 = vadd.f32 %v1744_v29, %v1716_v9  ;;  %v1029_v29 = vunpack.c.h.bf16 %v9697_v25  ;;  %v9781_v9 = vld [vmem:[#allocation4 + $0x30] sm:$0xff]  }
 0x214   : > { %v1690_v18 = vadd.f32 %v1689_v52, %v1661_v10 }
 0x215   : > { %v1882_v49 = vpack.c.bf16 %v1745_v30, %v1687_v33  ;;  %v1937_v33 = vunpack.c.l.bf16 %v9777_v12 }
 0x217   : > { %1906 = vst [vmem:[#allocation4 + $0x20] sm:$0xff] %v1882_v49  ;;  %v1936_v49 = vunpack.c.l.bf16 %v9781_v9 }
 0x218   : > { %v1718_v11 = vpop.f32.mrf.mxu2  ;;  %v1747_v13 = vpop.f32.mrf.mxu3 }
 0x219   : > { %v1719_v16 = vadd.f32 %v1718_v11, %v9744_v63  ;;  %v1662_v17 = vpop.f32.mrf.mxu0  ;;  %v1691_v34 = vpop.f32.mrf.mxu1  ;;  %v1036_v11 = vperm.slane %v1029_v29, 0 }
 0x21a   : > { %v1663_v21 = vadd.f32 %v1662_v17, %v9742_v51 }
 0x21b   : > { %v1748_v19 = vadd.f32 %v1747_v13, %v1719_v16 }
 0x21c   : > { %v1692_v41 = vadd.f32 %v1691_v34, %v1663_v21  ;;  %v1037_v21 = vperm.slane %v1029_v29, 2 }
 0x21d   : > { %v1885_v20 = vpack.c.bf16 %v1748_v19, %v1690_v18 }
 0x21f   : > { %1909 = vst [vmem:[#allocation4 + $0x38] sm:$0xff] %v1885_v20 }
 0x220   : > { %v1720_v22 = vpop.f32.mrf.mxu2  ;;  %v1749_v31 = vpop.f32.mrf.mxu3 }
 0x221   : > { %v1721_v35 = vadd.f32 %v1720_v22, %v9744_v63  ;;  %v1665_v36 = vpop.f32.mrf.mxu0  ;;  %v1694_v27 = vpop.f32.mrf.mxu1  ;;  %v9801_v22 = vld [vmem:[#allocation4 + $0x1c] sm:$0xff]  }
 0x222   : > { %v1666_v39 = vadd.f32 %v1665_v36, %v9742_v51  ;;  %v9803_v36 = vperm.slane %v1036_v11, 0 }
 0x223   : > { %v1750_v42 = vadd.f32 %v1749_v31, %v1721_v35 }
 0x224   : > { %v1695_v32 = vadd.f32 %v1694_v27, %v1666_v39 }
 0x225   : > { %v1888_v43 = vpack.c.bf16 %v1750_v42, %v1692_v41  ;;  %v9809_v41 = vperm.slane %v1037_v21, 0  ;;  %v2095_v42 = vunpack.c.l.bf16 %v9801_v22 }
 0x226   : > { %v9756_v14 = vld [vmem:[#allocation4 + $0x38] sm:$0xff]  }
 0x227   : > { %1912 = vst [vmem:[#allocation4 + $0x50] sm:$0xff] %v1888_v43  ;;  %v2112_v40 = vunpack.c.h.bf16 %v9756_v14  ;;  %v1952_v0 = vunpack.c.l.bf16 %v9756_v14 }
 0x228   : > { %v1723_v45 = vpop.f32.mrf.mxu2  ;;  %v1752_v46 = vpop.f32.mrf.mxu3 }
 0x229   : > { %v1724_v44 = vadd.f32 %v1723_v45, %v9744_v63  ;;  %v1667_v50 = vpop.f32.mrf.mxu0  ;;  %v1696_v60 = vpop.f32.mrf.mxu1 }
 0x22a   : > { %v1668_v24 = vadd.f32 %v1667_v50, %v9742_v51 }
 0x22b   : > { %v1753_v53 = vadd.f32 %v1752_v46, %v1724_v44 }
 0x22c   : > { %v1697_v7 = vadd.f32 %v1696_v60, %v1668_v24 }
 0x22d   : > { %v1891_v58 = vpack.c.bf16 %v1753_v53, %v1695_v32 }
 0x22e   : > { %v9758_v61 = vld [vmem:[#allocation4 + $0x50] sm:$0xff]  }
 0x22f   : > { %1915 = vst [vmem:[#allocation4 + $0x68] sm:$0xff] %v1891_v58  ;;  %v2113_v55 = vunpack.c.h.bf16 %v9758_v61  ;;  %v1953_v38 = vunpack.c.l.bf16 %v9758_v61 }
 0x230   : > { %v1725_v56 = vpop.f32.mrf.mxu2  ;;  %v1754_v37 = vpop.f32.mrf.mxu3 }
 0x231   : > { %v1726_v57 = vadd.f32 %v1725_v56, %v9744_v63  ;;  %v1670_v54 = vpop.f32.mrf.mxu0  ;;  %v1699_v15 = vpop.f32.mrf.mxu1  ;;  %v8289_v23 = vpack.i.bf16 %v2113_v55, %v2112_v40  ;;  %v8309_v5 = vpack.i.bf16 %v1953_v38, %v1952_v0  ;;  %v9822_v56 = vld [vmem:[#allocation4 + $0xa8] sm:$0xff]  }
 0x232   : > { %v1671_v48 = vadd.f32 %v1670_v54, %v9742_v51 }
 0x233   : > { %v1755_v8 = vadd.f32 %v1754_v37, %v1726_v57  ;;  %8290 = vrot.lane.b32.xlu1 %v8289_v23, %s8945_s18  ;;  %v9824_v57 = vld [vmem:[#allocation4 + $0x90] sm:$0xff]   ;;  %v12568_v23 = vunpack.c.h.bf16 %v9822_v56 }
 0x234   : > { %v1700_v26 = vadd.f32 %v1699_v15, %v1671_v48 }
 0x235   : > { %v1894_v62 = vpack.c.bf16 %v1755_v8, %v1697_v7 }
 0x236   : > { %v9783_v47 = vld [vmem:[#allocation4 + $0x68] sm:$0xff]  }
 0x237   : > { %1918 = vst [vmem:[#allocation4 + $0x80] sm:$0xff] %v1894_v62  ;;  %v2114_v13 = vunpack.c.h.bf16 %v9783_v47 }
 0x238   : > { %v1728_v1 = vpop.f32.mrf.mxu2  ;;  %v1757_v2 = vpop.f32.mrf.mxu3 }
 0x239   : > { %v1729_v4 = vadd.f32 %v1728_v1, %v9744_v63  ;;  %v1672_v3 = vpop.f32.mrf.mxu0  ;;  %v1701_v28 = vpop.f32.mrf.mxu1 }
 0x23a   : > { %v1673_v10 = vadd.f32 %v1672_v3, %v9742_v51  ;;  %v8324_v51 = vpack.i.bf16 %v1937_v33, %v1936_v49 }
 0x23b   : > { %v1758_v6 = vadd.f32 %v1757_v2, %v1729_v4  ;;  %8310 = vrot.lane.b32.xlu1 %v8309_v5, %s8945_s18  ;;  %v12567_v4 = vunpack.c.h.bf16 %v9824_v57 }
 0x23c   : > { %v1702_v31 = vadd.f32 %v1701_v28, %v1673_v10 }
 0x23d   : > { %v1897_v52 = vpack.c.bf16 %v1758_v6, %v1700_v26  ;;  %v8354_v29 = vpack.i.bf16 %v12568_v23, %v12567_v4 }
 0x23e   : > { %v9786_v30 = vld [vmem:[#allocation4 + $0x80] sm:$0xff]  }
 0x23f   : > { %1921 = vst [vmem:[#allocation4 + $0x98] sm:$0xff] %v1897_v52  ;;  %v2115_v16 = vunpack.c.h.bf16 %v9786_v30  ;;  %v9848_v52 = vld [vmem:[#allocation4 + $0x24] sm:$0xf] }
 0x240   : > { %v1730_v25 = vpop.f32.mrf.mxu2  ;;  %v1759_v17 = vpop.f32.mrf.mxu3 }
 0x241   : > { %v1731_v34 = vadd.f32 %v1730_v25, %v9744_v63  ;;  %v1771_v18 = vpop.f32.mrf.mxu0  ;;  %v1800_v19 = vpop.f32.mrf.mxu1  ;;  %v8284_v20 = vpack.i.bf16 %v2115_v16, %v2114_v13  ;;  %v9807_v63 = vld [vmem:[#allocation4 + $0x4] sm:$0xff]   ;;  %v9853_v25 = vld [vmem:[#allocation4 + $0xc] sm:$0xf] }
 0x242   : > { %v1772_v43 = vadd.f32 %v1771_v18, %v9803_v36  ;;  %v2094_v39 = vunpack.c.l.bf16 %v9807_v63  ;;  %v12564_v18 = vunpack.c.h.bf16 %v9801_v22  ;;  %v2110_v21 = vunpack.c.l.bf16 %v9853_v25 }
 0x243   : > { %v1760_v35 = vadd.f32 %v1759_v17, %v1731_v34  ;;  %8285 = vrot.lane.b32.xlu0 %v8284_v20, %s8945_s18  ;;  %8325 = vrot.lane.b32.xlu1 %v8324_v51, %s8945_s18  ;;  %v2111_v34 = vunpack.c.l.bf16 %v9848_v52 }
 0x244   : > { %v8339_v32 = vpack.i.bf16 %v2095_v42, %v2094_v39  ;;  %v1801_v53 = vadd.f32 %v1800_v19, %v1772_v43 }
 0x245   : > { %v1900_v27 = vpack.c.bf16 %v1760_v35, %v1702_v31  ;;  %v12557_v31 = vunpack.c.h.bf16 %v9807_v63 }
 0x246   : > { %v9820_v24 = vld [vmem:[#allocation4 + $0x98] sm:$0xff]  }
 0x247   : > { %1924 = vst [vmem:[#allocation4 + $0xb0] sm:$0xff] %v1900_v27  ;;  %v2116_v15 = vunpack.c.h.bf16 %v9820_v24  ;;  %v12566_v62 = vunpack.c.l.bf16 %v9820_v24 }
 0x248   : > { %v1829_v45 = vpop.f32.mrf.mxu2  ;;  %v1858_v46 = vpop.f32.mrf.mxu3 }
 0x249   : > { %v1830_v44 = vadd.f32 %v1829_v45, %v9809_v41  ;;  %v1773_v50 = vpop.f32.mrf.mxu0  ;;  %v1802_v60 = vpop.f32.mrf.mxu1 }
 0x24a   : > { %v1774_v7 = vadd.f32 %v1773_v50, %v9803_v36  ;;  %v8314_v50 = vpack.i.bf16 %v12564_v18, %v12557_v31 }
 0x24b   : > { %v1859_v58 = vadd.f32 %v1858_v46, %v1830_v44  ;;  %8340 = vrot.lane.b32.xlu1 %v8339_v32, %s8945_s18  ;;  %v8294_v44 = vpack.i.bf16 %v2111_v34, %v2110_v21 }
 0x24c   : > { %v1803_v10 = vadd.f32 %v1802_v60, %v1774_v7  ;;  %v9869_v60 = vld [vmem:[#allocation4 + $0x78] sm:$0xff]   ;;  %v1955_v7 = vunpack.c.l.bf16 %v9786_v30 }
 0x24d   : > { %v1880_v37 = vpack.c.bf16 %v1859_v58, %v1801_v53  ;;  %v9873_v58 = vld [vmem:[#allocation4 + $0x60] sm:$0xff]  }
 0x24e   : > { %v9826_v54 = vld [vmem:[#allocation4 + $0xb0] sm:$0xff]  }
 0x24f   : > { %1904 = vst [vmem:[#allocation4 + $0x10] sm:$0xff] %v1880_v37  ;;  %v2117_v8 = vunpack.c.h.bf16 %v9826_v54  ;;  %v12565_v48 = vunpack.c.l.bf16 %v9826_v54 }
 0x250   : > { %v1831_v1 = vpop.f32.mrf.mxu2  ;;  %v1860_v2 = vpop.f32.mrf.mxu3 }
 0x251   : > { %v1832_v3 = vadd.f32 %v1831_v1, %v9809_v41  ;;  %v1776_v28 = vpop.f32.mrf.mxu0  ;;  %v1805_v5 = vpop.f32.mrf.mxu1  ;;  %v8279_v26 = vpack.i.bf16 %v2117_v8, %v2116_v15  ;;  %v8299_v6 = vpack.i.bf16 %v12565_v48, %v12566_v62  ;;  %v12555_v1 = vunpack.c.l.bf16 %v9869_v60 }
 0x252   : > { %v1777_v51 = vadd.f32 %v1776_v28, %v9803_v36  ;;  %v12556_v28 = vunpack.c.l.bf16 %v9873_v58 }
 0x253   : > { %v1861_v11 = vadd.f32 %v1860_v2, %v1832_v3  ;;  %8280 = vrot.lane.b32.xlu2 %v8279_v26, %s8945_s18  ;;  %8300 = vrot.lane.b32.xlu0 %v8299_v6, %s8945_s18  ;;  %v1954_v3 = vunpack.c.l.bf16 %v9783_v47 }
 0x254   : > { %8355 = vrot.lane.b32.xlu1 %v8354_v29, %s8945_s18  ;;  %v1806_v32 = vadd.f32 %v1805_v5, %v1777_v51 }
 0x255   : > { %v1883_v17 = vpack.c.bf16 %v1861_v11, %v1803_v10 }
 0x256   : > { %v2070_v19 = vld [vmem:[#allocation4 + $0x10] sm:$0xf]  ;;  %v2230_v20 = vld [vmem:[#allocation4 + $0x14] sm:$0xf] }
 0x257   : > { %2078 = vst [vmem:[#allocation7] sm:$0xf] %v2070_v19  ;;  %v8329_v19 = vpack.i.bf16 %v12555_v1, %v12556_v28 }
 0x258   : > { %2238 = vst [vmem:[#allocation7 + $0x20] sm:$0xf] %v2230_v20  ;;  %v1834_v35 = vpop.f32.mrf.mxu2  ;;  %v1863_v27 = vpop.f32.mrf.mxu3  ;;  %v9889_v20 = vld [vmem:[#allocation4 + $0x18] sm:$0xf] }
 0x259   : > { %1907 = vst [vmem:[#allocation4 + $0x28] sm:$0xff] %v1883_v17  ;;  %v1835_v43 = vadd.f32 %v1834_v35, %v9809_v41  ;;  %v1778_v45 = vpop.f32.mrf.mxu0  ;;  %v1807_v46 = vpop.f32.mrf.mxu1  ;;  %v8304_v17 = vpack.i.bf16 %v1955_v7, %v1954_v3 }
 0x25a   : > { %v1779_v2 = vadd.f32 %v1778_v45, %v9803_v36 }
 0x25b   : > { %v1864_v53 = vadd.f32 %v1863_v27, %v1835_v43  ;;  %8295 = vrot.lane.b32.xlu2 %v8294_v44, %s8945_s18  ;;  %8315 = vrot.lane.b32.xlu0 %v8314_v50, %s8945_s18  ;;  %v9893_v43 = vld [vmem:[#allocation4] sm:$0xf]  ;;  %v12569_v44 = vunpack.c.l.bf16 %v9889_v20  ;;  %v12558_v50 = vunpack.c.h.bf16 %v9777_v12 }
 0x25c   : > { %v1808_v51 = vadd.f32 %v1807_v46, %v1779_v2  ;;  %v12570_v46 = vunpack.c.l.bf16 %v9893_v43  ;;  %v12559_v2 = vunpack.c.h.bf16 %v9781_v9 }
 0x25d   : > { %v1886_v37 = vpack.c.bf16 %v1864_v53, %v1806_v32 }
 0x25f   : > { %1910 = vst [vmem:[#allocation4 + $0x40] sm:$0xff] %v1886_v37 }
 0x260   : > { %v2071_v5 = vld [vmem:[#allocation4 + $0x28] sm:$0xf]  ;;  %v2231_v26 = vld [vmem:[#allocation4 + $0x2c] sm:$0xf]  ;;  %v1836_v6 = vpop.f32.mrf.mxu2  ;;  %v1865_v29 = vpop.f32.mrf.mxu3 }
 0x261   : > { %2079 = vst [vmem:[#allocation7 + $0x4] sm:$0xf] %v2071_v5  ;;  %v1837_v10 = vadd.f32 %v1836_v6, %v9809_v41  ;;  %v1781_v11 = vpop.f32.mrf.mxu0  ;;  %v1810_v27 = vpop.f32.mrf.mxu1 }
 0x262   : > { %2239 = vst [vmem:[#allocation7 + $0x24] sm:$0xf] %v2231_v26  ;;  %v1782_v37 = vadd.f32 %v1781_v11, %v9803_v36  ;;  %v8344_v11 = vpack.i.bf16 %v12558_v50, %v12559_v2 }
 0x263   : > { %v1866_v35 = vadd.f32 %v1865_v29, %v1837_v10  ;;  %8305 = vrot.lane.b32.xlu2 %v8304_v17, %s8945_s18  ;;  %8330 = vrot.lane.b32.xlu0 %v8329_v19, %s8945_s18  ;;  %v8319_v10 = vpack.i.bf16 %v12569_v44, %v12570_v46 }
 0x264   : > { %v1811_v17 = vadd.f32 %v1810_v27, %v1782_v37 }
 0x265   : > { %v1889_v45 = vpack.c.bf16 %v1866_v35, %v1808_v51 }
 0x266   : > { %v2072_v32 = vld [vmem:[#allocation4 + $0x40] sm:$0xf]  ;;  %v2232_v53 = vld [vmem:[#allocation4 + $0x44] sm:$0xf] }
 0x267   : > { %2080 = vst [vmem:[#allocation7 + $0x8] sm:$0xf] %v2072_v32 }
 0x268   : > { %2240 = vst [vmem:[#allocation7 + $0x28] sm:$0xf] %v2232_v53  ;;  %v1839_v5 = vpop.f32.mrf.mxu2  ;;  %v1868_v26 = vpop.f32.mrf.mxu3  ;;  %v12560_v53 = vunpack.c.l.bf16 %v9824_v57  ;;  %v7828_v14 = vld [vmem:[#allocation7] sm:$0xff] }
 0x269   : > { %1913 = vst [vmem:[#allocation4 + $0x58] sm:$0xff] %v1889_v45  ;;  %v1840_v6 = vadd.f32 %v1839_v5, %v9809_v41  ;;  %v1783_v29 = vpop.f32.mrf.mxu0  ;;  %v1812_v35 = vpop.f32.mrf.mxu1  ;;  %v12563_v45 = vunpack.c.l.bf16 %v9822_v56 }
 0x26a   : > { %v1784_v32 = vadd.f32 %v1783_v29, %v9803_v36 }
 0x26b   : > { %v1869_v19 = vadd.f32 %v1868_v26, %v1840_v6  ;;  %8320 = vrot.lane.b32.xlu2 %v8319_v10, %s8945_s18  ;;  %8345 = vrot.lane.b32.xlu0 %v8344_v11, %s8945_s18  ;;  %v8334_v37 = vpack.i.bf16 %v12563_v45, %v12560_v53  ;;  %v12561_v11 = vunpack.c.h.bf16 %v9869_v60  ;;  %v9971_v45 = vld [vmem:[#allocation11 + $0x20] sm:$0xff] }
 0x26c   : > { %v1813_v6 = vadd.f32 %v1812_v35, %v1784_v32 }
 0x26d   : > { %v1892_v51 = vpack.c.bf16 %v1869_v19, %v1811_v17 }
 0x26f   : > { %1916 = vst [vmem:[#allocation4 + $0x70] sm:$0xff] %v1892_v51 }
 0x270   : > { %v2073_v5 = vld [vmem:[#allocation4 + $0x58] sm:$0xf]  ;;  %v2233_v1 = vld [vmem:[#allocation4 + $0x5c] sm:$0xf]  ;;  %v1841_v28 = vpop.f32.mrf.mxu2  ;;  %v1870_v31 = vpop.f32.mrf.mxu3 }
 0x271   : > { %2081 = vst [vmem:[#allocation7 + $0xc] sm:$0xf] %v2073_v5  ;;  %v1842_v27 = vadd.f32 %v1841_v28, %v9809_v41  ;;  %v1786_v26 = vpop.f32.mrf.mxu0  ;;  %v1815_v28 = vpop.f32.mrf.mxu1  ;;  %v12562_v5 = vunpack.c.h.bf16 %v9873_v58 }
 0x272   : > { %2241 = vst [vmem:[#allocation7 + $0x2c] sm:$0xf] %v2233_v1  ;;  %v1787_v51 = vadd.f32 %v1786_v26, %v9803_v36 }
 0x273   : > { %v1871_v10 = vadd.f32 %v1870_v31, %v1842_v27  ;;  %8335 = vrot.lane.b32.xlu2 %v8334_v37, %s8945_s18  ;;  %v8349_v31 = vpack.i.bf16 %v12561_v11, %v12562_v5 }
 0x274   : > { %v1816_v35 = vadd.f32 %v1815_v28, %v1787_v51 }
 0x275   : > { %v1895_v29 = vpack.c.bf16 %v1871_v10, %v1813_v6 }
 0x276   : > { %v2074_v17 = vld [vmem:[#allocation4 + $0x70] sm:$0xf]  ;;  %v2234_v19 = vld [vmem:[#allocation4 + $0x74] sm:$0xf] }
 0x277   : > { %2082 = vst [vmem:[#allocation7 + $0x10] sm:$0xf] %v2074_v17 }
 0x278   : > { %2242 = vst [vmem:[#allocation7 + $0x30] sm:$0xf] %v2234_v19  ;;  %v1844_v50 = vpop.f32.mrf.mxu2  ;;  %v1873_v2 = vpop.f32.mrf.mxu3 }
 0x279   : > { %1919 = vst [vmem:[#allocation4 + $0x88] sm:$0xff] %v1895_v29  ;;  %v1845_v1 = vadd.f32 %v1844_v50, %v9809_v41  ;;  %v1788_v27 = vpop.f32.mrf.mxu0  ;;  %v1817_v29 = vpop.f32.mrf.mxu1 }
 0x27a   : > { %v1789_v26 = vadd.f32 %v1788_v27, %v9803_v36  ;;  %v9931_v27 = vld [vmem:[#allocation13 + $0x10] sm:$0xff] }
 0x27b   : > { %v1874_v32 = vadd.f32 %v1873_v2, %v1845_v1  ;;  %8350 = vrot.lane.b32.xlu2 %v8349_v31, %s8945_s18 }
 0x27c   : > { %v1818_v53 = vadd.f32 %v1817_v29, %v1789_v26 }
 0x27d   : > { %v1898_v37 = vpack.c.bf16 %v1874_v32, %v1816_v35  ;;  %v7832_v32 = vld [vmem:[#allocation7 + $0x20] sm:$0xff] }
 0x27f   : > { %1922 = vst [vmem:[#allocation4 + $0xa0] sm:$0xff] %v1898_v37  ;;  %v9933_v37 = vld [vmem:[#allocation13 + $0x18] sm:$0xff] }
 0x280   : > { %v2075_v6 = vld [vmem:[#allocation4 + $0x88] sm:$0xf]  ;;  %v2235_v10 = vld [vmem:[#allocation4 + $0x8c] sm:$0xf]  ;;  %v1846_v17 = vpop.f32.mrf.mxu2  ;;  %v1875_v19 = vpop.f32.mrf.mxu3 }
 0x281   : > { %2083 = vst [vmem:[#allocation7 + $0x14] sm:$0xf] %v2075_v6  ;;  %v1847_v50 = vadd.f32 %v1846_v17, %v9809_v41  ;;  %v7833_v41 = vld [vmem:[#allocation7 + $0x28] sm:$0xff]  ;;  %v9935_v6 = vld [vmem:[#allocation11 + $0x10] sm:$0xff] }
 0x282   : > { %2243 = vst [vmem:[#allocation7 + $0x34] sm:$0xf] %v2235_v10  ;;  %v9937_v10 = vld [vmem:[#allocation11 + $0x18] sm:$0xff]  ;;  %v2176_v29 = vmul.f32 %v2112_v40, %v9935_v6 }
 0x283   : > { %v1876_v11 = vadd.f32 %v1875_v19, %v1847_v50  ;;  %v2177_v17 = vmul.f32 %v2113_v55, %v9937_v10 }
 0x285   : > { %v1901_v51 = vpack.c.bf16 %v1876_v11, %v1818_v53 }
 0x286   : > { %v2076_v2 = vld [vmem:[#allocation4 + $0xa0] sm:$0xf]  ;;  %v2236_v28 = vld [vmem:[#allocation4 + $0xa4] sm:$0xf] }
 0x287   : > { %2084 = vst [vmem:[#allocation7 + $0x18] sm:$0xf] %v2076_v2 }
 0x288   : > { %2244 = vst [vmem:[#allocation7 + $0x38] sm:$0xf] %v2236_v28 }
 0x289   : > { %1925 = vst [vmem:[#allocation4 + $0xb8] sm:$0xff] %v1901_v51  ;;  %v7834_v35 = vld [vmem:[#allocation7 + $0x30] sm:$0xff] }
 0x290   : > { %v2077_v1 = vld [vmem:[#allocation4 + $0xb8] sm:$0xf]  ;;  %v2237_v31 = vld [vmem:[#allocation4 + $0xbc] sm:$0xf] }
 0x291   : > { %2085 = vst [vmem:[#allocation7 + $0x1c] sm:$0xf] %v2077_v1 }
 0x292   : > { %2245 = vst [vmem:[#allocation7 + $0x3c] sm:$0xf] %v2237_v31  ;;  %v7830_v31 = vld [vmem:[#allocation7 + $0x10] sm:$0xff] }
 0x298   : > { %v7831_v51 = vld [vmem:[#allocation7 + $0x18] sm:$0xff] }
 0x299   : > { %v7835_v36 = vld [vmem:[#allocation7 + $0x38] sm:$0xff] }
 0x29a   : > { %2687 = vmatpush.bf16.msrb.mxu1 %v7835_v36  ;;  %v9947_v36 = vld [vmem:[#allocation13 + $0x30] sm:$0xff] }
 0x29e   : > { %2688 = vmatpush.bf16.msrb.mxu1 %v7834_v35  ;;  %v9949_v35 = vld [vmem:[#allocation13 + $0x38] sm:$0xff] }
 0x2a2   : > { %2689 = vmatpush.bf16.msrb.mxu1 %v7833_v41 }
 0x2a5   : > { %v8291_v53 = vpop.permute.xlu1 %8290 }
 0x2a6   : > { %v8293_v11 = vunpack.i.h.bf16 %v8291_v53  ;;  %v8292_v26 = vunpack.i.l.bf16 %v8291_v53  ;;  %2690 = vmatpush.bf16.msrb.mxu1 %v7832_v32  ;;  %v9951_v32 = vld [vmem:[#allocation11 + $0x30] sm:$0xff]  ;;  %v9953_v53 = vld [vmem:[#allocation11 + $0x38] sm:$0xff] }
 0x2a8   : > { %v2201_v50 = vmul.f32 %v8293_v11, %v9933_v37  ;;  %v2200_v19 = vmul.f32 %v8292_v26, %v9931_v27 }
 0x2aa   : > { %v2209_v2 = vadd.f32 %v2201_v50, %v2177_v17  ;;  %v2208_v28 = vadd.f32 %v2200_v19, %v2176_v29  ;;  %2691 = vmatpush.bf16.msrb.mxu1 %v7831_v51  ;;  %v2181_v17 = vmul.f32 %v2117_v8, %v9953_v53  ;;  %v2180_v50 = vmul.f32 %v2116_v15, %v9951_v32 }
 0x2ab   : > { %v2017_v29 = vmul.f32 %v1953_v38, %v9937_v10  ;;  %v2016_v19 = vmul.f32 %v1952_v0, %v9935_v6  ;;  %v9973_v0 = vld [vmem:[#allocation13 + $0x20] sm:$0xff] }
 0x2ac   : > { %v8136_v1 = vpack.c.bf16 %v2209_v2, %v2208_v28 }
 0x2ad   : > { %v8281_v41 = vpop.permute.xlu2 %8280  ;;  %v8311_v55 = vpop.permute.xlu1 %8310 }
 0x2ae   : > { %8159 = vst [vmem:[#allocation6 + $0x18] sm:$0xff] %v8136_v1   ;;  %v8283_v40 = vunpack.i.h.bf16 %v8281_v41  ;;  %v8282_v11 = vunpack.i.l.bf16 %v8281_v41  ;;  %v8313_v26 = vunpack.i.h.bf16 %v8311_v55  ;;  %v8312_v5 = vunpack.i.l.bf16 %v8311_v55  ;;  %2692 = vmatpush.bf16.msrb.mxu1 %v7830_v31  ;;  %v7829_v1 = vld [vmem:[#allocation7 + $0x8] sm:$0xff] }
 0x2b0   : > { %v2205_v51 = vmul.f32 %v8283_v40, %v9949_v35  ;;  %v2204_v2 = vmul.f32 %v8282_v11, %v9947_v36  ;;  %v2041_v28 = vmul.f32 %v8313_v26, %v9933_v37  ;;  %v2040_v8 = vmul.f32 %v8312_v5, %v9931_v27  ;;  %v9975_v40 = vld [vmem:[#allocation13 + $0x28] sm:$0xff] }
 0x2b1   : > { %v1960_v5 = vmul.f32 %v1936_v49, %v9935_v6  ;;  %v1961_v26 = vmul.f32 %v1937_v33, %v9937_v10  ;;  %v2178_v33 = vmul.f32 %v2114_v13, %v9971_v45 }
 0x2b2   : > { %v2213_v31 = vadd.f32 %v2205_v51, %v2181_v17  ;;  %v2212_v41 = vadd.f32 %v2204_v2, %v2180_v50  ;;  %v2049_v15 = vadd.f32 %v2041_v28, %v2017_v29  ;;  %v2048_v55 = vadd.f32 %v2040_v8, %v2016_v19  ;;  %2693 = vmatpush.bf16.msrb.mxu1 %v7829_v1  ;;  %v9983_v50 = vld [vmem:[#allocation11 + $0x28] sm:$0xff]  ;;  %v9985_v28 = vld [vmem:[#allocation13] sm:$0xff] }
 0x2b3   : > { %v9987_v8 = vld [vmem:[#allocation13 + $0x8] sm:$0xff]  ;;  %v2179_v49 = vmul.f32 %v2115_v16, %v9983_v50 }
 0x2b4   : > { %v8146_v61 = vpack.c.bf16 %v2213_v31, %v2212_v41  ;;  %v8096_v38 = vpack.c.bf16 %v2049_v15, %v2048_v55 }
 0x2b5   : > { %v8286_v11 = vpop.permute.xlu0 %8285  ;;  %v8326_v17 = vpop.permute.xlu1 %8325 }
 0x2b6   : > { %8161 = vst [vmem:[#allocation6 + $0x20] sm:$0xff] %v8146_v61   ;;  %v8288_v29 = vunpack.i.h.bf16 %v8286_v11  ;;  %v8287_v19 = vunpack.i.l.bf16 %v8286_v11  ;;  %v8328_v51 = vunpack.i.h.bf16 %v8326_v17  ;;  %v8327_v2 = vunpack.i.l.bf16 %v8326_v17  ;;  %v8296_v1 = vpop.permute.xlu2 %8295  ;;  %2694 = vmatpush.bf16.msrb.mxu1 %v7828_v14  ;;  %v10001_v14 = vld [vmem:[#allocation11 + $0x8] sm:$0xff] }
 0x2b7   : > { %8151 = vst [vmem:[#allocation6] sm:$0xff] %v8096_v38   ;;  %v8298_v31 = vunpack.i.h.bf16 %v8296_v1  ;;  %v8297_v41 = vunpack.i.l.bf16 %v8296_v1  ;;  %v9999_v38 = vld [vmem:[#allocation11] sm:$0xff]  ;;  %v2175_v16 = vmul.f32 %v2111_v34, %v10001_v14 }
 0x2b8   : > { %v2203_v15 = vmul.f32 %v8288_v29, %v9975_v40  ;;  %v2202_v55 = vmul.f32 %v8287_v19, %v9973_v0  ;;  %v1985_v61 = vmul.f32 %v8328_v51, %v9933_v37  ;;  %v1984_v11 = vmul.f32 %v8327_v2, %v9931_v27 }
 0x2b9   : > { %v2199_v13 = vmul.f32 %v8298_v31, %v9987_v8  ;;  %v2174_v17 = vmul.f32 %v2110_v21, %v9999_v38  ;;  %v2198_v29 = vmul.f32 %v8297_v41, %v9985_v28 }
 0x2ba   : > { %v2211_v19 = vadd.f32 %v2203_v15, %v2179_v49  ;;  %v2210_v51 = vadd.f32 %v2202_v55, %v2178_v33  ;;  %v1993_v1 = vadd.f32 %v1985_v61, %v1961_v26  ;;  %v1992_v2 = vadd.f32 %v1984_v11, %v1960_v5 }
 0x2bb   : > { %v2207_v18 = vadd.f32 %v2199_v13, %v2175_v16  ;;  %v2206_v48 = vadd.f32 %v2198_v29, %v2174_v17  ;;  %v2118_v5 = vmul.f32 %v2094_v39, %v9999_v38  ;;  %v2119_v26 = vmul.f32 %v2095_v42, %v10001_v14 }
 0x2bc   : > { %v8141_v62 = vpack.c.bf16 %v2211_v19, %v2210_v51  ;;  %v8076_v4 = vpack.c.bf16 %v1993_v1, %v1992_v2  ;;  %v12637_v55 = vunpack.c.l.bf16 %v9893_v43  ;;  %v12639_v13 = vunpack.c.h.bf16 %v9822_v56 }
 0x2bd   : > { %v8131_v23 = vpack.c.bf16 %v2207_v18, %v2206_v48  ;;  %v8341_v44 = vpop.permute.xlu1 %8340  ;;  %v7827_v52 = vld [vmem:[#allocation6 + $0x20] sm:$0xff]  ;;  %v12640_v19 = vunpack.c.h.bf16 %v9824_v57 }
 0x2be   : > { %8160 = vst [vmem:[#allocation6 + $0x8] sm:$0xff] %v8141_v62   ;;  %v8343_v34 = vunpack.i.h.bf16 %v8341_v44  ;;  %v8342_v31 = vunpack.i.l.bf16 %v8341_v44  ;;  %v8306_v46 = vpop.permute.xlu2 %8305  ;;  %2374 = vmatpush.bf16.xpose.msrb.mxu0 %v7827_v52  ;;  %v1958_v47 = vmul.f32 %v12637_v55, %v9999_v38  ;;  %v2125_v17 = vmul.f32 %v12639_v13, %v9953_v53 }
 0x2bf   : > { %8148 = vst [vmem:[#allocation5] sm:$0xff] %v8076_v4   ;;  %v8308_v25 = vunpack.i.h.bf16 %v8306_v46  ;;  %v8307_v21 = vunpack.i.l.bf16 %v8306_v46  ;;  %v2018_v4 = vmul.f32 %v1954_v3, %v9971_v45  ;;  %v12638_v3 = vunpack.c.l.bf16 %v9889_v20 }
 0x2c0   : > { %8158 = vst [vmem:[#allocation6 + $0x38] sm:$0xff] %v8131_v23   ;;  %v2143_v48 = vmul.f32 %v8343_v34, %v9987_v8  ;;  %v2142_v62 = vmul.f32 %v8342_v31, %v9985_v28  ;;  %v2019_v23 = vmul.f32 %v1955_v7, %v9983_v50  ;;  %v2124_v51 = vmul.f32 %v12640_v19, %v9951_v32 }
 0x2c1   : > { %v2043_v18 = vmul.f32 %v8308_v25, %v9975_v40  ;;  %v2042_v39 = vmul.f32 %v8307_v21, %v9973_v0  ;;  %v1959_v30 = vmul.f32 %v12638_v3, %v10001_v14  ;;  %v12641_v52 = vunpack.c.l.bf16 %v9820_v24 }
 0x2c2   : > { %v2151_v44 = vadd.f32 %v2143_v48, %v2119_v26  ;;  %v2150_v46 = vadd.f32 %v2142_v62, %v2118_v5  ;;  %v12642_v31 = vunpack.c.l.bf16 %v9826_v54 }
 0x2c3   : > { %v2051_v49 = vadd.f32 %v2043_v18, %v2019_v23  ;;  %v2050_v42 = vadd.f32 %v2042_v39, %v2018_v4  ;;  %v2020_v34 = vmul.f32 %v12641_v52, %v9951_v32 }
 0x2c4   : > { %v8111_v33 = vpack.c.bf16 %v2151_v44, %v2150_v46  ;;  %v2021_v25 = vmul.f32 %v12642_v31, %v9953_v53 }
 0x2c5   : > { %v8101_v41 = vpack.c.bf16 %v2051_v49, %v2050_v42  ;;  %v8301_v15 = vpop.permute.xlu0 %8300  ;;  %v7826_v7 = vld [vmem:[#allocation6 + $0x8] sm:$0xff] }
 0x2c6   : > { %8154 = vst [vmem:[#allocation5 + $0x18] sm:$0xff] %v8111_v33   ;;  %v8303_v61 = vunpack.i.h.bf16 %v8301_v15  ;;  %v8302_v11 = vunpack.i.l.bf16 %v8301_v15  ;;  %v8321_v16 = vpop.permute.xlu2 %8320  ;;  %v8356_v29 = vpop.permute.xlu1 %8355  ;;  %2375 = vmatpush.bf16.xpose.msrb.mxu0 %v7826_v7 }
 0x2c7   : > { %8152 = vst [vmem:[#allocation6 + $0x10] sm:$0xff] %v8101_v41   ;;  %v8323_v43 = vunpack.i.h.bf16 %v8321_v16  ;;  %v8322_v1 = vunpack.i.l.bf16 %v8321_v16  ;;  %v8358_v2 = vunpack.i.h.bf16 %v8356_v29  ;;  %v8357_v20 = vunpack.i.l.bf16 %v8356_v29  ;;  %v7825_v41 = vld [vmem:[#allocation6 + $0x18] sm:$0xff] }
 0x2c8   : > { %v2045_v21 = vmul.f32 %v8303_v61, %v9949_v35  ;;  %v2044_v5 = vmul.f32 %v8302_v11, %v9947_v36  ;;  %v12644_v16 = vunpack.c.h.bf16 %v9807_v63  ;;  %v12645_v29 = vunpack.c.l.bf16 %v9822_v56 }
 0x2c9   : > { %v1983_v26 = vmul.f32 %v8323_v43, %v9987_v8  ;;  %v1982_v48 = vmul.f32 %v8322_v1, %v9985_v28  ;;  %v2149_v62 = vmul.f32 %v8358_v2, %v9949_v35  ;;  %v2148_v4 = vmul.f32 %v8357_v20, %v9947_v36 }
 0x2ca   : > { %v2053_v23 = vadd.f32 %v2045_v21, %v2021_v25  ;;  %v2052_v18 = vadd.f32 %v2044_v5, %v2020_v34  ;;  %v2014_v13 = vmul.f32 %v12644_v16, %v9999_v38  ;;  %v1965_v19 = vmul.f32 %v12645_v29, %v9953_v53 }
 0x2cb   : > { %v1991_v24 = vadd.f32 %v1983_v26, %v1959_v30  ;;  %v1990_v39 = vadd.f32 %v1982_v48, %v1958_v47  ;;  %v2157_v44 = vadd.f32 %v2149_v62, %v2125_v17  ;;  %v2156_v46 = vadd.f32 %v2148_v4, %v2124_v51 }
 0x2cc   : > { %v8106_v54 = vpack.c.bf16 %v2053_v23, %v2052_v18  ;;  %v12643_v30 = vunpack.c.h.bf16 %v9801_v22  ;;  %v12646_v43 = vunpack.c.l.bf16 %v9824_v57  ;;  %v12647_v57 = vunpack.c.l.bf16 %v9873_v58 }
 0x2cd   : > { %v8071_v49 = vpack.c.bf16 %v1991_v24, %v1990_v39  ;;  %v8126_v42 = vpack.c.bf16 %v2157_v44, %v2156_v46  ;;  %v8316_v33 = vpop.permute.xlu0 %8315  ;;  %v12649_v26 = vunpack.c.h.bf16 %v9873_v58  ;;  %v12650_v62 = vunpack.c.h.bf16 %v9869_v60 }
 0x2ce   : > { %8153 = vst [vmem:[#allocation6 + $0x28] sm:$0xff] %v8106_v54   ;;  %v8318_v15 = vunpack.i.h.bf16 %v8316_v33  ;;  %v8317_v55 = vunpack.i.l.bf16 %v8316_v33  ;;  %v8336_v3 = vpop.permute.xlu2 %8335  ;;  %2376 = vmatpush.bf16.xpose.msrb.mxu0 %v7825_v41  ;;  %v2015_v47 = vmul.f32 %v12643_v30, %v10001_v14  ;;  %v1964_v1 = vmul.f32 %v12646_v43, %v9951_v32  ;;  %v7821_v30 = vld [vmem:[#allocation6] sm:$0xff]  ;;  %v2440_v43 = vld [vmem:[#allocation14 + $0x8] sm:$0xff] }
 0x2cf   : > { %8072 = vst [vmem:[#allocation5 + $0x28] sm:$0xff] %v8071_v49   ;;  %v8338_v7 = vunpack.i.h.bf16 %v8336_v3  ;;  %v8337_v61 = vunpack.i.l.bf16 %v8336_v3  ;;  %v12648_v32 = vunpack.c.l.bf16 %v9869_v60  ;;  %v2122_v48 = vmul.f32 %v12649_v26, %v9971_v45 }
 0x2d0   : > { %8157 = vst [vmem:[#allocation5 + $0x30] sm:$0xff] %v8126_v42   ;;  %v2039_v11 = vmul.f32 %v8318_v15, %v9987_v8  ;;  %v2038_v17 = vmul.f32 %v8317_v55, %v9985_v28  ;;  %v7824_v28 = vld [vmem:[#allocation6 + $0x38] sm:$0xff]  ;;  %v2123_v4 = vmul.f32 %v12650_v62, %v9983_v50  ;;  %v12651_v60 = vunpack.c.h.bf16 %v9781_v9 }
 0x2d1   : > { %v1989_v51 = vmul.f32 %v8338_v7, %v9949_v35  ;;  %v1988_v22 = vmul.f32 %v8337_v61, %v9947_v36  ;;  %v1962_v36 = vmul.f32 %v12647_v57, %v9971_v45  ;;  %v1963_v25 = vmul.f32 %v12648_v32, %v9983_v50  ;;  %v7822_v61 = vld [vmem:[#allocation6 + $0x10] sm:$0xff]  ;;  %v2444_v57 = vld [vmem:[#allocation14 + $0x28] sm:$0xff]  ;;  %v2446_v62 = vld [vmem:[#allocation14 + $0x38] sm:$0xff] }
 0x2d2   : > { %v2047_v14 = vadd.f32 %v2039_v11, %v2015_v47  ;;  %v2046_v8 = vadd.f32 %v2038_v17, %v2014_v13  ;;  %v2120_v45 = vmul.f32 %v12651_v60, %v9935_v6  ;;  %v7813_v6 = vld [vmem:[#allocation5] sm:$0xff] }
 0x2d3   : > { %v1997_v2 = vadd.f32 %v1989_v51, %v1965_v19  ;;  %v1996_v20 = vadd.f32 %v1988_v22, %v1964_v1  ;;  %v2439_v17 = vld [vmem:[#allocation14] sm:$0xff] }
 0x2d4   : > { %v8091_v63 = vpack.c.bf16 %v2047_v14, %v2046_v8  ;;  %v2441_v8 = vld [vmem:[#allocation14 + $0x10] sm:$0xff] }
 0x2d5   : > { %v8086_v38 = vpack.c.bf16 %v1997_v2, %v1996_v20  ;;  %v8331_v52 = vpop.permute.xlu0 %8330  ;;  %v7823_v33 = vld [vmem:[#allocation6 + $0x28] sm:$0xff] }
 0x2d6   : > { %8092 = vst [vmem:[#allocation6 + $0x30] sm:$0xff] %v8091_v63   ;;  %v8333_v34 = vunpack.i.h.bf16 %v8331_v52  ;;  %v8332_v56 = vunpack.i.l.bf16 %v8331_v52  ;;  %v8351_v53 = vpop.permute.xlu2 %8350  ;;  %2377 = vmatpush.bf16.xpose.msrb.mxu0 %v7824_v28  ;;  %v7812_v9 = vld [vmem:[#allocation5 + $0x28] sm:$0xff] }
 0x2d7   : > { %8150 = vst [vmem:[#allocation5 + $0x20] sm:$0xff] %v8086_v38   ;;  %v8353_v35 = vunpack.i.h.bf16 %v8351_v53  ;;  %v8352_v31 = vunpack.i.l.bf16 %v8351_v53  ;;  %v7819_v16 = vld [vmem:[#allocation5 + $0x30] sm:$0xff]  ;;  %v2442_v38 = vld [vmem:[#allocation14 + $0x18] sm:$0xff] }
 0x2d8   : > { %v1987_v21 = vmul.f32 %v8333_v34, %v9975_v40  ;;  %v1986_v5 = vmul.f32 %v8332_v56, %v9973_v0  ;;  %v2443_v56 = vld [vmem:[#allocation14 + $0x20] sm:$0xff] }
 0x2d9   : > { %v2147_v23 = vmul.f32 %v8353_v35, %v9975_v40  ;;  %v2146_v18 = vmul.f32 %v8352_v31, %v9973_v0  ;;  %v12652_v0 = vunpack.c.h.bf16 %v9777_v12 }
 0x2da   : > { %v1995_v24 = vadd.f32 %v1987_v21, %v1963_v25  ;;  %v1994_v39 = vadd.f32 %v1986_v5, %v1962_v36  ;;  %v2445_v21 = vld [vmem:[#allocation14 + $0x30] sm:$0xff] }
 0x2db   : > { %v2155_v44 = vadd.f32 %v2147_v23, %v2123_v4  ;;  %v2154_v46 = vadd.f32 %v2146_v18, %v2122_v48  ;;  %v2121_v40 = vmul.f32 %v12652_v0, %v9937_v10 }
 0x2dc   : > { %v8081_v54 = vpack.c.bf16 %v1995_v24, %v1994_v39  ;;  %v2447_v24 = vld [vmem:[#allocation14 + $0x40] sm:$0xff] }
 0x2dd   : > { %v8121_v49 = vpack.c.bf16 %v2155_v44, %v2154_v46  ;;  %v8346_v42 = vpop.permute.xlu0 %8345  ;;  %v7820_v47 = vld [vmem:[#allocation6 + $0x30] sm:$0xff] }
 0x2de   : > { %8149 = vst [vmem:[#allocation5 + $0x10] sm:$0xff] %v8081_v54   ;;  %v8348_v41 = vunpack.i.h.bf16 %v8346_v42  ;;  %v8347_v58 = vunpack.i.l.bf16 %v8346_v42  ;;  %2378 = vmatpush.bf16.xpose.msrb.mxu0 %v7823_v33  ;;  %v7815_v10 = vld [vmem:[#allocation5 + $0x20] sm:$0xff] }
 0x2df   : > { %8156 = vst [vmem:[#allocation5 + $0x38] sm:$0xff] %v8121_v49  }
 0x2e0   : > { %v2145_v50 = vmul.f32 %v8348_v41, %v9933_v37  ;;  %v2144_v15 = vmul.f32 %v8347_v58, %v9931_v27  ;;  %v7816_v37 = vld [vmem:[#allocation5 + $0x18] sm:$0xff] }
 0x2e2   : > { %v2153_v55 = vadd.f32 %v2145_v50, %v2121_v40  ;;  %v2152_v3 = vadd.f32 %v2144_v15, %v2120_v45  ;;  %v2448_v40 = vld [vmem:[#allocation14 + $0x48] sm:$0xff] }
 0x2e4   : > { %v8116_v7 = vpack.c.bf16 %v2153_v55, %v2152_v3 }
 0x2e5   : > { %v7814_v12 = vld [vmem:[#allocation5 + $0x10] sm:$0xff] }
 0x2e6   : > { %8155 = vst [vmem:[#allocation5 + $0x8] sm:$0xff] %v8116_v7   ;;  %2379 = vmatpush.bf16.xpose.msrb.mxu0 %v7822_v61  ;;  %v7818_v11 = vld [vmem:[#allocation5 + $0x38] sm:$0xff] }
 0x2ed   : > { %v7817_v27 = vld [vmem:[#allocation5 + $0x8] sm:$0xff] }
 0x2ee   : > { %2380 = vmatpush.bf16.xpose.msrb.mxu0 %v7821_v30 }
 0x2f6   : > { %2381 = vmatpush.bf16.xpose.msrb.mxu0 %v7820_v47  ;;  %v2449_v47 = vld [vmem:[#allocation14 + $0x50] sm:$0xff] }
 0x2fd   : > { %2382 = vmatmul.bf16.vlgmr.msrb.gmra.mxu0 %v7812_v9 }
 0x30d   : > { %2387 = vmatmul.bf16.gmra.mxu0 %v7813_v6 }
 0x31d   : > { %2392 = vmatmul.bf16.gmra.mxu0 %v7814_v12 }
 0x32d   : > { %2397 = vmatmul.bf16.gmra.mxu0 %v7815_v10 }
 0x33d   : > { %2402 = vmatmul.bf16.gmra.mxu0 %v7816_v37 }
 0x34d   : > { %2407 = vmatmul.bf16.gmra.mxu0 %v7817_v27 }
 0x35d   : > { %2412 = vmatmul.bf16.gmra.mxu0 %v7818_v11 }
 0x36d   : > { %2417 = vmatmul.bf16.gmra.mxu0 %v7819_v16  ;;  %v2450_v16 = vld [vmem:[#allocation14 + $0x58] sm:$0xff] }
 0x37a   : > { %v2383_v13 = vpop.f32.mrf.mxu0 }
 0x37b   : > { %v2423_v29 = vmul.f32 0.088388346, %v2383_v13 }
 0x37d   : > { %v2455_v19 = vadd.f32 %v2439_v17, %v2423_v29 }
 0x37f   : > { %2471 = vmax.xlane.f32.xlu0 %v2455_v19 }
 0x382   : > { %v2385_v51 = vpop.f32.mrf.mxu0 }
 0x383   : > { %v2424_v1 = vmul.f32 0.088388346, %v2385_v51 }
 0x385   : > { %v2456_v22 = vadd.f32 %v2440_v43, %v2424_v1 }
 0x387   : > { %2473 = vmax.xlane.f32.xlu2 %v2456_v22 }
 0x38a   : > { %v2388_v14 = vpop.f32.mrf.mxu0 }
 0x38b   : > { %v2425_v2 = vmul.f32 0.088388346, %v2388_v14 }
 0x38d   : > { %v2457_v20 = vadd.f32 %v2441_v8, %v2425_v2 }
 0x38f   : > { %2475 = vmax.xlane.f32.xlu1 %v2457_v20 }
 0x392   : > { %v2390_v63 = vpop.f32.mrf.mxu0 }
 0x393   : > { %v2426_v52 = vmul.f32 0.088388346, %v2390_v63 }
 0x395   : > { %v2458_v28 = vadd.f32 %v2442_v38, %v2426_v52  ;;  %v2452_v52 = vld [vmem:[#allocation14 + $0x68] sm:$0xff] }
 0x397   : > { %2477 = vmax.xlane.f32.xlu0 %v2458_v28 }
 0x39a   : > { %v2393_v34 = vpop.f32.mrf.mxu0 }
 0x39b   : > { %v2427_v53 = vmul.f32 0.088388346, %v2393_v34 }
 0x39d   : > { %v2459_v35 = vadd.f32 %v2443_v56, %v2427_v53 }
 0x39f   : > { %2479 = vmax.xlane.f32.xlu2 %v2459_v35 }
 0x3a2   : > { %v2395_v31 = vpop.f32.mrf.mxu0 }
 0x3a3   : > { %v2428_v36 = vmul.f32 0.088388346, %v2395_v31 }
 0x3a5   : > { %v10091_v32 = vadd.f32 %v2444_v57, %v2428_v36  ;;  %v2453_v36 = vld [vmem:[#allocation14 + $0x70] sm:$0xff] }
 0x3a7   : > { %2481 = vmax.xlane.f32.xlu1 %v10091_v32 }
 0x3aa   : > { %v2398_v25 = vpop.f32.mrf.mxu0 }
 0x3ab   : > { %v2429_v5 = vmul.f32 0.088388346, %v2398_v25 }
 0x3ad   : > { %v10094_v26 = vadd.f32 %v2445_v21, %v2429_v5 }
 0x3af   : > { %2483 = vmax.xlane.f32.xlu0 %v10094_v26 }
 0x3b2   : > { %v2400_v48 = vpop.f32.mrf.mxu0 }
 0x3b3   : > { %v2430_v4 = vmul.f32 0.088388346, %v2400_v48 }
 0x3b5   : > { %v10097_v23 = vadd.f32 %v2446_v62, %v2430_v4  ;;  %v2454_v4 = vld [vmem:[#allocation14 + $0x78] sm:$0xff] }
 0x3b7   : > { %2485 = vmax.xlane.f32.xlu2 %v10097_v23 }
 0x3ba   : > { %v2403_v18 = vpop.f32.mrf.mxu0 }
 0x3bb   : > { %v2431_v39 = vmul.f32 0.088388346, %v2403_v18 }
 0x3bd   : > { %v10100_v44 = vadd.f32 %v2447_v24, %v2431_v39 }
 0x3bf   : > { %2487 = vmax.xlane.f32.xlu2 %v10100_v44 }
 0x3c2   : > { %v2405_v46 = vpop.f32.mrf.mxu0 }
 0x3c3   : > { %v2432_v0 = vmul.f32 0.088388346, %v2405_v46 }
 0x3c5   : > { %v10106_v55 = vadd.f32 %v2448_v40, %v2432_v0 }
 0x3ca   : > { %v2408_v41 = vpop.f32.mrf.mxu0 }
 0x3cb   : > { %v2433_v30 = vmul.f32 0.088388346, %v2408_v41 }
 0x3cd   : > { %v10112_v12 = vadd.f32 %v2449_v47, %v2433_v30 }
 0x3d2   : > { %v2410_v7 = vpop.f32.mrf.mxu0 }
 0x3d3   : > { %v2434_v11 = vmul.f32 0.088388346, %v2410_v7 }
 0x3d5   : > { %v10118_v29 = vadd.f32 %v2450_v16, %v2434_v11 }
 0x3da   : > { %v2413_v27 = vpop.f32.mrf.mxu0 }
 0x3db   : > { %v2435_v43 = vmul.f32 0.088388346, %v2413_v27 }
 0x3e2   : > { %v2415_v1 = vpop.f32.mrf.mxu0 }
 0x3e3   : > { %v2436_v38 = vmul.f32 0.088388346, %v2415_v1  ;;  %v6838_v1 = vld [vmem:[%s9234_s12 + $0x70] sm:$0xf] }
 0x3e5   : > { %v10132_v53 = vadd.f32 %v2452_v52, %v2436_v38 }
 0x3ea   : > { %v2418_v34 = vpop.f32.mrf.mxu0 }
 0x3eb   : > { %v2437_v57 = vmul.f32 0.088388346, %v2418_v34 }
 0x3ed   : > { %v10139_v21 = vadd.f32 %v2453_v36, %v2437_v57 }
 0x3f2   : > { %v2472_v54 = vpop.xlane.xlu0 %2471 }
 0x3f3   : > { %v2503_v49 = vsub.f32 %v2455_v19, %v2472_v54 }
 0x3f5   : > { %v2519_v42 = vmul.f32 1.442695, %v2503_v49 }
 0x3f7   : > { %8377 = vpow2.f32 %v2519_v42 }
 0x3fa   : > { %v2474_v33 = vpop.xlane.xlu2 %2473 }
 0x3fb   : > { %v2504_v58 = vsub.f32 %v2456_v22, %v2474_v33  ;;  %v2451_v22 = vld [vmem:[#allocation14 + $0x60] sm:$0xff] }
 0x3fc   : > { %v10125_v2 = vadd.f32 %v2451_v22, %v2435_v43  ;;  %v7859_v22 = vld [vmem:[%s9234_s12 + $0x74] sm:$0xf0] }
 0x3fd   : > { %v10103_v60 = vpop.eup %8377  ;;  %v2521_v45 = vmul.f32 1.442695, %v2504_v58 }
 0x3fe   : > { %2551 = vadd.xlane.f32.xlu1 %v10103_v60 }
 0x3ff   : > { %8379 = vpow2.f32 %v2521_v45 }
 0x402   : > { %v2476_v50 = vpop.xlane.xlu1 %2475 }
 0x403   : > { %v2505_v15 = vsub.f32 %v2457_v20, %v2476_v50 }
 0x405   : > { %v10108_v3 = vpop.eup %8379  ;;  %v2523_v61 = vmul.f32 1.442695, %v2505_v15 }
 0x406   : > { %2553 = vadd.xlane.f32.xlu0 %v10108_v3  ;;  %2489 = vmax.xlane.f32.xlu1 %v10106_v55 }
 0x407   : > { %8381 = vpow2.f32 %v2523_v61 }
 0x40a   : > { %v2478_v9 = vpop.xlane.xlu0 %2477 }
 0x40b   : > { %v2506_v6 = vsub.f32 %v2458_v28, %v2478_v9 }
 0x40d   : > { %v10114_v10 = vpop.eup %8381  ;;  %v2525_v37 = vmul.f32 1.442695, %v2506_v6 }
 0x40e   : > { %2555 = vadd.xlane.f32.xlu0 %v10114_v10  ;;  %2491 = vmax.xlane.f32.xlu1 %v10112_v12 }
 0x40f   : > { %8383 = vpow2.f32 %v2525_v37 }
 0x412   : > { %v2480_v13 = vpop.xlane.xlu2 %2479 }
 0x413   : > { %v2507_v17 = vsub.f32 %v2459_v35, %v2480_v13 }
 0x415   : > { %v10120_v19 = vpop.eup %8383  ;;  %v2527_v51 = vmul.f32 1.442695, %v2507_v17 }
 0x416   : > { %2557 = vadd.xlane.f32.xlu2 %v10120_v19  ;;  %2493 = vmax.xlane.f32.xlu0 %v10118_v29 }
 0x417   : > { %8385 = vpow2.f32 %v2527_v51 }
 0x41a   : > { %v2482_v14 = vpop.xlane.xlu1 %2481 }
 0x41b   : > { %v2508_v8 = vsub.f32 %v10091_v32, %v2482_v14  ;;  %v6839_v14 = vor.u32 %v7859_v22, %v6838_v1 }
 0x41d   : > { %v10127_v20 = vpop.eup %8385  ;;  %v2529_v63 = vmul.f32 1.442695, %v2508_v8  ;;  %3008 = vmatpush.bf16.msrb.mxu2 %v6839_v14 }
 0x41e   : > { %2559 = vadd.xlane.f32.xlu2 %v10127_v20  ;;  %2495 = vmax.xlane.f32.xlu0 %v10125_v2 }
 0x41f   : > { %8387 = vpow2.f32 %v2529_v63 }
 0x422   : > { %v2484_v28 = vpop.xlane.xlu0 %2483 }
 0x423   : > { %v2509_v56 = vsub.f32 %v10094_v26, %v2484_v28  ;;  %v2420_v26 = vpop.f32.mrf.mxu0 }
 0x424   : > { %v2438_v62 = vmul.f32 0.088388346, %v2420_v26 }
 0x425   : > { %v10134_v35 = vpop.eup %8387  ;;  %v2531_v31 = vmul.f32 1.442695, %v2509_v56 }
 0x426   : > { %2561 = vadd.xlane.f32.xlu1 %v10134_v35  ;;  %2497 = vmax.xlane.f32.xlu2 %v10132_v53  ;;  %v10146_v39 = vadd.f32 %v2454_v4, %v2438_v62 }
 0x427   : > { %8389 = vpow2.f32 %v2531_v31 }
 0x42a   : > { %v2486_v32 = vpop.xlane.xlu2 %2485 }
 0x42b   : > { %v2510_v25 = vsub.f32 %v10097_v23, %v2486_v32 }
 0x42d   : > { %v10141_v5 = vpop.eup %8389  ;;  %v2533_v48 = vmul.f32 1.442695, %v2510_v25 }
 0x42e   : > { %2563 = vadd.xlane.f32.xlu1 %v10141_v5  ;;  %2499 = vmax.xlane.f32.xlu2 %v10139_v21 }
 0x42f   : > { %8391 = vpow2.f32 %v2533_v48 }
 0x432   : > { %v2488_v18 = vpop.xlane.xlu2 %2487 }
 0x433   : > { %v2511_v24 = vsub.f32 %v10100_v44, %v2488_v18 }
 0x435   : > { %v10148_v46 = vpop.eup %8391  ;;  %v2535_v23 = vmul.f32 1.442695, %v2511_v24 }
 0x436   : > { %2565 = vadd.xlane.f32.xlu0 %v10148_v46  ;;  %2501 = vmax.xlane.f32.xlu1 %v10146_v39 }
 0x437   : > { %8393 = vpow2.f32 %v2535_v23 }
 0x43d   : > { %v10152_v54 = vpop.eup %8393 }
 0x43e   : > { %2567 = vadd.xlane.f32.xlu0 %v10152_v54 }
 0x471   : > { %v2552_v49 = vpop.xlane.xlu1 %2551 }
 0x472   : > { %8395 = vrcp.f32 %v2552_v49  ;;  %v7857_v49 = vld [vmem:[%s9234_s12 + $0x64] sm:$0xf0] }
 0x478   : > { %v8396_v58 = vpop.eup %8395 }
 0x479   : > { %v2554_v42 = vpop.xlane.xlu0 %2553  ;;  %v2490_v33 = vpop.xlane.xlu1 %2489  ;;  %v2599_v0 = vmul.f32 %v8396_v58, %v10103_v60 }
 0x47a   : > { %8397 = vrcp.f32 %v2554_v42  ;;  %v2512_v44 = vsub.f32 %v10106_v55, %v2490_v33  ;;  %v6822_v42 = vld [vmem:[%s9234_s12 + $0x50] sm:$0xf] }
 0x47c   : > { %v2537_v41 = vmul.f32 1.442695, %v2512_v44  ;;  %v7855_v44 = vld [vmem:[%s9234_s12 + $0x54] sm:$0xf0] }
 0x47e   : > { %8399 = vpow2.f32 %v2537_v41  ;;  %v7853_v41 = vld [vmem:[%s9234_s12 + $0x44] sm:$0xf0] }
 0x480   : > { %v8398_v45 = vpop.eup %8397 }
 0x481   : > { %v2600_v40 = vmul.f32 %v8398_v45, %v10108_v3  ;;  %v2556_v50 = vpop.xlane.xlu0 %2555  ;;  %v2492_v15 = vpop.xlane.xlu1 %2491  ;;  %v6806_v45 = vld [vmem:[%s9234_s12 + $0x30] sm:$0xf] }
 0x482   : > { %v2513_v7 = vsub.f32 %v10112_v12, %v2492_v15  ;;  %v7849_v15 = vld [vmem:[%s9234_s12 + $0x24] sm:$0xf0] }
 0x483   : > { %v2615_v61 = vpack.c.bf16 %v2600_v40, %v2599_v0  ;;  %v7851_v0 = vld [vmem:[%s9234_s12 + $0x34] sm:$0xf0] }
 0x484   : > { %v10159_v30 = vpop.eup %8399  ;;  %v2539_v47 = vmul.f32 1.442695, %v2513_v7  ;;  %v6807_v40 = vor.u32 %v7851_v0, %v6806_v45 }
 0x485   : > { %2695 = vmatmul.bf16.vlgmr.msrb.gmra.mxu1 %v2615_v61  ;;  %2569 = vadd.xlane.f32.xlu2 %v10159_v30  ;;  %v6790_v61 = vld [vmem:[%s9234_s12 + $0x10] sm:$0xf] }
 0x486   : > { %8401 = vpow2.f32 %v2539_v47  ;;  %v7847_v47 = vld [vmem:[%s9234_s12 + $0x14] sm:$0xf0] }
 0x487   : > { %8403 = vrcp.f32 %v2556_v50  ;;  %v6798_v50 = vld [vmem:[%s9234_s12 + $0x20] sm:$0xf] }
 0x488   : > { %v6799_v7 = vor.u32 %v7849_v15, %v6798_v50 }
 0x489   : > { %v2558_v55 = vpop.xlane.xlu2 %2557  ;;  %v2494_v9 = vpop.xlane.xlu0 %2493 }
 0x48a   : > { %8405 = vrcp.f32 %v2558_v55  ;;  %v2514_v60 = vsub.f32 %v10118_v29, %v2494_v9  ;;  %v6791_v55 = vor.u32 %v7847_v47, %v6790_v61  ;;  %v6800_v61 = vld [vmem:[%s9234_s12 + $0x28] sm:$0xf0]  ;;  %v6902_v47 = vld [vmem:[%s9234_s12 + $0xf0] sm:$0xf] }
 0x48c   : > { %v10163_v6 = vpop.eup %8401  ;;  %v2541_v3 = vmul.f32 1.442695, %v2514_v60  ;;  %v6782_v60 = vld [vmem:[%s9234_s12] sm:$0xf] }
 0x48d   : > { %2571 = vadd.xlane.f32.xlu1 %v10163_v6  ;;  %v8404_v12 = vpop.eup %8403 }
 0x48e   : > { %8407 = vpow2.f32 %v2541_v3  ;;  %v2601_v16 = vmul.f32 %v8404_v12, %v10114_v10  ;;  %v7845_v3 = vld [vmem:[%s9234_s12 + $0x4] sm:$0xf0] }
 0x48f   : > { %v6783_v12 = vor.u32 %v7845_v3, %v6782_v60 }
 0x490   : > { %v8406_v37 = vpop.eup %8405 }
 0x491   : > { %v2560_v27 = vpop.xlane.xlu2 %2559  ;;  %v2496_v11 = vpop.xlane.xlu0 %2495  ;;  %v2602_v13 = vmul.f32 %v8406_v37, %v10120_v19 }
 0x492   : > { %v2515_v17 = vsub.f32 %v10125_v2, %v2496_v11 }
 0x493   : > { %v2616_v51 = vpack.c.bf16 %v2602_v13, %v2601_v16 }
 0x494   : > { %v10169_v29 = vpop.eup %8407  ;;  %v2543_v43 = vmul.f32 1.442695, %v2515_v17 }
 0x495   : > { %2700 = vmatmul.bf16.gmra.mxu1 %v2616_v51  ;;  %2573 = vadd.xlane.f32.xlu0 %v10169_v29 }
 0x496   : > { %8409 = vpow2.f32 %v2543_v43 }
 0x497   : > { %8411 = vrcp.f32 %v2560_v27 }
 0x499   : > { %v2562_v8 = vpop.xlane.xlu1 %2561  ;;  %v2498_v63 = vpop.xlane.xlu2 %2497 }
 0x49a   : > { %8413 = vrcp.f32 %v2562_v8  ;;  %v2516_v10 = vsub.f32 %v10132_v53, %v2498_v63 }
 0x49c   : > { %v10175_v19 = vpop.eup %8409  ;;  %v2545_v2 = vmul.f32 1.442695, %v2516_v10 }
 0x49d   : > { %2575 = vadd.xlane.f32.xlu2 %v10175_v19  ;;  %v8412_v38 = vpop.eup %8411 }
 0x49e   : > { %8415 = vpow2.f32 %v2545_v2  ;;  %v2603_v56 = vmul.f32 %v8412_v38, %v10127_v20 }
 0x4a0   : > { %v8414_v52 = vpop.eup %8413 }
 0x4a1   : > { %v2564_v28 = vpop.xlane.xlu1 %2563  ;;  %v2500_v34 = vpop.xlane.xlu2 %2499  ;;  %v2604_v31 = vmul.f32 %v8414_v52, %v10134_v35 }
 0x4a2   : > { %v2517_v57 = vsub.f32 %v10139_v21, %v2500_v34 }
 0x4a3   : > { %v2617_v36 = vpack.c.bf16 %v2604_v31, %v2603_v56 }
 0x4a4   : > { %v10181_v32 = vpop.eup %8415  ;;  %v2547_v53 = vmul.f32 1.442695, %v2517_v57  ;;  %v6840_v57 = vld [vmem:[%s9234_s12 + $0x78] sm:$0xf0] }
 0x4a5   : > { %2705 = vmatmul.bf16.gmra.mxu1 %v2617_v36  ;;  %2577 = vadd.xlane.f32.xlu1 %v10181_v32 }
 0x4a6   : > { %8417 = vpow2.f32 %v2547_v53 }
 0x4a7   : > { %8419 = vrcp.f32 %v2564_v28 }
 0x4a9   : > { %v2566_v25 = vpop.xlane.xlu0 %2565  ;;  %v2502_v26 = vpop.xlane.xlu1 %2501 }
 0x4aa   : > { %8421 = vrcp.f32 %v2566_v25  ;;  %v2518_v20 = vsub.f32 %v10146_v39, %v2502_v26  ;;  %v6830_v39 = vld [vmem:[%s9234_s12 + $0x60] sm:$0xf]  ;;  %v7856_v26 = vld [vmem:[%s9234_s12 + $0x64] sm:$0xf] }
 0x4ab   : > { %v6831_v33 = vor.u32 %v7857_v49, %v6830_v39 }
 0x4ac   : > { %v10185_v35 = vpop.eup %8417  ;;  %v2549_v21 = vmul.f32 1.442695, %v2518_v20  ;;  %v6832_v20 = vld [vmem:[%s9234_s12 + $0x68] sm:$0xf0] }
 0x4ad   : > { %2579 = vadd.xlane.f32.xlu0 %v10185_v35  ;;  %v8420_v48 = vpop.eup %8419  ;;  %3009 = vmatpush.bf16.msrb.mxu2 %v6831_v33  ;;  %v6816_v33 = vld [vmem:[%s9234_s12 + $0x48] sm:$0xf0] }
 0x4ae   : > { %8423 = vpow2.f32 %v2549_v21  ;;  %v2605_v4 = vmul.f32 %v8420_v48, %v10141_v5  ;;  %v6823_v5 = vor.u32 %v7855_v44, %v6822_v42  ;;  %v6835_v48 = vor.u32 %v7856_v26, %v6832_v20  ;;  %v7852_v42 = vld [vmem:[%s9234_s12 + $0x44] sm:$0xf]  ;;  %v7867_v20 = vld [vmem:[%s9234_s12 + $0xb4] sm:$0xf0] }
 0x4af   : > { %v6819_v0 = vor.u32 %v7852_v42, %v6816_v33  ;;  %v7861_v42 = vld [vmem:[%s9234_s12 + $0x84] sm:$0xf0] }
 0x4b0   : > { %v8422_v62 = vpop.eup %8421 }
 0x4b1   : > { %v2606_v18 = vmul.f32 %v8422_v62, %v10148_v46  ;;  %3010 = vmatpush.bf16.msrb.mxu2 %v6823_v5  ;;  %v6814_v46 = vld [vmem:[%s9234_s12 + $0x40] sm:$0xf]  ;;  %v2568_v9 = vpop.xlane.xlu0 %2567  ;;  %v7854_v62 = vld [vmem:[%s9234_s12 + $0x54] sm:$0xf] }
 0x4b2   : > { %v6815_v58 = vor.u32 %v7853_v41, %v6814_v46  ;;  %8425 = vrcp.f32 %v2568_v9  ;;  %v7875_v9 = vld [vmem:[%s9234_s12 + $0xf4] sm:$0xf0] }
 0x4b3   : > { %v2618_v24 = vpack.c.bf16 %v2606_v18, %v2605_v4  ;;  %v6824_v4 = vld [vmem:[%s9234_s12 + $0x58] sm:$0xf0]  ;;  %v6903_v3 = vor.u32 %v7875_v9, %v6902_v47 }
 0x4b4   : > { %v10190_v23 = vpop.eup %8423 }
 0x4b5   : > { %2710 = vmatmul.bf16.gmra.mxu1 %v2618_v24  ;;  %2581 = vadd.xlane.f32.xlu2 %v10190_v23  ;;  %v6827_v24 = vor.u32 %v7854_v62, %v6824_v4  ;;  %v7865_v62 = vld [vmem:[%s9234_s12 + $0xa4] sm:$0xf0] }
 0x4b6   : > { %3011 = vmatpush.bf16.msrb.mxu2 %v6815_v58  ;;  %3037 = vmatpush.bf16.msrb.mxu3 %v6903_v3 }
 0x4b8   : > { %v8426_v27 = vpop.eup %8425 }
 0x4b9   : > { %v2607_v16 = vmul.f32 %v8426_v27, %v10152_v54  ;;  %v7846_v27 = vld [vmem:[%s9234_s12 + $0x14] sm:$0xf] }
 0x4ba   : > { %3012 = vmatpush.bf16.msrb.mxu2 %v6807_v40  ;;  %v6808_v40 = vld [vmem:[%s9234_s12 + $0x38] sm:$0xf0] }
 0x4be   : > { %3013 = vmatpush.bf16.msrb.mxu2 %v6799_v7  ;;  %v7848_v7 = vld [vmem:[%s9234_s12 + $0x24] sm:$0xf] }
 0x4c2   : > { %3014 = vmatpush.bf16.msrb.mxu2 %v6791_v55 }
 0x4c6   : > { %3015 = vmatpush.bf16.msrb.mxu2 %v6783_v12  ;;  %v6803_v12 = vor.u32 %v7848_v7, %v6800_v61  ;;  %v7868_v7 = vld [vmem:[%s9234_s12 + $0xc4] sm:$0xf]  ;;  %v6880_v61 = vld [vmem:[%s9234_s12 + $0xc8] sm:$0xf0] }
 0x4c7   : > { %v6883_v47 = vor.u32 %v7868_v7, %v6880_v61 }
 0x4f8   : > { %v2570_v37 = vpop.xlane.xlu2 %2569 }
 0x4f9   : > { %8427 = vrcp.f32 %v2570_v37 }
 0x4ff   : > { %v8428_v11 = vpop.eup %8427 }
 0x500   : > { %v2608_v13 = vmul.f32 %v8428_v11, %v10159_v30  ;;  %v2572_v1 = vpop.xlane.xlu1 %2571  ;;  %v6792_v11 = vld [vmem:[%s9234_s12 + $0x18] sm:$0xf0] }
 0x501   : > { %8429 = vrcp.f32 %v2572_v1  ;;  %v6784_v1 = vld [vmem:[%s9234_s12 + $0x8] sm:$0xf0] }
 0x502   : > { %v2696_v17 = vpop.f32.mrf.mxu1  ;;  %v2619_v51 = vpack.c.bf16 %v2608_v13, %v2607_v16 }
 0x503   : > { %v2736_v43 = vpack.c.bf16 %v2696_v17, %v2696_v17 }
 0x504   : > { %2715 = vmatmul.bf16.gmra.mxu1 %v2619_v51  ;;  %v6795_v51 = vor.u32 %v7846_v27, %v6792_v11  ;;  %v6872_v27 = vld [vmem:[%s9234_s12 + $0xb8] sm:$0xf0] }
 0x505   : > { %2744 = vst [vmem:[#allocation3] sm:$0xf] %v2736_v43  ;;  %v7844_v43 = vld [vmem:[%s9234_s12 + $0x4] sm:$0xf] }
 0x507   : > { %v8430_v63 = vpop.eup %8429 }
 0x508   : > { %v2574_v22 = vpop.xlane.xlu0 %2573  ;;  %v2609_v54 = vmul.f32 %v8430_v63, %v10163_v6  ;;  %v7858_v6 = vld [vmem:[%s9234_s12 + $0x74] sm:$0xf] }
 0x509   : > { %8431 = vrcp.f32 %v2574_v22  ;;  %v6843_v36 = vor.u32 %v7858_v6, %v6840_v57 }
 0x50a   : > { %v2698_v14 = vpop.f32.mrf.mxu1 }
 0x50b   : > { %v2737_v8 = vpack.c.bf16 %v2698_v14, %v2698_v14  ;;  %3066 = vmatpush.bf16.msra.mxu2 %v6843_v36  ;;  %v6878_v36 = vld [vmem:[%s9234_s12 + $0xc0] sm:$0xf] }
 0x50c   : > { %v6750_v34 = vld [vmem:[#allocation3] sm:$0xf] }
 0x50d   : > { %2745 = vst [vmem:[#allocation3 + $0x8] sm:$0xf] %v2737_v8 }
 0x50f   : > { %v8432_v10 = vpop.eup %8431  ;;  %3067 = vmatpush.bf16.msra.mxu2 %v6835_v48  ;;  %v6862_v48 = vld [vmem:[%s9234_s12 + $0xa0] sm:$0xf] }
 0x510   : > { %v2610_v30 = vmul.f32 %v8432_v10, %v10169_v29  ;;  %v2576_v28 = vpop.xlane.xlu2 %2575  ;;  %v6863_v4 = vor.u32 %v7865_v62, %v6862_v48 }
 0x511   : > { %8433 = vrcp.f32 %v2576_v28 }
 0x512   : > { %v2701_v2 = vpop.f32.mrf.mxu1  ;;  %v2620_v38 = vpack.c.bf16 %v2610_v30, %v2609_v54  ;;  %v6787_v54 = vor.u32 %v7844_v43, %v6784_v1  ;;  %v7873_v30 = vld [vmem:[%s9234_s12 + $0xe4] sm:$0xf0] }
 0x513   : > { %v2738_v52 = vpack.c.bf16 %v2701_v2, %v2701_v2  ;;  %3068 = vmatpush.bf16.msra.mxu2 %v6827_v24  ;;  %v6886_v2 = vld [vmem:[%s9234_s12 + $0xd0] sm:$0xf]  ;;  %v7863_v24 = vld [vmem:[%s9234_s12 + $0x94] sm:$0xf0] }
 0x514   : > { %2720 = vmatmul.bf16.gmra.mxu1 %v2620_v38  ;;  %v7837_v56 = vld [vmem:[#allocation3 + $0x4] sm:$0xf0] }
 0x515   : > { %2746 = vst [vmem:[#allocation3 + $0x10] sm:$0xf] %v2738_v52  ;;  %v10211_v31 = vor.u32 %v7837_v56, %v6750_v34  ;;  %v7871_v52 = vld [vmem:[%s9234_s12 + $0xd4] sm:$0xf0] }
 0x516   : > { %v6887_v34 = vor.u32 %v7871_v52, %v6886_v2  ;;  %v7860_v2 = vld [vmem:[%s9234_s12 + $0x84] sm:$0xf] }
 0x517   : > { %3016 = vmatmul.bf16.vlgmr.msrb.gmra.mxu2 %v10211_v31  ;;  %v8434_v21 = vpop.eup %8433 }
 0x518   : > { %v2578_v29 = vpop.xlane.xlu1 %2577  ;;  %v2611_v39 = vmul.f32 %v8434_v21, %v10175_v19  ;;  %3069 = vmatpush.bf16.msra.mxu2 %v6819_v0 }
 0x519   : > { %8435 = vrcp.f32 %v2578_v29 }
 0x51a   : > { %v2703_v53 = vpop.f32.mrf.mxu1 }
 0x51b   : > { %v2739_v25 = vpack.c.bf16 %v2703_v53, %v2703_v53  ;;  %v7869_v53 = vld [vmem:[%s9234_s12 + $0xc4] sm:$0xf0] }
 0x51c   : > { %v6758_v58 = vld [vmem:[#allocation3 + $0x10] sm:$0xf]  ;;  %v6879_v26 = vor.u32 %v7869_v53, %v6878_v36 }
 0x51d   : > { %2747 = vst [vmem:[#allocation3 + $0x18] sm:$0xf] %v2739_v25  ;;  %v6870_v25 = vld [vmem:[%s9234_s12 + $0xb0] sm:$0xf] }
 0x51e   : > { %v6871_v21 = vor.u32 %v7867_v20, %v6870_v25 }
 0x51f   : > { %v8436_v18 = vpop.eup %8435 }
 0x520   : > { %v2612_v49 = vmul.f32 %v8436_v18, %v10181_v32  ;;  %v2580_v41 = vpop.xlane.xlu0 %2579  ;;  %v7850_v32 = vld [vmem:[%s9234_s12 + $0x34] sm:$0xf]  ;;  %v6854_v18 = vld [vmem:[%s9234_s12 + $0x90] sm:$0xf] }
 0x521   : > { %8437 = vrcp.f32 %v2580_v41  ;;  %v6811_v15 = vor.u32 %v7850_v32, %v6808_v40  ;;  %v6896_v41 = vld [vmem:[%s9234_s12 + $0xe8] sm:$0xf0]  ;;  %v6888_v32 = vld [vmem:[%s9234_s12 + $0xd8] sm:$0xf0] }
 0x522   : > { %v2706_v44 = vpop.f32.mrf.mxu1  ;;  %v2621_v5 = vpack.c.bf16 %v2612_v49, %v2611_v39  ;;  %v6855_v39 = vor.u32 %v7863_v24, %v6854_v18  ;;  %v6846_v49 = vld [vmem:[%s9234_s12 + $0x80] sm:$0xf] }
 0x523   : > { %v2740_v46 = vpack.c.bf16 %v2706_v44, %v2706_v44  ;;  %3070 = vmatpush.bf16.msra.mxu2 %v6811_v15  ;;  %v6847_v33 = vor.u32 %v7861_v42, %v6846_v49  ;;  %v7874_v44 = vld [vmem:[%s9234_s12 + $0xf4] sm:$0xf] }
 0x524   : > { %2725 = vmatmul.bf16.gmra.mxu1 %v2621_v5  ;;  %v7839_v45 = vld [vmem:[#allocation3 + $0x14] sm:$0xf0] }
 0x525   : > { %2748 = vst [vmem:[#allocation3 + $0x20] sm:$0xf] %v2740_v46  ;;  %v10224_v19 = vor.u32 %v7839_v45, %v6758_v58  ;;  %v7872_v46 = vld [vmem:[%s9234_s12 + $0xe4] sm:$0xf] }
 0x526   : > { %v6899_v58 = vor.u32 %v7872_v46, %v6896_v41 }
 0x527   : > { %3021 = vmatmul.bf16.gmra.mxu2 %v10224_v19  ;;  %v8438_v37 = vpop.eup %8437 }
 0x528   : > { %v2582_v50 = vpop.xlane.xlu2 %2581  ;;  %v2613_v13 = vmul.f32 %v8438_v37, %v10185_v35  ;;  %3071 = vmatpush.bf16.msra.mxu2 %v6803_v12  ;;  %v7866_v37 = vld [vmem:[%s9234_s12 + $0xb4] sm:$0xf] }
 0x529   : > { %8439 = vrcp.f32 %v2582_v50  ;;  %v6875_v11 = vor.u32 %v7866_v37, %v6872_v27  ;;  %v8000_v37 = vld [vmem:[%s9236_s30 + $0x3dc] sm:$0xf0] }
 0x52a   : > { %v2708_v55 = vpop.f32.mrf.mxu1 }
 0x52b   : > { %v2741_v60 = vpack.c.bf16 %v2708_v55, %v2708_v55 }
 0x52c   : > { %v6766_v63 = vld [vmem:[#allocation3 + $0x20] sm:$0xf]  ;;  %3072 = vmatpush.bf16.msra.mxu2 %v6795_v51  ;;  %v6864_v51 = vld [vmem:[%s9234_s12 + $0xa8] sm:$0xf0] }
 0x52d   : > { %2749 = vst [vmem:[#allocation3 + $0x28] sm:$0xf] %v2741_v60 }
 0x52f   : > { %v8440_v16 = vpop.eup %8439 }
 0x530   : > { %v2614_v17 = vmul.f32 %v8440_v16, %v10190_v23  ;;  %v6894_v23 = vld [vmem:[%s9234_s12 + $0xe0] sm:$0xf]  ;;  %3073 = vmatpush.bf16.msra.mxu2 %v6787_v54  ;;  %v6856_v54 = vld [vmem:[%s9234_s12 + $0x98] sm:$0xf0] }
 0x531   : > { %v6895_v38 = vor.u32 %v7873_v30, %v6894_v23 }
 0x532   : > { %v2711_v22 = vpop.f32.mrf.mxu1  ;;  %v2622_v14 = vpack.c.bf16 %v2614_v17, %v2613_v13  ;;  %v7864_v17 = vld [vmem:[%s9234_s12 + $0xa4] sm:$0xf] }
 0x533   : > { %v2742_v8 = vpack.c.bf16 %v2711_v22, %v2711_v22  ;;  %3038 = vmatpush.bf16.msrb.mxu3 %v6895_v38  ;;  %v6867_v43 = vor.u32 %v7864_v17, %v6864_v51  ;;  %v6848_v38 = vld [vmem:[%s9234_s12 + $0x88] sm:$0xf0] }
 0x534   : > { %2730 = vmatmul.bf16.gmra.mxu1 %v2622_v14  ;;  %v7841_v10 = vld [vmem:[#allocation3 + $0x24] sm:$0xf0]  ;;  %v6851_v52 = vor.u32 %v7860_v2, %v6848_v38  ;;  %v8589_v2 = vld [vmem:[#allocation2 + $0x50] sm:$0xff] }
 0x535   : > { %2750 = vst [vmem:[#allocation3 + $0x30] sm:$0xf] %v2742_v8  ;;  %v6767_v35 = vor.u32 %v7841_v10, %v6766_v63  ;;  %v7862_v10 = vld [vmem:[%s9234_s12 + $0x94] sm:$0xf] }
 0x537   : > { %3026 = vmatmul.bf16.gmra.mxu2 %v6767_v35  ;;  %3039 = vmatpush.bf16.msrb.mxu3 %v6887_v34 }
 0x53a   : > { %v2713_v28 = vpop.f32.mrf.mxu1 }
 0x53b   : > { %v2743_v56 = vpack.c.bf16 %v2713_v28, %v2713_v28  ;;  %3040 = vmatpush.bf16.msrb.mxu3 %v6879_v26 }
 0x53c   : > { %v6774_v6 = vld [vmem:[#allocation3 + $0x30] sm:$0xf] }
 0x53d   : > { %2751 = vst [vmem:[#allocation3 + $0x38] sm:$0xf] %v2743_v56 }
 0x53f   : > { %3041 = vmatpush.bf16.msrb.mxu3 %v6871_v21 }
 0x543   : > { %3042 = vmatpush.bf16.msrb.mxu3 %v6863_v4 }
 0x544   : > { %v7843_v57 = vld [vmem:[#allocation3 + $0x34] sm:$0xf0] }
 0x545   : > { %v6775_v29 = vor.u32 %v7843_v57, %v6774_v6 }
 0x547   : > { %3031 = vmatmul.bf16.gmra.mxu2 %v6775_v29  ;;  %3043 = vmatpush.bf16.msrb.mxu3 %v6855_v39 }
 0x54b   : > { %3044 = vmatpush.bf16.msrb.mxu3 %v6847_v33 }
 0x557   : > { %3074 = vmatmul.bf16.vlgmr.msra.gmra.mxu2 %v10211_v31  ;;  %v6904_v31 = vld [vmem:[%s9234_s12 + $0xf8] sm:$0xf0] }
 0x558   : > { %v6907_v5 = vor.u32 %v7874_v44, %v6904_v31 }
 0x55a   : > { %3095 = vmatpush.bf16.msra.mxu3 %v6907_v5 }
 0x55e   : > { %3096 = vmatpush.bf16.msra.mxu3 %v6899_v58 }
 0x567   : > { %3079 = vmatmul.bf16.gmra.mxu2 %v10224_v19  ;;  %v7870_v19 = vld [vmem:[%s9234_s12 + $0xd4] sm:$0xf] }
 0x568   : > { %v6891_v40 = vor.u32 %v7870_v19, %v6888_v32 }
 0x56a   : > { %3097 = vmatpush.bf16.msra.mxu3 %v6891_v40 }
 0x56e   : > { %3098 = vmatpush.bf16.msra.mxu3 %v6883_v47  ;;  %v8586_v47 = vld [vmem:[#allocation2] sm:$0xff] }
 0x572   : > { %3099 = vmatpush.bf16.msra.mxu3 %v6875_v11 }
 0x576   : > { %3100 = vmatpush.bf16.msra.mxu3 %v6867_v43 }
 0x577   : > { %3084 = vmatmul.bf16.gmra.mxu2 %v6767_v35  ;;  %v6859_v35 = vor.u32 %v7862_v10, %v6856_v54 }
 0x57a   : > { %3101 = vmatpush.bf16.msra.mxu3 %v6859_v35 }
 0x57e   : > { %3102 = vmatpush.bf16.msra.mxu3 %v6851_v52 }
 0x581   : > { %v2716_v45 = vpop.f32.mrf.mxu1 }
 0x582   : > { %v2752_v0 = vpack.c.bf16 %v2716_v45, %v2716_v45 }
 0x584   : > { %2760 = vst [vmem:[#allocation3 + $0x4] sm:$0xf] %v2752_v0 }
 0x587   : > { %3089 = vmatmul.bf16.gmra.mxu2 %v6775_v29 }
 0x589   : > { %v2718_v50 = vpop.f32.mrf.mxu1 }
 0x58a   : > { %v2753_v15 = vpack.c.bf16 %v2718_v50, %v2718_v50 }
 0x58b   : > { %v7836_v60 = vld [vmem:[#allocation3 + $0x4] sm:$0xf] }
 0x58c   : > { %2761 = vst [vmem:[#allocation3 + $0xc] sm:$0xf] %v2753_v15  ;;  %v8585_v15 = vld [vmem:[#allocation2 + $0x30] sm:$0xff] }
 0x591   : > { %v2721_v55 = vpop.f32.mrf.mxu1 }
 0x592   : > { %v2754_v9 = vpack.c.bf16 %v2721_v55, %v2721_v55 }
 0x593   : > { %v6752_v3 = vld [vmem:[#allocation3 + $0x8] sm:$0xf0] }
 0x594   : > { %2762 = vst [vmem:[#allocation3 + $0x14] sm:$0xf] %v2754_v9  ;;  %v6755_v12 = vor.u32 %v7836_v60, %v6752_v3  ;;  %v7134_v9 = vld [vmem:[%s9236_s30 + $0x1c0] sm:$0xf] }
 0x595   : > { %v7936_v60 = vld [vmem:[%s9236_s30 + $0x1dc] sm:$0xf0] }
 0x596   : > { %3045 = vmatmul.bf16.vlgmr.msrb.gmra.mxu3 %v6755_v12  ;;  %v7390_v3 = vld [vmem:[%s9236_s30 + $0x3c0] sm:$0xf] }
 0x599   : > { %v2723_v16 = vpop.f32.mrf.mxu1 }
 0x59a   : > { %v2755_v13 = vpack.c.bf16 %v2723_v16, %v2723_v16  ;;  %v3017_v20 = vpop.f32.mrf.mxu2 }
 0x59b   : > { %v7838_v14 = vld [vmem:[#allocation3 + $0x14] sm:$0xf] }
 0x59c   : > { %2763 = vst [vmem:[#allocation3 + $0x1c] sm:$0xf] %v2755_v13  ;;  %v7391_v13 = vor.u32 %v8000_v37, %v7390_v3  ;;  %v7912_v3 = vld [vmem:[%s9236_s30 + $0x11c] sm:$0xf0] }
 0x59e   : > { %4122 = vmatpush.bf16.msra.mxu1 %v7391_v13 }
 0x5a1   : > { %v2726_v1 = vpop.f32.mrf.mxu1 }
 0x5a2   : > { %v2756_v22 = vpack.c.bf16 %v2726_v1, %v2726_v1  ;;  %v3019_v21 = vpop.f32.mrf.mxu2  ;;  %v8587_v1 = vld [vmem:[#allocation2 + $0x58] sm:$0xff] }
 0x5a3   : > { %v6760_v8 = vld [vmem:[#allocation3 + $0x18] sm:$0xf0] }
 0x5a4   : > { %2764 = vst [vmem:[#allocation3 + $0x24] sm:$0xf] %v2756_v22  ;;  %v6763_v63 = vor.u32 %v7838_v14, %v6760_v8  ;;  %v8588_v8 = vld [vmem:[#allocation2 + $0x18] sm:$0xff] }
 0x5a6   : > { %3050 = vmatmul.bf16.gmra.mxu3 %v6763_v63 }
 0x5a9   : > { %v2728_v23 = vpop.f32.mrf.mxu1 }
 0x5aa   : > { %v2757_v30 = vpack.c.bf16 %v2728_v23, %v2728_v23  ;;  %v3022_v48 = vpop.f32.mrf.mxu2 }
 0x5ab   : > { %v7840_v56 = vld [vmem:[#allocation3 + $0x24] sm:$0xf] }
 0x5ac   : > { %2765 = vst [vmem:[#allocation3 + $0x2c] sm:$0xf] %v2757_v30 }
 0x5b1   : > { %v2731_v28 = vpop.f32.mrf.mxu1 }
 0x5b2   : > { %v2758_v34 = vpack.c.bf16 %v2731_v28, %v2731_v28  ;;  %v3024_v62 = vpop.f32.mrf.mxu2  ;;  %v8590_v28 = vld [vmem:[#allocation2 + $0x68] sm:$0xff] }
 0x5b3   : > { %v6768_v6 = vld [vmem:[#allocation3 + $0x28] sm:$0xf0] }
 0x5b4   : > { %2766 = vst [vmem:[#allocation3 + $0x34] sm:$0xf] %v2758_v34  ;;  %v6771_v57 = vor.u32 %v7840_v56, %v6768_v6  ;;  %v7102_v56 = vld [vmem:[%s9236_s30 + $0x180] sm:$0xf] }
 0x5b5   : > { %v7928_v6 = vld [vmem:[%s9236_s30 + $0x19c] sm:$0xf0] }
 0x5b6   : > { %3055 = vmatmul.bf16.gmra.mxu3 %v6771_v57 }
 0x5b9   : > { %v2733_v29 = vpop.f32.mrf.mxu1 }
 0x5ba   : > { %v2759_v36 = vpack.c.bf16 %v2733_v29, %v2733_v29  ;;  %v3027_v39 = vpop.f32.mrf.mxu2  ;;  %v7103_v29 = vor.u32 %v7928_v6, %v7102_v56 }
 0x5bb   : > { %v7842_v53 = vld [vmem:[#allocation3 + $0x34] sm:$0xf] }
 0x5bc   : > { %2767 = vst [vmem:[#allocation3 + $0x3c] sm:$0xf] %v2759_v36  ;;  %v7992_v36 = vld [vmem:[%s9236_s30 + $0x39c] sm:$0xf0] }
 0x5c2   : > { %v10271_v33 = vpop.f32.mrf.mxu2 }
 0x5c3   : > { %v6776_v25 = vld [vmem:[#allocation3 + $0x38] sm:$0xf0] }
 0x5c4   : > { %v6779_v26 = vor.u32 %v7842_v53, %v6776_v25 }
 0x5c6   : > { %3060 = vmatmul.bf16.gmra.mxu3 %v6779_v26 }
 0x5ca   : > { %v3032_v31 = vpop.f32.mrf.mxu2 }
 0x5d2   : > { %v10275_v41 = vpop.f32.mrf.mxu2 }
 0x5d6   : > { %3103 = vmatmul.bf16.vlgmr.msra.gmra.mxu3 %v6755_v12  ;;  %v7135_v12 = vor.u32 %v7936_v60, %v7134_v9  ;;  %v7984_v9 = vld [vmem:[%s9236_s30 + $0x35c] sm:$0xf0] }
 0x5d7   : > { %v7038_v60 = vld [vmem:[%s9236_s30 + $0x100] sm:$0xf] }
 0x5d8   : > { %4093 = vmatpush.bf16.msra.mxu0 %v7135_v12  ;;  %v8594_v12 = vld [vmem:[#allocation2 + $0x20] sm:$0xff] }
 0x5da   : > { %v3075_v19 = vpop.f32.mrf.mxu2 }
 0x5dc   : > { %4094 = vmatpush.bf16.msra.mxu0 %v7103_v29  ;;  %v7360_v29 = vld [vmem:[%s9236_s30 + $0x3a0] sm:$0xf0] }
 0x5e2   : > { %v3077_v40 = vpop.f32.mrf.mxu2 }
 0x5e6   : > { %3108 = vmatmul.bf16.gmra.mxu3 %v6763_v63 }
 0x5ea   : > { %v3080_v17 = vpop.f32.mrf.mxu2 }
 0x5f2   : > { %v3082_v23 = vpop.f32.mrf.mxu2 }
 0x5f6   : > { %3113 = vmatmul.bf16.gmra.mxu3 %v6771_v57  ;;  %v7358_v57 = vld [vmem:[%s9236_s30 + $0x380] sm:$0xf] }
 0x606   : > { %3118 = vmatmul.bf16.gmra.mxu3 %v6779_v26 }
 0x619   : > { %v3046_v4 = vpop.f32.mrf.mxu3 }
 0x61a   : > { %v3047_v18 = vadd.f32 %v3046_v4, %v3017_v20  ;;  %v7359_v20 = vor.u32 %v7992_v36, %v7358_v57  ;;  %v8591_v4 = vld [vmem:[#allocation2 + $0x8] sm:$0xff]  ;;  %v7988_v57 = vld [vmem:[%s9236_s30 + $0x384] sm:$0xf] }
 0x61b   : > { %v7916_v36 = vld [vmem:[%s9236_s30 + $0x144] sm:$0xf] }
 0x61c   : > { %v10283_v7 = vadd.f32 %v8585_v15, %v3047_v18  ;;  %4123 = vmatpush.bf16.msra.mxu1 %v7359_v20  ;;  %v7920_v15 = vld [vmem:[%s9236_s30 + $0x15c] sm:$0xf0]  ;;  %v7072_v20 = vld [vmem:[%s9236_s30 + $0x160] sm:$0xf0] }
 0x61e   : > { %12653 = vst [vmem:[#allocation30_spill] sm:$0xff] %v10283_v7  ;;  %v3140_v11 = vmul.f32 %v10283_v7, %v10283_v7 }
 0x621   : > { %v3048_v24 = vpop.f32.mrf.mxu3 }
 0x622   : > { %v3049_v27 = vadd.f32 %v3048_v24, %v3019_v21 }
 0x624   : > { %v10295_v22 = vadd.f32 %v8587_v1, %v3049_v27  ;;  %v7136_v1 = vld [vmem:[%s9236_s30 + $0x1e0] sm:$0xf0] }
 0x626   : > { %12655 = vst [vmem:[#allocation32_spill] sm:$0xff] %v10295_v22  ;;  %v3142_v10 = vmul.f32 %v10295_v22, %v10295_v22 }
 0x629   : > { %v3051_v49 = vpop.f32.mrf.mxu3 }
 0x62a   : > { %v3052_v42 = vadd.f32 %v3051_v49, %v3022_v48 }
 0x62c   : > { %v10303_v38 = vadd.f32 %v8589_v2, %v3052_v42  ;;  %v7968_v2 = vld [vmem:[%s9236_s30 + $0x2dc] sm:$0xf0] }
 0x62e   : > { %12657 = vst [vmem:[#allocation34_spill] sm:$0xff] %v10303_v38  ;;  %v3144_v25 = vmul.f32 %v10303_v38, %v10303_v38 }
 0x631   : > { %v3053_v44 = vpop.f32.mrf.mxu3 }
 0x632   : > { %v3054_v53 = vadd.f32 %v3053_v44, %v3024_v62  ;;  %v3085_v62 = vpop.f32.mrf.mxu2 }
 0x634   : > { %v10315_v18 = vadd.f32 %v8591_v4, %v3054_v53  ;;  %v8595_v4 = vld [vmem:[#allocation2 + $0x10] sm:$0xff] }
 0x636   : > { %12659 = vst [vmem:[#allocation36_spill] sm:$0xff] %v10315_v18  ;;  %v3146_v42 = vmul.f32 %v10315_v18, %v10315_v18 }
 0x639   : > { %v3056_v5 = vpop.f32.mrf.mxu3 }
 0x63a   : > { %v10273_v46 = vadd.f32 %v3056_v5, %v3027_v39  ;;  %v8592_v39 = vld [vmem:[#allocation2 + $0x48] sm:$0xff]  ;;  %v8593_v5 = vld [vmem:[#allocation2 + $0x40] sm:$0xff]  ;;  %v3087_v13 = vpop.f32.mrf.mxu2 }
 0x641   : > { %v10277_v58 = vpop.f32.mrf.mxu3 }
 0x649   : > { %v3061_v45 = vpop.f32.mrf.mxu3 }
 0x64a   : > { %v10279_v0 = vadd.f32 %v3061_v45, %v3032_v31  ;;  %v10324_v45 = vadd.f32 %v8593_v5, %v10273_v46  ;;  %v7294_v46 = vld [vmem:[%s9236_s30 + $0x300] sm:$0xf] }
 0x64b   : > { %v7960_v5 = vld [vmem:[%s9236_s30 + $0x29c] sm:$0xf0] }
 0x64c   : > { %12661 = vst [vmem:[#allocation38_spill] sm:$0xff] %v10324_v45 }
 0x651   : > { %v10281_v32 = vpop.f32.mrf.mxu3 }
 0x659   : > { %v3104_v50 = vpop.f32.mrf.mxu3 }
 0x65a   : > { %v3105_v61 = vadd.f32 %v3104_v50, %v3075_v19  ;;  %v7070_v50 = vld [vmem:[%s9236_s30 + $0x140] sm:$0xf] }
 0x65c   : > { %v10285_v55 = vadd.f32 %v8586_v47, %v3105_v61  ;;  %v7326_v61 = vld [vmem:[%s9236_s30 + $0x340] sm:$0xf]  ;;  %v7071_v47 = vor.u32 %v7920_v15, %v7070_v50  ;;  %v7075_v50 = vor.u32 %v7916_v36, %v7072_v20  ;;  %v7964_v36 = vld [vmem:[%s9236_s30 + $0x2c4] sm:$0xf] }
 0x65d   : > { %v7327_v27 = vor.u32 %v7984_v9, %v7326_v61  ;;  %v7908_v61 = vld [vmem:[%s9236_s30 + $0x104] sm:$0xf] }
 0x65e   : > { %12654 = vst [vmem:[#allocation31_spill] sm:$0xff] %v10285_v55  ;;  %v3141_v16 = vmul.f32 %v10285_v55, %v10285_v55  ;;  %4095 = vmatpush.bf16.msra.mxu0 %v7071_v47  ;;  %v7040_v9 = vld [vmem:[%s9236_s30 + $0x120] sm:$0xf0] }
 0x65f   : > { %4124 = vmatpush.bf16.msra.mxu1 %v7327_v27  ;;  %v7892_v20 = vld [vmem:[%s9236_s30 + $0x84] sm:$0xf] }
 0x660   : > { %v3156_v51 = vadd.f32 %v3141_v16, %v3140_v11  ;;  %v7976_v11 = vld [vmem:[%s9236_s30 + $0x31c] sm:$0xf0]  ;;  %v7932_v16 = vld [vmem:[%s9236_s30 + $0x1c4] sm:$0xf] }
 0x661   : > { %v3106_v43 = vpop.f32.mrf.mxu3 }
 0x662   : > { %v3107_v14 = vadd.f32 %v3106_v43, %v3077_v40  ;;  %3157 = vadd.xlane.f32.xlu1 %v3156_v51  ;;  %v3148_v51 = vmul.f32 %v10324_v45, %v10324_v45  ;;  %v7039_v43 = vor.u32 %v7912_v3, %v7038_v60  ;;  %v7972_v60 = vld [vmem:[%s9236_s30 + $0x304] sm:$0xf] }
 0x663   : > { %v7296_v3 = vld [vmem:[%s9236_s30 + $0x320] sm:$0xf0] }
 0x664   : > { %v10297_v63 = vadd.f32 %v8588_v8, %v3107_v14  ;;  %v7996_v14 = vld [vmem:[%s9236_s30 + $0x3c4] sm:$0xf]  ;;  %4096 = vmatpush.bf16.msra.mxu0 %v7039_v43 }
 0x665   : > { %v7392_v8 = vld [vmem:[%s9236_s30 + $0x3e0] sm:$0xf0] }
 0x666   : > { %12656 = vst [vmem:[#allocation33_spill] sm:$0xff] %v10297_v63  ;;  %v3143_v54 = vmul.f32 %v10297_v63, %v10297_v63  ;;  %v8597_v43 = vld [vmem:[#allocation2 + $0x60] sm:$0xff] }
 0x668   : > { %v3159_v35 = vadd.f32 %v3143_v54, %v3142_v10  ;;  %v7295_v54 = vor.u32 %v7976_v11, %v7294_v46  ;;  %v3090_v11 = vpop.f32.mrf.mxu2 }
 0x669   : > { %v3109_v30 = vpop.f32.mrf.mxu3 }
 0x66a   : > { %v3110_v52 = vadd.f32 %v3109_v30, %v3080_v17  ;;  %3160 = vadd.xlane.f32.xlu0 %v3159_v35  ;;  %v3059_v17 = vadd.f32 %v10277_v58, %v10271_v33  ;;  %v7139_v35 = vor.u32 %v7932_v16, %v7136_v1  ;;  %v7395_v33 = vor.u32 %v7996_v14, %v7392_v8  ;;  %v7006_v58 = vld [vmem:[%s9236_s30 + $0xc0] sm:$0xf]  ;;  %v8598_v8 = vld [vmem:[#allocation2 + $0x70] sm:$0xff] }
 0x66b   : > { %v7262_v30 = vld [vmem:[%s9236_s30 + $0x2c0] sm:$0xf]  ;;  %4125 = vmatpush.bf16.msra.mxu1 %v7295_v54  ;;  %v10375_v1 = vadd.f32 %v8597_v43, %v10279_v0  ;;  %v3064_v54 = vadd.f32 %v10281_v32, %v10275_v41  ;;  %v8600_v41 = vld [vmem:[#allocation2 + $0x28] sm:$0xff]  ;;  %v7876_v43 = vld [vmem:[%s9236_s30 + $0x4] sm:$0xf] }
 0x66c   : > { %v10305_v34 = vadd.f32 %v8590_v28, %v3110_v52  ;;  %v7924_v52 = vld [vmem:[%s9236_s30 + $0x184] sm:$0xf]  ;;  %4151 = vmatpush.bf16.msrb.mxu2 %v7139_v35  ;;  %4180 = vmatpush.bf16.msrb.mxu3 %v7395_v33 }
 0x66d   : > { %v7104_v28 = vld [vmem:[%s9236_s30 + $0x1a0] sm:$0xf0]  ;;  %12665 = vst [vmem:[#allocation42_spill] sm:$0xff] %v10375_v1  ;;  %v3152_v35 = vmul.f32 %v10375_v1, %v10375_v1 }
 0x66e   : > { %12658 = vst [vmem:[#allocation35_spill] sm:$0xff] %v10305_v34  ;;  %v3145_v26 = vmul.f32 %v10305_v34, %v10305_v34  ;;  %v7107_v6 = vor.u32 %v7924_v52, %v7104_v28 }
 0x670   : > { %v3162_v21 = vadd.f32 %v3145_v26, %v3144_v25  ;;  %v7363_v26 = vor.u32 %v7988_v57, %v7360_v29  ;;  %4152 = vmatpush.bf16.msrb.mxu2 %v7107_v6  ;;  %v7900_v57 = vld [vmem:[%s9236_s30 + $0xc4] sm:$0xf] }
 0x671   : > { %v3111_v48 = vpop.f32.mrf.mxu3  ;;  %v7008_v29 = vld [vmem:[%s9236_s30 + $0xe0] sm:$0xf0] }
 0x672   : > { %v3112_v24 = vadd.f32 %v3111_v48, %v3082_v23  ;;  %3163 = vadd.xlane.f32.xlu2 %v3162_v21  ;;  %v7904_v23 = vld [vmem:[%s9236_s30 + $0xdc] sm:$0xf0]  ;;  %v7980_v21 = vld [vmem:[%s9236_s30 + $0x344] sm:$0xf]  ;;  %4181 = vmatpush.bf16.msrb.mxu3 %v7363_v26 }
 0x673   : > { %v7007_v25 = vor.u32 %v7904_v23, %v7006_v58  ;;  %v7328_v48 = vld [vmem:[%s9236_s30 + $0x360] sm:$0xf0]  ;;  %v3092_v58 = vpop.f32.mrf.mxu2 }
 0x674   : > { %v10317_v49 = vadd.f32 %v8592_v39, %v3112_v24  ;;  %v10358_v24 = vadd.f32 %v8595_v4, %v3059_v17  ;;  %v7263_v39 = vor.u32 %v7968_v2, %v7262_v30  ;;  %v7331_v15 = vor.u32 %v7980_v21, %v7328_v48  ;;  %4153 = vmatpush.bf16.msrb.mxu2 %v7075_v50  ;;  %v8599_v30 = vld [vmem:[#allocation2 + $0x78] sm:$0xff]  ;;  %v6976_v21 = vld [vmem:[%s9236_s30 + $0xa0] sm:$0xf0] }
 0x675   : > { %4097 = vmatpush.bf16.msra.mxu0 %v7007_v25  ;;  %v7299_v17 = vor.u32 %v7972_v60, %v7296_v3  ;;  %v10385_v2 = vadd.f32 %v8599_v30, %v3064_v54  ;;  %v7264_v25 = vld [vmem:[%s9236_s30 + $0x2e0] sm:$0xf0]  ;;  %v6979_v4 = vor.u32 %v7892_v20, %v6976_v21 }
 0x676   : > { %12660 = vst [vmem:[#allocation37_spill] sm:$0xff] %v10317_v49  ;;  %v3147_v44 = vmul.f32 %v10317_v49, %v10317_v49  ;;  %4126 = vmatpush.bf16.msra.mxu1 %v7263_v39  ;;  %4182 = vmatpush.bf16.msrb.mxu3 %v7331_v15  ;;  %v7267_v26 = vor.u32 %v7964_v36, %v7264_v25  ;;  %v7956_v48 = vld [vmem:[%s9236_s30 + $0x284] sm:$0xf] }
 0x677   : > { %12663 = vst [vmem:[#allocation40_spill] sm:$0xff] %v10358_v24  ;;  %v3154_v28 = vmul.f32 %v10385_v2, %v10385_v2  ;;  %v7884_v50 = vld [vmem:[%s9236_s30 + $0x44] sm:$0xf] }
 0x678   : > { %v3165_v31 = vadd.f32 %v3147_v44, %v3146_v42  ;;  %v6974_v42 = vld [vmem:[%s9236_s30 + $0x80] sm:$0xf]  ;;  %12667 = vst [vmem:[#allocation44_spill] sm:$0xff] %v10385_v2  ;;  %v6944_v15 = vld [vmem:[%s9236_s30 + $0x60] sm:$0xf0] }
 0x679   : > { %v3114_v19 = vpop.f32.mrf.mxu3  ;;  %v7896_v44 = vld [vmem:[%s9236_s30 + $0x9c] sm:$0xf0]  ;;  %v7948_v60 = vld [vmem:[%s9236_s30 + $0x244] sm:$0xf] }
 0x67a   : > { %v3115_v40 = vadd.f32 %v3114_v19, %v3085_v62  ;;  %3166 = vadd.xlane.f32.xlu1 %v3165_v31  ;;  %v7230_v31 = vld [vmem:[%s9236_s30 + $0x280] sm:$0xf]  ;;  %v8596_v19 = vld [vmem:[#allocation2 + $0x38] sm:$0xff]  ;;  %v6975_v47 = vor.u32 %v7896_v44, %v6974_v42  ;;  %4183 = vmatpush.bf16.msrb.mxu3 %v7299_v17  ;;  %v7200_v3 = vld [vmem:[%s9236_s30 + $0x260] sm:$0xf0] }
 0x67b   : > { %v7231_v46 = vor.u32 %v7960_v5, %v7230_v31  ;;  %v6942_v42 = vld [vmem:[%s9236_s30 + $0x40] sm:$0xf]  ;;  %v7940_v54 = vld [vmem:[%s9236_s30 + $0x204] sm:$0xf] }
 0x67c   : > { %v10332_v37 = vadd.f32 %v8594_v12, %v3115_v40  ;;  %v3150_v12 = vmul.f32 %v10358_v24, %v10358_v24  ;;  %4098 = vmatpush.bf16.msra.mxu0 %v6975_v47  ;;  %v7888_v44 = vld [vmem:[%s9236_s30 + $0x5c] sm:$0xf0] }
 0x67d   : > { %4127 = vmatpush.bf16.msra.mxu1 %v7231_v46  ;;  %v7198_v31 = vld [vmem:[%s9236_s30 + $0x240] sm:$0xf]  ;;  %v6943_v5 = vor.u32 %v7888_v44, %v6942_v42 }
 0x67e   : > { %12662 = vst [vmem:[#allocation39_spill] sm:$0xff] %v10332_v37  ;;  %v3149_v10 = vmul.f32 %v10332_v37, %v10332_v37  ;;  %4184 = vmatpush.bf16.msrb.mxu3 %v7267_v26  ;;  %v6910_v46 = vld [vmem:[%s9236_s30] sm:$0xf] }
 0x680   : > { %v3168_v56 = vadd.f32 %v3149_v10, %v3148_v51  ;;  %4099 = vmatpush.bf16.msra.mxu0 %v6943_v5  ;;  %v7933_v5 = vld [vmem:[%s9236_s30 + $0x1cc] sm:$0xf] }
 0x681   : > { %v3116_v53 = vpop.f32.mrf.mxu3 }
 0x682   : > { %v3117_v62 = vadd.f32 %v3116_v53, %v3087_v13  ;;  %3169 = vadd.xlane.f32.xlu0 %v3168_v56  ;;  %v7043_v13 = vor.u32 %v7908_v61, %v7040_v9  ;;  %v7011_v53 = vor.u32 %v7900_v57, %v7008_v29  ;;  %v6947_v9 = vor.u32 %v7884_v50, %v6944_v15  ;;  %v7997_v50 = vld [vmem:[%s9236_s30 + $0x3cc] sm:$0xf] }
 0x684   : > { %v10364_v40 = vadd.f32 %v8596_v19, %v3117_v62  ;;  %4154 = vmatpush.bf16.msrb.mxu2 %v7043_v13  ;;  %v7232_v62 = vld [vmem:[%s9236_s30 + $0x2a0] sm:$0xf0]  ;;  %v7952_v19 = vld [vmem:[%s9236_s30 + $0x25c] sm:$0xf0] }
 0x685   : > { %v7235_v39 = vor.u32 %v7956_v48, %v7232_v62  ;;  %v7199_v47 = vor.u32 %v7952_v19, %v7198_v31  ;;  %v7144_v19 = vld [vmem:[%s9236_s30 + $0x1e8] sm:$0xf0] }
 0x686   : > { %12664 = vst [vmem:[#allocation41_spill] sm:$0xff] %v10364_v40  ;;  %v3151_v27 = vmul.f32 %v10364_v40, %v10364_v40 }
 0x687   : > { %4185 = vmatpush.bf16.msrb.mxu3 %v7235_v39  ;;  %4128 = vmatpush.bf16.msra.mxu1 %v7199_v47  ;;  %v7400_v47 = vld [vmem:[%s9236_s30 + $0x3e8] sm:$0xf0] }
 0x688   : > { %v3171_v16 = vadd.f32 %v3151_v27, %v3150_v12  ;;  %4155 = vmatpush.bf16.msrb.mxu2 %v7011_v53  ;;  %v7203_v27 = vor.u32 %v7948_v60, %v7200_v3 }
 0x689   : > { %v3119_v51 = vpop.f32.mrf.mxu3 }
 0x68a   : > { %v3120_v14 = vadd.f32 %v3119_v51, %v3090_v11  ;;  %3172 = vadd.xlane.f32.xlu2 %v3171_v16  ;;  %v7880_v11 = vld [vmem:[%s9236_s30 + $0x1c] sm:$0xf0] }
 0x68b   : > { %v7166_v16 = vld [vmem:[%s9236_s30 + $0x200] sm:$0xf]  ;;  %4186 = vmatpush.bf16.msrb.mxu3 %v7203_v27  ;;  %v6911_v17 = vor.u32 %v7880_v11, %v6910_v46 }
 0x68c   : > { %v10377_v10 = vadd.f32 %v8598_v8, %v3120_v14  ;;  %4156 = vmatpush.bf16.msrb.mxu2 %v6979_v4  ;;  %v7944_v51 = vld [vmem:[%s9236_s30 + $0x21c] sm:$0xf0]  ;;  %v6912_v8 = vld [vmem:[%s9236_s30 + $0x20] sm:$0xf0] }
 0x68d   : > { %v7167_v14 = vor.u32 %v7944_v51, %v7166_v16  ;;  %4100 = vmatpush.bf16.msra.mxu0 %v6911_v17 }
 0x68e   : > { %12666 = vst [vmem:[#allocation43_spill] sm:$0xff] %v10377_v10  ;;  %v3153_v0 = vmul.f32 %v10377_v10, %v10377_v10 }
 0x68f   : > { %4129 = vmatpush.bf16.msra.mxu1 %v7167_v14 }
 0x690   : > { %v3174_v33 = vadd.f32 %v3153_v0, %v3152_v35  ;;  %4157 = vmatpush.bf16.msrb.mxu2 %v6947_v9  ;;  %v7168_v35 = vld [vmem:[%s9236_s30 + $0x220] sm:$0xf0]  ;;  %v6915_v0 = vor.u32 %v7876_v43, %v6912_v8 }
 0x691   : > { %v3121_v23 = vpop.f32.mrf.mxu3 }
 0x692   : > { %v3122_v52 = vadd.f32 %v3121_v23, %v3092_v58  ;;  %3175 = vadd.xlane.f32.xlu1 %v3174_v33  ;;  %v7171_v33 = vor.u32 %v7940_v54, %v7168_v35 }
 0x694   : > { %v10387_v32 = vadd.f32 %v8600_v41, %v3122_v52  ;;  %4158 = vmatpush.bf16.msrb.mxu2 %v6915_v0  ;;  %4187 = vmatpush.bf16.msrb.mxu3 %v7171_v33 }
 0x696   : > { %12668 = vst [vmem:[#allocation45_spill] sm:$0xff] %v10387_v32  ;;  %v3155_v56 = vmul.f32 %v10387_v32, %v10387_v32 }
 0x698   : > { %v3177_v6 = vadd.f32 %v3155_v56, %v3154_v28  ;;  %v3292_v56 = vld [vmem:[%s9227_s15] sm:$0x3] }
 0x699   : > { %v3293_v25 = vunpack.c.l.bf16 %v3292_v56 }
 0x69a   : > { %3178 = vadd.xlane.f32.xlu0 %v3177_v6 }
 0x69b   : > { %v3295_v4 = vperm.slane %v3293_v25, 0  ;;  %v3296_v62 = vperm.slane %v3293_v25, 2  ;;  %v8001_v25 = vld [vmem:[%s9236_s30 + $0x3e4] sm:$0xf0] }
 0x69d   : > { %v10429_v60 = vperm.slane %v3295_v4, 0  ;;  %v10435_v16 = vperm.slane %v3296_v62, 0  ;;  %v7112_v4 = vld [vmem:[%s9236_s30 + $0x1a8] sm:$0xf0] }
 0x69e   : > { %v7989_v62 = vld [vmem:[%s9236_s30 + $0x38c] sm:$0xf] }
 0x6d5   : > { %v3158_v61 = vpop.xlane.xlu1 %3157 }
 0x6d6   : > { %v3180_v12 = vmul.f32 %v3158_v61, %v9369_v59  ;;  %v7147_v61 = vor.u32 %v7933_v5, %v7144_v19 }
 0x6d8   : > { %v3188_v13 = vadd.f32 1e-06, %v3180_v12  ;;  %v7403_v12 = vor.u32 %v7997_v50, %v7400_v47  ;;  %4267 = vmatpush.bf16.msra.mxu2 %v7147_v61  ;;  %v7110_v61 = vld [vmem:[%s9236_s30 + $0x188] sm:$0xf] }
 0x6d9   : > { %v7929_v47 = vld [vmem:[%s9236_s30 + $0x1a4] sm:$0xf0] }
 0x6da   : > { %8441 = vrsqrt.f32 %v3188_v13  ;;  %vm3202_vm10 = vweird.f32 %v3188_v13  ;;  %4296 = vmatpush.bf16.msra.mxu3 %v7403_v12  ;;  %v7366_v12 = vld [vmem:[%s9236_s30 + $0x388] sm:$0xf] }
 0x6dd   : > { %v3161_v58 = vpop.xlane.xlu0 %3160 }
 0x6de   : > { %v3181_v23 = vmul.f32 %v3161_v58, %v9369_v59 }
 0x6e0   : > { %v8442_v30 = vpop.eup %8441  ;;  %v3189_v52 = vadd.f32 1e-06, %v3181_v23 }
 0x6e1   : > { %v3197_v41 = vmul.f32 %v8442_v30, %v3188_v13  ;;  %vm3203_vm9 = vweird.f32 %v8442_v30 }
 0x6e2   : > { %8443 = vrsqrt.f32 %v3189_v52  ;;  %vm3204_vm11 = vmor %vm3202_vm10, %vm3203_vm9  ;;  %vm3212_vm13 = vweird.f32 %v3189_v52 }
 0x6e3   : > { %v3198_v28 = vmul.f32 %v8442_v30, %v3197_v41 }
 0x6e5   : > { %v3199_v6 = vmul.f32 0.5, %v3198_v28  ;;  %v3164_v57 = vpop.xlane.xlu2 %3163 }
 0x6e6   : > { %v3182_v29 = vmul.f32 %v3164_v57, %v9369_v59  ;;  %v7937_v57 = vld [vmem:[%s9236_s30 + $0x1e4] sm:$0xf0] }
 0x6e7   : > { %v3200_v36 = vsub.f32 1.5, %v3199_v6  ;;  %v7142_v6 = vld [vmem:[%s9236_s30 + $0x1c8] sm:$0xf] }
 0x6e8   : > { %v8444_v53 = vpop.eup %8443  ;;  %v10421_v26 = vadd.f32 1e-06, %v3182_v29 }
 0x6e9   : > { %v3207_v20 = vmul.f32 %v8444_v53, %v3189_v52  ;;  %v3201_v21 = vmul.f32 %v8442_v30, %v3200_v36  ;;  %vm3213_vm12 = vweird.f32 %v8444_v53  ;;  %v7143_v36 = vor.u32 %v7937_v57, %v7142_v6  ;;  %v7921_v6 = vld [vmem:[%s9236_s30 + $0x164] sm:$0xf0] }
 0x6ea   : > { %8445 = vrsqrt.f32 %v10421_v26  ;;  %vm3214_vm14 = vmor %vm3212_vm13, %vm3213_vm12  ;;  %vm3222_vm0 = vweird.f32 %v10421_v26  ;;  %v7334_v57 = vld [vmem:[%s9236_s30 + $0x348] sm:$0xf] }
 0x6eb   : > { %v3208_v48 = vmul.f32 %v8444_v53, %v3207_v20  ;;  %v3205_v44 = vsel %vm3204_vm11, %v8442_v30, %v3201_v21  ;;  %v7925_v20 = vld [vmem:[%s9236_s30 + $0x18c] sm:$0xf]  ;;  %4209 = vmatpush.bf16.msrb.mxu0 %v7143_v36 }
 0x6ec   : > { %v3276_v27 = vmul.f32 %v3205_v44, %v10283_v7  ;;  %v3277_v13 = vmul.f32 %v3205_v44, %v10285_v55  ;;  %v7368_v44 = vld [vmem:[%s9236_s30 + $0x3a8] sm:$0xf0] }
 0x6ed   : > { %v3209_v39 = vmul.f32 0.5, %v3208_v48  ;;  %v3167_v42 = vpop.xlane.xlu1 %3166 }
 0x6ee   : > { %v3183_v31 = vmul.f32 %v3167_v42, %v9369_v59  ;;  %v3301_v8 = vmul.f32 %v10429_v60, %v3276_v27  ;;  %v3302_v0 = vmul.f32 %v10435_v16, %v3277_v13  ;;  %v7115_v42 = vor.u32 %v7925_v20, %v7112_v4 }
 0x6ef   : > { %v3210_v15 = vsub.f32 1.5, %v3209_v39  ;;  %v7111_v27 = vor.u32 %v7929_v47, %v7110_v61 }
 0x6f0   : > { %v8446_v9 = vpop.eup %8445  ;;  %v10431_v3 = vadd.f32 1e-06, %v3183_v31  ;;  %v7371_v31 = vor.u32 %v7989_v62, %v7368_v44  ;;  %4268 = vmatpush.bf16.msra.mxu2 %v7115_v42 }
 0x6f1   : > { %v3211_v46 = vmul.f32 %v8444_v53, %v3210_v15  ;;  %v3217_v11 = vmul.f32 %v8446_v9, %v10421_v26  ;;  %vm3223_vm15 = vweird.f32 %v8446_v9  ;;  %4210 = vmatpush.bf16.msrb.mxu0 %v7111_v27 }
 0x6f2   : > { %8447 = vrsqrt.f32 %v10431_v3  ;;  %vm3224_vm1 = vmor %vm3222_vm0, %vm3223_vm15  ;;  %4297 = vmatpush.bf16.msra.mxu3 %v7371_v31  ;;  %vm3232_vm3 = vweird.f32 %v10431_v3  ;;  %v7909_v31 = vld [vmem:[%s9236_s30 + $0x10c] sm:$0xf] }
 0x6f3   : > { %v3215_v17 = vsel %vm3214_vm14, %v8444_v53, %v3211_v46  ;;  %v3218_v51 = vmul.f32 %v8446_v9, %v3217_v11  ;;  %v7398_v53 = vld [vmem:[%s9236_s30 + $0x3c8] sm:$0xf]  ;;  %v7917_v11 = vld [vmem:[%s9236_s30 + $0x14c] sm:$0xf] }
 0x6f4   : > { %v3278_v43 = vmul.f32 %v3215_v17, %v10295_v22  ;;  %v3279_v14 = vmul.f32 %v3215_v17, %v10297_v63  ;;  %v7399_v48 = vor.u32 %v8001_v25, %v7398_v53  ;;  %v7993_v46 = vld [vmem:[%s9236_s30 + $0x3a4] sm:$0xf0] }
 0x6f5   : > { %v3219_v54 = vmul.f32 0.5, %v3218_v51  ;;  %v3170_v35 = vpop.xlane.xlu0 %3169  ;;  %v7080_v51 = vld [vmem:[%s9236_s30 + $0x168] sm:$0xf0]  ;;  %v7985_v25 = vld [vmem:[%s9236_s30 + $0x364] sm:$0xf0] }
 0x6f6   : > { %v3303_v33 = vmul.f32 %v10429_v60, %v3278_v43  ;;  %v3304_v58 = vmul.f32 %v10435_v16, %v3279_v14  ;;  %v3184_v23 = vmul.f32 %v3170_v35, %v9369_v59  ;;  %4238 = vmatpush.bf16.msrb.mxu1 %v7399_v48  ;;  %v7981_v43 = vld [vmem:[%s9236_s30 + $0x34c] sm:$0xf]  ;;  %v7083_v35 = vor.u32 %v7917_v11, %v7080_v51  ;;  %v7046_v11 = vld [vmem:[%s9236_s30 + $0x108] sm:$0xf] }
 0x6f7   : > { %v3220_v30 = vsub.f32 1.5, %v3219_v54  ;;  %v7302_v51 = vld [vmem:[%s9236_s30 + $0x308] sm:$0xf] }
 0x6f8   : > { %v8448_v52 = vpop.eup %8447  ;;  %v10446_v41 = vpack.c.bf16 %v3303_v33, %v3301_v8  ;;  %v10448_v28 = vpack.c.bf16 %v3304_v58, %v3302_v0  ;;  %v10450_v56 = vadd.f32 1e-06, %v3184_v23  ;;  %v7336_v0 = vld [vmem:[%s9236_s30 + $0x368] sm:$0xf0]  ;;  %4269 = vmatpush.bf16.msra.mxu2 %v7083_v35 }
 0x6f9   : > { %v3227_v29 = vmul.f32 %v8448_v52, %v10431_v3  ;;  %v3221_v21 = vmul.f32 %v8446_v9, %v3220_v30  ;;  %vm3233_vm2 = vweird.f32 %v8448_v52  ;;  %v7339_v33 = vor.u32 %v7981_v43, %v7336_v0  ;;  %v7078_v30 = vld [vmem:[%s9236_s30 + $0x148] sm:$0xf] }
 0x6fa   : > { %8449 = vrsqrt.f32 %v10450_v56  ;;  %4101 = vmatmul.bf16.vlgmr.msra.gmra.mxu0 %v10446_v41  ;;  %4130 = vmatmul.bf16.vlgmr.msra.gmra.mxu1 %v10448_v28  ;;  %vm3234_vm4 = vmor %vm3232_vm3, %vm3233_vm2  ;;  %v7079_v53 = vor.u32 %v7921_v6, %v7078_v30  ;;  %vm3242_vm6 = vweird.f32 %v10450_v56  ;;  %v7014_v30 = vld [vmem:[%s9236_s30 + $0xc8] sm:$0xf] }
 0x6fb   : > { %v3228_v39 = vmul.f32 %v8448_v52, %v3227_v29  ;;  %4159 = vmatmul.bf16.vlgmr.msrb.gmra.mxu2 %v10446_v41  ;;  %4188 = vmatmul.bf16.vlgmr.msrb.gmra.mxu3 %v10448_v28  ;;  %v3225_v50 = vsel %vm3224_vm1, %v8446_v9, %v3221_v21  ;;  %v7367_v9 = vor.u32 %v7993_v46, %v7366_v12  ;;  %v7973_v12 = vld [vmem:[%s9236_s30 + $0x30c] sm:$0xf]  ;;  %v7905_v6 = vld [vmem:[%s9236_s30 + $0xe4] sm:$0xf0] }
 0x6fc   : > { %v3280_v14 = vmul.f32 %v3225_v50, %v10303_v38  ;;  %v3281_v3 = vmul.f32 %v3225_v50, %v10305_v34  ;;  %4298 = vmatpush.bf16.msra.mxu3 %v7339_v33  ;;  %4211 = vmatpush.bf16.msrb.mxu0 %v7079_v53  ;;  %v7965_v33 = vld [vmem:[%s9236_s30 + $0x2cc] sm:$0xf] }
 0x6fd   : > { %v3229_v5 = vmul.f32 0.5, %v3228_v39  ;;  %v3173_v19 = vpop.xlane.xlu2 %3172  ;;  %4239 = vmatpush.bf16.msrb.mxu1 %v7367_v9  ;;  %v7913_v9 = vld [vmem:[%s9236_s30 + $0x124] sm:$0xf0] }
 0x6fe   : > { %v3185_v15 = vmul.f32 %v3173_v19, %v9369_v59  ;;  %v3305_v20 = vmul.f32 %v10429_v60, %v3280_v14  ;;  %v3306_v4 = vmul.f32 %v10435_v16, %v3281_v3  ;;  %v7047_v43 = vor.u32 %v7913_v9, %v7046_v11  ;;  %v7977_v14 = vld [vmem:[%s9236_s30 + $0x324] sm:$0xf0]  ;;  %v7016_v3 = vld [vmem:[%s9236_s30 + $0xe8] sm:$0xf0] }
 0x6ff   : > { %v3230_v26 = vsub.f32 1.5, %v3229_v5  ;;  %v7048_v5 = vld [vmem:[%s9236_s30 + $0x128] sm:$0xf0]  ;;  %v7303_v0 = vor.u32 %v7977_v14, %v7302_v51 }
 0x700   : > { %v10474_v13 = vpop.eup %8449  ;;  %v10477_v17 = vadd.f32 1e-06, %v3185_v15  ;;  %v7051_v47 = vor.u32 %v7909_v31, %v7048_v5  ;;  %4212 = vmatpush.bf16.msrb.mxu0 %v7047_v43  ;;  %v7897_v31 = vld [vmem:[%s9236_s30 + $0xa4] sm:$0xf0]  ;;  %v7885_v43 = vld [vmem:[%s9236_s30 + $0x4c] sm:$0xf] }
 0x701   : > { %v3231_v8 = vmul.f32 %v8448_v52, %v3230_v26  ;;  %v3237_v54 = vmul.f32 %v10474_v13, %v10450_v56  ;;  %v7304_v26 = vld [vmem:[%s9236_s30 + $0x328] sm:$0xf0]  ;;  %vm3243_vm5 = vweird.f32 %v10474_v13  ;;  %v7015_v56 = vor.u32 %v7905_v6, %v7014_v30  ;;  %v7206_v30 = vld [vmem:[%s9236_s30 + $0x248] sm:$0xf] }
 0x702   : > { %8451 = vrsqrt.f32 %v10477_v17  ;;  %v7307_v46 = vor.u32 %v7973_v12, %v7304_v26  ;;  %4270 = vmatpush.bf16.msra.mxu2 %v7051_v47  ;;  %vm3244_vm7 = vmor %vm3242_vm6, %vm3243_vm5  ;;  %vm3252_vm9 = vweird.f32 %v10477_v17  ;;  %v6952_v14 = vld [vmem:[%s9236_s30 + $0x68] sm:$0xf0]  ;;  %v7953_v6 = vld [vmem:[%s9236_s30 + $0x264] sm:$0xf0] }
 0x703   : > { %v3235_v58 = vsel %vm3234_vm4, %v8448_v52, %v3231_v8  ;;  %v3238_v23 = vmul.f32 %v10474_v13, %v3237_v54  ;;  %v7335_v52 = vor.u32 %v7985_v25, %v7334_v57  ;;  %v7901_v8 = vld [vmem:[%s9236_s30 + $0xcc] sm:$0xf]  ;;  %v7270_v57 = vld [vmem:[%s9236_s30 + $0x2c8] sm:$0xf] }
 0x704   : > { %v3282_v29 = vmul.f32 %v3235_v58, %v10315_v18  ;;  %v3283_v36 = vmul.f32 %v3235_v58, %v10317_v49  ;;  %v7272_v58 = vld [vmem:[%s9236_s30 + $0x2e8] sm:$0xf0]  ;;  %4299 = vmatpush.bf16.msra.mxu3 %v7307_v46  ;;  %v7969_v25 = vld [vmem:[%s9236_s30 + $0x2e4] sm:$0xf0]  ;;  %4213 = vmatpush.bf16.msrb.mxu0 %v7015_v56 }
 0x705   : > { %v3239_v21 = vmul.f32 0.5, %v3238_v23  ;;  %v3176_v48 = vpop.xlane.xlu1 %3175  ;;  %4240 = vmatpush.bf16.msrb.mxu1 %v7335_v52  ;;  %v7019_v23 = vor.u32 %v7901_v8, %v7016_v3  ;;  %v7275_v53 = vor.u32 %v7965_v33, %v7272_v58  ;;  %v6984_v52 = vld [vmem:[%s9236_s30 + $0xa8] sm:$0xf0]  ;;  %v7238_v46 = vld [vmem:[%s9236_s30 + $0x288] sm:$0xf]  ;;  %v6955_v58 = vor.u32 %v7885_v43, %v6952_v14 }
 0x706   : > { %v3307_v62 = vmul.f32 %v10429_v60, %v3282_v29  ;;  %v3308_v39 = vmul.f32 %v10435_v16, %v3283_v36  ;;  %v3186_v42 = vmul.f32 %v3176_v48, %v9369_v59  ;;  %v7271_v48 = vor.u32 %v7969_v25, %v7270_v57  ;;  %v7949_v8 = vld [vmem:[%s9236_s30 + $0x24c] sm:$0xf] }
 0x707   : > { %v3240_v44 = vsub.f32 1.5, %v3239_v21  ;;  %4271 = vmatpush.bf16.msra.mxu2 %v7019_v23  ;;  %v7889_v23 = vld [vmem:[%s9236_s30 + $0x64] sm:$0xf0]  ;;  %v7941_v56 = vld [vmem:[%s9236_s30 + $0x20c] sm:$0xf] }
 0x708   : > { %v10502_v19 = vpop.eup %8451  ;;  %v10504_v50 = vpack.c.bf16 %v3307_v62, %v3305_v20  ;;  %v10506_v15 = vpack.c.bf16 %v3308_v39, %v3306_v4  ;;  %v10508_v61 = vadd.f32 1e-06, %v3186_v42  ;;  %v7893_v20 = vld [vmem:[%s9236_s30 + $0x8c] sm:$0xf]  ;;  %4300 = vmatpush.bf16.msra.mxu3 %v7275_v53 }
 0x709   : > { %v3247_v27 = vmul.f32 %v10502_v19, %v10477_v17  ;;  %v3241_v54 = vmul.f32 %v10474_v13, %v3240_v44  ;;  %4241 = vmatpush.bf16.msrb.mxu1 %v7303_v0  ;;  %v7957_v4 = vld [vmem:[%s9236_s30 + $0x28c] sm:$0xf]  ;;  %vm3253_vm8 = vweird.f32 %v10502_v19  ;;  %v6982_v44 = vld [vmem:[%s9236_s30 + $0x88] sm:$0xf]  ;;  %v6987_v12 = vor.u32 %v7893_v20, %v6984_v52 }
 0x70a   : > { %8453 = vrsqrt.f32 %v10508_v61  ;;  %4106 = vmatmul.bf16.gmra.mxu0 %v10504_v50  ;;  %4135 = vmatmul.bf16.gmra.mxu1 %v10506_v15  ;;  %v7240_v62 = vld [vmem:[%s9236_s30 + $0x2a8] sm:$0xf0]  ;;  %vm3254_vm10 = vmor %vm3252_vm9, %vm3253_vm8  ;;  %v6950_v0 = vld [vmem:[%s9236_s30 + $0x48] sm:$0xf]  ;;  %vm3262_vm12 = vweird.f32 %v10508_v61 }
 0x70b   : > { %v3248_v35 = vmul.f32 %v10502_v19, %v3247_v27  ;;  %4164 = vmatmul.bf16.gmra.mxu2 %v10504_v50  ;;  %4193 = vmatmul.bf16.gmra.mxu3 %v10506_v15  ;;  %v3245_v39 = vsel %vm3244_vm7, %v10474_v13, %v3241_v54  ;;  %v7243_v26 = vor.u32 %v7957_v4, %v7240_v62  ;;  %v7961_v13 = vld [vmem:[%s9236_s30 + $0x2a4] sm:$0xf0]  ;;  %v7208_v17 = vld [vmem:[%s9236_s30 + $0x268] sm:$0xf0] }
 0x70c   : > { %v6983_v27 = vor.u32 %v7897_v31, %v6982_v44  ;;  %v7239_v51 = vor.u32 %v7961_v13, %v7238_v46  ;;  %v3284_v54 = vmul.f32 %v3245_v39, %v10324_v45  ;;  %4272 = vmatpush.bf16.msra.mxu2 %v6987_v12  ;;  %v7877_v53 = vld [vmem:[%s9236_s30 + $0xc] sm:$0xf]  ;;  %v6951_v20 = vor.u32 %v7889_v23, %v6950_v0  ;;  %v6918_v52 = vld [vmem:[%s9236_s30 + $0x8] sm:$0xf]  ;;  %v7998_v0 = vld [vmem:[%s9236_s30 + $0x3d4] sm:$0xf] }
 0x70d   : > { %v3249_v29 = vmul.f32 0.5, %v3248_v35  ;;  %v3179_v36 = vpop.xlane.xlu0 %3178  ;;  %4242 = vmatpush.bf16.msrb.mxu1 %v7271_v48  ;;  %v3285_v35 = vmul.f32 %v3245_v39, %v10332_v37  ;;  %4301 = vmatpush.bf16.msra.mxu3 %v7243_v26  ;;  %v7176_v48 = vld [vmem:[%s9236_s30 + $0x228] sm:$0xf0]  ;;  %v7881_v44 = vld [vmem:[%s9236_s30 + $0x24] sm:$0xf0] }
 0x70e   : > { %v3187_v21 = vmul.f32 %v3179_v36, %v9369_v59  ;;  %v7211_v36 = vor.u32 %v7949_v8, %v7208_v17  ;;  %4214 = vmatpush.bf16.msrb.mxu0 %v6983_v27  ;;  %v3309_v4 = vmul.f32 %v10429_v60, %v3284_v54  ;;  %v7174_v31 = vld [vmem:[%s9236_s30 + $0x208] sm:$0xf]  ;;  %v6919_v43 = vor.u32 %v7881_v44, %v6918_v52  ;;  %v7152_v17 = vld [vmem:[%s9236_s30 + $0x1f0] sm:$0xf0]  ;;  %v7938_v23 = vld [vmem:[%s9236_s30 + $0x1ec] sm:$0xf0] }
 0x70f   : > { %v3250_v42 = vsub.f32 1.5, %v3249_v29  ;;  %v3310_v62 = vmul.f32 %v10435_v16, %v3285_v35  ;;  %v7945_v12 = vld [vmem:[%s9236_s30 + $0x224] sm:$0xf0]  ;;  %v7934_v35 = vld [vmem:[%s9236_s30 + $0x1d4] sm:$0xf] }
 0x710   : > { %v10546_v5 = vpop.eup %8453  ;;  %v10548_v47 = vadd.f32 1e-06, %v3187_v21  ;;  %v7207_v21 = vor.u32 %v7953_v6, %v7206_v30  ;;  %4273 = vmatpush.bf16.msra.mxu2 %v6955_v58  ;;  %v7175_v14 = vor.u32 %v7945_v12, %v7174_v31  ;;  %v7150_v58 = vld [vmem:[%s9236_s30 + $0x1d0] sm:$0xf] }
 0x711   : > { %v3251_v11 = vmul.f32 %v10502_v19, %v3250_v42  ;;  %v3257_v9 = vmul.f32 %v10546_v5, %v10508_v61  ;;  %4243 = vmatpush.bf16.msrb.mxu1 %v7239_v51  ;;  %4302 = vmatpush.bf16.msra.mxu3 %v7211_v36  ;;  %vm3263_vm11 = vweird.f32 %v10546_v5  ;;  %v7406_v61 = vld [vmem:[%s9236_s30 + $0x3d0] sm:$0xf] }
 0x712   : > { %8455 = vrsqrt.f32 %v10548_v47  ;;  %4215 = vmatpush.bf16.msrb.mxu0 %v6951_v20  ;;  %vm3264_vm13 = vmor %vm3262_vm12, %vm3263_vm11  ;;  %v7118_v52 = vld [vmem:[%s9236_s30 + $0x190] sm:$0xf]  ;;  %vm3272_vm15 = vweird.f32 %v10548_v47 }
 0x713   : > { %v3255_v3 = vsel %vm3254_vm10, %v10502_v19, %v3251_v11  ;;  %v3258_v33 = vmul.f32 %v10546_v5, %v3257_v9  ;;  %v6920_v19 = vld [vmem:[%s9236_s30 + $0x28] sm:$0xf0]  ;;  %v7179_v9 = vor.u32 %v7941_v56, %v7176_v48  ;;  %v7990_v56 = vld [vmem:[%s9236_s30 + $0x394] sm:$0xf] }
 0x714   : > { %v3286_v57 = vmul.f32 %v3255_v3, %v10358_v24  ;;  %v3287_v29 = vmul.f32 %v3255_v3, %v10364_v40  ;;  %v6923_v46 = vor.u32 %v7877_v53, %v6920_v19  ;;  %v7155_v3 = vor.u32 %v7934_v35, %v7152_v17  ;;  %v7926_v53 = vld [vmem:[%s9236_s30 + $0x194] sm:$0xf] }
 0x715   : > { %v3259_v25 = vmul.f32 0.5, %v3258_v33  ;;  %4244 = vmatpush.bf16.msrb.mxu1 %v7207_v21  ;;  %4303 = vmatpush.bf16.msra.mxu3 %v7179_v9  ;;  %v7408_v33 = vld [vmem:[%s9236_s30 + $0x3f0] sm:$0xf0] }
 0x716   : > { %v3311_v39 = vmul.f32 %v10429_v60, %v3286_v57  ;;  %v3312_v42 = vmul.f32 %v10435_v16, %v3287_v29  ;;  %4274 = vmatpush.bf16.msra.mxu2 %v6923_v46  ;;  %4216 = vmatpush.bf16.msrb.mxu0 %v6919_v43  ;;  %v7411_v6 = vor.u32 %v7998_v0, %v7408_v33  ;;  %v8002_v29 = vld [vmem:[%s9236_s30 + $0x3ec] sm:$0xf0]  ;;  %v7120_v19 = vld [vmem:[%s9236_s30 + $0x1b0] sm:$0xf0] }
 0x717   : > { %v3260_v26 = vsub.f32 1.5, %v3259_v25  ;;  %v7151_v57 = vor.u32 %v7938_v23, %v7150_v58  ;;  %v7407_v36 = vor.u32 %v8002_v29, %v7406_v61  ;;  %v7123_v21 = vor.u32 %v7926_v53, %v7120_v19  ;;  %v7376_v48 = vld [vmem:[%s9236_s30 + $0x3b0] sm:$0xf0]  ;;  %v7922_v33 = vld [vmem:[%s9236_s30 + $0x16c] sm:$0xf0] }
 0x718   : > { %v10585_v13 = vpop.eup %8455  ;;  %v10587_v27 = vpack.c.bf16 %v3311_v39, %v3309_v4  ;;  %v10589_v11 = vpack.c.bf16 %v3312_v42, %v3310_v62  ;;  %v7379_v4 = vor.u32 %v7990_v56, %v7376_v48  ;;  %v7930_v62 = vld [vmem:[%s9236_s30 + $0x1ac] sm:$0xf0]  ;;  %v7982_v35 = vld [vmem:[%s9236_s30 + $0x354] sm:$0xf] }
 0x719   : > { %v3267_v51 = vmul.f32 %v10585_v13, %v10548_v47  ;;  %v3261_v8 = vmul.f32 %v10546_v5, %v3260_v26  ;;  %4245 = vmatpush.bf16.msrb.mxu1 %v7175_v14  ;;  %vm3273_vm14 = vweird.f32 %v10585_v13  ;;  %4412 = vmatpush.bf16.msrb.mxu3 %v7411_v6  ;;  %v7374_v39 = vld [vmem:[%s9236_s30 + $0x390] sm:$0xf]  ;;  %v7119_v31 = vor.u32 %v7930_v62, %v7118_v52  ;;  %v7344_v0 = vld [vmem:[%s9236_s30 + $0x370] sm:$0xf0] }
 0x71a   : > { %4111 = vmatmul.bf16.gmra.mxu0 %v10587_v27  ;;  %4140 = vmatmul.bf16.gmra.mxu1 %v10589_v11  ;;  %v7994_v42 = vld [vmem:[%s9236_s30 + $0x3ac] sm:$0xf0]  ;;  %vm3274_vm0 = vmor %vm3272_vm15, %vm3273_vm14  ;;  %v7347_v58 = vor.u32 %v7982_v35, %v7344_v0  ;;  %v7056_v29 = vld [vmem:[%s9236_s30 + $0x130] sm:$0xf0] }
 0x71b   : > { %v3268_v54 = vmul.f32 %v10585_v13, %v3267_v51  ;;  %4169 = vmatmul.bf16.gmra.mxu2 %v10587_v27  ;;  %4198 = vmatmul.bf16.gmra.mxu3 %v10589_v11  ;;  %v3265_v25 = vsel %vm3264_vm13, %v10546_v5, %v3261_v8  ;;  %v7375_v12 = vor.u32 %v7994_v42, %v7374_v39  ;;  %v7986_v6 = vld [vmem:[%s9236_s30 + $0x36c] sm:$0xf0]  ;;  %v7312_v53 = vld [vmem:[%s9236_s30 + $0x330] sm:$0xf0] }
 0x71c   : > { %4383 = vmatpush.bf16.msrb.mxu2 %v7155_v3  ;;  %4325 = vmatpush.bf16.msra.mxu0 %v7151_v57  ;;  %v3288_v5 = vmul.f32 %v3265_v25, %v10375_v1  ;;  %v3289_v26 = vmul.f32 %v3265_v25, %v10377_v10  ;;  %v7086_v3 = vld [vmem:[%s9236_s30 + $0x150] sm:$0xf]  ;;  %v7910_v57 = vld [vmem:[%s9236_s30 + $0x114] sm:$0xf] }
 0x71d   : > { %v3269_v30 = vmul.f32 0.5, %v3268_v54  ;;  %4354 = vmatpush.bf16.msra.mxu1 %v7407_v36  ;;  %4413 = vmatpush.bf16.msrb.mxu3 %v7379_v4  ;;  %v7087_v23 = vor.u32 %v7922_v33, %v7086_v3  ;;  %v7974_v36 = vld [vmem:[%s9236_s30 + $0x314] sm:$0xf]  ;;  %v7059_v19 = vor.u32 %v7910_v57, %v7056_v29  ;;  %v7054_v25 = vld [vmem:[%s9236_s30 + $0x110] sm:$0xf] }
 0x71e   : > { %v3313_v51 = vmul.f32 %v10429_v60, %v3288_v5  ;;  %v3314_v43 = vmul.f32 %v10435_v16, %v3289_v26  ;;  %v7315_v56 = vor.u32 %v7974_v36, %v7312_v53  ;;  %v7978_v52 = vld [vmem:[%s9236_s30 + $0x32c] sm:$0xf0]  ;;  %v7902_v62 = vld [vmem:[%s9236_s30 + $0xd4] sm:$0xf] }
 0x71f   : > { %v3270_v20 = vsub.f32 1.5, %v3269_v30  ;;  %v7342_v30 = vld [vmem:[%s9236_s30 + $0x350] sm:$0xf]  ;;  %v7024_v39 = vld [vmem:[%s9236_s30 + $0xf0] sm:$0xf0] }
 0x720   : > { %4384 = vmatpush.bf16.msrb.mxu2 %v7123_v21  ;;  %4326 = vmatpush.bf16.msra.mxu0 %v7119_v31  ;;  %v7343_v61 = vor.u32 %v7986_v6, %v7342_v30  ;;  %v7310_v21 = vld [vmem:[%s9236_s30 + $0x310] sm:$0xf]  ;;  %v7966_v42 = vld [vmem:[%s9236_s30 + $0x2d4] sm:$0xf] }
 0x721   : > { %v3271_v44 = vmul.f32 %v10585_v13, %v3270_v20  ;;  %4355 = vmatpush.bf16.msra.mxu1 %v7375_v12  ;;  %4414 = vmatpush.bf16.msrb.mxu3 %v7347_v58  ;;  %v7914_v20 = vld [vmem:[%s9236_s30 + $0x12c] sm:$0xf0]  ;;  %v7311_v4 = vor.u32 %v7978_v52, %v7310_v21  ;;  %v7280_v31 = vld [vmem:[%s9236_s30 + $0x2f0] sm:$0xf0] }
 0x722   : > { %v7055_v48 = vor.u32 %v7914_v20, %v7054_v25  ;;  %v7022_v12 = vld [vmem:[%s9236_s30 + $0xd0] sm:$0xf]  ;;  %v7283_v26 = vor.u32 %v7966_v42, %v7280_v31  ;;  %v7886_v30 = vld [vmem:[%s9236_s30 + $0x54] sm:$0xf] }
 0x723   : > { %v3275_v46 = vsel %vm3274_vm0, %v10585_v13, %v3271_v44  ;;  %v7027_v44 = vor.u32 %v7902_v62, %v7024_v39  ;;  %v7906_v5 = vld [vmem:[%s9236_s30 + $0xec] sm:$0xf0]  ;;  %v6960_v6 = vld [vmem:[%s9236_s30 + $0x70] sm:$0xf0] }
 0x724   : > { %v3290_v9 = vmul.f32 %v3275_v46, %v10385_v2  ;;  %v3291_v47 = vmul.f32 %v3275_v46, %v10387_v32  ;;  %4327 = vmatpush.bf16.msra.mxu0 %v7087_v23  ;;  %v7023_v46 = vor.u32 %v7906_v5, %v7022_v12  ;;  %v7898_v0 = vld [vmem:[%s9236_s30 + $0xac] sm:$0xf0]  ;;  %v7950_v57 = vld [vmem:[%s9236_s30 + $0x254] sm:$0xf] }
 0x725   : > { %4356 = vmatpush.bf16.msra.mxu1 %v7343_v61  ;;  %4415 = vmatpush.bf16.msrb.mxu3 %v7315_v56  ;;  %v7246_v3 = vld [vmem:[%s9236_s30 + $0x290] sm:$0xf]  ;;  %v6963_v61 = vor.u32 %v7886_v30, %v6960_v6  ;;  %v7216_v29 = vld [vmem:[%s9236_s30 + $0x270] sm:$0xf0] }
 0x726   : > { %v3315_v14 = vmul.f32 %v10429_v60, %v3290_v9  ;;  %v3316_v13 = vmul.f32 %v10435_v16, %v3291_v47  ;;  %v7918_v60 = vld [vmem:[%s9236_s30 + $0x154] sm:$0xf]  ;;  %v7278_v9 = vld [vmem:[%s9236_s30 + $0x2d0] sm:$0xf] }
 0x727   : > { %v7088_v16 = vld [vmem:[%s9236_s30 + $0x170] sm:$0xf0]  ;;  %v7970_v47 = vld [vmem:[%s9236_s30 + $0x2ec] sm:$0xf0] }
 0x728   : > { %v10634_v8 = vpack.c.bf16 %v3315_v14, %v3313_v51  ;;  %v10636_v54 = vpack.c.bf16 %v3316_v13, %v3314_v43  ;;  %v7091_v17 = vor.u32 %v7918_v60, %v7088_v16  ;;  %4328 = vmatpush.bf16.msra.mxu0 %v7055_v48  ;;  %v7894_v51 = vld [vmem:[%s9236_s30 + $0x94] sm:$0xf]  ;;  %v7279_v43 = vor.u32 %v7970_v47, %v7278_v9  ;;  %v7962_v58 = vld [vmem:[%s9236_s30 + $0x2ac] sm:$0xf0]  ;;  %v7935_v9 = vld [vmem:[%s9236_s30 + $0x1dc] sm:$0xf] }
 0x729   : > { %4357 = vmatpush.bf16.msra.mxu1 %v7311_v4  ;;  %v6992_v14 = vld [vmem:[%s9236_s30 + $0xb0] sm:$0xf0]  ;;  %4416 = vmatpush.bf16.msrb.mxu3 %v7283_v26  ;;  %v7247_v23 = vor.u32 %v7962_v58, %v7246_v3  ;;  %v6958_v36 = vld [vmem:[%s9236_s30 + $0x50] sm:$0xf]  ;;  %v7160_v47 = vld [vmem:[%s9236_s30 + $0x1f8] sm:$0xf0] }
 0x72a   : > { %4116 = vmatmul.bf16.gmra.mxu0 %v10634_v8  ;;  %4145 = vmatmul.bf16.gmra.mxu1 %v10636_v54  ;;  %v7958_v13 = vld [vmem:[%s9236_s30 + $0x294] sm:$0xf]  ;;  %v6995_v16 = vor.u32 %v7894_v51, %v6992_v14  ;;  %v7890_v53 = vld [vmem:[%s9236_s30 + $0x6c] sm:$0xf0]  ;;  %v7999_v51 = vld [vmem:[%s9236_s30 + $0x3dc] sm:$0xf] }
 0x72b   : > { %4174 = vmatmul.bf16.gmra.mxu2 %v10634_v8  ;;  %4203 = vmatmul.bf16.gmra.mxu3 %v10636_v54  ;;  %v7248_v60 = vld [vmem:[%s9236_s30 + $0x2b0] sm:$0xf0]  ;;  %v6959_v56 = vor.u32 %v7890_v53, %v6958_v36  ;;  %v7214_v25 = vld [vmem:[%s9236_s30 + $0x250] sm:$0xf]  ;;  %v7414_v3 = vld [vmem:[%s9236_s30 + $0x3d8] sm:$0xf] }
 0x72c   : > { %4385 = vmatpush.bf16.msrb.mxu2 %v7091_v17  ;;  %4329 = vmatpush.bf16.msra.mxu0 %v7023_v46  ;;  %v7251_v35 = vor.u32 %v7958_v13, %v7248_v60  ;;  %v6990_v17 = vld [vmem:[%s9236_s30 + $0x90] sm:$0xf]  ;;  %v7878_v21 = vld [vmem:[%s9236_s30 + $0x14] sm:$0xf]  ;;  %v7163_v13 = vor.u32 %v7935_v9, %v7160_v47  ;;  %v7416_v60 = vld [vmem:[%s9236_s30 + $0x3f8] sm:$0xf0] }
 0x72d   : > { %4358 = vmatpush.bf16.msra.mxu1 %v7279_v43  ;;  %v6991_v33 = vor.u32 %v7898_v0, %v6990_v17  ;;  %v7954_v20 = vld [vmem:[%s9236_s30 + $0x26c] sm:$0xf0]  ;;  %v6928_v52 = vld [vmem:[%s9236_s30 + $0x30] sm:$0xf0]  ;;  %v7158_v17 = vld [vmem:[%s9236_s30 + $0x1d8] sm:$0xf] }
 0x72e   : > { %4417 = vmatpush.bf16.msrb.mxu3 %v7251_v35  ;;  %v7215_v48 = vor.u32 %v7954_v20, %v7214_v25  ;;  %v7942_v4 = vld [vmem:[%s9236_s30 + $0x214] sm:$0xf]  ;;  %v6931_v39 = vor.u32 %v7878_v21, %v6928_v52  ;;  %v7882_v31 = vld [vmem:[%s9236_s30 + $0x2c] sm:$0xf0]  ;;  %v7419_v35 = vor.u32 %v7999_v51, %v7416_v60  ;;  %v7939_v0 = vld [vmem:[%s9236_s30 + $0x1f4] sm:$0xf0] }
 0x72f   : > { %v7184_v62 = vld [vmem:[%s9236_s30 + $0x230] sm:$0xf0]  ;;  %v7182_v12 = vld [vmem:[%s9236_s30 + $0x210] sm:$0xf]  ;;  %v8003_v58 = vld [vmem:[%s9236_s30 + $0x3f4] sm:$0xf0] }
 0x730   : > { %4386 = vmatpush.bf16.msrb.mxu2 %v7059_v19  ;;  %4330 = vmatpush.bf16.msra.mxu0 %v6991_v33  ;;  %v7219_v19 = vor.u32 %v7950_v57, %v7216_v29  ;;  %v7187_v42 = vor.u32 %v7942_v4, %v7184_v62  ;;  %v7946_v26 = vld [vmem:[%s9236_s30 + $0x22c] sm:$0xf0]  ;;  %v7159_v33 = vor.u32 %v7939_v0, %v7158_v17  ;;  %v7927_v57 = vld [vmem:[%s9236_s30 + $0x19c] sm:$0xf]  ;;  %v7126_v21 = vld [vmem:[%s9236_s30 + $0x198] sm:$0xf] }
 0x731   : > { %4359 = vmatpush.bf16.msra.mxu1 %v7247_v23  ;;  %v7183_v46 = vor.u32 %v7946_v26, %v7182_v12  ;;  %v7415_v23 = vor.u32 %v8003_v58, %v7414_v3  ;;  %v7991_v29 = vld [vmem:[%s9236_s30 + $0x39c] sm:$0xf]  ;;  %v7382_v4 = vld [vmem:[%s9236_s30 + $0x398] sm:$0xf] }
 0x732   : > { %4418 = vmatpush.bf16.msrb.mxu3 %v7219_v19  ;;  %v7384_v25 = vld [vmem:[%s9236_s30 + $0x3b8] sm:$0xf0]  ;;  %v7995_v62 = vld [vmem:[%s9236_s30 + $0x3b4] sm:$0xf0] }
 0x733   : > { %v7387_v20 = vor.u32 %v7991_v29, %v7384_v25  ;;  %v7096_v12 = vld [vmem:[%s9236_s30 + $0x178] sm:$0xf0]  ;;  %v7350_v17 = vld [vmem:[%s9236_s30 + $0x358] sm:$0xf] }
 0x734   : > { %4387 = vmatpush.bf16.msrb.mxu2 %v7027_v44  ;;  %4331 = vmatpush.bf16.msra.mxu0 %v6959_v56  ;;  %v6926_v44 = vld [vmem:[%s9236_s30 + $0x10] sm:$0xf]  ;;  %v7352_v26 = vld [vmem:[%s9236_s30 + $0x378] sm:$0xf0]  ;;  %v7987_v0 = vld [vmem:[%s9236_s30 + $0x374] sm:$0xf0] }
 0x735   : > { %4360 = vmatpush.bf16.msra.mxu1 %v7215_v48  ;;  %v6927_v5 = vor.u32 %v7882_v31, %v6926_v44  ;;  %v7931_v48 = vld [vmem:[%s9236_s30 + $0x1b4] sm:$0xf0]  ;;  %v7351_v3 = vor.u32 %v7987_v0, %v7350_v17  ;;  %v7064_v58 = vld [vmem:[%s9236_s30 + $0x138] sm:$0xf0] }
 0x736   : > { %4419 = vmatpush.bf16.msrb.mxu3 %v7187_v42  ;;  %v7127_v52 = vor.u32 %v7931_v48, %v7126_v21  ;;  %v7919_v42 = vld [vmem:[%s9236_s30 + $0x15c] sm:$0xf]  ;;  %v7062_v29 = vld [vmem:[%s9236_s30 + $0x118] sm:$0xf] }
 0x737   : > { %v7099_v51 = vor.u32 %v7919_v42, %v7096_v12  ;;  %v7903_v42 = vld [vmem:[%s9236_s30 + $0xdc] sm:$0xf] }
 0x738   : > { %4388 = vmatpush.bf16.msrb.mxu2 %v6995_v16  ;;  %4332 = vmatpush.bf16.msra.mxu0 %v6927_v5  ;;  %v7983_v5 = vld [vmem:[%s9236_s30 + $0x35c] sm:$0xf] }
 0x739   : > { %4361 = vmatpush.bf16.msra.mxu1 %v7183_v46  ;;  %v7355_v60 = vor.u32 %v7983_v5, %v7352_v26 }
 0x73a   : > { %4217 = vmatmul.bf16.vlgmr.msrb.gmra.mxu0 %v10446_v41  ;;  %4246 = vmatmul.bf16.vlgmr.msrb.gmra.mxu1 %v10448_v28 }
 0x73b   : > { %4275 = vmatmul.bf16.vlgmr.msra.gmra.mxu2 %v10446_v41  ;;  %4304 = vmatmul.bf16.vlgmr.msra.gmra.mxu3 %v10448_v28 }
 0x73c   : > { %4389 = vmatpush.bf16.msrb.mxu2 %v6963_v61  ;;  %4528 = vmatpush.bf16.msra.mxu3 %v7419_v35  ;;  %v7128_v61 = vld [vmem:[%s9236_s30 + $0x1b8] sm:$0xf0] }
 0x73d   : > { %4441 = vmatpush.bf16.msrb.mxu0 %v7159_v33  ;;  %4470 = vmatpush.bf16.msrb.mxu1 %v7415_v23  ;;  %v7131_v56 = vor.u32 %v7927_v57, %v7128_v61  ;;  %v7911_v33 = vld [vmem:[%s9236_s30 + $0x11c] sm:$0xf] }
 0x73e   : > { %v7067_v23 = vor.u32 %v7911_v33, %v7064_v58  ;;  %v7030_v33 = vld [vmem:[%s9236_s30 + $0xd8] sm:$0xf] }
 0x73f   : > { %v7907_v58 = vld [vmem:[%s9236_s30 + $0xf4] sm:$0xf0] }
 0x740   : > { %4390 = vmatpush.bf16.msrb.mxu2 %v6931_v39  ;;  %4529 = vmatpush.bf16.msra.mxu3 %v7387_v20  ;;  %v7383_v39 = vor.u32 %v7995_v62, %v7382_v4  ;;  %v7979_v4 = vld [vmem:[%s9236_s30 + $0x334] sm:$0xf0] }
 0x741   : > { %4442 = vmatpush.bf16.msrb.mxu0 %v7127_v52  ;;  %v7318_v52 = vld [vmem:[%s9236_s30 + $0x318] sm:$0xf] }
 0x742   : > { %4471 = vmatpush.bf16.msrb.mxu1 %v7383_v39  ;;  %v7319_v39 = vor.u32 %v7979_v4, %v7318_v52 }
 0x744   : > { %4499 = vmatpush.bf16.msra.mxu2 %v7163_v13  ;;  %4530 = vmatpush.bf16.msra.mxu3 %v7355_v60 }
 0x746   : > { %4472 = vmatpush.bf16.msrb.mxu1 %v7351_v3 }
 0x748   : > { %4500 = vmatpush.bf16.msra.mxu2 %v7131_v56  ;;  %v7915_v56 = vld [vmem:[%s9236_s30 + $0x134] sm:$0xf0] }
 0x749   : > { %v7063_v62 = vor.u32 %v7915_v56, %v7062_v29  ;;  %v7000_v29 = vld [vmem:[%s9236_s30 + $0xb8] sm:$0xf0] }
 0x74a   : > { %4222 = vmatmul.bf16.gmra.mxu0 %v10504_v50  ;;  %4251 = vmatmul.bf16.gmra.mxu1 %v10506_v15 }
 0x74b   : > { %4280 = vmatmul.bf16.gmra.mxu2 %v10504_v50  ;;  %4309 = vmatmul.bf16.gmra.mxu3 %v10506_v15 }
 0x74c   : > { %4501 = vmatpush.bf16.msra.mxu2 %v7099_v51  ;;  %4473 = vmatpush.bf16.msrb.mxu1 %v7319_v39  ;;  %v7967_v51 = vld [vmem:[%s9236_s30 + $0x2dc] sm:$0xf] }
 0x74d   : > { %v7256_v39 = vld [vmem:[%s9236_s30 + $0x2b8] sm:$0xf0] }
 0x750   : > { %4502 = vmatpush.bf16.msra.mxu2 %v7067_v23 }
 0x75a   : > { %4227 = vmatmul.bf16.gmra.mxu0 %v10587_v27  ;;  %4256 = vmatmul.bf16.gmra.mxu1 %v10589_v11 }
 0x75b   : > { %4285 = vmatmul.bf16.gmra.mxu2 %v10587_v27  ;;  %4314 = vmatmul.bf16.gmra.mxu3 %v10589_v11 }
 0x76a   : > { %4232 = vmatmul.bf16.gmra.mxu0 %v10634_v8  ;;  %4261 = vmatmul.bf16.gmra.mxu1 %v10636_v54 }
 0x76b   : > { %4290 = vmatmul.bf16.gmra.mxu2 %v10634_v8  ;;  %4319 = vmatmul.bf16.gmra.mxu3 %v10636_v54 }
 0x777   : > { %v4102_v43 = vpop.f32.mrf.mxu0  ;;  %v4131_v14 = vpop.f32.mrf.mxu1 }
 0x778   : > { %v10710_v16 = vadd.f32 %v4131_v14, %v4102_v43  ;;  %v7094_v43 = vld [vmem:[%s9236_s30 + $0x158] sm:$0xf] }
 0x779   : > { %v7923_v14 = vld [vmem:[%s9236_s30 + $0x174] sm:$0xf0] }
 0x77a   : > { %4333 = vmatmul.bf16.vlgmr.msra.gmra.mxu0 %v10446_v41  ;;  %4362 = vmatmul.bf16.vlgmr.msra.gmra.mxu1 %v10448_v28  ;;  %v7095_v35 = vor.u32 %v7923_v14, %v7094_v43  ;;  %v7288_v43 = vld [vmem:[%s9236_s30 + $0x2f8] sm:$0xf0] }
 0x77b   : > { %4391 = vmatmul.bf16.vlgmr.msrb.gmra.mxu2 %v10446_v41  ;;  %4420 = vmatmul.bf16.vlgmr.msrb.gmra.mxu3 %v10448_v28  ;;  %v7291_v60 = vor.u32 %v7967_v51, %v7288_v43  ;;  %v7254_v51 = vld [vmem:[%s9236_s30 + $0x298] sm:$0xf] }
 0x77c   : > { %4443 = vmatpush.bf16.msrb.mxu0 %v7095_v35  ;;  %v7963_v43 = vld [vmem:[%s9236_s30 + $0x2b4] sm:$0xf0] }
 0x77e   : > { %v4160_v30 = vpop.f32.mrf.mxu2  ;;  %v4189_v6 = vpop.f32.mrf.mxu3 }
 0x77f   : > { %v10723_v36 = vadd.f32 %v4189_v6, %v4160_v30  ;;  %v10725_v53 = vpop.f32.mrf.mxu0  ;;  %v10727_v19 = vpop.f32.mrf.mxu1  ;;  %v7975_v30 = vld [vmem:[%s9236_s30 + $0x31c] sm:$0xf] }
 0x780   : > { %v7320_v6 = vld [vmem:[%s9236_s30 + $0x338] sm:$0xf0]  ;;  %4444 = vmatpush.bf16.msrb.mxu0 %v7063_v62 }
 0x781   : > { %v7323_v48 = vor.u32 %v7975_v30, %v7320_v6  ;;  %v7031_v30 = vor.u32 %v7907_v58, %v7030_v33  ;;  %v7286_v6 = vld [vmem:[%s9236_s30 + $0x2d8] sm:$0xf]  ;;  %v7959_v62 = vld [vmem:[%s9236_s30 + $0x29c] sm:$0xf] }
 0x782   : > { %v6968_v58 = vld [vmem:[%s9236_s30 + $0x78] sm:$0xf0] }
 0x783   : > { %4531 = vmatpush.bf16.msra.mxu3 %v7323_v48 }
 0x784   : > { %4445 = vmatpush.bf16.msrb.mxu0 %v7031_v30  ;;  %v7951_v30 = vld [vmem:[%s9236_s30 + $0x25c] sm:$0xf] }
 0x786   : > { %v4162_v44 = vpop.f32.mrf.mxu2  ;;  %v4191_v31 = vpop.f32.mrf.mxu3 }
 0x787   : > { %v10738_v46 = vadd.f32 %v4191_v31, %v4162_v44  ;;  %v4107_v9 = vpop.f32.mrf.mxu0  ;;  %v4136_v47 = vpop.f32.mrf.mxu1  ;;  %v7032_v44 = vld [vmem:[%s9236_s30 + $0xf8] sm:$0xf0]  ;;  %4532 = vmatpush.bf16.msra.mxu3 %v7291_v60 }
 0x788   : > { %v10742_v13 = vadd.f32 %v4136_v47, %v4107_v9  ;;  %v7035_v31 = vor.u32 %v7903_v42, %v7032_v44  ;;  %v7887_v60 = vld [vmem:[%s9236_s30 + $0x5c] sm:$0xf] }
 0x78a   : > { %4338 = vmatmul.bf16.gmra.mxu0 %v10504_v50  ;;  %4367 = vmatmul.bf16.gmra.mxu1 %v10506_v15 }
 0x78b   : > { %4396 = vmatmul.bf16.gmra.mxu2 %v10504_v50  ;;  %4425 = vmatmul.bf16.gmra.mxu3 %v10506_v15 }
 0x78c   : > { %4503 = vmatpush.bf16.msra.mxu2 %v7035_v31  ;;  %v7259_v31 = vor.u32 %v7959_v62, %v7256_v39 }
 0x78e   : > { %v4165_v57 = vpop.f32.mrf.mxu2  ;;  %v4194_v61 = vpop.f32.mrf.mxu3  ;;  %4533 = vmatpush.bf16.msra.mxu3 %v7259_v31  ;;  %v7891_v31 = vld [vmem:[%s9236_s30 + $0x74] sm:$0xf0] }
 0x78f   : > { %v10756_v25 = vadd.f32 %v4194_v61, %v4165_v57  ;;  %v10758_v20 = vpop.f32.mrf.mxu0  ;;  %v10760_v21 = vpop.f32.mrf.mxu1  ;;  %v7971_v57 = vld [vmem:[%s9236_s30 + $0x2f4] sm:$0xf0]  ;;  %v7895_v61 = vld [vmem:[%s9236_s30 + $0x9c] sm:$0xf] }
 0x790   : > { %v7287_v56 = vor.u32 %v7971_v57, %v7286_v6  ;;  %v7003_v48 = vor.u32 %v7895_v61, %v7000_v29  ;;  %v7224_v6 = vld [vmem:[%s9236_s30 + $0x278] sm:$0xf0]  ;;  %v7255_v29 = vor.u32 %v7963_v43, %v7254_v51 }
 0x792   : > { %4474 = vmatpush.bf16.msrb.mxu1 %v7287_v56  ;;  %4504 = vmatpush.bf16.msra.mxu2 %v7003_v48  ;;  %v6971_v56 = vor.u32 %v7887_v60, %v6968_v58  ;;  %v7227_v48 = vor.u32 %v7951_v30, %v7224_v6  ;;  %v7879_v60 = vld [vmem:[%s9236_s30 + $0x1c] sm:$0xf] }
 0x793   : > { %v7192_v58 = vld [vmem:[%s9236_s30 + $0x238] sm:$0xf0] }
 0x794   : > { %4534 = vmatpush.bf16.msra.mxu3 %v7227_v48  ;;  %v10827_v48 = vadd.f32 %v10727_v19, %v10725_v53 }
 0x796   : > { %v4167_v12 = vpop.f32.mrf.mxu2  ;;  %v4196_v5 = vpop.f32.mrf.mxu3  ;;  %4475 = vmatpush.bf16.msrb.mxu1 %v7255_v29  ;;  %4505 = vmatpush.bf16.msra.mxu2 %v6971_v56  ;;  %v7424_v10 = vmul.f32 -1.442695, %v10827_v48 }
 0x797   : > { %v10766_v26 = vadd.f32 %v4196_v5, %v4167_v12  ;;  %v4112_v9 = vpop.f32.mrf.mxu0  ;;  %v4141_v47 = vpop.f32.mrf.mxu1 }
 0x798   : > { %v10770_v14 = vadd.f32 %v4141_v47, %v4112_v9  ;;  %v6998_v9 = vld [vmem:[%s9236_s30 + $0x98] sm:$0xf] }
 0x799   : > { %v7899_v47 = vld [vmem:[%s9236_s30 + $0xb4] sm:$0xf0]  ;;  %v7433_v37 = vmul.f32 -1.442695, %v10766_v26 }
 0x79a   : > { %4343 = vmatmul.bf16.gmra.mxu0 %v10587_v27  ;;  %4372 = vmatmul.bf16.gmra.mxu1 %v10589_v11  ;;  %v6999_v33 = vor.u32 %v7899_v47, %v6998_v9  ;;  %v7222_v9 = vld [vmem:[%s9236_s30 + $0x258] sm:$0xf] }
 0x79b   : > { %4401 = vmatmul.bf16.gmra.mxu2 %v10587_v27  ;;  %4430 = vmatmul.bf16.gmra.mxu3 %v10589_v11  ;;  %v7955_v47 = vld [vmem:[%s9236_s30 + $0x274] sm:$0xf0] }
 0x79c   : > { %4446 = vmatpush.bf16.msrb.mxu0 %v6999_v33  ;;  %v7223_v43 = vor.u32 %v7955_v47, %v7222_v9  ;;  %v7943_v33 = vld [vmem:[%s9236_s30 + $0x21c] sm:$0xf]  ;;  %v7883_v9 = vld [vmem:[%s9236_s30 + $0x34] sm:$0xf0] }
 0x79d   : > { %v7195_v47 = vor.u32 %v7943_v33, %v7192_v58 }
 0x79e   : > { %v4170_v35 = vpop.f32.mrf.mxu2  ;;  %v4199_v17 = vpop.f32.mrf.mxu3  ;;  %4476 = vmatpush.bf16.msrb.mxu1 %v7223_v43 }
 0x79f   : > { %v10776_v0 = vpop.f32.mrf.mxu0  ;;  %v10778_v3 = vpop.f32.mrf.mxu1  ;;  %v10782_v23 = vadd.f32 %v4199_v17, %v4170_v35  ;;  %4535 = vmatpush.bf16.msra.mxu3 %v7195_v47 }
 0x7a1   : > { %12669 = vst [vmem:[#allocation46_spill] sm:$0xff] %v10782_v23 }
 0x7a6   : > { %v4172_v52 = vpop.f32.mrf.mxu2  ;;  %v4201_v4 = vpop.f32.mrf.mxu3 }
 0x7a7   : > { %v4117_v42 = vpop.f32.mrf.mxu0  ;;  %v4146_v44 = vpop.f32.mrf.mxu1  ;;  %v10790_v12 = vadd.f32 %v4201_v4, %v4172_v52 }
 0x7a8   : > { %v10796_v5 = vadd.f32 %v4146_v44, %v4117_v42  ;;  %v6966_v44 = vld [vmem:[%s9236_s30 + $0x58] sm:$0xf] }
 0x7a9   : > { %12670 = vst [vmem:[#allocation47_spill] sm:$0xff] %v10790_v12  ;;  %v6967_v51 = vor.u32 %v7891_v31, %v6966_v44  ;;  %v6934_v31 = vld [vmem:[%s9236_s30 + $0x18] sm:$0xf] }
 0x7aa   : > { %4348 = vmatmul.bf16.gmra.mxu0 %v10634_v8  ;;  %4377 = vmatmul.bf16.gmra.mxu1 %v10636_v54  ;;  %12671 = vst [vmem:[#allocation48_spill] sm:$0xff] %v10796_v5  ;;  %v6935_v32 = vor.u32 %v7883_v9, %v6934_v31 }
 0x7ab   : > { %4406 = vmatmul.bf16.gmra.mxu2 %v10634_v8  ;;  %4435 = vmatmul.bf16.gmra.mxu3 %v10636_v54 }
 0x7ac   : > { %4447 = vmatpush.bf16.msrb.mxu0 %v6967_v51  ;;  %v7421_v51 = vmul.f32 -1.442695, %v10723_v36 }
 0x7ae   : > { %v4175_v35 = vpop.f32.mrf.mxu2  ;;  %v4204_v17 = vpop.f32.mrf.mxu3 }
 0x7af   : > { %v10806_v57 = vpop.f32.mrf.mxu0  ;;  %v10808_v61 = vpop.f32.mrf.mxu1  ;;  %v10810_v52 = vadd.f32 %v4204_v17, %v4175_v35  ;;  %v6936_v35 = vld [vmem:[%s9236_s30 + $0x38] sm:$0xf0]  ;;  %v7420_v17 = vmul.f32 -1.442695, %v10710_v16 }
 0x7b0   : > { %v6939_v44 = vor.u32 %v7879_v60, %v6936_v35  ;;  %4448 = vmatpush.bf16.msrb.mxu0 %v6935_v32  ;;  %v7190_v60 = vld [vmem:[%s9236_s30 + $0x218] sm:$0xf] }
 0x7b1   : > { %12672 = vst [vmem:[#allocation49_spill] sm:$0xff] %v10810_v52  ;;  %8457 = vpow2.f32 %v7420_v17  ;;  %v7947_v35 = vld [vmem:[%s9236_s30 + $0x234] sm:$0xf0] }
 0x7b2   : > { %4506 = vmatpush.bf16.msra.mxu2 %v6939_v44  ;;  %8459 = vpow2.f32 %v7421_v51  ;;  %v7425_v44 = vmul.f32 -1.442695, %v10738_v46 }
 0x7b3   : > { %8461 = vpow2.f32 %v7424_v10 }
 0x7b6   : > { %v4177_v4 = vpop.f32.mrf.mxu2  ;;  %v4206_v62 = vpop.f32.mrf.mxu3 }
 0x7b7   : > { %v4218_v39 = vpop.f32.mrf.mxu0  ;;  %v4247_v42 = vpop.f32.mrf.mxu1  ;;  %v10832_v43 = vadd.f32 %v4206_v62, %v4177_v4 }
 0x7b8   : > { %v10834_v59 = vadd.f32 %v4247_v42, %v4218_v39  ;;  %v8458_v17 = vpop.eup %8457  ;;  %v7191_v39 = vor.u32 %v7947_v35, %v7190_v60  ;;  %v7428_v60 = vmul.f32 -1.442695, %v10742_v13  ;;  %v10868_v35 = vadd.f32 %v10760_v21, %v10758_v20 }
 0x7b9   : > { %12673 = vst [vmem:[#allocation50_spill] sm:$0xff] %v10832_v43  ;;  %v10846_v42 = vadd.f32 1.0, %v8458_v17  ;;  %v8460_v33 = vpop.eup %8459 }
 0x7ba   : > { %12674 = vst [vmem:[#allocation51_spill] sm:$0xff] %v10834_v59  ;;  %4449 = vmatmul.bf16.vlgmr.msrb.gmra.mxu0 %v10446_v41  ;;  %4477 = vmatpush.bf16.msrb.mxu1 %v7191_v39  ;;  %v8462_v58 = vpop.eup %8461  ;;  %v10854_v51 = vadd.f32 1.0, %v8460_v33 }
 0x7bb   : > { %4507 = vmatmul.bf16.vlgmr.msra.gmra.mxu2 %v10446_v41  ;;  %4536 = vmatmul.bf16.vlgmr.msra.gmra.mxu3 %v10448_v28  ;;  %8463 = vrcp.f32 %v10846_v42  ;;  %v4694_v45 = vand.u32 2147483647, %v10846_v42  ;;  %v4696_v18 = vand.u32 2147483648, %v10846_v42  ;;  %vm4690_vm1 = vweird.f32 %v10846_v42 }
 0x7bc   : > { %8465 = vpow2.f32 %v7425_v44  ;;  %vm4705_vm6 = vweird.f32 %v10854_v51 }
 0x7bd   : > { %4478 = vmatmul.bf16.vlgmr.msrb.gmra.mxu1 %v10448_v28  ;;  %8467 = vrcp.f32 %v10854_v51  ;;  %vm10928_vm3 = vcmp.eq.f32.partialorder %v4694_v45, 8.507059e+37 }
 0x7be   : > { %v4276_v30 = vpop.f32.mrf.mxu2  ;;  %v4305_v6 = vpop.f32.mrf.mxu3 }
 0x7bf   : > { %v10821_v29 = vpop.f32.mrf.mxu0  ;;  %v10823_v56 = vpop.f32.mrf.mxu1  ;;  %v10848_v32 = vadd.f32 %v4305_v6, %v4276_v30  ;;  %v10863_v6 = vadd.f32 1.0, %v8462_v58 }
 0x7c1   : > { %12675 = vst [vmem:[#allocation52_spill] sm:$0xff] %v10848_v32  ;;  %v10872_v28 = vpop.eup %8463  ;;  %8469 = vrcp.f32 %v10863_v6  ;;  %v4756_v7 = vand.u32 2147483648, %v10863_v6  ;;  %vm4750_vm8 = vweird.f32 %v10863_v6 }
 0x7c2   : > { %8471 = vpow2.f32 %v7428_v60  ;;  %v8466_v33 = vpop.eup %8465  ;;  %v4686_v58 = vmul.f32 %v10872_v28, %v10846_v42  ;;  %vm4691_vm2 = vweird.f32 %v10872_v28 }
 0x7c3   : > { %v10889_v44 = vpop.eup %8467  ;;  %vm10947_vm5 = vmor %vm4690_vm1, %vm4691_vm2 }
 0x7c4   : > { %v4687_v40 = vsub.f32 1.0, %v4686_v58  ;;  %vm4706_vm4 = vweird.f32 %v10889_v44 }
 0x7c5   : > { %vm10987_vm11 = vmor %vm4705_vm6, %vm4706_vm4 }
 0x7c6   : > { %v10839_v53 = vpop.f32.mrf.mxu2  ;;  %v10841_v19 = vpop.f32.mrf.mxu3  ;;  %v4688_v2 = vmul.f32 %v10872_v28, %v4687_v40 }
 0x7c7   : > { %v4223_v4 = vpop.f32.mrf.mxu0  ;;  %v4252_v62 = vpop.f32.mrf.mxu1 }
 0x7c8   : > { %v10851_v31 = vadd.f32 %v4252_v62, %v4223_v4  ;;  %v7429_v4 = vmul.f32 -1.442695, %v10756_v25  ;;  %v7432_v62 = vmul.f32 -1.442695, %v10868_v35  ;;  %v4689_v22 = vadd.f32 %v10872_v28, %v4688_v2 }
 0x7c9   : > { %v4711_v2 = vand.u32 2147483648, %v10854_v51 }
 0x7ca   : > { %12676 = vst [vmem:[#allocation53_spill] sm:$0xff] %v10851_v31  ;;  %8473 = vpow2.f32 %v7429_v4  ;;  %4454 = vmatmul.bf16.gmra.mxu0 %v10504_v50  ;;  %v4701_v4 = vmul.f32 %v10889_v44, %v10854_v51  ;;  %v4693_v42 = vsel %vm10947_vm5, %v10872_v28, %v4689_v22 }
 0x7cb   : > { %4512 = vmatmul.bf16.gmra.mxu2 %v10504_v50  ;;  %4541 = vmatmul.bf16.gmra.mxu3 %v10506_v15  ;;  %8475 = vpow2.f32 %v7432_v62  ;;  %v4712_v28 = vor.u32 1.1754944e-38, %v4711_v2 }
 0x7cc   : > { %v4702_v1 = vsub.f32 1.0, %v4701_v4  ;;  %v4697_v4 = vor.u32 1.1754944e-38, %v4696_v18 }
 0x7cd   : > { %4483 = vmatmul.bf16.gmra.mxu1 %v10506_v15 }
 0x7ce   : > { %v4281_v9 = vpop.f32.mrf.mxu2  ;;  %v4310_v47 = vpop.f32.mrf.mxu3 }
 0x7cf   : > { %v10857_v10 = vadd.f32 %v4310_v47, %v4281_v9  ;;  %v10859_v41 = vpop.f32.mrf.mxu0  ;;  %v10861_v30 = vpop.f32.mrf.mxu1  ;;  %v10893_v47 = vadd.f32 1.0, %v8466_v33 }
 0x7d0   : > { %12678 = vst [vmem:[#allocation55_spill] sm:$0xff] %v10859_v41  ;;  %v10891_v9 = vpop.eup %8469 }
 0x7d1   : > { %12677 = vst [vmem:[#allocation54_spill] sm:$0xff] %v10857_v10  ;;  %v8472_v60 = vpop.eup %8471  ;;  %v4746_v50 = vmul.f32 %v10891_v9, %v10863_v6  ;;  %8477 = vrcp.f32 %v10893_v47  ;;  %vm4751_vm9 = vweird.f32 %v10891_v9  ;;  %vm4765_vm13 = vweird.f32 %v10893_v47 }
 0x7d2   : > { %12679 = vst [vmem:[#allocation56_spill] sm:$0xff] %v10861_v30  ;;  %v8474_v49 = vpop.eup %8473  ;;  %v10905_v62 = vadd.f32 1.0, %v8472_v60  ;;  %8479 = vpow2.f32 %v7433_v37  ;;  %v7436_v60 = vmul.f32 -1.442695, %v10770_v14  ;;  %vm11009_vm12 = vmor %vm4750_vm8, %vm4751_vm9 }
 0x7d3   : > { %v8476_v55 = vpop.eup %8475  ;;  %v10913_v24 = vadd.f32 1.0, %v8474_v49  ;;  %v4747_v15 = vsub.f32 1.0, %v4746_v50  ;;  %v4703_v49 = vmul.f32 %v10889_v44, %v4702_v1  ;;  %v4709_v50 = vand.u32 2147483647, %v10854_v51 }
 0x7d4   : > { %8481 = vrcp.f32 %v10905_v62  ;;  %v10920_v38 = vadd.f32 1.0, %v8476_v55  ;;  %v4754_v1 = vand.u32 2147483647, %v10863_v6  ;;  %v4698_v51 = vsel %vm10928_vm3, %v4697_v4, %v4693_v42 }
 0x7d5   : > { %8483 = vrcp.f32 %v10913_v24  ;;  %vm10969_vm7 = vcmp.eq.f32.partialorder %v4709_v50, 8.507059e+37  ;;  %v4769_v42 = vand.u32 2147483647, %v10893_v47  ;;  %vm4810_vm0 = vweird.f32 %v10905_v62 }
 0x7d6   : > { %v10878_v17 = vpop.f32.mrf.mxu2  ;;  %v10880_v39 = vpop.f32.mrf.mxu3  ;;  %8485 = vpow2.f32 %v7436_v60  ;;  %v4748_v60 = vmul.f32 %v10891_v9, %v4747_v15  ;;  %v7441_v15 = vmul.f32 -1.442695, %v10790_v12  ;;  %vm10979_vm10 = vcmp.eq.f32.partialorder %v4754_v1, 8.507059e+37 }
 0x7d7   : > { %12680 = vst [vmem:[#allocation57_spill] sm:$0xff] %v10878_v17  ;;  %v10882_v20 = vpop.f32.mrf.mxu0  ;;  %v10884_v21 = vpop.f32.mrf.mxu1  ;;  %8487 = vrcp.f32 %v10920_v38  ;;  %v4704_v17 = vadd.f32 %v10889_v44, %v4703_v49  ;;  %v4771_v12 = vand.u32 2147483648, %v10893_v47  ;;  %vm11062_vm15 = vcmp.eq.f32.partialorder %v4769_v42, 8.507059e+37 }
 0x7d8   : > { %12681 = vst [vmem:[#allocation58_spill] sm:$0xff] %v10880_v39  ;;  %v10926_v37 = vpop.eup %8477  ;;  %v10956_v39 = vadd.f32 %v10778_v3, %v10776_v0  ;;  %vm4825_vm1 = vweird.f32 %v10913_v24  ;;  %vm4870_vm8 = vweird.f32 %v10920_v38 }
 0x7d9   : > { %v8480_v55 = vpop.eup %8479  ;;  %v4761_v30 = vmul.f32 %v10926_v37, %v10893_v47  ;;  %v4708_v1 = vsel %vm10987_vm11, %v10889_v44, %v4704_v17  ;;  %v4816_v17 = vand.u32 2147483648, %v10905_v62  ;;  %vm4766_vm14 = vweird.f32 %v10926_v37 }
 0x7da   : > { %12690 = vst [vmem:[#allocation63_spill] sm:$0xff] %v10956_v39  ;;  %4459 = vmatmul.bf16.gmra.mxu0 %v10587_v27  ;;  %v10966_v41 = vpop.eup %8481  ;;  %v10974_v22 = vadd.f32 1.0, %v8480_v55  ;;  %v4749_v55 = vadd.f32 %v10891_v9, %v4748_v60  ;;  %v7440_v2 = vmul.f32 -1.442695, %v10956_v39  ;;  %v11018_v60 = vadd.f32 %v10884_v21, %v10882_v20  ;;  %v7510_v20 = vld [vmem:[%s9238_s14 + $0x70] sm:$0xf]  ;;  %vm11098_vm2 = vmor %vm4765_vm13, %vm4766_vm14 }
 0x7db   : > { %4517 = vmatmul.bf16.gmra.mxu2 %v10587_v27  ;;  %4546 = vmatmul.bf16.gmra.mxu3 %v10589_v11  ;;  %v10976_v3 = vpop.eup %8483  ;;  %v4757_v27 = vor.u32 1.1754944e-38, %v4756_v7  ;;  %v4762_v7 = vsub.f32 1.0, %v4761_v30  ;;  %v4806_v40 = vmul.f32 %v10966_v41, %v10905_v62  ;;  %v4713_v6 = vsel %vm10969_vm7, %v4712_v28, %v4708_v1  ;;  %v8019_v21 = vld [vmem:[%s9238_s14 + $0x74] sm:$0xf0]  ;;  %v8017_v30 = vld [vmem:[%s9238_s14 + $0x64] sm:$0xf0] }
 0x7dc   : > { %v8486_v18 = vpop.eup %8485  ;;  %12699 = vst [vmem:[#allocation64_spill] sm:$0xff] %v11018_v60  ;;  %vm4811_vm3 = vweird.f32 %v10966_v41  ;;  %vm4826_vm5 = vweird.f32 %v10976_v3  ;;  %vm4885_vm13 = vweird.f32 %v10974_v22 }
 0x7dd   : > { %v10998_v4 = vpop.eup %8487  ;;  %v11014_v44 = vadd.f32 1.0, %v8486_v18  ;;  %4488 = vmatmul.bf16.gmra.mxu1 %v10589_v11  ;;  %v11041_v11 = vor.u32 1.1754944e-38, %v4771_v12  ;;  %vm11147_vm7 = vmor %vm4810_vm0, %vm4811_vm3 }
 0x7de   : > { %v10898_v34 = vpop.f32.mrf.mxu2  ;;  %v10900_v63 = vpop.f32.mrf.mxu3  ;;  %v4866_v0 = vmul.f32 %v10998_v4, %v10920_v38  ;;  %vm11160_vm9 = vmor %vm4825_vm1, %vm4826_vm5 }
 0x7df   : > { %v10908_v33 = vpop.f32.mrf.mxu0  ;;  %v10910_v58 = vpop.f32.mrf.mxu1  ;;  %vm4930_vm1 = vweird.f32 %v11014_v44 }
 0x7e0   : > { %12682 = vst [vmem:[#allocation59_spill] sm:$0xff] %v10908_v33  ;;  %v7437_v33 = vmul.f32 -1.442695, %v10782_v23  ;;  %v4753_v23 = vsel %vm11009_vm12, %v10891_v9, %v4749_v55  ;;  %v7444_v9 = vmul.f32 -1.442695, %v10796_v5 }
 0x7e1   : > { %12683 = vst [vmem:[#allocation60_spill] sm:$0xff] %v10910_v58  ;;  %v7502_v55 = vld [vmem:[%s9238_s14 + $0x60] sm:$0xf] }
 0x7e2   : > { %8489 = vpow2.f32 %v7437_v33  ;;  %v4821_v33 = vmul.f32 %v10976_v3, %v10913_v24  ;;  %v7503_v42 = vor.u32 %v8017_v30, %v7502_v55 }
 0x7e3   : > { %8491 = vpow2.f32 %v7441_v15  ;;  %v11022_v15 = vadd.f32 %v10900_v63, %v10898_v34  ;;  %v4763_v63 = vmul.f32 %v10926_v37, %v4762_v7  ;;  %v4807_v34 = vsub.f32 1.0, %v4806_v40 }
 0x7e4   : > { %8493 = vrcp.f32 %v10974_v22  ;;  %v11048_v7 = vmul.f32 %v4698_v51, %v10710_v16  ;;  %v7511_v40 = vor.u32 %v8019_v21, %v7510_v20  ;;  %v11067_v51 = vor.u32 1.1754944e-38, %v4816_v17  ;;  %v7494_v17 = vld [vmem:[%s9238_s14 + $0x50] sm:$0xf] }
 0x7e5   : > { %12700 = vst [vmem:[#allocation65_spill] sm:$0xff] %v11022_v15  ;;  %8495 = vpow2.f32 %v7440_v2  ;;  %v11058_v15 = vmul.f32 %v4713_v6, %v10723_v36  ;;  %v4764_v21 = vadd.f32 %v10926_v37, %v4763_v63  ;;  %v4867_v36 = vsub.f32 1.0, %v4866_v0  ;;  %v7566_v0 = vld [vmem:[%s9238_s14 + $0xe0] sm:$0xf] }
 0x7e6   : > { %v10939_v45 = vpop.f32.mrf.mxu2  ;;  %v10941_v58 = vpop.f32.mrf.mxu3  ;;  %8497 = vrcp.f32 %v11014_v44  ;;  %5629 = vmatpush.bf16.msra.mxu0 %v7511_v40 }
 0x7e7   : > { %12686 = vst [vmem:[#allocation61_spill] sm:$0xff] %v10939_v45  ;;  %v4233_v45 = vpop.f32.mrf.mxu0  ;;  %8499 = vpow2.f32 %v7444_v9  ;;  %v8033_v9 = vld [vmem:[%s9238_s14 + $0xe4] sm:$0xf0]  ;;  %v4768_v47 = vsel %vm11098_vm2, %v10926_v37, %v4764_v21 }
 0x7e8   : > { %12687 = vst [vmem:[#allocation62_spill] sm:$0xff] %v10941_v58  ;;  %v4262_v58 = vpop.f32.mrf.mxu1  ;;  %v8490_v28 = vpop.eup %8489 }
 0x7e9   : > { %v11030_v18 = vadd.f32 %v4262_v58, %v4233_v45  ;;  %v4814_v58 = vand.u32 2147483647, %v10905_v62  ;;  %v4822_v45 = vsub.f32 1.0, %v4821_v33  ;;  %v8492_v1 = vpop.eup %8491  ;;  %v4758_v33 = vsel %vm10979_vm10, %v4757_v27, %v4753_v23 }
 0x7ea   : > { %v11055_v12 = vpop.eup %8493  ;;  %v11073_v49 = vadd.f32 1.0, %v8490_v28  ;;  %v11075_v27 = vadd.f32 1.0, %v8492_v1  ;;  %v4874_v1 = vand.u32 2147483647, %v10920_v38  ;;  %4464 = vmatmul.bf16.gmra.mxu0 %v10634_v8  ;;  %vm4871_vm10 = vweird.f32 %v10998_v4 }
 0x7eb   : > { %12701 = vst [vmem:[#allocation66_spill] sm:$0xff] %v11030_v18  ;;  %v8035_v18 = vld [vmem:[%s9238_s14 + $0xf4] sm:$0xf0]  ;;  %v8496_v23 = vpop.eup %8495  ;;  %4522 = vmatmul.bf16.gmra.mxu2 %v10634_v8  ;;  %v4823_v6 = vmul.f32 %v10976_v3, %v4822_v45  ;;  %v4881_v63 = vmul.f32 %v11055_v12, %v10974_v22  ;;  %4551 = vmatmul.bf16.gmra.mxu3 %v10636_v54  ;;  %vm11103_vm4 = vcmp.eq.f32.partialorder %v4814_v58, 8.507059e+37  ;;  %v4831_v45 = vand.u32 2147483648, %v10913_v24  ;;  %vm11196_vm12 = vmor %vm4870_vm8, %vm4871_vm10 }
 0x7ec   : > { %v11110_v40 = vpop.eup %8497  ;;  %v4868_v58 = vmul.f32 %v10998_v4, %v4867_v36  ;;  %8501 = vrcp.f32 %v11073_v49  ;;  %5630 = vmatpush.bf16.msra.mxu0 %v7503_v42  ;;  %v4876_v8 = vand.u32 2147483648, %v10920_v38  ;;  %vm11169_vm11 = vcmp.eq.f32.partialorder %v4874_v1, 8.507059e+37 }
 0x7ed   : > { %v8500_v5 = vpop.eup %8499  ;;  %v4824_v37 = vadd.f32 %v10976_v3, %v4823_v6  ;;  %8503 = vrcp.f32 %v11075_v27  ;;  %v4926_v36 = vmul.f32 %v11110_v40, %v11014_v44  ;;  %4493 = vmatmul.bf16.gmra.mxu1 %v10636_v54  ;;  %v4891_v54 = vand.u32 2147483648, %v10974_v22 }
 0x7ee   : > { %v4291_v50 = vpop.f32.mrf.mxu2  ;;  %v4320_v39 = vpop.f32.mrf.mxu3  ;;  %v4869_v62 = vadd.f32 %v10998_v4, %v4868_v58  ;;  %v11174_v16 = vadd.f32 1.0, %v8500_v5  ;;  %v4934_v38 = vand.u32 2147483647, %v11014_v44  ;;  %vm4886_vm14 = vweird.f32 %v11055_v12 }
 0x7ef   : > { %v11034_v60 = vpop.f32.mrf.mxu0  ;;  %v11069_v20 = vadd.f32 %v4320_v39, %v4291_v50  ;;  %v11080_v50 = vmul.f32 %v4758_v33, %v10827_v48  ;;  %v11117_v33 = vadd.f32 1.0, %v8496_v23  ;;  %v11136_v23 = vadd.f32 %v10808_v61, %v10806_v57  ;;  %vm11237_vm0 = vmor %vm4885_vm13, %vm4886_vm14 }
 0x7f0   : > { %12702 = vst [vmem:[#allocation67_spill] sm:$0xff] %v11034_v60  ;;  %v11045_v2 = vpop.f32.mrf.mxu1  ;;  %v7574_v60 = vld [vmem:[%s9238_s14 + $0xf0] sm:$0xf]  ;;  %v4927_v48 = vsub.f32 1.0, %v4926_v36  ;;  %v4951_v6 = vand.u32 2147483648, %v11073_v49  ;;  %vm11242_vm2 = vcmp.eq.f32.partialorder %v4934_v38, 8.507059e+37  ;;  %vm4931_vm3 = vweird.f32 %v11110_v40 }
 0x7f1   : > { %12703 = vst [vmem:[#allocation68_spill] sm:$0xff] %v11045_v2  ;;  %v4808_v2 = vmul.f32 %v10966_v41, %v4807_v34  ;;  %v7575_v39 = vor.u32 %v8035_v18, %v7574_v60  ;;  %v8015_v34 = vld [vmem:[%s9238_s14 + $0x54] sm:$0xf0]  ;;  %v4829_v18 = vand.u32 2147483647, %v10913_v24  ;;  %8505 = vrcp.f32 %v11117_v33  ;;  %vm11279_vm5 = vmor %vm4930_vm1, %vm4931_vm3 }
 0x7f2   : > { %12706 = vst [vmem:[#allocation69_spill] sm:$0xff] %v11069_v20  ;;  %v7567_v20 = vor.u32 %v8033_v9, %v7566_v0  ;;  %v11180_v0 = vpop.eup %8501  ;;  %vm5005_vm8 = vweird.f32 %v11075_v27 }
 0x7f3   : > { %5658 = vmatpush.bf16.msra.mxu1 %v7575_v39  ;;  %v4809_v30 = vadd.f32 %v10966_v41, %v4808_v2  ;;  %v7445_v39 = vmul.f32 -1.442695, %v10810_v52  ;;  %v4882_v2 = vsub.f32 1.0, %v4881_v63  ;;  %vm11127_vm6 = vcmp.eq.f32.partialorder %v4829_v18, 8.507059e+37  ;;  %12715 = vst [vmem:[#allocation72_spill] sm:$0xff] %v11136_v23  ;;  %v11187_v18 = vpop.eup %8503 }
 0x7f4   : > { %v4832_v63 = vor.u32 1.1754944e-38, %v4831_v45  ;;  %v5001_v21 = vmul.f32 %v11187_v18, %v11075_v27 }
 0x7f5   : > { %v4813_v57 = vsel %vm11147_vm7, %v10966_v41, %v4809_v30  ;;  %8507 = vpow2.f32 %v7445_v39  ;;  %v4883_v24 = vmul.f32 %v11055_v12, %v4882_v2  ;;  %v4941_v39 = vmul.f32 %v11180_v0, %v11073_v49 }
 0x7f6   : > { %v11090_v28 = vpop.f32.mrf.mxu2  ;;  %v11092_v55 = vpop.f32.mrf.mxu3  ;;  %v4818_v5 = vsel %vm11103_vm4, %v11067_v51, %v4813_v57  ;;  %v4873_v51 = vsel %vm11196_vm12, %v10998_v4, %v4869_v62  ;;  %8509 = vrcp.f32 %v11174_v16  ;;  %v4928_v4 = vmul.f32 %v11110_v40, %v4927_v48 }
 0x7f7   : > { %12707 = vst [vmem:[#allocation70_spill] sm:$0xff] %v11090_v28  ;;  %v7495_v28 = vor.u32 %v8015_v34, %v7494_v17  ;;  %5659 = vmatpush.bf16.msra.mxu1 %v7567_v20  ;;  %v4773_v17 = vsel %vm11062_vm15, %v11041_v11, %v4768_v47  ;;  %v4828_v11 = vsel %vm11160_vm9, %v10976_v3, %v4824_v37  ;;  %v7448_v3 = vmul.f32 -1.442695, %v11136_v23  ;;  %v11212_v30 = vpop.eup %8505 }
 0x7f8   : > { %12708 = vst [vmem:[#allocation71_spill] sm:$0xff] %v11092_v55  ;;  %v11120_v55 = vpop.f32.mrf.mxu0  ;;  %v11138_v42 = vpop.f32.mrf.mxu1  ;;  %v11183_v9 = vmul.f32 %v4773_v17, %v10738_v46  ;;  %v4889_v46 = vand.u32 2147483647, %v10974_v22  ;;  %v4833_v60 = vsel %vm11127_vm6, %v4832_v63, %v4828_v11  ;;  %v4936_v47 = vand.u32 2147483648, %v11014_v44 }
 0x7f9   : > { %5631 = vmatpush.bf16.msra.mxu0 %v7495_v28  ;;  %v4877_v28 = vor.u32 1.1754944e-38, %v4876_v8  ;;  %v4884_v58 = vadd.f32 %v11055_v12, %v4883_v24  ;;  %v11220_v2 = vmul.f32 %v4818_v5, %v10742_v13  ;;  %8511 = vpow2.f32 %v7448_v3 }
 0x7fa   : > { %v11226_v8 = vmul.f32 %v4833_v60, %v10756_v25  ;;  %vm11228_vm15 = vcmp.eq.f32.partialorder %v4889_v46, 8.507059e+37  ;;  %v4892_v17 = vor.u32 1.1754944e-38, %v4891_v54  ;;  %v4986_v57 = vmul.f32 %v11212_v30, %v11117_v33 }
 0x7fb   : > { %v8508_v37 = vpop.eup %8507  ;;  %12724 = vst [vmem:[#allocation73_spill] sm:$0xff] %v11220_v2  ;;  %v4878_v13 = vsel %vm11169_vm11, %v4877_v28, %v4873_v51  ;;  %v4888_v62 = vsel %vm11237_vm0, %v11055_v12, %v4884_v58  ;;  %v4937_v22 = vor.u32 1.1754944e-38, %v4936_v47  ;;  %v4942_v11 = vsub.f32 1.0, %v4941_v39  ;;  %v7694_v2 = vld [vmem:[%s9238_s14 + $0x1e0] sm:$0xf] }
 0x7fc   : > { %v11253_v41 = vadd.f32 1.0, %v8508_v37  ;;  %v4929_v48 = vadd.f32 %v11110_v40, %v4928_v4  ;;  %v5002_v3 = vsub.f32 1.0, %v5001_v21  ;;  %v7449_v5 = vmul.f32 -1.442695, %v10832_v43  ;;  %v11262_v45 = vpop.eup %8509 }
 0x7fd   : > { %v11265_v46 = vmul.f32 %v4878_v13, %v10868_v35  ;;  %vm4945_vm4 = vweird.f32 %v11073_v49  ;;  %v4949_v12 = vand.u32 2147483647, %v11073_v49  ;;  %v11269_v54 = vor.u32 1.1754944e-38, %v4951_v6  ;;  %v8031_v49 = vld [vmem:[%s9238_s14 + $0xd4] sm:$0xf0] }
 0x7fe   : > { %v11176_v20 = vpop.f32.mrf.mxu2  ;;  %v11178_v34 = vpop.f32.mrf.mxu3  ;;  %v4893_v51 = vsel %vm11228_vm15, %v4892_v17, %v4888_v62  ;;  %v4987_v38 = vsub.f32 1.0, %v4986_v57  ;;  %v4994_v47 = vand.u32 2147483647, %v11117_v33  ;;  %v4996_v58 = vand.u32 2147483648, %v11117_v33  ;;  %v7486_v57 = vld [vmem:[%s9238_s14 + $0x40] sm:$0xf] }
 0x7ff   : > { %v8512_v60 = vpop.eup %8511  ;;  %v4943_v37 = vmul.f32 %v11180_v0, %v4942_v11  ;;  %v5009_v4 = vand.u32 2147483647, %v11075_v27  ;;  %v5011_v21 = vand.u32 2147483648, %v11075_v27  ;;  %8513 = vrcp.f32 %v11253_v41  ;;  %v8013_v62 = vld [vmem:[%s9238_s14 + $0x44] sm:$0xf0] }
 0x800   : > { %v11203_v1 = vpop.f32.mrf.mxu0  ;;  %v11248_v61 = vpop.f32.mrf.mxu1  ;;  %v4933_v36 = vsel %vm11279_vm5, %v11110_v40, %v4929_v48  ;;  %vm4990_vm6 = vweird.f32 %v11117_v33  ;;  %v5003_v44 = vmul.f32 %v11187_v18, %v5002_v3  ;;  %v5046_v17 = vmul.f32 %v11262_v45, %v11174_v16 }
 0x801   : > { %8515 = vpow2.f32 %v7449_v5  ;;  %v11295_v6 = vmul.f32 %v4893_v51, %v10766_v26  ;;  %vm11297_vm7 = vcmp.eq.f32.partialorder %v4949_v12, 8.507059e+37  ;;  %v5056_v63 = vand.u32 2147483648, %v11174_v16  ;;  %v7542_v12 = vld [vmem:[%s9238_s14 + $0xb0] sm:$0xf] }
 0x802   : > { %v11303_v40 = vadd.f32 1.0, %v8512_v60  ;;  %vm4946_vm9 = vweird.f32 %v11180_v0  ;;  %v4988_v11 = vmul.f32 %v11212_v30, %v4987_v38  ;;  %v11309_v48 = vor.u32 1.1754944e-38, %v4996_v58 }
 0x803   : > { %v7422_v26 = vmul.f32 -1.442695, %v10834_v59  ;;  %v4938_v3 = vsel %vm11242_vm2, %v4937_v22, %v4933_v36  ;;  %v4944_v5 = vadd.f32 %v11180_v0, %v4943_v37  ;;  %vm11315_vm10 = vcmp.eq.f32.partialorder %v5009_v4, 8.507059e+37  ;;  %vm11338_vm13 = vmor %vm4945_vm4, %vm4946_vm9  ;;  %v8029_v59 = vld [vmem:[%s9238_s14 + $0xc4] sm:$0xf0] }
 0x804   : > { %v5012_v60 = vor.u32 1.1754944e-38, %v5011_v21  ;;  %v5004_v38 = vadd.f32 %v11187_v18, %v5003_v44  ;;  %vm5006_vm11 = vweird.f32 %v11187_v18  ;;  %v5047_v58 = vsub.f32 1.0, %v5046_v17  ;;  %v8011_v44 = vld [vmem:[%s9238_s14 + $0x34] sm:$0xf0] }
 0x805   : > { %v7487_v25 = vor.u32 %v8013_v62, %v7486_v57  ;;  %v11327_v37 = vpop.eup %8513  ;;  %vm4991_vm12 = vweird.f32 %v11212_v30  ;;  %v11331_v21 = vor.u32 1.1754944e-38, %v5056_v63  ;;  %8517 = vrcp.f32 %v11303_v40  ;;  %v7558_v62 = vld [vmem:[%s9238_s14 + $0xd0] sm:$0xf]  ;;  %vm11359_vm14 = vmor %vm5005_vm8, %vm5006_vm11 }
 0x806   : > { %v11255_v24 = vpop.f32.mrf.mxu2  ;;  %v11257_v28 = vpop.f32.mrf.mxu3  ;;  %v11343_v17 = vadd.f32 %v11212_v30, %v4988_v11  ;;  %8519 = vpow2.f32 %v7422_v26  ;;  %v11348_v63 = vadd.f32 %v10823_v56, %v10821_v29  ;;  %v4948_v4 = vsel %vm11338_vm13, %v11180_v0, %v4944_v5  ;;  %vm11388_vm1 = vmor %vm4990_vm6, %vm4991_vm12 }
 0x807   : > { %v8516_v36 = vpop.eup %8515  ;;  %5632 = vmatpush.bf16.msra.mxu0 %v7487_v25  ;;  %v5071_v29 = vand.u32 2147483648, %v11253_v41  ;;  %v5116_v56 = vand.u32 2147483648, %v11303_v40  ;;  %v7423_v26 = vmul.f32 -1.442695, %v10848_v32  ;;  %v7478_v25 = vld [vmem:[%s9238_s14 + $0x30] sm:$0xf]  ;;  %v11368_v57 = vmul.f32 %v4938_v3, %v10770_v14 }
 0x808   : > { %v11275_v39 = vpop.f32.mrf.mxu0  ;;  %v11325_v22 = vpop.f32.mrf.mxu1  ;;  %12739 = vst [vmem:[#allocation74_spill] sm:$0xff] %v11348_v63  ;;  %vm11370_vm15 = vcmp.eq.f32.partialorder %v4994_v47, 8.507059e+37  ;;  %v5008_v27 = vsel %vm11359_vm14, %v11187_v18, %v5004_v38  ;;  %v5048_v5 = vmul.f32 %v11262_v45, %v5047_v58  ;;  %vm5050_vm0 = vweird.f32 %v11174_v16  ;;  %v7550_v32 = vld [vmem:[%s9238_s14 + $0xc0] sm:$0xf] }
 0x809   : > { %12742 = vst [vmem:[#allocation75_spill] sm:$0xff] %v11368_v57  ;;  %v11394_v18 = vmul.f32 %v11327_v37, %v11253_v41  ;;  %v11396_v47 = vadd.f32 1.0, %v8516_v36  ;;  %v11400_v3 = vadd.f32 %v10841_v19, %v10839_v53  ;;  %v7559_v38 = vor.u32 %v8031_v49, %v7558_v62  ;;  %v7470_v36 = vld [vmem:[%s9238_s14 + $0x20] sm:$0xf]  ;;  %v8009_v57 = vld [vmem:[%s9238_s14 + $0x24] sm:$0xf0] }
 0x80a   : > { %v4953_v58 = vsel %vm11297_vm7, %v11269_v54, %v4948_v4  ;;  %v4993_v33 = vsel %vm11388_vm1, %v11212_v30, %v11343_v17  ;;  %vm5051_vm2 = vweird.f32 %v11262_v45  ;;  %v7426_v11 = vmul.f32 -1.442695, %v11348_v63  ;;  %v7534_v54 = vld [vmem:[%s9238_s14 + $0xa0] sm:$0xf] }
 0x80b   : > { %12747 = vst [vmem:[#allocation76_spill] sm:$0xff] %v11400_v3  ;;  %v11413_v53 = vpop.eup %8517  ;;  %v5013_v19 = vsel %vm11315_vm10, %v5012_v60, %v5008_v27  ;;  %5660 = vmatpush.bf16.msra.mxu1 %v7559_v38  ;;  %v7479_v13 = vor.u32 %v8011_v44, %v7478_v25  ;;  %v7551_v4 = vor.u32 %v8029_v59, %v7550_v32  ;;  %v11425_v14 = vor.u32 1.1754944e-38, %v5071_v29  ;;  %v8027_v60 = vld [vmem:[%s9238_s14 + $0xb4] sm:$0xf0]  ;;  %vm11460_vm3 = vmor %vm5050_vm0, %vm5051_vm2 }
 0x80c   : > { %v8520_v17 = vpop.eup %8519  ;;  %v11423_v49 = vadd.f32 %v11262_v45, %v5048_v5  ;;  %v11427_v63 = vor.u32 1.1754944e-38, %v5116_v56  ;;  %8521 = vpow2.f32 %v7423_v26  ;;  %v5062_v25 = vsub.f32 1.0, %v11394_v18  ;;  %v7462_v26 = vld [vmem:[%s9238_s14 + $0x10] sm:$0xf]  ;;  %v8007_v5 = vld [vmem:[%s9238_s14 + $0x14] sm:$0xf0] }
 0x80d   : > { %8523 = vrcp.f32 %v11396_v47  ;;  %v7427_v59 = vmul.f32 -1.442695, %v11400_v3  ;;  %5633 = vmatpush.bf16.msra.mxu0 %v7479_v13  ;;  %v7471_v32 = vor.u32 %v8009_v57, %v7470_v36  ;;  %v11436_v27 = vmul.f32 %v11413_v53, %v11303_v40  ;;  %v12749_v36 = vld [vmem:[#allocation46_spill] sm:$0xff]  ;;  %v12755_v3 = vld [vmem:[#allocation55_spill] sm:$0xff] }
 0x80e   : > { %v11319_v51 = vpop.f32.mrf.mxu2  ;;  %v11321_v35 = vpop.f32.mrf.mxu3  ;;  %12748 = vst [vmem:[#allocation77_spill] sm:$0xff] %v11427_v63  ;;  %8525 = vpow2.f32 %v7426_v11  ;;  %v11439_v29 = vmul.f32 -1.442695, %v10851_v31  ;;  %v4422_v56 = vadd.f32 %v11178_v34, %v11176_v20  ;;  %v5131_v18 = vand.u32 2147483648, %v11396_v47  ;;  %v8065_v63 = vld [vmem:[%s9238_s14 + $0x1e4] sm:$0xf0] }
 0x80f   : > { %v11448_v57 = vadd.f32 1.0, %v8520_v17  ;;  %v11451_v38 = vmul.f32 -1.442695, %v10857_v10  ;;  %5661 = vmatpush.bf16.msra.mxu1 %v7551_v4  ;;  %v7543_v11 = vor.u32 %v8027_v60, %v7542_v12  ;;  %v11454_v13 = vmul.f32 %v4953_v58, %v12749_v36  ;;  %v8025_v4 = vld [vmem:[%s9238_s14 + $0xa4] sm:$0xf0]  ;;  %v12752_v60 = vld [vmem:[#allocation47_spill] sm:$0xff] }
 0x810   : > { %v11382_v43 = vpop.f32.mrf.mxu0  ;;  %v11445_v44 = vpop.f32.mrf.mxu1  ;;  %v4366_v17 = vadd.f32 %v11248_v61, %v11203_v1  ;;  %v4424_v58 = vadd.f32 %v11257_v28, %v11255_v24  ;;  %v11474_v12 = vsel %vm11370_vm15, %v11309_v48, %v4993_v33  ;;  %v11477_v36 = vmul.f32 %v5013_v19, %v12752_v60  ;;  %v11480_v1 = vld [vmem:[%s9238_s14] sm:$0xf]  ;;  %v8005_v61 = vld [vmem:[%s9238_s14 + $0x4] sm:$0xf0]  ;;  %v7638_v10 = vld [vmem:[%s9238_s14 + $0x170] sm:$0xf] }
 0x811   : > { %8527 = vpow2.f32 %v7427_v59  ;;  %5634 = vmatpush.bf16.msra.mxu0 %v7471_v32  ;;  %v7463_v34 = vor.u32 %v8007_v5, %v7462_v26  ;;  %v4364_v28 = vadd.f32 %v11138_v42, %v11120_v55  ;;  %v5198_v48 = vmul.f32 %v11058_v15, %v4422_v56  ;;  %v8051_v33 = vld [vmem:[%s9238_s14 + $0x174] sm:$0xf0]  ;;  %v7702_v19 = vld [vmem:[%s9238_s14 + $0x1f0] sm:$0xf] }
 0x812   : > { %v8522_v31 = vpop.eup %8521  ;;  %v5202_v0 = vmul.f32 %v11183_v9, %v4424_v58  ;;  %v8067_v59 = vld [vmem:[%s9238_s14 + $0x1f4] sm:$0xf0]  ;;  %v5107_v5 = vsub.f32 1.0, %v11436_v27  ;;  %v11500_v60 = vor.u32 1.1754944e-38, %v5131_v18  ;;  %v7535_v15 = vor.u32 %v8025_v4, %v7534_v54  ;;  %v7526_v42 = vld [vmem:[%s9238_s14 + $0x90] sm:$0xf] }
 0x813   : > { %v11497_v26 = vpop.eup %8523  ;;  %5662 = vmatpush.bf16.msra.mxu1 %v7543_v11  ;;  %v5063_v24 = vmul.f32 %v11327_v37, %v5062_v25  ;;  %vm5066_vm4 = vweird.f32 %v11327_v37  ;;  %v5201_v18 = vmul.f32 %v11080_v50, %v4366_v17  ;;  %v8023_v11 = vld [vmem:[%s9238_s14 + $0x94] sm:$0xf0]  ;;  %v7630_v54 = vld [vmem:[%s9238_s14 + $0x160] sm:$0xf]  ;;  %v8049_v4 = vld [vmem:[%s9238_s14 + $0x164] sm:$0xf0]  ;;  %v7455_v55 = vor.u32 %v8005_v61, %v11480_v1 }
 0x814   : > { %12754 = vst [vmem:[#allocation47_spill] sm:$0xff] %v11500_v60  ;;  %v8526_v58 = vpop.eup %8525  ;;  %v11511_v23 = vpack.c.bf16 %v5202_v0, %v5198_v48  ;;  %v7639_v52 = vor.u32 %v8051_v33, %v7638_v10  ;;  %v4427_v25 = vadd.f32 %v11321_v35, %v11319_v51  ;;  %v7703_v60 = vor.u32 %v8067_v59, %v7702_v19  ;;  %v11533_v35 = vld [vmem:[%s9238_s14 + $0x80] sm:$0xf]  ;;  %v8047_v33 = vld [vmem:[%s9238_s14 + $0x154] sm:$0xf0] }
 0x815   : > { %5635 = vmatpush.bf16.msra.mxu0 %v7463_v34  ;;  %vm5065_vm5 = vweird.f32 %v11253_v41  ;;  %v11524_v50 = vmul.f32 %v11497_v26, %v11396_v47  ;;  %v11527_v34 = vadd.f32 1.0, %v8522_v31  ;;  %v5197_v17 = vmul.f32 %v11048_v7, %v4364_v28  ;;  %v8021_v7 = vld [vmem:[%s9238_s14 + $0x84] sm:$0xf0]  ;;  %v7686_v59 = vld [vmem:[%s9238_s14 + $0x1d0] sm:$0xf] }
 0x816   : > { %v11418_v62 = vpop.f32.mrf.mxu2  ;;  %v11420_v30 = vpop.f32.mrf.mxu3  ;;  %v11530_v1 = vadd.f32 1.0, %v8526_v58  ;;  %v7527_v51 = vor.u32 %v8023_v11, %v7526_v42  ;;  %5687 = vmatpush.bf16.msrb.mxu2 %v7639_v52  ;;  %v7631_v61 = vor.u32 %v8049_v4, %v7630_v54  ;;  %vm5110_vm6 = vweird.f32 %v11303_v40  ;;  %5716 = vmatpush.bf16.msrb.mxu3 %v7703_v60  ;;  %v7622_v52 = vld [vmem:[%s9238_s14 + $0x150] sm:$0xf]  ;;  %v8018_v42 = vld [vmem:[%s9238_s14 + $0x74] sm:$0xf]  ;;  %vm11615_vm12 = vmor %vm5065_vm5, %vm5066_vm4 }
 0x817   : > { %v8528_v10 = vpop.eup %8527  ;;  %5663 = vmatpush.bf16.msra.mxu1 %v7535_v15  ;;  %v4429_v48 = vadd.f32 %v11420_v30, %v11418_v62  ;;  %vm5111_vm7 = vweird.f32 %v11413_v53  ;;  %8529 = vpow2.f32 %v11439_v29  ;;  %v11540_v31 = vpack.c.bf16 %v5201_v18, %v5197_v17  ;;  %v7614_v54 = vld [vmem:[%s9238_s14 + $0x140] sm:$0xf]  ;;  %v8045_v4 = vld [vmem:[%s9238_s14 + $0x144] sm:$0xf0] }
 0x818   : > { %v11495_v32 = vpop.f32.mrf.mxu0  ;;  %v7695_v28 = vor.u32 %v8065_v63, %v7694_v2  ;;  %v11543_v0 = vpop.f32.mrf.mxu1  ;;  %v12757_v62 = vand.u32 2147483647, %v11174_v16  ;;  %v5108_v19 = vmul.f32 %v11413_v53, %v5107_v5  ;;  %v5206_v2 = vmul.f32 %v11226_v8, %v4427_v25  ;;  %v7512_v5 = vld [vmem:[%s9238_s14 + $0x78] sm:$0xf0]  ;;  %vm11645_vm14 = vmor %vm5110_vm6, %vm5111_vm7 }
 0x819   : > { %12753 = vst [vmem:[#allocation46_spill] sm:$0xff] %v11495_v32  ;;  %v12756_v32 = vld [vmem:[#allocation56_spill] sm:$0xff]  ;;  %5636 = vmatpush.bf16.msra.mxu0 %v7455_v55  ;;  %v5210_v63 = vmul.f32 %v11295_v6, %v4429_v48  ;;  %v5122_v60 = vsub.f32 1.0, %v11524_v50  ;;  %v11562_v15 = vadd.f32 1.0, %v8528_v10  ;;  %8531 = vpow2.f32 %v11451_v38  ;;  %v11582_v50 = vld [vmem:[%s9238_s14 + $0x1c0] sm:$0xf] }
 0x81a   : > { %v11508_v27 = vadd.f32 %v12756_v32, %v12755_v3  ;;  %v4726_v3 = vand.u32 2147483648, %v11448_v57  ;;  %vm11549_vm8 = vcmp.eq.f32.partialorder %v12757_v62, 8.507059e+37  ;;  %v8063_v32 = vld [vmem:[%s9238_s14 + $0x1d4] sm:$0xf0]  ;;  %v7519_v8 = vor.u32 %v8021_v7, %v11533_v35  ;;  %5688 = vmatpush.bf16.msrb.mxu2 %v7631_v61  ;;  %5717 = vmatpush.bf16.msrb.mxu3 %v7695_v28  ;;  %v12766_v35 = vld [vmem:[#allocation57_spill] sm:$0xff]  ;;  %v12767_v61 = vld [vmem:[#allocation58_spill] sm:$0xff] }
 0x81b   : > { %5664 = vmatpush.bf16.msra.mxu1 %v7527_v51  ;;  %v7623_v6 = vor.u32 %v8047_v33, %v7622_v52  ;;  %v11570_v55 = vpack.c.bf16 %v5210_v63, %v5206_v2  ;;  %v11573_v38 = vadd.f32 %v11327_v37, %v5063_v24  ;;  %8533 = vrcp.f32 %v11448_v57  ;;  %v8061_v7 = vld [vmem:[%s9238_s14 + $0x1c4] sm:$0xf0]  ;;  %v8016_v52 = vld [vmem:[%s9238_s14 + $0x64] sm:$0xf]  ;;  %v7504_v33 = vld [vmem:[%s9238_s14 + $0x68] sm:$0xf0] }
 0x81c   : > { %v11555_v29 = vmul.f32 -1.442695, %v11508_v27  ;;  %v11567_v58 = vor.u32 1.1754944e-38, %v4726_v3  ;;  %5637 = vmatmul.bf16.vlgmr.msra.gmra.mxu0 %v11540_v31  ;;  %v12760_v3 = vand.u32 2147483647, %v11253_v41  ;;  %v11591_v17 = vadd.f32 %v11413_v53, %v5108_v19 }
 0x81d   : > { %v12763_v10 = vand.u32 2147483647, %v11303_v40  ;;  %8535 = vrcp.f32 %v11527_v34  ;;  %v11602_v48 = vadd.f32 %v12767_v61, %v12766_v35  ;;  %v7515_v28 = vor.u32 %v8018_v42, %v7512_v5  ;;  %v8530_v62 = vpop.eup %8529 }
 0x81e   : > { %v4402_v9 = vpop.f32.mrf.mxu2  ;;  %v4431_v56 = vpop.f32.mrf.mxu3  ;;  %vm11586_vm9 = vcmp.eq.f32.partialorder %v12760_v3, 8.507059e+37  ;;  %v5123_v19 = vmul.f32 %v11497_v26, %v5122_v60  ;;  %vm5126_vm11 = vweird.f32 %v11497_v26  ;;  %v4741_v60 = vand.u32 2147483648, %v11527_v34  ;;  %5689 = vmatpush.bf16.msrb.mxu2 %v7623_v6  ;;  %v8034_v6 = vld [vmem:[%s9238_s14 + $0xf4] sm:$0xf] }
 0x81f   : > { %v4432_v16 = vadd.f32 %v4431_v56, %v4402_v9  ;;  %v7687_v9 = vor.u32 %v8063_v32, %v7686_v59  ;;  %vm11595_vm10 = vcmp.eq.f32.partialorder %v12763_v10, 8.507059e+37  ;;  %v4739_v32 = vand.u32 2147483647, %v11527_v34  ;;  %5665 = vmatpush.bf16.msra.mxu1 %v7519_v8  ;;  %v11626_v42 = vpop.eup %8531  ;;  %5745 = vmatpush.bf16.msrb.mxu0 %v7515_v28  ;;  %v12779_v59 = vld [vmem:[#allocation63_spill] sm:$0xff] }
 0x820   : > { %v11577_v56 = vpop.f32.mrf.mxu0  ;;  %v12770_v41 = vand.u32 2147483647, %v11396_v47  ;;  %8537 = vrcp.f32 %v11530_v1  ;;  %v7679_v8 = vor.u32 %v8061_v7, %v11582_v50  ;;  %v12776_v10 = vsel %vm11460_vm3, %v11262_v45, %v11423_v49  ;;  %v11668_v20 = vpop.f32.mrf.mxu1  ;;  %v7670_v7 = vld [vmem:[%s9238_s14 + $0x1b0] sm:$0xf]  ;;  %v8059_v45 = vld [vmem:[%s9238_s14 + $0x1b4] sm:$0xf0] }
 0x821   : > { %v5214_v2 = vmul.f32 %v11454_v13, %v4432_v16  ;;  %v4371_v13 = vadd.f32 %v11445_v44, %v11382_v43  ;;  %v11624_v16 = vld [vmem:[%s9238_s14 + $0x130] sm:$0xf]  ;;  %5718 = vmatpush.bf16.msrb.mxu3 %v7687_v9  ;;  %v7507_v43 = vor.u32 %v8016_v52, %v7504_v33  ;;  %v4784_v9 = vand.u32 2147483647, %v11530_v1  ;;  %v11653_v3 = vpop.eup %8533  ;;  %v8014_v49 = vld [vmem:[%s9238_s14 + $0x54] sm:$0xf] }
 0x822   : > { %vm11630_vm13 = vcmp.eq.f32.partialorder %v12770_v41, 8.507059e+37  ;;  %v5058_v40 = vsel %vm11549_vm8, %v11331_v21, %v12776_v10  ;;  %v5124_v35 = vadd.f32 %v11497_v26, %v5123_v19  ;;  %8539 = vrcp.f32 %v11562_v15  ;;  %5666 = vmatmul.bf16.vlgmr.msra.gmra.mxu1 %v11511_v23  ;;  %v7496_v33 = vld [vmem:[%s9238_s14 + $0x58] sm:$0xf0]  ;;  %v12782_v10 = vld [vmem:[#allocation73_spill] sm:$0xff] }
 0x823   : > { %v4369_v61 = vadd.f32 %v11325_v22, %v11275_v39  ;;  %v11673_v28 = vpop.eup %8535  ;;  %v5068_v21 = vsel %vm11615_vm12, %v11327_v37, %v11573_v38  ;;  %v5113_v39 = vsel %vm11645_vm14, %v11413_v53, %v11591_v17  ;;  %vm5125_vm15 = vweird.f32 %v11396_v47  ;;  %v7568_v37 = vld [vmem:[%s9238_s14 + $0xe8] sm:$0xf0]  ;;  %5746 = vmatpush.bf16.msrb.mxu0 %v7507_v43  ;;  %v8057_v43 = vld [vmem:[%s9238_s14 + $0x1a4] sm:$0xf0] }
 0x824   : > { %vm11690_vm0 = vmor %vm5125_vm15, %vm5126_vm11  ;;  %v7435_v47 = vmul.f32 -1.442695, %v11602_v48  ;;  %v5209_v38 = vmul.f32 %v11265_v46, %v4371_v13  ;;  %v7671_v17 = vor.u32 %v8059_v45, %v7670_v7  ;;  %v7499_v19 = vor.u32 %v8014_v49, %v7496_v33  ;;  %v8012_v13 = vld [vmem:[%s9238_s14 + $0x44] sm:$0xf]  ;;  %v7488_v45 = vld [vmem:[%s9238_s14 + $0x48] sm:$0xf0] }
 0x825   : > { %5719 = vmatpush.bf16.msrb.mxu3 %v7679_v8  ;;  %v7662_v8 = vld [vmem:[%s9238_s14 + $0x1a0] sm:$0xf]  ;;  %v8030_v49 = vld [vmem:[%s9238_s14 + $0xd4] sm:$0xf]  ;;  %v7560_v33 = vld [vmem:[%s9238_s14 + $0xd8] sm:$0xf0]  ;;  %v7491_v53 = vor.u32 %v8012_v13, %v7488_v45  ;;  %vm4720_vm1 = vweird.f32 %v11448_v57  ;;  %vm4721_vm2 = vweird.f32 %v11653_v3  ;;  %vm4735_vm3 = vweird.f32 %v11527_v34 }
 0x826   : > { %v4404_v18 = vpop.f32.mrf.mxu2  ;;  %v4433_v11 = vpop.f32.mrf.mxu3  ;;  %v7563_v24 = vor.u32 %v8030_v49, %v7560_v33  ;;  %v8039_v45 = vld [vmem:[%s9238_s14 + $0x114] sm:$0xf0]  ;;  %vm4736_vm4 = vweird.f32 %v11673_v28  ;;  %vm4780_vm6 = vweird.f32 %v11530_v1  ;;  %vm4795_vm8 = vweird.f32 %v11562_v15 }
 0x827   : > { %v4434_v25 = vadd.f32 %v4433_v11, %v4404_v18  ;;  %v8043_v18 = vld [vmem:[%s9238_s14 + $0x134] sm:$0xf0]  ;;  %v7576_v11 = vld [vmem:[%s9238_s14 + $0xf8] sm:$0xf0]  ;;  %5747 = vmatpush.bf16.msrb.mxu0 %v7499_v19  ;;  %vm11849_vm11 = vcmp.eq.f32.partialorder %v4784_v9, 8.507059e+37  ;;  %vm11887_vm14 = vmor %vm4735_vm3, %vm4736_vm4 }
 0x828   : > { %v7579_v50 = vor.u32 %v8034_v6, %v7576_v11  ;;  %v7607_v22 = vor.u32 %v8043_v18, %v11624_v16  ;;  %v12780_v16 = vld [vmem:[#allocation48_spill] sm:$0xff]  ;;  %v4716_v18 = vmul.f32 %v11653_v3, %v11448_v57  ;;  %v11710_v6 = vpop.eup %8537  ;;  %v5073_v11 = vsel %vm11586_vm9, %v11425_v14, %v5068_v21  ;;  %v11722_v7 = vpop.f32.mrf.mxu0  ;;  %v12783_v21 = vld [vmem:[#allocation47_spill] sm:$0xff] }
 0x829   : > { %v5218_v63 = vmul.f32 %v11477_v36, %v4434_v25  ;;  %v7615_v36 = vor.u32 %v8045_v4, %v7614_v54  ;;  %v4786_v4 = vand.u32 2147483648, %v11530_v1  ;;  %v11651_v25 = vadd.f32 1.0, %v8530_v62  ;;  %v8032_v62 = vld [vmem:[%s9238_s14 + $0xe4] sm:$0xf]  ;;  %v11730_v51 = vpop.eup %8539  ;;  %5720 = vmatpush.bf16.msrb.mxu3 %v7671_v17  ;;  %v8010_v17 = vld [vmem:[%s9238_s14 + $0x34] sm:$0xf] }
 0x82a   : > { %5774 = vmatpush.bf16.msrb.mxu1 %v7579_v50  ;;  %v11703_v41 = vmul.f32 %v5058_v40, %v12780_v16  ;;  %v7571_v46 = vor.u32 %v8032_v62, %v7568_v37  ;;  %v12781_v54 = vld [vmem:[#allocation77_spill] sm:$0xff]  ;;  %v5128_v50 = vsel %vm11690_vm0, %v11497_v26, %v5124_v35  ;;  %v5205_v40 = vmul.f32 %v12782_v10, %v4369_v61  ;;  %v7480_v19 = vld [vmem:[%s9238_s14 + $0x38] sm:$0xf0] }
 0x82b   : > { %v11637_v44 = vpack.c.bf16 %v5218_v63, %v5214_v2  ;;  %5690 = vmatpush.bf16.msrb.mxu2 %v7615_v36  ;;  %v7598_v2 = vld [vmem:[%s9238_s14 + $0x120] sm:$0xf]  ;;  %v8041_v63 = vld [vmem:[%s9238_s14 + $0x124] sm:$0xf0]  ;;  %v11700_v36 = vmul.f32 %v11474_v12, %v12779_v59  ;;  %v5118_v12 = vsel %vm11595_vm10, %v12781_v54, %v5113_v39  ;;  %v4731_v62 = vmul.f32 %v11673_v28, %v11527_v34  ;;  %vm11843_vm10 = vmor %vm4720_vm1, %vm4721_vm2 }
 0x82c   : > { %8541 = vrcp.f32 %v11651_v25  ;;  %v7599_v14 = vor.u32 %v8041_v63, %v7598_v2  ;;  %v11734_v26 = vor.u32 1.1754944e-38, %v4741_v60  ;;  %v11736_v35 = vpack.c.bf16 %v5209_v38, %v5205_v40  ;;  %v12784_v2 = vld [vmem:[#allocation49_spill] sm:$0xff]  ;;  %5748 = vmatpush.bf16.msrb.mxu0 %v7491_v53 }
 0x82d   : > { %12773 = vst [vmem:[#allocation55_spill] sm:$0xff] %v11637_v44  ;;  %8543 = vpow2.f32 %v7435_v47  ;;  %v7663_v61 = vor.u32 %v8057_v43, %v7662_v8  ;;  %v5133_v39 = vsel %vm11630_vm13, %v12783_v21, %v5128_v50  ;;  %v11743_v37 = vmul.f32 %v11710_v6, %v11530_v1  ;;  %v8028_v8 = vld [vmem:[%s9238_s14 + $0xc4] sm:$0xf]  ;;  %v7552_v43 = vld [vmem:[%s9238_s14 + $0xc8] sm:$0xf0]  ;;  %v11775_v50 = vpop.f32.mrf.mxu1 }
 0x82e   : > { %v4407_v30 = vpop.f32.mrf.mxu2  ;;  %v4436_v52 = vpop.f32.mrf.mxu3  ;;  %5775 = vmatpush.bf16.msrb.mxu1 %v7571_v46  ;;  %v5190_v63 = vmul.f32 %v5073_v11, %v12784_v2  ;;  %v11748_v60 = vor.u32 1.1754944e-38, %v4786_v4  ;;  %v11751_v47 = vadd.f32 1.0, %v11626_v42  ;;  %v4732_v5 = vsub.f32 1.0, %v4731_v62  ;;  %5642 = vmatmul.bf16.gmra.mxu0 %v11736_v35 }
 0x82f   : > { %5691 = vmatpush.bf16.msrb.mxu2 %v7607_v22  ;;  %v4717_v22 = vsub.f32 1.0, %v4716_v18  ;;  %v4437_v38 = vadd.f32 %v4436_v52, %v4407_v30  ;;  %v11758_v59 = vmul.f32 %v11730_v51, %v11562_v15  ;;  %v4801_v16 = vand.u32 2147483648, %v11562_v15  ;;  %v12785_v30 = vld [vmem:[#allocation72_spill] sm:$0xff]  ;;  %v12786_v18 = vld [vmem:[#allocation50_spill] sm:$0xff]  ;;  %5721 = vmatpush.bf16.msrb.mxu3 %v7663_v61 }
 0x830   : > { %8545 = vpow2.f32 %v11555_v29  ;;  %v11763_v52 = vmul.f32 %v5118_v12, %v12785_v30  ;;  %v5194_v46 = vmul.f32 %v5133_v39, %v12786_v18  ;;  %v7590_v29 = vld [vmem:[%s9238_s14 + $0x110] sm:$0xf]  ;;  %v4777_v12 = vsub.f32 1.0, %v11743_v37  ;;  %v7472_v61 = vld [vmem:[%s9238_s14 + $0x28] sm:$0xf0] }
 0x831   : > { %v4718_v54 = vmul.f32 %v11653_v3, %v4717_v22  ;;  %v7483_v10 = vor.u32 %v8010_v17, %v7480_v19  ;;  %v7555_v40 = vor.u32 %v8028_v8, %v7552_v43  ;;  %8547 = vrcp.f32 %v11751_v47  ;;  %v11801_v17 = vpop.f32.mrf.mxu0  ;;  %v7654_v43 = vld [vmem:[%s9238_s14 + $0x190] sm:$0xf] }
 0x832   : > { %5776 = vmatpush.bf16.msrb.mxu1 %v7563_v24  ;;  %v11771_v11 = vpop.eup %8541  ;;  %v5222_v33 = vmul.f32 %v5190_v63, %v4437_v38  ;;  %v8008_v24 = vld [vmem:[%s9238_s14 + $0x24] sm:$0xf]  ;;  %v4733_v21 = vmul.f32 %v11673_v28, %v4732_v5  ;;  %v4792_v39 = vsub.f32 1.0, %v11758_v59  ;;  %v4799_v22 = vand.u32 2147483647, %v11562_v15 }
 0x833   : > { %5692 = vmatpush.bf16.msrb.mxu2 %v7599_v14  ;;  %v8544_v49 = vpop.eup %8543  ;;  %v7591_v14 = vor.u32 %v8039_v45, %v7590_v29  ;;  %v12787_v37 = vand.u32 2147483647, %v11448_v57  ;;  %v11793_v2 = vor.u32 1.1754944e-38, %v4801_v16  ;;  %v11797_v63 = vmul.f32 %v11771_v11, %v11651_v25  ;;  %v8026_v5 = vld [vmem:[%s9238_s14 + $0xb4] sm:$0xf]  ;;  %5749 = vmatpush.bf16.msrb.mxu0 %v7483_v10  ;;  %v12794_v45 = vld [vmem:[#allocation61_spill] sm:$0xff] }
 0x834   : > { %v4376_v38 = vadd.f32 %v11668_v20, %v11577_v56  ;;  %v7544_v59 = vld [vmem:[%s9238_s14 + $0xb8] sm:$0xf0]  ;;  %v11807_v16 = vadd.f32 1.0, %v8544_v49  ;;  %v7475_v18 = vor.u32 %v8008_v24, %v7472_v61  ;;  %v4719_v56 = vadd.f32 %v11653_v3, %v4718_v54  ;;  %5671 = vmatmul.bf16.gmra.mxu1 %v11570_v55  ;;  %v8055_v29 = vld [vmem:[%s9238_s14 + $0x194] sm:$0xf0] }
 0x835   : > { %vm11788_vm5 = vcmp.eq.f32.partialorder %v12787_v37, 8.507059e+37  ;;  %v4778_v20 = vmul.f32 %v11710_v6, %v4777_v12  ;;  %vm4781_vm7 = vweird.f32 %v11710_v6  ;;  %v8006_v10 = vld [vmem:[%s9238_s14 + $0x14] sm:$0xf]  ;;  %vm11825_vm9 = vcmp.eq.f32.partialorder %v4739_v32, 8.507059e+37  ;;  %v7536_v24 = vld [vmem:[%s9238_s14 + $0xa8] sm:$0xf0] }
 0x836   : > { %v4409_v42 = vpop.f32.mrf.mxu2  ;;  %v4438_v4 = vpop.f32.mrf.mxu3  ;;  %5777 = vmatpush.bf16.msrb.mxu1 %v7555_v40  ;;  %v11821_v40 = vadd.f32 %v11673_v28, %v4733_v21  ;;  %v4793_v12 = vmul.f32 %v11730_v51, %v4792_v39  ;;  %v4837_v39 = vsub.f32 1.0, %v11797_v63  ;;  %v7582_v57 = vld [vmem:[%s9238_s14 + $0x100] sm:$0xf]  ;;  %vm4796_vm12 = vweird.f32 %v11730_v51  ;;  %vm11906_vm15 = vmor %vm4780_vm6, %vm4781_vm7 }
 0x837   : > { %v4439_v13 = vadd.f32 %v4438_v4, %v4409_v42  ;;  %5693 = vmatpush.bf16.msrb.mxu2 %v7591_v14  ;;  %v8546_v42 = vpop.eup %8545  ;;  %v12790_v4 = vld [vmem:[#allocation65_spill] sm:$0xff]  ;;  %5750 = vmatpush.bf16.msrb.mxu0 %v7475_v18  ;;  %vm11871_vm13 = vcmp.eq.f32.partialorder %v4799_v22, 8.507059e+37  ;;  %8549 = vrcp.f32 %v11807_v16  ;;  %v4846_v53 = vand.u32 2147483648, %v11651_v25  ;;  %vm11923_vm0 = vmor %vm4795_vm8, %vm4796_vm12 }
 0x838   : > { %v7439_v30 = vmul.f32 -1.442695, %v12790_v4  ;;  %v8024_v14 = vld [vmem:[%s9238_s14 + $0xa4] sm:$0xf]  ;;  %v11837_v61 = vpop.eup %8547  ;;  %v11854_v37 = vadd.f32 1.0, %v8546_v42  ;;  %v4738_v34 = vsel %vm11887_vm14, %v11673_v28, %v11821_v40  ;;  %v4838_v28 = vmul.f32 %v11771_v11, %v4837_v39 }
 0x839   : > { %v5226_v62 = vmul.f32 %v5194_v46, %v4439_v13  ;;  %v7547_v46 = vor.u32 %v8026_v5, %v7544_v59  ;;  %v12791_v13 = vld [vmem:[#allocation46_spill] sm:$0xff]  ;;  %v5217_v5 = vmul.f32 %v11700_v36, %v4376_v38  ;;  %v7539_v59 = vor.u32 %v8024_v14, %v7536_v24  ;;  %v8004_v42 = vld [vmem:[%s9238_s14 + $0x4] sm:$0xf]  ;;  %v12804_v24 = vld [vmem:[#allocation75_spill] sm:$0xff]  ;;  %v11917_v1 = vpop.f32.mrf.mxu0 }
 0x83a   : > { %v4374_v8 = vadd.f32 %v11543_v0, %v12791_v13  ;;  %v12795_v0 = vld [vmem:[#allocation62_spill] sm:$0xff]  ;;  %v12800_v13 = vld [vmem:[#allocation59_spill] sm:$0xff]  ;;  %v4723_v36 = vsel %vm11843_vm10, %v11653_v3, %v4719_v56  ;;  %v4779_v38 = vadd.f32 %v11710_v6, %v4778_v20  ;;  %v4380_v3 = vpop.f32.mrf.mxu1  ;;  %v4794_v20 = vadd.f32 %v11730_v51, %v4793_v12 }
 0x83b   : > { %v11803_v19 = vpack.c.bf16 %v5226_v62, %v5222_v33  ;;  %v11832_v49 = vadd.f32 %v12795_v0, %v12794_v45  ;;  %v7655_v33 = vor.u32 %v8055_v29, %v7654_v43  ;;  %5778 = vmatpush.bf16.msrb.mxu1 %v7547_v46  ;;  %v7464_v62 = vld [vmem:[%s9238_s14 + $0x18] sm:$0xf0]  ;;  %v8037_v46 = vld [vmem:[%s9238_s14 + $0x104] sm:$0xf0]  ;;  %v7646_v45 = vld [vmem:[%s9238_s14 + $0x180] sm:$0xf]  ;;  %8551 = vpow2.f32 %v7439_v30 }
 0x83c   : > { %v12801_v43 = vld [vmem:[#allocation60_spill] sm:$0xff]  ;;  %v7467_v29 = vor.u32 %v8006_v10, %v7464_v62  ;;  %v7583_v63 = vor.u32 %v8037_v46, %v7582_v57  ;;  %v8053_v0 = vld [vmem:[%s9238_s14 + $0x184] sm:$0xf0]  ;;  %v4851_v62 = vmul.f32 %v11837_v61, %v11751_v47  ;;  %8553 = vrcp.f32 %v11854_v37 }
 0x83d   : > { %v11862_v9 = vadd.f32 %v12801_v43, %v12800_v13  ;;  %5722 = vmatpush.bf16.msrb.mxu3 %v7655_v33  ;;  %v5213_v13 = vmul.f32 %v12804_v24, %v4374_v8  ;;  %v7456_v43 = vld [vmem:[%s9238_s14 + $0x8] sm:$0xf0]  ;;  %v7647_v18 = vor.u32 %v8053_v0, %v7646_v45  ;;  %v8022_v33 = vld [vmem:[%s9238_s14 + $0x94] sm:$0xf]  ;;  %v7528_v10 = vld [vmem:[%s9238_s14 + $0x98] sm:$0xf0]  ;;  %vm4840_vm1 = vweird.f32 %v11651_v25 }
 0x83e   : > { %v7443_v32 = vmul.f32 -1.442695, %v11832_v49  ;;  %5694 = vmatpush.bf16.msrb.mxu2 %v7583_v63  ;;  %v7531_v22 = vor.u32 %v8022_v33, %v7528_v10  ;;  %v12807_v8 = vld [vmem:[#allocation64_spill] sm:$0xff]  ;;  %5751 = vmatpush.bf16.msrb.mxu0 %v7467_v29  ;;  %v4852_v39 = vsub.f32 1.0, %v4851_v62  ;;  %v12813_v29 = vld [vmem:[#allocation51_spill] sm:$0xff]  ;;  %v4798_v15 = vsel %vm11923_vm0, %v11730_v51, %v4794_v20  ;;  %v4537_v10 = vpop.f32.mrf.mxu3  ;;  %v12816_v12 = vld [vmem:[#allocation66_spill] sm:$0xff] }
 0x83f   : > { %5779 = vmatpush.bf16.msrb.mxu1 %v7539_v59  ;;  %v7438_v57 = vmul.f32 -1.442695, %v12807_v8  ;;  %v11893_v46 = vpack.c.bf16 %v5217_v5, %v5213_v13  ;;  %v4728_v59 = vsel %vm11788_vm5, %v11567_v58, %v4723_v36  ;;  %v7442_v30 = vmul.f32 -1.442695, %v11862_v9  ;;  %v8020_v45 = vld [vmem:[%s9238_s14 + $0x84] sm:$0xf] }
 0x840   : > { %v7459_v5 = vor.u32 %v8004_v42, %v7456_v43  ;;  %v4783_v58 = vsel %vm11906_vm15, %v11710_v6, %v4779_v38  ;;  %v4844_v6 = vand.u32 2147483647, %v11651_v25  ;;  %8555 = vpow2.f32 %v7443_v32  ;;  %v7520_v0 = vld [vmem:[%s9238_s14 + $0x88] sm:$0xf0]  ;;  %v8050_v36 = vld [vmem:[%s9238_s14 + $0x174] sm:$0xf]  ;;  %v11942_v38 = vpop.eup %8549 }
 0x841   : > { %12808 = vst [vmem:[#allocation56_spill] sm:$0xff] %v11893_v46  ;;  %5723 = vmatpush.bf16.msrb.mxu3 %v7647_v18  ;;  %v11930_v63 = vmul.f32 %v4728_v59, %v12813_v29  ;;  %v4743_v42 = vsel %vm11825_vm9, %v11734_v26, %v4738_v34  ;;  %8557 = vpow2.f32 %v7438_v57  ;;  %5647 = vmatmul.bf16.gmra.mxu0 %v11893_v46  ;;  %v4861_v13 = vand.u32 2147483648, %v11751_v47  ;;  %v4508_v26 = vpop.f32.mrf.mxu2  ;;  %v7640_v43 = vld [vmem:[%s9238_s14 + $0x178] sm:$0xf0]  ;;  %v8552_v51 = vpop.eup %8551  ;;  %v12815_v57 = vld [vmem:[#allocation74_spill] sm:$0xff] }
 0x842   : > { %v4788_v24 = vsel %vm11849_vm11, %v11748_v60, %v4783_v58  ;;  %8559 = vpow2.f32 %v7442_v30  ;;  %5752 = vmatpush.bf16.msrb.mxu0 %v7459_v5  ;;  %v7523_v54 = vor.u32 %v8020_v45, %v7520_v0  ;;  %v11950_v18 = vadd.f32 %v11771_v11, %v4838_v28  ;;  %v12814_v32 = vld [vmem:[#allocation52_spill] sm:$0xff]  ;;  %v11964_v20 = vpop.eup %8553  ;;  %v4479_v40 = vpop.f32.mrf.mxu1  ;;  %v8066_v0 = vld [vmem:[%s9238_s14 + $0x1f4] sm:$0xf] }
 0x843   : > { %5780 = vmatpush.bf16.msrb.mxu1 %v7531_v22  ;;  %vm4841_vm2 = vweird.f32 %v11771_v11  ;;  %v11953_v33 = vor.u32 1.1754944e-38, %v4846_v53  ;;  %v7643_v62 = vor.u32 %v8050_v36, %v7640_v43  ;;  %v11956_v21 = vmul.f32 %v4743_v42, %v12814_v32  ;;  %v12820_v29 = vld [vmem:[#allocation76_spill] sm:$0xff]  ;;  %v4452_v45 = vpop.f32.mrf.mxu0 }
 0x844   : > { %v4803_v60 = vsel %vm11871_vm13, %v11793_v2, %v4798_v15  ;;  %v4853_v22 = vmul.f32 %v11837_v61, %v4852_v39  ;;  %vm4855_vm3 = vweird.f32 %v11751_v47  ;;  %v4859_v56 = vand.u32 2147483647, %v11751_v47  ;;  %vm11979_vm4 = vmor %vm4840_vm1, %vm4841_vm2  ;;  %5676 = vmatmul.bf16.gmra.mxu1 %v11637_v44  ;;  %v7704_v36 = vld [vmem:[%s9238_s14 + $0x1f8] sm:$0xf0] }
 0x845   : > { %v11967_v59 = vmul.f32 %v4788_v24, %v12815_v57  ;;  %v4911_v34 = vmul.f32 %v11942_v38, %v11807_v16  ;;  %v11972_v30 = vmul.f32 -1.442695, %v12816_v12  ;;  %v4381_v2 = vadd.f32 %v4380_v3, %v11801_v17  ;;  %5803 = vmatpush.bf16.msra.mxu2 %v7643_v62  ;;  %v12819_v17 = vld [vmem:[#allocation69_spill] sm:$0xff]  ;;  %v12822_v62 = vld [vmem:[#allocation71_spill] sm:$0xff]  ;;  %v7632_v57 = vld [vmem:[%s9238_s14 + $0x168] sm:$0xf0] }
 0x846   : > { %v8556_v14 = vpop.eup %8555  ;;  %v11983_v58 = vor.u32 1.1754944e-38, %v4861_v13  ;;  %v11986_v53 = vadd.f32 1.0, %v8552_v51  ;;  %v7447_v3 = vmul.f32 -1.442695, %v12819_v17  ;;  %v5172_v42 = vmul.f32 %v4803_v60, %v12820_v29  ;;  %v8048_v24 = vld [vmem:[%s9238_s14 + $0x164] sm:$0xf] }
 0x847   : > { %5781 = vmatpush.bf16.msrb.mxu1 %v7523_v54  ;;  %v8558_v39 = vpop.eup %8557  ;;  %vm4856_vm5 = vweird.f32 %v11837_v61  ;;  %v4379_v15 = vadd.f32 %v11775_v50, %v11722_v7  ;;  %v12002_v54 = vadd.f32 %v11837_v61, %v4853_v22  ;;  %v4896_v43 = vmul.f32 %v11964_v20, %v11854_v37  ;;  %v12821_v51 = vld [vmem:[#allocation70_spill] sm:$0xff]  ;;  %v8064_v7 = vld [vmem:[%s9238_s14 + $0x1e4] sm:$0xf] }
 0x848   : > { %v8560_v13 = vpop.eup %8559  ;;  %v12008_v32 = vadd.f32 %v12822_v62, %v12821_v51  ;;  %v7707_v60 = vor.u32 %v8066_v0, %v7704_v36  ;;  %v7696_v50 = vld [vmem:[%s9238_s14 + $0x1e8] sm:$0xf0]  ;;  %vm12013_vm6 = vcmp.eq.f32.partialorder %v4844_v6, 8.507059e+37  ;;  %v4912_v28 = vsub.f32 1.0, %v4911_v34  ;;  %v12827_v34 = vld [vmem:[#allocation67_spill] sm:$0xff]  ;;  %vm12040_vm8 = vmor %vm4855_vm3, %vm4856_vm5 }
 0x849   : > { %v12017_v25 = vadd.f32 1.0, %v8556_v14  ;;  %v5225_v22 = vmul.f32 %v11763_v52, %v4381_v2  ;;  %v7635_v44 = vor.u32 %v8048_v24, %v7632_v57  ;;  %v4906_v46 = vand.u32 2147483648, %v11854_v37  ;;  %v4510_v62 = vpop.f32.mrf.mxu2  ;;  %v12828_v14 = vld [vmem:[#allocation68_spill] sm:$0xff]  ;;  %v4539_v2 = vpop.f32.mrf.mxu3 }
 0x84a   : > { %v12021_v12 = vadd.f32 1.0, %v8558_v39  ;;  %v4538_v51 = vadd.f32 %v4537_v10, %v4508_v26  ;;  %5832 = vmatpush.bf16.msra.mxu3 %v7707_v60  ;;  %v7699_v0 = vor.u32 %v8064_v7, %v7696_v50  ;;  %vm12023_vm7 = vcmp.eq.f32.partialorder %v4859_v56, 8.507059e+37  ;;  %v4481_v24 = vpop.f32.mrf.mxu1  ;;  %v8046_v7 = vld [vmem:[%s9238_s14 + $0x154] sm:$0xf]  ;;  %v7624_v50 = vld [vmem:[%s9238_s14 + $0x158] sm:$0xf0] }
 0x84b   : > { %v12027_v6 = vadd.f32 1.0, %v8560_v13  ;;  %8561 = vpow2.f32 %v7447_v3  ;;  %v12031_v17 = vadd.f32 %v12828_v14, %v12827_v34  ;;  %v5221_v52 = vmul.f32 %v11703_v41, %v4379_v15  ;;  %5804 = vmatpush.bf16.msra.mxu2 %v7635_v44 }
 0x84c   : > { %v4897_v39 = vsub.f32 1.0, %v4896_v43  ;;  %8563 = vrcp.f32 %v11986_v53  ;;  %v7451_v26 = vmul.f32 -1.442695, %v12008_v32  ;;  %v4540_v10 = vadd.f32 %v4539_v2, %v4510_v62  ;;  %v12058_v43 = vpop.f32.mrf.mxu0 }
 0x84d   : > { %v4913_v3 = vmul.f32 %v11942_v38, %v4912_v28  ;;  %8565 = vrcp.f32 %v12017_v25  ;;  %v12046_v41 = vpack.c.bf16 %v5225_v22, %v5221_v52  ;;  %v4480_v44 = vadd.f32 %v4479_v40, %v11917_v1 }
 0x84e   : > { %v4858_v15 = vsel %vm12040_vm8, %v11837_v61, %v12002_v54  ;;  %8567 = vrcp.f32 %v12021_v12  ;;  %v5200_v47 = vmul.f32 %v11956_v21, %v4538_v51  ;;  %v5204_v13 = vmul.f32 %v5172_v42, %v4540_v10  ;;  %5833 = vmatpush.bf16.msra.mxu3 %v7699_v0 }
 0x84f   : > { %v4919_v28 = vand.u32 2147483647, %v11807_v16  ;;  %8569 = vrcp.f32 %v12027_v6  ;;  %v7450_v1 = vmul.f32 -1.442695, %v12031_v17  ;;  %v4482_v40 = vadd.f32 %v4481_v24, %v4452_v45 }
 0x850   : > { %v4898_v61 = vmul.f32 %v11964_v20, %v4897_v39  ;;  %v4921_v54 = vand.u32 2147483648, %v11807_v16  ;;  %8571 = vpow2.f32 %v7451_v26  ;;  %v12062_v21 = vpack.c.bf16 %v5204_v13, %v5200_v47 }
 0x851   : > { %v8562_v42 = vpop.eup %8561  ;;  %v4914_v60 = vadd.f32 %v11942_v38, %v4913_v3  ;;  %vm4916_vm9 = vweird.f32 %v11942_v38  ;;  %5652 = vmatmul.bf16.gmra.mxu0 %v12046_v41  ;;  %v5199_v57 = vmul.f32 %v11930_v63, %v4480_v44  ;;  %v5203_v45 = vmul.f32 %v11967_v59, %v4482_v40  ;;  %v4513_v63 = vpop.f32.mrf.mxu2  ;;  %v7688_v40 = vld [vmem:[%s9238_s14 + $0x1d8] sm:$0xf0] }
 0x852   : > { %v12071_v22 = vpop.eup %8563  ;;  %v12831_v51 = vsel %vm11979_vm4, %v11771_v11, %v11950_v18  ;;  %vm4900_vm10 = vweird.f32 %v11854_v37  ;;  %8573 = vpow2.f32 %v11972_v30  ;;  %5724 = vmatmul.bf16.vlgmr.msrb.gmra.mxu3 %v12062_v21  ;;  %v7627_v59 = vor.u32 %v8046_v7, %v7624_v50  ;;  %v4542_v18 = vpop.f32.mrf.mxu3  ;;  %v7616_v7 = vld [vmem:[%s9238_s14 + $0x148] sm:$0xf0]  ;;  %v8060_v50 = vld [vmem:[%s9238_s14 + $0x1c4] sm:$0xf] }
 0x853   : > { %v4848_v62 = vsel %vm12013_vm6, %v11953_v33, %v12831_v51  ;;  %v12084_v0 = vpop.eup %8565  ;;  %vm4901_vm11 = vweird.f32 %v11964_v20  ;;  %vm4915_vm12 = vweird.f32 %v11807_v16  ;;  %8575 = vpow2.f32 %v7450_v1  ;;  %v4484_v44 = vpop.f32.mrf.mxu1  ;;  %v8062_v1 = vld [vmem:[%s9238_s14 + $0x1d4] sm:$0xf]  ;;  %v7680_v51 = vld [vmem:[%s9238_s14 + $0x1c8] sm:$0xf0] }
 0x854   : > { %v12088_v11 = vpack.c.bf16 %v5203_v45, %v5199_v57  ;;  %v12090_v5 = vpop.eup %8567  ;;  %v4863_v33 = vsel %vm12023_vm7, %v11983_v58, %v4858_v15  ;;  %v4899_v30 = vadd.f32 %v11964_v20, %v4898_v61  ;;  %v12832_v29 = vand.u32 2147483647, %v11854_v37  ;;  %vm12104_vm14 = vmor %vm4915_vm12, %vm4916_vm9  ;;  %5805 = vmatpush.bf16.msra.mxu2 %v7627_v59  ;;  %v12841_v15 = vld [vmem:[#allocation53_spill] sm:$0xff]  ;;  %v12842_v37 = vld [vmem:[#allocation54_spill] sm:$0xff]  ;;  %5681 = vmatmul.bf16.gmra.mxu1 %v11803_v19 }
 0x855   : > { %v4907_v14 = vor.u32 1.1754944e-38, %v4906_v46  ;;  %v12108_v52 = vpop.eup %8569  ;;  %v4918_v58 = vsel %vm12104_vm14, %v11942_v38, %v4914_v60  ;;  %vm12113_vm15 = vcmp.eq.f32.partialorder %v4919_v28, 8.507059e+37  ;;  %v4922_v2 = vor.u32 1.1754944e-38, %v4921_v54  ;;  %vm12124_vm0 = vmor %vm4900_vm10, %vm4901_vm11  ;;  %v4457_v28 = vpop.f32.mrf.mxu0  ;;  %v8044_v61 = vld [vmem:[%s9238_s14 + $0x144] sm:$0xf] }
 0x856   : > { %vm12098_vm13 = vcmp.eq.f32.partialorder %v12832_v29, 8.507059e+37  ;;  %v4971_v46 = vmul.f32 %v12071_v22, %v11986_v53  ;;  %5695 = vmatmul.bf16.vlgmr.msrb.gmra.mxu2 %v12088_v11  ;;  %v8572_v39 = vpop.eup %8571  ;;  %v4964_v26 = vand.u32 2147483647, %v12021_v12  ;;  %v4966_v10 = vand.u32 2147483648, %v12021_v12 }
 0x857   : > { %v5031_v56 = vmul.f32 %v12084_v0, %v12017_v25  ;;  %v12132_v3 = vadd.f32 1.0, %v8562_v42  ;;  %v5175_v47 = vmul.f32 %v4848_v62, %v12841_v15  ;;  %v5176_v24 = vmul.f32 %v4863_v33, %v12842_v37 }
 0x858   : > { %v4956_v13 = vmul.f32 %v12090_v5, %v12021_v12  ;;  %v8574_v54 = vpop.eup %8573  ;;  %v4903_v42 = vsel %vm12124_vm0, %v11964_v20, %v4899_v30  ;;  %v4923_v60 = vsel %vm12113_vm15, %v4922_v2, %v4918_v58  ;;  %v5016_v57 = vmul.f32 %v12108_v52, %v12027_v6 }
 0x859   : > { %v7691_v45 = vor.u32 %v8062_v1, %v7688_v40  ;;  %v8576_v62 = vpop.eup %8575  ;;  %v4972_v59 = vsub.f32 1.0, %v4971_v46  ;;  %v4979_v33 = vand.u32 2147483647, %v11986_v53  ;;  %v12153_v29 = vadd.f32 1.0, %v8572_v39  ;;  %v4515_v36 = vpop.f32.mrf.mxu2 }
 0x85a   : > { %v7619_v16 = vor.u32 %v8044_v61, %v7616_v7  ;;  %vm4960_vm1 = vweird.f32 %v12021_v12  ;;  %v4981_v20 = vand.u32 2147483648, %v11986_v53  ;;  %v5032_v30 = vsub.f32 1.0, %v5031_v56  ;;  %v4544_v37 = vpop.f32.mrf.mxu3  ;;  %v8042_v7 = vld [vmem:[%s9238_s14 + $0x134] sm:$0xf] }
 0x85b   : > { %v4543_v58 = vadd.f32 %v4542_v18, %v4513_v63  ;;  %5834 = vmatpush.bf16.msra.mxu3 %v7691_v45  ;;  %v7683_v2 = vor.u32 %v8060_v50, %v7680_v51  ;;  %v4908_v38 = vsel %vm12098_vm13, %v4907_v14, %v4903_v42  ;;  %v5180_v15 = vmul.f32 %v4923_v60, %v11602_v48  ;;  %v4486_v40 = vpop.f32.mrf.mxu1 }
 0x85c   : > { %v4957_v46 = vsub.f32 1.0, %v4956_v13  ;;  %vm4975_vm2 = vweird.f32 %v11986_v53  ;;  %v12161_v39 = vadd.f32 1.0, %v8574_v54  ;;  %5806 = vmatpush.bf16.msra.mxu2 %v7619_v16  ;;  %v5017_v1 = vsub.f32 1.0, %v5016_v57 }
 0x85d   : > { %8577 = vrcp.f32 %v12132_v3  ;;  %v12164_v56 = vadd.f32 1.0, %v8576_v62  ;;  %v4545_v63 = vadd.f32 %v4544_v37, %v4515_v36  ;;  %v12166_v18 = vor.u32 1.1754944e-38, %v4966_v10  ;;  %v12176_v60 = vpop.f32.mrf.mxu0 }
 0x85e   : > { %v4973_v34 = vmul.f32 %v12071_v22, %v4972_v59  ;;  %8579 = vrcp.f32 %v12153_v29  ;;  %v4485_v48 = vadd.f32 %v4484_v44, %v12058_v43  ;;  %vm4961_vm3 = vweird.f32 %v12090_v5 }
 0x85f   : > { %v5033_v14 = vmul.f32 %v12084_v0, %v5032_v30  ;;  %v5208_v13 = vmul.f32 %v5176_v24, %v4543_v58  ;;  %v5212_v61 = vmul.f32 %v5180_v15, %v4545_v63  ;;  %5835 = vmatpush.bf16.msra.mxu3 %v7683_v2  ;;  %v5179_v54 = vmul.f32 %v4908_v38, %v11508_v27  ;;  %vm12207_vm7 = vmor %vm4960_vm1, %vm4961_vm3 }
 0x860   : > { %v4958_v10 = vmul.f32 %v12090_v5, %v4957_v46  ;;  %8581 = vrcp.f32 %v12161_v39  ;;  %v4487_v42 = vadd.f32 %v4486_v40, %v4457_v28  ;;  %vm4976_vm4 = vweird.f32 %v12071_v22  ;;  %v7608_v28 = vld [vmem:[%s9238_s14 + $0x138] sm:$0xf0]  ;;  %v8058_v40 = vld [vmem:[%s9238_s14 + $0x1b4] sm:$0xf] }
 0x861   : > { %v5018_v43 = vmul.f32 %v12108_v52, %v5017_v1  ;;  %8583 = vrcp.f32 %v12164_v56  ;;  %v12181_v44 = vpack.c.bf16 %v5212_v61, %v5208_v13  ;;  %v4974_v24 = vadd.f32 %v12071_v22, %v4973_v34  ;;  %5753 = vmatmul.bf16.vlgmr.msrb.gmra.mxu0 %v11540_v31  ;;  %v4518_v31 = vpop.f32.mrf.mxu2  ;;  %vm12222_vm10 = vmor %vm4975_vm2, %vm4976_vm4  ;;  %v7672_v61 = vld [vmem:[%s9238_s14 + $0x1b8] sm:$0xf0] }
 0x862   : > { %v5039_v57 = vand.u32 2147483647, %v12017_v25  ;;  %v5207_v27 = vmul.f32 %v5175_v47, %v4485_v48  ;;  %v5211_v45 = vmul.f32 %v5179_v54, %v4487_v42  ;;  %vm12192_vm5 = vcmp.eq.f32.partialorder %v4964_v26, 8.507059e+37  ;;  %v4547_v2 = vpop.f32.mrf.mxu3 }
 0x863   : > { %v12188_v50 = vpop.eup %8577  ;;  %v5034_v62 = vadd.f32 %v12084_v0, %v5033_v14  ;;  %vm5036_vm6 = vweird.f32 %v12084_v0  ;;  %v5041_v59 = vand.u32 2147483648, %v12017_v25  ;;  %5729 = vmatmul.bf16.gmra.mxu3 %v12181_v44  ;;  %v7611_v47 = vor.u32 %v8042_v7, %v7608_v28  ;;  %v4489_v14 = vpop.f32.mrf.mxu1 }
 0x864   : > { %v12200_v16 = vpop.eup %8579  ;;  %v4959_v30 = vadd.f32 %v12090_v5, %v4958_v10  ;;  %vm12211_vm8 = vcmp.eq.f32.partialorder %v4979_v33, 8.507059e+37  ;;  %vm5021_vm9 = vweird.f32 %v12108_v52  ;;  %v12216_v36 = vpack.c.bf16 %v5211_v45, %v5207_v27  ;;  %5782 = vmatmul.bf16.vlgmr.msrb.gmra.mxu1 %v11511_v23  ;;  %v8056_v27 = vld [vmem:[%s9238_s14 + $0x1a4] sm:$0xf] }
 0x865   : > { %v4982_v12 = vor.u32 1.1754944e-38, %v4981_v20  ;;  %v5019_v15 = vadd.f32 %v12108_v52, %v5018_v43  ;;  %vm5020_vm11 = vweird.f32 %v12027_v6  ;;  %vm5035_vm12 = vweird.f32 %v12017_v25  ;;  %5807 = vmatpush.bf16.msra.mxu2 %v7611_v47  ;;  %v4462_v43 = vpop.f32.mrf.mxu0 }
 0x866   : > { %v12229_v33 = vpop.eup %8581  ;;  %v4978_v46 = vsel %vm12222_vm10, %v12071_v22, %v4974_v24  ;;  %v5024_v53 = vand.u32 2147483647, %v12027_v6  ;;  %v5026_v20 = vand.u32 2147483648, %v12027_v6  ;;  %vm12238_vm13 = vmor %vm5035_vm12, %vm5036_vm6  ;;  %v5091_v25 = vmul.f32 %v12188_v50, %v12132_v3  ;;  %5700 = vmatmul.bf16.gmra.mxu2 %v12216_v36 }
 0x867   : > { %v12245_v1 = vpop.eup %8583  ;;  %vm12249_vm14 = vmor %vm5020_vm11, %vm5021_vm9  ;;  %v5038_v6 = vsel %vm12238_vm13, %v12084_v0, %v5034_v62  ;;  %vm12256_vm15 = vcmp.eq.f32.partialorder %v5039_v57, 8.507059e+37  ;;  %v5042_v34 = vor.u32 1.1754944e-38, %v5041_v59  ;;  %v5151_v48 = vmul.f32 %v12200_v16, %v12153_v29  ;;  %v8040_v0 = vld [vmem:[%s9238_s14 + $0x124] sm:$0xf]  ;;  %v7600_v57 = vld [vmem:[%s9238_s14 + $0x128] sm:$0xf0] }
 0x868   : > { %v4963_v13 = vsel %vm12207_vm7, %v12090_v5, %v4959_v30  ;;  %v4983_v54 = vsel %vm12211_vm8, %v4982_v12, %v4978_v46  ;;  %v5023_v10 = vsel %vm12249_vm14, %v12108_v52, %v5019_v15  ;;  %v5076_v42 = vmul.f32 %v12229_v33, %v12161_v39  ;;  %v7664_v5 = vld [vmem:[%s9238_s14 + $0x1a8] sm:$0xf0] }
 0x869   : > { %v7675_v24 = vor.u32 %v8058_v40, %v7672_v61  ;;  %v5043_v23 = vsel %vm12256_vm15, %v5042_v34, %v5038_v6  ;;  %v5092_v45 = vsub.f32 1.0, %v5091_v25  ;;  %v5136_v7 = vmul.f32 %v12245_v1, %v12164_v56  ;;  %v4520_v52 = vpop.f32.mrf.mxu2 }
 0x86a   : > { %v7603_v28 = vor.u32 %v8040_v0, %v7600_v57  ;;  %v5027_v62 = vor.u32 1.1754944e-38, %v5026_v20  ;;  %v5152_v59 = vsub.f32 1.0, %v5151_v48  ;;  %v4548_v47 = vadd.f32 %v4547_v2, %v4518_v31  ;;  %v4549_v38 = vpop.f32.mrf.mxu3 }
 0x86b   : > { %5836 = vmatpush.bf16.msra.mxu3 %v7675_v24  ;;  %v7667_v30 = vor.u32 %v8056_v27, %v7664_v5  ;;  %v4968_v26 = vsel %vm12192_vm5, %v12166_v18, %v4963_v13  ;;  %v5184_v58 = vmul.f32 %v4983_v54, %v12790_v4  ;;  %vm5025_vm0 = vcmp.eq.f32.partialorder %v5024_v53, 8.507059e+37  ;;  %v4491_v51 = vpop.f32.mrf.mxu1  ;;  %v7592_v13 = vld [vmem:[%s9238_s14 + $0x118] sm:$0xf0] }
 0x86c   : > { %5808 = vmatpush.bf16.msra.mxu2 %v7603_v28  ;;  %v5028_v12 = vsel %vm5025_vm0, %v5027_v62, %v5023_v10  ;;  %v5188_v15 = vmul.f32 %v5043_v23, %v11832_v49  ;;  %v5077_v46 = vsub.f32 1.0, %v5076_v42  ;;  %v4550_v37 = vadd.f32 %v4549_v38, %v4520_v52 }
 0x86d   : > { %v5093_v20 = vmul.f32 %v12188_v50, %v5092_v45  ;;  %v5137_v31 = vsub.f32 1.0, %v5136_v7  ;;  %v4490_v2 = vadd.f32 %v4489_v14, %v12176_v60  ;;  %v5153_v25 = vmul.f32 %v12200_v16, %v5152_v59  ;;  %v4465_v0 = vpop.f32.mrf.mxu0 }
 0x86e   : > { %v5216_v22 = vmul.f32 %v5184_v58, %v4548_v47  ;;  %v5220_v18 = vmul.f32 %v5188_v15, %v4550_v37  ;;  %v5183_v4 = vmul.f32 %v4968_v26, %v12807_v8  ;;  %v5187_v53 = vmul.f32 %v5028_v12, %v11862_v9  ;;  %v8038_v9 = vld [vmem:[%s9238_s14 + $0x114] sm:$0xf]  ;;  %v7656_v26 = vld [vmem:[%s9238_s14 + $0x198] sm:$0xf0] }
 0x86f   : > { %5837 = vmatpush.bf16.msra.mxu3 %v7667_v30  ;;  %vm5080_vm1 = vweird.f32 %v12161_v39  ;;  %v4492_v49 = vadd.f32 %v4491_v51, %v4462_v43  ;;  %v5078_v6 = vmul.f32 %v12229_v33, %v5077_v46  ;;  %v5084_v63 = vand.u32 2147483647, %v12161_v39  ;;  %v8054_v30 = vld [vmem:[%s9238_s14 + $0x194] sm:$0xf]  ;;  %v12870_v47 = vld [vmem:[#allocation32_spill] sm:$0xff] }
 0x870   : > { %vm5096_vm2 = vweird.f32 %v12188_v50  ;;  %v12297_v60 = vpack.c.bf16 %v5220_v18, %v5216_v22  ;;  %v5094_v34 = vadd.f32 %v12188_v50, %v5093_v20  ;;  %v5138_v48 = vmul.f32 %v12245_v1, %v5137_v31  ;;  %v12865_v20 = vld [vmem:[#allocation69_spill] sm:$0xff]  ;;  %v7584_v22 = vld [vmem:[%s9238_s14 + $0x108] sm:$0xf0] }
 0x871   : > { %5758 = vmatmul.bf16.gmra.mxu0 %v11736_v35  ;;  %v5215_v8 = vmul.f32 %v5183_v4, %v4490_v2  ;;  %v5219_v14 = vmul.f32 %v5187_v53, %v4492_v49  ;;  %v5101_v40 = vand.u32 2147483648, %v12132_v3  ;;  %v5154_v61 = vadd.f32 %v12200_v16, %v5153_v25  ;;  %v4523_v54 = vpop.f32.mrf.mxu2  ;;  %v8036_v25 = vld [vmem:[%s9238_s14 + $0x104] sm:$0xf] }
 0x872   : > { %vm5156_vm3 = vweird.f32 %v12200_v16  ;;  %v7595_v10 = vor.u32 %v8038_v9, %v7592_v13  ;;  %vm5095_vm4 = vweird.f32 %v12132_v3  ;;  %v5099_v42 = vand.u32 2147483647, %v12132_v3  ;;  %v4552_v24 = vpop.f32.mrf.mxu3 }
 0x873   : > { %5734 = vmatmul.bf16.gmra.mxu3 %v12297_v60  ;;  %v5161_v35 = vand.u32 2147483648, %v12153_v29  ;;  %v12311_v43 = vpack.c.bf16 %v5219_v14, %v5215_v8  ;;  %v5079_v57 = vadd.f32 %v12229_v33, %v5078_v6  ;;  %vm5081_vm5 = vweird.f32 %v12229_v33  ;;  %vm12317_vm6 = vmor %vm5095_vm4, %vm5096_vm2  ;;  %v4494_v59 = vpop.f32.mrf.mxu1  ;;  %v7648_v8 = vld [vmem:[%s9238_s14 + $0x188] sm:$0xf0] }
 0x874   : > { %vm5155_vm7 = vweird.f32 %v12153_v29  ;;  %v5159_v5 = vand.u32 2147483647, %v12153_v29  ;;  %5809 = vmatpush.bf16.msra.mxu2 %v7595_v10  ;;  %v5086_v3 = vand.u32 2147483648, %v12161_v39  ;;  %v5098_v23 = vsel %vm12317_vm6, %v12188_v50, %v5094_v34  ;;  %vm12345_vm10 = vmor %vm5080_vm1, %vm5081_vm5  ;;  %5787 = vmatmul.bf16.gmra.mxu1 %v11570_v55  ;;  %v12866_v14 = vld [vmem:[#allocation66_spill] sm:$0xff]  ;;  %v12867_v10 = vld [vmem:[#allocation56_spill] sm:$0xff] }
 0x875   : > { %v5139_v45 = vadd.f32 %v12245_v1, %v5138_v48  ;;  %vm5141_vm8 = vweird.f32 %v12245_v1  ;;  %vm12331_vm9 = vmor %vm5155_vm7, %vm5156_vm3  ;;  %v5102_v29 = vor.u32 1.1754944e-38, %v5101_v40  ;;  %v5144_v28 = vand.u32 2147483647, %v12164_v56  ;;  %v4467_v4 = vpop.f32.mrf.mxu0  ;;  %v8052_v48 = vld [vmem:[%s9238_s14 + $0x184] sm:$0xf] }
 0x876   : > { %5705 = vmatmul.bf16.gmra.mxu2 %v12311_v43  ;;  %v5146_v62 = vand.u32 2147483648, %v12164_v56  ;;  %v5158_v50 = vsel %vm12331_vm9, %v12200_v16, %v5154_v61  ;;  %vm5100_vm11 = vcmp.eq.f32.partialorder %v5099_v42, 8.507059e+37  ;;  %vm5140_vm12 = vweird.f32 %v12164_v56 }
 0x877   : > { %v5162_v52 = vor.u32 1.1754944e-38, %v5161_v35  ;;  %v5083_v16 = vsel %vm12345_vm10, %v12229_v33, %v5079_v57  ;;  %v5103_v58 = vsel %vm5100_vm11, %v5102_v29, %v5098_v23  ;;  %vm12358_vm13 = vmor %vm5140_vm12, %vm5141_vm8  ;;  %vm5160_vm14 = vcmp.eq.f32.partialorder %v5159_v5, 8.507059e+37  ;;  %v12868_v35 = vld [vmem:[#allocation55_spill] sm:$0xff] }
 0x878   : > { %v7659_v56 = vor.u32 %v8054_v30, %v7656_v26  ;;  %v5087_v38 = vor.u32 1.1754944e-38, %v5086_v3  ;;  %v5143_v55 = vsel %vm12358_vm13, %v12245_v1, %v5139_v45  ;;  %vm5085_vm15 = vcmp.eq.f32.partialorder %v5084_v63, 8.507059e+37 }
 0x879   : > { %v5163_v12 = vsel %vm5160_vm14, %v5162_v52, %v5158_v50  ;;  %v5147_v15 = vor.u32 1.1754944e-38, %v5146_v62  ;;  %v4553_v33 = vadd.f32 %v4552_v24, %v4523_v54  ;;  %v4525_v46 = vpop.f32.mrf.mxu2  ;;  %v5192_v31 = vmul.f32 %v5103_v58, %v12865_v20 }
 0x87a   : > { %5838 = vmatpush.bf16.msra.mxu3 %v7659_v56  ;;  %v5088_v37 = vsel %vm5085_vm15, %v5087_v38, %v5083_v16  ;;  %vm5145_vm0 = vcmp.eq.f32.partialorder %v5144_v28, 8.507059e+37  ;;  %v4554_v2 = vpop.f32.mrf.mxu3  ;;  %v5196_v18 = vmul.f32 %v5163_v12, %v12008_v32  ;;  %v7587_v53 = vor.u32 %v8036_v25, %v7584_v22  ;;  %v12872_v25 = vld [vmem:[#allocation36_spill] sm:$0xff] }
 0x87b   : > { %v5148_v51 = vsel %vm5145_vm0, %v5147_v15, %v5143_v55  ;;  %v4555_v1 = vadd.f32 %v4554_v2, %v4525_v46  ;;  %v4495_v49 = vadd.f32 %v4494_v59, %v4465_v0  ;;  %v5224_v6 = vmul.f32 %v5192_v31, %v4553_v33  ;;  %v4496_v63 = vpop.f32.mrf.mxu1  ;;  %v12871_v55 = vld [vmem:[#allocation34_spill] sm:$0xff] }
 0x87c   : > { %5810 = vmatpush.bf16.msra.mxu2 %v7587_v53  ;;  %v5191_v9 = vmul.f32 %v5088_v37, %v12866_v14  ;;  %v5195_v13 = vmul.f32 %v5148_v51, %v12031_v17  ;;  %v4497_v40 = vadd.f32 %v4496_v63, %v4467_v4  ;;  %v7651_v61 = vor.u32 %v8052_v48, %v7648_v8 }
 0x87d   : > { %v5228_v34 = vmul.f32 %v5196_v18, %v4555_v1 }
 0x87e   : > { %v5223_v32 = vmul.f32 %v5191_v9, %v4495_v49  ;;  %v5227_v42 = vmul.f32 %v5195_v13, %v4497_v40  ;;  %5839 = vmatpush.bf16.msra.mxu3 %v7651_v61  ;;  %v12874_v40 = vld [vmem:[#allocation40_spill] sm:$0xff] }
 0x87f   : > { %v5244_v54 = vpack.c.bf16 %v5228_v34, %v5224_v6  ;;  %v12873_v6 = vld [vmem:[#allocation38_spill] sm:$0xff] }
 0x880   : > { %v5243_v0 = vpack.c.bf16 %v5227_v42, %v5223_v32 }
 0x881   : > { %5763 = vmatmul.bf16.gmra.mxu0 %v12867_v10 }
 0x883   : > { %5739 = vmatmul.bf16.gmra.mxu3 %v5244_v54 }
 0x884   : > { %5792 = vmatmul.bf16.gmra.mxu1 %v12868_v35 }
 0x886   : > { %5710 = vmatmul.bf16.gmra.mxu2 %v5243_v0 }
 0x891   : > { %5768 = vmatmul.bf16.gmra.mxu0 %v12046_v41 }
 0x893   : > { %5840 = vmatmul.bf16.vlgmr.msra.gmra.mxu3 %v12062_v21 }
 0x894   : > { %5797 = vmatmul.bf16.gmra.mxu1 %v11803_v19 }
 0x896   : > { %5811 = vmatmul.bf16.vlgmr.msra.gmra.mxu2 %v12088_v11 }
 0x899   : > { %v5638_v24 = vpop.f32.mrf.mxu0 }
 0x89f   : > { %v5667_v17 = vpop.f32.mrf.mxu1 }
 0x8a0   : > { %v5668_v19 = vadd.f32 %v5667_v17, %v5638_v24  ;;  %v12875_v24 = vld [vmem:[#allocation42_spill] sm:$0xff] }
 0x8a1   : > { %v5640_v27 = vpop.f32.mrf.mxu0 }
 0x8a3   : > { %5845 = vmatmul.bf16.gmra.mxu3 %v12181_v44 }
 0x8a6   : > { %5816 = vmatmul.bf16.gmra.mxu2 %v12216_v36  ;;  %v12869_v36 = vld [vmem:[#allocation30_spill] sm:$0xff] }
 0x8a7   : > { %v5669_v57 = vpop.f32.mrf.mxu1 }
 0x8ab   : > { %v5643_v21 = vpop.f32.mrf.mxu0 }
 0x8b1   : > { %v5672_v41 = vpop.f32.mrf.mxu1 }
 0x8b2   : > { %v5673_v26 = vadd.f32 %v5672_v41, %v5643_v21 }
 0x8b3   : > { %5850 = vmatmul.bf16.gmra.mxu3 %v12297_v60  ;;  %v5645_v3 = vpop.f32.mrf.mxu0 }
 0x8b6   : > { %5821 = vmatmul.bf16.gmra.mxu2 %v12311_v43  ;;  %v5670_v43 = vadd.f32 %v5669_v57, %v5640_v27 }
 0x8b9   : > { %v5674_v5 = vpop.f32.mrf.mxu1 }
 0x8ba   : > { %v5675_v33 = vadd.f32 %v5674_v5, %v5645_v3 }
 0x8be   : > { %v5648_v28 = vpop.f32.mrf.mxu0 }
 0x8c1   : > { %v5677_v29 = vpop.f32.mrf.mxu1 }
 0x8c2   : > { %v5678_v18 = vadd.f32 %v5677_v29, %v5648_v28 }
 0x8c3   : > { %5855 = vmatmul.bf16.gmra.mxu3 %v5244_v54 }
 0x8c6   : > { %5826 = vmatmul.bf16.gmra.mxu2 %v5243_v0  ;;  %v5650_v56 = vpop.f32.mrf.mxu0 }
 0x8c9   : > { %v5679_v16 = vpop.f32.mrf.mxu1 }
 0x8ca   : > { %v5680_v8 = vadd.f32 %v5679_v16, %v5650_v56 }
 0x8ce   : > { %v5653_v2 = vpop.f32.mrf.mxu0 }
 0x8d1   : > { %v5682_v20 = vpop.f32.mrf.mxu1 }
 0x8d2   : > { %v5683_v32 = vadd.f32 %v5682_v20, %v5653_v2  ;;  %v12879_v20 = vld [vmem:[#allocation35_spill] sm:$0xff] }
 0x8d5   : > { %v5725_v11 = vpop.f32.mrf.mxu3 }
 0x8d6   : > { %v5655_v48 = vpop.f32.mrf.mxu0 }
 0x8d9   : > { %v5696_v23 = vpop.f32.mrf.mxu2  ;;  %v5684_v49 = vpop.f32.mrf.mxu1 }
 0x8da   : > { %v5697_v44 = vadd.f32 %v5696_v23, %v5668_v19  ;;  %v5685_v41 = vadd.f32 %v5684_v49, %v5655_v48  ;;  %v12876_v23 = vld [vmem:[#allocation44_spill] sm:$0xff]  ;;  %v12880_v49 = vld [vmem:[#allocation37_spill] sm:$0xff] }
 0x8dc   : > { %v5726_v45 = vadd.f32 %v5725_v11, %v5697_v44 }
 0x8dd   : > { %v5727_v60 = vpop.f32.mrf.mxu3 }
 0x8de   : > { %v5861_v7 = vadd.f32 %v5726_v45, %v12869_v36  ;;  %v5754_v42 = vpop.f32.mrf.mxu0 }
 0x8e0   : > { %5877 = vst [vmem:[#allocation2 + $0x30] sm:$0xff] %v5861_v7 }
 0x8e1   : > { %v5698_v62 = vpop.f32.mrf.mxu2  ;;  %v5783_v10 = vpop.f32.mrf.mxu1 }
 0x8e2   : > { %v5699_v50 = vadd.f32 %v5698_v62, %v5670_v43  ;;  %v5784_v36 = vadd.f32 %v5783_v10, %v5754_v42  ;;  %v12877_v62 = vld [vmem:[#allocation31_spill] sm:$0xff] }
 0x8e4   : > { %v5728_v59 = vadd.f32 %v5727_v60, %v5699_v50 }
 0x8e6   : > { %v12385_v52 = vadd.f32 %v5728_v59, %v12870_v47  ;;  %v5730_v30 = vpop.f32.mrf.mxu3  ;;  %v5756_v3 = vpop.f32.mrf.mxu0 }
 0x8e8   : > { %5879 = vst [vmem:[#allocation2 + $0x58] sm:$0xff] %v12385_v52 }
 0x8e9   : > { %v5701_v58 = vpop.f32.mrf.mxu2  ;;  %v5785_v21 = vpop.f32.mrf.mxu1 }
 0x8ea   : > { %v5702_v39 = vadd.f32 %v5701_v58, %v5673_v26  ;;  %v5786_v47 = vadd.f32 %v5785_v21, %v5756_v3 }
 0x8ec   : > { %v5731_v38 = vadd.f32 %v5730_v30, %v5702_v39  ;;  %v12878_v39 = vld [vmem:[#allocation33_spill] sm:$0xff] }
 0x8ee   : > { %v12389_v12 = vadd.f32 %v5731_v38, %v12871_v55  ;;  %v5732_v15 = vpop.f32.mrf.mxu3  ;;  %v5759_v28 = vpop.f32.mrf.mxu0 }
 0x8f0   : > { %5881 = vst [vmem:[#allocation2 + $0x50] sm:$0xff] %v12389_v12 }
 0x8f1   : > { %v5703_v46 = vpop.f32.mrf.mxu2  ;;  %v5788_v29 = vpop.f32.mrf.mxu1 }
 0x8f2   : > { %v5704_v37 = vadd.f32 %v5703_v46, %v5675_v33 }
 0x8f4   : > { %v5733_v31 = vadd.f32 %v5732_v15, %v5704_v37  ;;  %v5789_v15 = vadd.f32 %v5788_v29, %v5759_v28 }
 0x8f6   : > { %v12393_v22 = vadd.f32 %v5733_v31, %v12872_v25  ;;  %v5735_v51 = vpop.f32.mrf.mxu3  ;;  %v5761_v55 = vpop.f32.mrf.mxu0 }
 0x8f8   : > { %5883 = vst [vmem:[#allocation2 + $0x8] sm:$0xff] %v12393_v22 }
 0x8f9   : > { %v5706_v4 = vpop.f32.mrf.mxu2  ;;  %v5790_v58 = vpop.f32.mrf.mxu1 }
 0x8fa   : > { %v5707_v1 = vadd.f32 %v5706_v4, %v5678_v18 }
 0x8fc   : > { %v5736_v53 = vadd.f32 %v5735_v51, %v5707_v1  ;;  %v5791_v51 = vadd.f32 %v5790_v58, %v5761_v55 }
 0x8fe   : > { %v5869_v63 = vadd.f32 %v5736_v53, %v12873_v6  ;;  %v5737_v34 = vpop.f32.mrf.mxu3  ;;  %v5764_v18 = vpop.f32.mrf.mxu0 }
 0x900   : > { %5885 = vst [vmem:[#allocation2 + $0x40] sm:$0xff] %v5869_v63 }
 0x901   : > { %v5708_v14 = vpop.f32.mrf.mxu2  ;;  %v5793_v25 = vpop.f32.mrf.mxu1 }
 0x902   : > { %v5709_v9 = vadd.f32 %v5708_v14, %v5680_v8 }
 0x904   : > { %v5738_v13 = vadd.f32 %v5737_v34, %v5709_v9  ;;  %v5794_v34 = vadd.f32 %v5793_v25, %v5764_v18 }
 0x906   : > { %v12398_v61 = vadd.f32 %v5738_v13, %v12874_v40  ;;  %v5740_v54 = vpop.f32.mrf.mxu3  ;;  %v5766_v9 = vpop.f32.mrf.mxu0  ;;  %v12881_v40 = vld [vmem:[#allocation39_spill] sm:$0xff] }
 0x908   : > { %5887 = vst [vmem:[#allocation2 + $0x10] sm:$0xff] %v12398_v61 }
 0x909   : > { %v5711_v0 = vpop.f32.mrf.mxu2  ;;  %v5795_v48 = vpop.f32.mrf.mxu1 }
 0x90a   : > { %v5712_v35 = vadd.f32 %v5711_v0, %v5683_v32  ;;  %v5796_v32 = vadd.f32 %v5795_v48, %v5766_v9 }
 0x90c   : > { %v5741_v17 = vadd.f32 %v5740_v54, %v5712_v35 }
 0x90e   : > { %v12402_v57 = vadd.f32 %v5741_v17, %v12875_v24  ;;  %v5742_v27 = vpop.f32.mrf.mxu3  ;;  %v5769_v24 = vpop.f32.mrf.mxu0 }
 0x910   : > { %5889 = vst [vmem:[#allocation2 + $0x60] sm:$0xff] %v12402_v57 }
 0x911   : > { %v5713_v5 = vpop.f32.mrf.mxu2  ;;  %v5798_v35 = vpop.f32.mrf.mxu1 }
 0x912   : > { %v5714_v11 = vadd.f32 %v5713_v5, %v5685_v41  ;;  %v5799_v5 = vadd.f32 %v5798_v35, %v5769_v24 }
 0x914   : > { %v5743_v19 = vadd.f32 %v5742_v27, %v5714_v11  ;;  %v12882_v27 = vld [vmem:[#allocation41_spill] sm:$0xff] }
 0x916   : > { %v12406_v44 = vadd.f32 %v5743_v19, %v12876_v23  ;;  %v5841_v45 = vpop.f32.mrf.mxu3 }
 0x918   : > { %5891 = vst [vmem:[#allocation2 + $0x78] sm:$0xff] %v12406_v44 }
 0x919   : > { %v5812_v7 = vpop.f32.mrf.mxu2  ;;  %v5800_v23 = vpop.f32.mrf.mxu1 }
 0x91a   : > { %v5813_v60 = vadd.f32 %v5812_v7, %v5784_v36  ;;  %v5771_v7 = vpop.f32.mrf.mxu0 }
 0x91c   : > { %v5842_v43 = vadd.f32 %v5841_v45, %v5813_v60  ;;  %v12883_v45 = vld [vmem:[#allocation43_spill] sm:$0xff]  ;;  %v5801_v60 = vadd.f32 %v5800_v23, %v5771_v7 }
 0x91e   : > { %v5862_v50 = vadd.f32 %v5842_v43, %v12877_v62  ;;  %v5843_v59 = vpop.f32.mrf.mxu3 }
 0x920   : > { %5878 = vst [vmem:[#allocation2] sm:$0xff] %v5862_v50  ;;  %v12884_v50 = vld [vmem:[#allocation45_spill] sm:$0xff] }
 0x921   : > { %v5814_v30 = vpop.f32.mrf.mxu2 }
 0x922   : > { %v5815_v26 = vadd.f32 %v5814_v30, %v5786_v47 }
 0x924   : > { %v5844_v16 = vadd.f32 %v5843_v59, %v5815_v26 }
 0x926   : > { %v12411_v56 = vadd.f32 %v5844_v16, %v12878_v39  ;;  %v5846_v38 = vpop.f32.mrf.mxu3 }
 0x928   : > { %5880 = vst [vmem:[#allocation2 + $0x18] sm:$0xff] %v12411_v56 }
 0x929   : > { %v5817_v33 = vpop.f32.mrf.mxu2 }
 0x92a   : > { %v5818_v46 = vadd.f32 %v5817_v33, %v5789_v15 }
 0x92c   : > { %v5847_v37 = vadd.f32 %v5846_v38, %v5818_v46 }
 0x92e   : > { %v12415_v31 = vadd.f32 %v5847_v37, %v12879_v20  ;;  %v5848_v2 = vpop.f32.mrf.mxu3 }
 0x930   : > { %5882 = vst [vmem:[#allocation2 + $0x68] sm:$0xff] %v12415_v31 }
 0x931   : > { %v5819_v4 = vpop.f32.mrf.mxu2 }
 0x932   : > { %v5820_v1 = vadd.f32 %v5819_v4, %v5791_v51 }
 0x934   : > { %v5849_v53 = vadd.f32 %v5848_v2, %v5820_v1 }
 0x936   : > { %v12419_v6 = vadd.f32 %v5849_v53, %v12880_v49  ;;  %v5851_v63 = vpop.f32.mrf.mxu3 }
 0x938   : > { %5884 = vst [vmem:[#allocation2 + $0x48] sm:$0xff] %v12419_v6 }
 0x939   : > { %v5822_v8 = vpop.f32.mrf.mxu2 }
 0x93a   : > { %v5823_v14 = vadd.f32 %v5822_v8, %v5794_v34 }
 0x93c   : > { %v5852_v13 = vadd.f32 %v5851_v63, %v5823_v14 }
 0x93e   : > { %v5870_v54 = vadd.f32 %v5852_v13, %v12881_v40  ;;  %v5853_v10 = vpop.f32.mrf.mxu3 }
 0x940   : > { %5886 = vst [vmem:[#allocation2 + $0x20] sm:$0xff] %v5870_v54 }
 0x941   : > { %v5824_v42 = vpop.f32.mrf.mxu2 }
 0x942   : > { %v5825_v0 = vadd.f32 %v5824_v42, %v5796_v32 }
 0x944   : > { %v5854_v17 = vadd.f32 %v5853_v10, %v5825_v0 }
 0x946   : > { %v12424_v41 = vadd.f32 %v5854_v17, %v12882_v27  ;;  %v5856_v21 = vpop.f32.mrf.mxu3 }
 0x948   : > { %5888 = vst [vmem:[#allocation2 + $0x38] sm:$0xff] %v12424_v41 }
 0x949   : > { %v5827_v11 = vpop.f32.mrf.mxu2 }
 0x94a   : > { %v5828_v3 = vadd.f32 %v5827_v11, %v5799_v5 }
 0x94c   : > { %v5857_v19 = vadd.f32 %v5856_v21, %v5828_v3 }
 0x94e   : > { %v12428_v36 = vadd.f32 %v5857_v19, %v12883_v45  ;;  %v5858_v43 = vpop.f32.mrf.mxu3 }
 0x950   : > { %5890 = vst [vmem:[#allocation2 + $0x70] sm:$0xff] %v12428_v36 }
 0x951   : > { %v5829_v29 = vpop.f32.mrf.mxu2 }
 0x952   : > { %v5830_v28 = vadd.f32 %v5829_v29, %v5801_v60 }
 0x954   : > { %v5859_v62 = vadd.f32 %v5858_v43, %v5830_v28  ;;  %5896 = sbr.rel (%p7708_p8) target bundleno = 2556 (0x9fc), region = 108 }
 0x956   : > { %v12432_v59 = vadd.f32 %v5859_v62, %v12884_v50 }
 0x958   : > { %5892 = vst [vmem:[#allocation2 + $0x28] sm:$0xff] %v12432_v59 }
 0x959   : > { %v5905_v47 = vmul.f32 %v12402_v57, %v12402_v57  ;;  %v5906_v30 = vmul.f32 %v12428_v36, %v12428_v36  ;;  %v5901_v26 = vmul.f32 %v12393_v22, %v12393_v22  ;;  %v5902_v16 = vmul.f32 %v12419_v6, %v12419_v6  ;;  %v12885_v49 = vld [vmem:[#allocation29_spill] sm:$0xff] }
 0x95a   : > { %v5897_v58 = vmul.f32 %v12385_v52, %v12385_v52  ;;  %v5898_v39 = vmul.f32 %v12411_v56, %v12411_v56  ;;  %v5907_v33 = vmul.f32 %v12406_v44, %v12406_v44  ;;  %v5908_v46 = vmul.f32 %v12432_v59, %v12432_v59  ;;  %v6011_v40 = vld [vmem:[%s12886_s27] sm:$0x3] }
 0x95b   : > { %v5921_v38 = vadd.f32 %v5906_v30, %v5905_v47  ;;  %v5915_v55 = vadd.f32 %v5902_v16, %v5901_v26  ;;  %v5903_v37 = vmul.f32 %v12398_v61, %v12398_v61  ;;  %v5904_v20 = vmul.f32 %v12424_v41, %v12424_v41 }
 0x95c   : > { %v5909_v15 = vadd.f32 %v5898_v39, %v5897_v58  ;;  %v5899_v2 = vmul.f32 %v12389_v12, %v12389_v12  ;;  %v5900_v25 = vmul.f32 %v12415_v31, %v12415_v31  ;;  %v5924_v51 = vadd.f32 %v5908_v46, %v5907_v33 }
 0x95d   : > { %5922 = vadd.xlane.f32.xlu2 %v5921_v38  ;;  %5916 = vadd.xlane.f32.xlu1 %v5915_v55  ;;  %v5918_v18 = vadd.f32 %v5904_v20, %v5903_v37  ;;  %v6012_v32 = vunpack.c.l.bf16 %v6011_v40 }
 0x95e   : > { %5910 = vadd.xlane.f32.xlu0 %v5909_v15  ;;  %v5912_v4 = vadd.f32 %v5900_v25, %v5899_v2 }
 0x95f   : > { %v6014_v23 = vperm.slane %v6012_v32, 0  ;;  %v6015_v45 = vperm.slane %v6012_v32, 2 }
 0x961   : > { %v12478_v50 = vperm.slane %v6014_v23, 0  ;;  %v12480_v47 = vperm.slane %v6015_v45, 0 }
 0x965   : > { %5925 = vadd.xlane.f32.xlu2 %v5924_v51  ;;  %5919 = vadd.xlane.f32.xlu1 %v5918_v18 }
 0x966   : > { %5913 = vadd.xlane.f32.xlu0 %v5912_v4 }
 0x9d0   : > { %v5923_v1 = vpop.xlane.xlu2 %5922  ;;  %v5917_v53 = vpop.xlane.xlu1 %5916 }
 0x9d1   : > { %v5931_v63 = vmul.f32 %v5923_v1, %v12885_v49  ;;  %v5929_v34 = vmul.f32 %v5917_v53, %v12885_v49  ;;  %v5911_v48 = vpop.xlane.xlu0 %5910 }
 0x9d2   : > { %v5927_v8 = vmul.f32 %v5911_v48, %v12885_v49 }
 0x9d3   : > { %v5937_v14 = vadd.f32 1e-06, %v5931_v63  ;;  %v5935_v9 = vadd.f32 1e-06, %v5929_v34 }
 0x9d4   : > { %v5933_v13 = vadd.f32 1e-06, %v5927_v8 }
 0x9d5   : > { %8601 = vrsqrt.f32 %v5937_v14  ;;  %vm5985_vm1 = vweird.f32 %v5937_v14  ;;  %vm5965_vm3 = vweird.f32 %v5935_v9 }
 0x9d6   : > { %8603 = vrsqrt.f32 %v5935_v9  ;;  %vm5945_vm5 = vweird.f32 %v5933_v13 }
 0x9d7   : > { %8605 = vrsqrt.f32 %v5933_v13 }
 0x9d8   : > { %v5926_v54 = vpop.xlane.xlu2 %5925  ;;  %v5920_v10 = vpop.xlane.xlu1 %5919 }
 0x9d9   : > { %v5932_v42 = vmul.f32 %v5926_v54, %v12885_v49  ;;  %v5930_v0 = vmul.f32 %v5920_v10, %v12885_v49  ;;  %v5914_v35 = vpop.xlane.xlu0 %5913 }
 0x9da   : > { %v5928_v17 = vmul.f32 %v5914_v35, %v12885_v49 }
 0x9db   : > { %v8602_v24 = vpop.eup %8601  ;;  %v12469_v27 = vadd.f32 1e-06, %v5932_v42  ;;  %v12471_v21 = vadd.f32 1e-06, %v5930_v0 }
 0x9dc   : > { %v8604_v5 = vpop.eup %8603  ;;  %v5980_v11 = vmul.f32 %v8602_v24, %v5937_v14  ;;  %v12473_v3 = vadd.f32 1e-06, %v5928_v17  ;;  %vm5986_vm2 = vweird.f32 %v8602_v24 }
 0x9dd   : > { %v8606_v19 = vpop.eup %8605  ;;  %v5960_v7 = vmul.f32 %v8604_v5, %v5935_v9  ;;  %8607 = vrsqrt.f32 %v12469_v27  ;;  %vm5966_vm4 = vweird.f32 %v8604_v5  ;;  %vm5987_vm7 = vmor %vm5985_vm1, %vm5986_vm2  ;;  %vm5995_vm8 = vweird.f32 %v12469_v27 }
 0x9de   : > { %v5981_v60 = vmul.f32 %v8602_v24, %v5980_v11  ;;  %v5940_v29 = vmul.f32 %v8606_v19, %v5933_v13  ;;  %8609 = vrsqrt.f32 %v12471_v21  ;;  %vm5946_vm6 = vweird.f32 %v8606_v19  ;;  %vm5967_vm10 = vmor %vm5965_vm3, %vm5966_vm4 }
 0x9df   : > { %v5961_v43 = vmul.f32 %v8604_v5, %v5960_v7  ;;  %8611 = vrsqrt.f32 %v12473_v3  ;;  %vm5947_vm11 = vmor %vm5945_vm5, %vm5946_vm6  ;;  %vm5975_vm14 = vweird.f32 %v12471_v21  ;;  %vm5955_vm1 = vweird.f32 %v12473_v3 }
 0x9e0   : > { %v5982_v28 = vmul.f32 0.5, %v5981_v60  ;;  %v5941_v62 = vmul.f32 %v8606_v19, %v5940_v29 }
 0x9e1   : > { %v5962_v30 = vmul.f32 0.5, %v5961_v43 }
 0x9e2   : > { %v5983_v26 = vsub.f32 1.5, %v5982_v28  ;;  %v5942_v16 = vmul.f32 0.5, %v5941_v62 }
 0x9e3   : > { %v8608_v58 = vpop.eup %8607  ;;  %v5963_v39 = vsub.f32 1.5, %v5962_v30 }
 0x9e4   : > { %v8610_v38 = vpop.eup %8609  ;;  %v5984_v55 = vmul.f32 %v8602_v24, %v5983_v26  ;;  %v5943_v15 = vsub.f32 1.5, %v5942_v16  ;;  %v5990_v33 = vmul.f32 %v8608_v58, %v12469_v27  ;;  %vm5996_vm9 = vweird.f32 %v8608_v58 }
 0x9e5   : > { %v8612_v46 = vpop.eup %8611  ;;  %v5964_v37 = vmul.f32 %v8604_v5, %v5963_v39  ;;  %v5970_v20 = vmul.f32 %v8610_v38, %v12471_v21  ;;  %vm5976_vm12 = vweird.f32 %v8610_v38  ;;  %vm5997_vm13 = vmor %vm5995_vm8, %vm5996_vm9 }
 0x9e6   : > { %v5988_v2 = vsel %vm5987_vm7, %v8602_v24, %v5984_v55  ;;  %v5944_v25 = vmul.f32 %v8606_v19, %v5943_v15  ;;  %v5991_v51 = vmul.f32 %v8608_v58, %v5990_v33  ;;  %v5950_v18 = vmul.f32 %v8612_v46, %v12473_v3  ;;  %vm5977_vm15 = vmor %vm5975_vm14, %vm5976_vm12 }
 0x9e7   : > { %v6007_v4 = vmul.f32 %v5988_v2, %v12402_v57  ;;  %v6008_v1 = vmul.f32 %v5988_v2, %v12428_v36  ;;  %v5968_v53 = vsel %vm5967_vm10, %v8604_v5, %v5964_v37  ;;  %v5971_v49 = vmul.f32 %v8610_v38, %v5970_v20 }
 0x9e8   : > { %v6003_v63 = vmul.f32 %v5968_v53, %v12393_v22  ;;  %v6004_v34 = vmul.f32 %v5968_v53, %v12419_v6  ;;  %v5948_v48 = vsel %vm5947_vm11, %v8606_v19, %v5944_v25  ;;  %v5992_v8 = vmul.f32 0.5, %v5991_v51 }
 0x9e9   : > { %v6028_v14 = vmul.f32 %v12478_v50, %v6007_v4  ;;  %v6029_v9 = vmul.f32 %v12480_v47, %v6008_v1  ;;  %v5999_v40 = vmul.f32 %v5948_v48, %v12385_v52  ;;  %v6000_v57 = vmul.f32 %v5948_v48, %v12411_v56 }
 0x9ea   : > { %v6024_v36 = vmul.f32 %v12478_v50, %v6003_v63  ;;  %v6025_v13 = vmul.f32 %v12480_v47, %v6004_v34  ;;  %v5993_v54 = vsub.f32 1.5, %v5992_v8  ;;  %v5972_v10 = vmul.f32 0.5, %v5971_v49 }
 0x9eb   : > { %v6039_v32 = vpack.c.bf16 %v6029_v9, %v6028_v14  ;;  %v6020_v22 = vmul.f32 %v12478_v50, %v5999_v40  ;;  %v6021_v6 = vmul.f32 %v12480_v47, %v6000_v57  ;;  %v5951_v42 = vmul.f32 %v8612_v46, %v5950_v18 }
 0x9ec   : > { %v6034_v0 = vpack.c.bf16 %v6025_v13, %v6024_v36  ;;  %v5994_v35 = vmul.f32 %v8608_v58, %v5993_v54  ;;  %v5973_v17 = vsub.f32 1.5, %v5972_v10  ;;  %vm5956_vm0 = vweird.f32 %v8612_v46 }
 0x9ed   : > { %6043 = vst [vmem:[#allocation20 + $0x28] sm:$0xff] %v6039_v32  ;;  %v6032_v52 = vpack.c.bf16 %v6021_v6, %v6020_v22  ;;  %v5952_v56 = vmul.f32 0.5, %v5951_v42  ;;  %vm5957_vm2 = vmor %vm5955_vm1, %vm5956_vm0 }
 0x9ee   : > { %6037 = vst [vmem:[#allocation20 + $0x10] sm:$0xff] %v6034_v0  ;;  %v5998_v24 = vsel %vm5997_vm13, %v8608_v58, %v5994_v35  ;;  %v5974_v5 = vmul.f32 %v8610_v38, %v5973_v17 }
 0x9ef   : > { %6035 = vst [vmem:[#allocation20] sm:$0xff] %v6032_v52  ;;  %v6009_v11 = vmul.f32 %v5998_v24, %v12406_v44  ;;  %v6010_v19 = vmul.f32 %v5998_v24, %v12432_v59  ;;  %v5953_v23 = vsub.f32 1.5, %v5952_v56 }
 0x9f0   : > { %v5978_v45 = vsel %vm5977_vm15, %v8610_v38, %v5974_v5 }
 0x9f1   : > { %v6030_v7 = vmul.f32 %v12478_v50, %v6009_v11  ;;  %v6031_v27 = vmul.f32 %v12480_v47, %v6010_v19  ;;  %v6005_v60 = vmul.f32 %v5978_v45, %v12398_v61  ;;  %v6006_v29 = vmul.f32 %v5978_v45, %v12424_v41 }
 0x9f2   : > { %v5954_v43 = vmul.f32 %v8612_v46, %v5953_v23 }
 0x9f3   : > { %v6040_v21 = vpack.c.bf16 %v6031_v27, %v6030_v7  ;;  %v6026_v44 = vmul.f32 %v12478_v50, %v6005_v60  ;;  %v6027_v59 = vmul.f32 %v12480_v47, %v6006_v29 }
 0x9f4   : > { %v5958_v28 = vsel %vm5957_vm2, %v8612_v46, %v5954_v43 }
 0x9f5   : > { %6044 = vst [vmem:[#allocation20 + $0x30] sm:$0xff] %v6040_v21  ;;  %v6038_v62 = vpack.c.bf16 %v6027_v59, %v6026_v44  ;;  %v6001_v30 = vmul.f32 %v5958_v28, %v12389_v12  ;;  %v6002_v26 = vmul.f32 %v5958_v28, %v12415_v31 }
 0x9f7   : > { %6042 = vst [vmem:[#allocation20 + $0x20] sm:$0xff] %v6038_v62  ;;  %v6022_v61 = vmul.f32 %v12478_v50, %v6001_v30  ;;  %v6023_v41 = vmul.f32 %v12480_v47, %v6002_v26 }
 0x9f9   : > { %v6033_v16 = vpack.c.bf16 %v6023_v41, %v6022_v61 }
 0x9fb   : > { %6036 = vst [vmem:[#allocation20 + $0x8] sm:$0xff] %v6033_v16 }
 0x9fc PF: > { %p8229_p9 = scmp.eq.s32.totalorder %s9033_s25, 1  ;;  %s8946_s8 = smov [#allocation20]  }
 0x9fd   : > { %s6050_s23 = sshll.u32 %s8946_s8, 4  ;;  %s12887_s28 = sld [smem:[#allocation85_spill]]  ;;  %s6051_s23 = int_to_ptr.vmem [resolvable:$true] %s6050_s23 }
 0x9fe   : > { %s8947_s9 = smov 128   ;;  %s8948_s29 = smov 8  }
 0xa03   : > { %s6052_s26 = sshll.u32 %s12887_s28, 4  ;;  %s6053_s26 = int_to_ptr.hbm [resolvable:$true] %s6052_s26 }
 0xa04   : > { %8191 = dma.vmem_to_hbm [thread:$0]  (%p8229_p9), %s6051_s23, 1024, %s6053_s26, [#allocation10], %s8947_s9, %s8947_s9, %s8948_s29  }
 0xa05   : > { %8914 = dma.done.wait (%p8229_p9), [#allocation10], 1024  }
 0xa06   : > { %8916 = vsyncadd (%p8229_p9), [#allocation10], 4294966272 }
 0xa07 PF: > { %s12888_s24 = sld [smem:[#allocation27_spill]]  ;;  %s12891_s21 = smov %s8923_s22 }
 0xa08   : > { %s12889_s19 = sld [smem:[#allocation26_spill]] }
 0xa09   : > { %s12890_s23 = sld [smem:[#allocation28_spill]] }
 0xa0d   : > { %p23_p10 = scmp.ge.s32.totalorder %s12888_s24, 4  }
 0xa0e   : > { %s12892_s22 = smov %s12889_s19 }
 0xa0f   :  { %25 = sbr.rel (!%p23_p10) target bundleno = 14 (0xe), region = 171 }
 0xa14   :  { %6069 = vsyncpa [#allocation9], 1 }
 0xa15   :  { %6071 = vsyncpa [#allocation9 + $0x1], 1 }
 0xa16   :  { %6072 = vsyncpa [#allocation12], 1 }
 0xa17   :  { %6073 = vsyncpa [#allocation15], 1 }
 0xa18   :  { %6074 = vsyncpa [#allocation10], 1 }
 0xa19   :  { %6076 = vsyncpa [#allocation10 + $0x1], 1 }

</bundles_post_ra>
